<compile_context>
chip_gen: v7x
topology: tpu7x:2x2x1
jax: 0.10.0
libtpu: 0.0.40
codegen_flags: <defaults>
</compile_context>

<pallas_src>
import jax
import jax.numpy as jnp
from jax.experimental import pallas as pl
from jax.experimental.pallas import tpu as pltpu


# ----------------------------------------------------------------------------
# Fused encoder kernel (one grid step = BBLK batch elements, fully in VMEM)
# ----------------------------------------------------------------------------
def encoder_kernel(x_ref, lin_w_ref, lin_b_ref,
                   rb1_s_ref, rb1_t_ref, rb1_w_ref, rb1_b_ref,
                   ds_w_ref, ds_b_ref,
                   rb2_s_ref, rb2_t_ref, rb2_w_ref, rb2_b_ref,
                   o_ref):
    BBLK, T, Din = x_ref.shape
    _, T2, C = o_ref.shape
    M1, M2 = BBLK * T, BBLK * T2

    # Boundary masks on the flattened (BBLK*T, C) layout, hoisted (built once per
    # grid step).  (row % T) == 0 / T-1 marks per-element sequence boundaries, so
    # the cross-batch leakage of a flattened roll is always masked to the conv's
    # zero padding.
    row1 = jax.lax.broadcasted_iota(jnp.int32, (M1, C), 0)
    t1 = row1 % T
    first1, last1 = t1 == 0, t1 == T - 1
    row2 = jax.lax.broadcasted_iota(jnp.int32, (M2, C), 0)
    t2 = row2 % T2
    first2, last2 = t2 == 0, t2 == T2 - 1

    def shift_prev(a, first):
        # a_prev[t] = a[t-1], zero at t=0   (XLU roll + VPU mask; no (T,T) matmul)
        return jnp.where(first, 0.0, pltpu.roll(a, 1, axis=0))

    def shift_next(a, last):
        # a_next[t] = a[t+1], zero at t=T-1 (roll by M-1 == roll by -1)
        return jnp.where(last, 0.0, pltpu.roll(a, a.shape[0] - 1, axis=0))

    def conv3(a, w2d, b_row, first, last):
        # Fused 3-tap conv, padding=1: one (M, 3C) @ (3C, C) bf16 MXU matmul, f32 acc.
        a3 = jnp.concatenate([shift_prev(a, first), a, shift_next(a, last)], axis=-1)
        return (jnp.dot(a3.astype(jnp.bfloat16), w2d[...],
                        preferred_element_type=jnp.float32) + b_row)

    def resblock(a, s_ref, t_ref, w_ref, b_ref, i, first, last):
        h = jnp.maximum(a * s_ref[i, 0] + t_ref[i, 0], 0.0)          # BN1 (folded)+ReLU
        h = conv3(h, w_ref.at[i, 0], b_ref[i, 0], first, last)       # Conv1d k=3 p=1
        h = jnp.maximum(h * s_ref[i, 1] + t_ref[i, 1], 0.0)          # BN2 (folded)+ReLU
        h = conv3(h, w_ref.at[i, 1], b_ref[i, 1], first, last)       # Conv1d k=3 p=1
        return a + h                                                 # residual

    # Linear(orig_dim -> hidden_dim) on all BBLK*T rows at once.
    x = x_ref[...].reshape(M1, Din)
    z = (jnp.dot(x.astype(jnp.bfloat16), lin_w_ref[...],
                 preferred_element_type=jnp.float32) + lin_b_ref[...])

    # Stage 1: 3 ResBlocks at full length T (flattened M1 rows).
    for i in range(3):
        z = resblock(z, rb1_s_ref, rb1_t_ref, rb1_w_ref, rb1_b_ref, i, first1, last1)

    # Dsample1: Conv1d(C, C, 3, stride=2, padding=1)
    #   y[j] = x[2j-1] @ W0 + x[2j] @ W1 + x[2j+1] @ W2 + b
    # T is even, so even/odd row extraction on the flattened value never crosses a
    # batch boundary; no VMEM scratch round-trip needed.
    zp = z.reshape(M2, 2, C)
    xe = zp[:, 0, :]                               # rows 0, 2, 4, ... of each element
    xo = zp[:, 1, :]                               # rows 1, 3, 5, ... of each element
    a3 = jnp.concatenate([shift_prev(xo, first2), xe, xo], axis=-1)
    z = (jnp.dot(a3.astype(jnp.bfloat16), ds_w_ref[...],
                 preferred_element_type=jnp.float32) + ds_b_ref[...])

    # Stage 2: 3 ResBlocks at length T//2 (flattened M2 rows).
    for i in range(3):
        z = resblock(z, rb2_s_ref, rb2_t_ref, rb2_w_ref, rb2_b_ref, i, first2, last2)

    o_ref[...] = z.reshape(BBLK, T2, C).astype(o_ref.dtype)


def _conv3_weight(w_ref_view):
    return w_ref_view  # placeholder (weights already fused (3C, C)); kept for clarity


def _pick_block_b(B, T, max_rows=2048):
    """Largest divisor of B with block_b*T <= max_rows (VMEM headroom, re-derived for
    v7x's 64 MiB), preferring >=2 grid steps so both v7x TensorCores get work."""
    divisors = [d for d in range(1, B + 1) if B % d == 0]
    ok = [d for d in divisors if d * T <= max_rows] or [1]
    two_step = [d for d in ok if B // d >= 2]
    return max(two_step) if two_step else max(ok)


def encoder_forward(x, params, *, block_b=None):
    B, T, Din = x.shape
    C = params["lin_w"].shape[1]
    C3 = 3 * C
    assert T % 2 == 0, "stride-2 Encoder kernel requires even sequence length T"
    T2 = (T + 2 - 3) // 2 + 1          # == T // 2 for even T
    if block_b is None:
        block_b = _pick_block_b(B, T)
    assert B % block_b == 0, (B, block_b)

    def const_spec(shape):
        zeros = (0,) * len(shape)
        return pl.BlockSpec(shape, lambda b, _z=zeros: _z)

    return pl.pallas_call(
        encoder_kernel,
        out_shape=jax.ShapeDtypeStruct((B, T2, C), x.dtype),
        grid=(B // block_b,),
        in_specs=[
            pl.BlockSpec((block_b, T, Din), lambda b: (b, 0, 0)),
            const_spec((Din, C)), const_spec((1, C)),
            const_spec((3, 2, 1, C)), const_spec((3, 2, 1, C)),
            const_spec((3, 2, C3, C)), const_spec((3, 2, 1, C)),
            const_spec((C3, C)), const_spec((1, C)),
            const_spec((3, 2, 1, C)), const_spec((3, 2, 1, C)),
            const_spec((3, 2, C3, C)), const_spec((3, 2, 1, C)),
        ],
        out_specs=pl.BlockSpec((block_b, T2, C), lambda b: (b, 0, 0)),
        compiler_params=pltpu.CompilerParams(dimension_semantics=("parallel",)),
    )(x, params["lin_w"], params["lin_b"],
      params["rb1_s"], params["rb1_t"], params["rb1_w"], params["rb1_b"],
      params["ds_w"], params["ds_b"],
      params["rb2_s"], params["rb2_t"], params["rb2_w"], params["rb2_b"])


# ----------------------------------------------------------------------------
# Parameter init (deterministic, synthetic; BN folded, conv weights pre-fused, bf16)
# ----------------------------------------------------------------------------
def _fold_bn(key, C):
    k1, k2, k3, k4 = jax.random.split(key, 4)
    gamma = 1.0 + 0.1 * jax.random.normal(k1, (1, C), jnp.float32)
    beta = 0.1 * jax.random.normal(k2, (1, C), jnp.float32)
    mean = 0.1 * jax.random.normal(k3, (1, C), jnp.float32)
    var = 1.0 + 0.1 * jax.random.uniform(k4, (1, C), jnp.float32)
    scale = gamma / jnp.sqrt(var + 1e-5)
    shift = beta - mean * scale
    return scale, shift


def _init_resblock_stack(key, C, n_blocks=3):
    """Params for n_blocks ResBlocks, stacked so one pallas_call sees them all:
    scale/shift/bias (n, 2, 1, C) f32; fused conv weights (n, 2, 3C, C) bf16 with rows
    [W_tap0; W_tap1; W_tap2] (== torch weight.permute(2, 1, 0).reshape(3C, C))."""
    s, t, w, b = [], [], [], []
    for kb in jax.random.split(key, n_blocks):
        kk = jax.random.split(kb, 6)
        s1, t1 = _fold_bn(kk[0], C)
        s2, t2 = _fold_bn(kk[1], C)
        w1 = 0.05 * jax.random.normal(kk[2], (3 * C, C), jnp.float32)
        b1 = 0.05 * jax.random.normal(kk[3], (1, C), jnp.float32)
        w2 = 0.05 * jax.random.normal(kk[4], (3 * C, C), jnp.float32)
        b2 = 0.05 * jax.random.normal(kk[5], (1, C), jnp.float32)
        s.append(jnp.stack([s1, s2]))
        t.append(jnp.stack([t1, t2]))
        w.append(jnp.stack([w1, w2]))
        b.append(jnp.stack([b1, b2]))
    return (jnp.stack(s), jnp.stack(t),
            jnp.stack(w).astype(jnp.bfloat16), jnp.stack(b))


def init_encoder(key, orig_dim, C):
    ks = jax.random.split(key, 6)
    rb1_s, rb1_t, rb1_w, rb1_b = _init_resblock_stack(ks[0], C)
    rb2_s, rb2_t, rb2_w, rb2_b = _init_resblock_stack(ks[1], C)
    return dict(
        lin_w=(0.05 * jax.random.normal(ks[2], (orig_dim, C), jnp.float32)
               ).astype(jnp.bfloat16),
        lin_b=0.05 * jax.random.normal(ks[3], (1, C), jnp.float32),
        rb1_s=rb1_s, rb1_t=rb1_t, rb1_w=rb1_w, rb1_b=rb1_b,
        ds_w=(0.05 * jax.random.normal(ks[4], (3 * C, C), jnp.float32)
              ).astype(jnp.bfloat16),
        ds_b=0.05 * jax.random.normal(ks[5], (1, C), jnp.float32),
        rb2_s=rb2_s, rb2_t=rb2_t, rb2_w=rb2_w, rb2_b=rb2_b,
    )


# ----------------------------------------------------------------------------
# Pure-JAX reference (independent implementation, same bf16-operand / f32-acc
# matmul precision as the kernel, for validation)
# ----------------------------------------------------------------------------
def _bf16_mm(a, w):
    return jnp.einsum("btc,cd->btd", a.astype(jnp.bfloat16), w,
                      preferred_element_type=jnp.float32)


def _ref_conv3_full(a, w_fused, b):
    _, T, C = a.shape
    w = [w_fused[k * C:(k + 1) * C] for k in range(3)]
    ap = jnp.pad(a, ((0, 0), (1, 1), (0, 0)))
    return sum(_bf16_mm(ap[:, k:k + T], w[k]) for k in range(3)) + b


def _ref_conv3_stride2(a, w_fused, b):
    _, T, C = a.shape
    T2 = (T - 1) // 2 + 1
    w = [w_fused[k * C:(k + 1) * C] for k in range(3)]
    ap = jnp.pad(a, ((0, 0), (1, 1), (0, 0)))
    return sum(_bf16_mm(ap[:, k:k + 2 * T2:2], w[k]) for k in range(3)) + b


def _ref_resblock(x, s, t, w, b):
    h = jnp.maximum(x * s[0] + t[0], 0.0)
    h = _ref_conv3_full(h, w[0], b[0])
    h = jnp.maximum(h * s[1] + t[1], 0.0)
    h = _ref_conv3_full(h, w[1], b[1])
    return x + h


def _ref_encoder(x, p):
    z = (jnp.einsum("btd,dc->btc", x.astype(jnp.bfloat16), p["lin_w"],
                    preferred_element_type=jnp.float32) + p["lin_b"])
    for i in range(3):
        z = _ref_resblock(z, p["rb1_s"][i], p["rb1_t"][i], p["rb1_w"][i], p["rb1_b"][i])
    z = _ref_conv3_stride2(z, p["ds_w"], p["ds_b"])
    for i in range(3):
        z = _ref_resblock(z, p["rb2_s"][i], p["rb2_t"][i], p["rb2_w"][i], p["rb2_b"][i])
    return z


# ----------------------------------------------------------------------------
if __name__ == "__main__":
    # batch, seq (even), orig_dim, hidden_dim (lane-dense). block_b is auto-picked
    # (here 4 -> 128 matmul rows/step, 2 grid steps for the two v7x TensorCores).
    B, T, ORIG, HID = 8, 32, 64, 128
    key = jax.random.PRNGKey(0)
    kx, kp = jax.random.split(key)
    x = jax.random.normal(kx, (B, T, ORIG), jnp.float32)
    params = init_encoder(kp, ORIG, HID)

    out = jax.block_until_ready(encoder_forward(x, params))
    ref = _ref_encoder(x, params)

    assert out.shape == (B, T // 2, HID), out.shape
    assert jnp.allclose(out, ref, rtol=1e-2, atol=1e-2), \
        float(jnp.max(jnp.abs(out - ref)))
    print("KERNEL_OK")
</pallas_src>

<mosaic_0001>
module attributes {stable_mosaic.version = 11 : i64} {
  func.func @encoder_kernel(%arg0: i32, %arg1: memref<4x32x64xf32, #tpu.memory_space<vmem>>, %arg2: memref<64x128xbf16, #tpu.memory_space<vmem>>, %arg3: memref<1x128xf32, #tpu.memory_space<vmem>>, %arg4: memref<3x2x1x128xf32, #tpu.memory_space<vmem>>, %arg5: memref<3x2x1x128xf32, #tpu.memory_space<vmem>>, %arg6: memref<3x2x384x128xbf16, #tpu.memory_space<vmem>>, %arg7: memref<3x2x1x128xf32, #tpu.memory_space<vmem>>, %arg8: memref<384x128xbf16, #tpu.memory_space<vmem>>, %arg9: memref<1x128xf32, #tpu.memory_space<vmem>>, %arg10: memref<3x2x1x128xf32, #tpu.memory_space<vmem>>, %arg11: memref<3x2x1x128xf32, #tpu.memory_space<vmem>>, %arg12: memref<3x2x384x128xbf16, #tpu.memory_space<vmem>>, %arg13: memref<3x2x1x128xf32, #tpu.memory_space<vmem>>, %arg14: memref<4x16x128xf32, #tpu.memory_space<vmem>>) attributes {dimension_semantics = [#tpu.dimension_semantics<parallel>], iteration_bounds = array<i64: 2>, scalar_prefetch = 0 : i64, scratch_operands = 0 : i64, tpu.core_type = #tpu.core_type<tc>, window_params = [{transform_indices = @transform_0, window_bounds = array<i64: 4, 32, 64>}, {pipeline_mode = #tpu.pipeline_mode<synchronous>, transform_indices = @transform_1, window_bounds = array<i64: 64, 128>}, {pipeline_mode = #tpu.pipeline_mode<synchronous>, transform_indices = @transform_2, window_bounds = array<i64: 1, 128>}, {pipeline_mode = #tpu.pipeline_mode<synchronous>, transform_indices = @transform_3, window_bounds = array<i64: 3, 2, 1, 128>}, {pipeline_mode = #tpu.pipeline_mode<synchronous>, transform_indices = @transform_4, window_bounds = array<i64: 3, 2, 1, 128>}, {pipeline_mode = #tpu.pipeline_mode<synchronous>, transform_indices = @transform_5, window_bounds = array<i64: 3, 2, 384, 128>}, {pipeline_mode = #tpu.pipeline_mode<synchronous>, transform_indices = @transform_6, window_bounds = array<i64: 3, 2, 1, 128>}, {pipeline_mode = #tpu.pipeline_mode<synchronous>, transform_indices = @transform_7, window_bounds = array<i64: 384, 128>}, {pipeline_mode = #tpu.pipeline_mode<synchronous>, transform_indices = @transform_8, window_bounds = array<i64: 1, 128>}, {pipeline_mode = #tpu.pipeline_mode<synchronous>, transform_indices = @transform_9, window_bounds = array<i64: 3, 2, 1, 128>}, {pipeline_mode = #tpu.pipeline_mode<synchronous>, transform_indices = @transform_10, window_bounds = array<i64: 3, 2, 1, 128>}, {pipeline_mode = #tpu.pipeline_mode<synchronous>, transform_indices = @transform_11, window_bounds = array<i64: 3, 2, 384, 128>}, {pipeline_mode = #tpu.pipeline_mode<synchronous>, transform_indices = @transform_12, window_bounds = array<i64: 3, 2, 1, 128>}, {transform_indices = @transform_13, window_bounds = array<i64: 4, 16, 128>}]} {
    %0 = tpu.iota {dimensions = array<i32: 0>} : vector<128x128xi32>
    %c32_i32 = arith.constant 32 : i32
    %c0_i32 = arith.constant 0 : i32
    %1 = arith.cmpi eq, %c32_i32, %c0_i32 : i32
    %c1_i32 = arith.constant 1 : i32
    %2 = arith.select %1, %c1_i32, %c32_i32 : i32
    %3 = vector.broadcast %2 : i32 to vector<128x128xi32>
    %4 = arith.remsi %0, %3 : vector<128x128xi32>
    %c0_i32_0 = arith.constant 0 : i32
    %5 = vector.broadcast %c0_i32_0 : i32 to vector<128x128xi32>
    %6 = arith.cmpi ne, %4, %5 : vector<128x128xi32>
    %c0_i32_1 = arith.constant 0 : i32
    %7 = vector.broadcast %c0_i32_1 : i32 to vector<128x128xi32>
    %8 = arith.cmpi slt, %4, %7 : vector<128x128xi32>
    %c0_i32_2 = arith.constant 0 : i32
    %9 = arith.cmpi slt, %2, %c0_i32_2 : i32
    %10 = vector.broadcast %9 : i1 to vector<128x128xi1>
    %11 = vector.broadcast %10 : vector<128x128xi1> to vector<128x128xi1>
    %12 = arith.xori %8, %11 : vector<128x128xi1>
    %13 = arith.andi %12, %6 : vector<128x128xi1>
    %14 = vector.broadcast %2 : i32 to vector<128x128xi32>
    %15 = arith.addi %4, %14 : vector<128x128xi32>
    %16 = arith.select %13, %15, %4 : vector<128x128xi1>, vector<128x128xi32>
    %c0_i32_3 = arith.constant 0 : i32
    %17 = vector.broadcast %c0_i32_3 : i32 to vector<128x128xi32>
    %18 = arith.cmpi eq, %16, %17 : vector<128x128xi32>
    %c31_i32 = arith.constant 31 : i32
    %19 = vector.broadcast %c31_i32 : i32 to vector<128x128xi32>
    %20 = arith.cmpi eq, %16, %19 : vector<128x128xi32>
    %21 = tpu.iota {dimensions = array<i32: 0>} : vector<64x128xi32>
    %c16_i32 = arith.constant 16 : i32
    %c0_i32_4 = arith.constant 0 : i32
    %22 = arith.cmpi eq, %c16_i32, %c0_i32_4 : i32
    %c1_i32_5 = arith.constant 1 : i32
    %23 = arith.select %22, %c1_i32_5, %c16_i32 : i32
    %24 = vector.broadcast %23 : i32 to vector<64x128xi32>
    %25 = arith.remsi %21, %24 : vector<64x128xi32>
    %c0_i32_6 = arith.constant 0 : i32
    %26 = vector.broadcast %c0_i32_6 : i32 to vector<64x128xi32>
    %27 = arith.cmpi ne, %25, %26 : vector<64x128xi32>
    %c0_i32_7 = arith.constant 0 : i32
    %28 = vector.broadcast %c0_i32_7 : i32 to vector<64x128xi32>
    %29 = arith.cmpi slt, %25, %28 : vector<64x128xi32>
    %c0_i32_8 = arith.constant 0 : i32
    %30 = arith.cmpi slt, %23, %c0_i32_8 : i32
    %31 = vector.broadcast %30 : i1 to vector<64x128xi1>
    %32 = vector.broadcast %31 : vector<64x128xi1> to vector<64x128xi1>
    %33 = arith.xori %29, %32 : vector<64x128xi1>
    %34 = arith.andi %33, %27 : vector<64x128xi1>
    %35 = vector.broadcast %23 : i32 to vector<64x128xi32>
    %36 = arith.addi %25, %35 : vector<64x128xi32>
    %37 = arith.select %34, %36, %25 : vector<64x128xi1>, vector<64x128xi32>
    %c0_i32_9 = arith.constant 0 : i32
    %38 = vector.broadcast %c0_i32_9 : i32 to vector<64x128xi32>
    %39 = arith.cmpi eq, %37, %38 : vector<64x128xi32>
    %c15_i32 = arith.constant 15 : i32
    %40 = vector.broadcast %c15_i32 : i32 to vector<64x128xi32>
    %41 = arith.cmpi eq, %37, %40 : vector<64x128xi32>
    %c0 = arith.constant 0 : index
    %c0_10 = arith.constant 0 : index
    %c0_11 = arith.constant 0 : index
    %42 = vector.load %arg1[%c0, %c0_10, %c0_11] : memref<4x32x64xf32, #tpu.memory_space<vmem>>, vector<4x32x64xf32>
    %43 = vector.shape_cast %42 : vector<4x32x64xf32> to vector<128x64xf32>
    %44 = arith.truncf %43 : vector<128x64xf32> to vector<128x64xbf16>
    %c0_12 = arith.constant 0 : index
    %c0_13 = arith.constant 0 : index
    %45 = vector.load %arg2[%c0_12, %c0_13] : memref<64x128xbf16, #tpu.memory_space<vmem>>, vector<64x128xbf16>
    %cst = arith.constant dense<0.000000e+00> : vector<128x128xf32>
    %46 = tpu.matmul %44, %45, %cst {dimension_numbers = #tpu.dot_dimension_numbers<[1], [0], [0], [1], [0, 0, 1, 1], [], []>} : vector<128x64xbf16>, vector<64x128xbf16>, vector<128x128xf32> -> vector<128x128xf32>
    %c0_14 = arith.constant 0 : index
    %c0_15 = arith.constant 0 : index
    %47 = vector.load %arg3[%c0_14, %c0_15] : memref<1x128xf32, #tpu.memory_space<vmem>>, vector<1x128xf32>
    %48 = vector.broadcast %47 : vector<1x128xf32> to vector<128x128xf32>
    %49 = arith.addf %46, %48 : vector<128x128xf32>
    %c0_16 = arith.constant 0 : index
    %c0_17 = arith.constant 0 : index
    %c0_18 = arith.constant 0 : index
    %c0_19 = arith.constant 0 : index
    %50 = vector.load %arg4[%c0_16, %c0_17, %c0_18, %c0_19] : memref<3x2x1x128xf32, #tpu.memory_space<vmem>>, vector<1x1x1x128xf32>
    %51 = vector.shape_cast %50 : vector<1x1x1x128xf32> to vector<1x128xf32>
    %52 = vector.broadcast %51 : vector<1x128xf32> to vector<128x128xf32>
    %53 = arith.mulf %49, %52 : vector<128x128xf32>
    %c0_20 = arith.constant 0 : index
    %c0_21 = arith.constant 0 : index
    %c0_22 = arith.constant 0 : index
    %c0_23 = arith.constant 0 : index
    %54 = vector.load %arg5[%c0_20, %c0_21, %c0_22, %c0_23] : memref<3x2x1x128xf32, #tpu.memory_space<vmem>>, vector<1x1x1x128xf32>
    %55 = vector.shape_cast %54 : vector<1x1x1x128xf32> to vector<1x128xf32>
    %56 = vector.broadcast %55 : vector<1x128xf32> to vector<128x128xf32>
    %57 = arith.addf %53, %56 : vector<128x128xf32>
    %cst_24 = arith.constant 0.000000e+00 : f32
    %58 = vector.broadcast %cst_24 : f32 to vector<128x128xf32>
    %59 = arith.maximumf %57, %58 : vector<128x128xf32>
    %c0_25 = arith.constant 0 : index
    %c0_26 = arith.constant 0 : index
    %c0_27 = arith.constant 0 : index
    %c0_28 = arith.constant 0 : index
    %60 = vector.load %arg7[%c0_25, %c0_26, %c0_27, %c0_28] : memref<3x2x1x128xf32, #tpu.memory_space<vmem>>, vector<1x1x1x128xf32>
    %61 = vector.shape_cast %60 : vector<1x1x1x128xf32> to vector<1x128xf32>
    %c1_i32_29 = arith.constant 1 : i32
    %62 = tpu.dynamic_rotate %59 by %c1_i32_29 dim 0 : vector<128x128xf32>, i32 -> vector<128x128xf32>
    %cst_30 = arith.constant 0.000000e+00 : f32
    %63 = vector.broadcast %cst_30 : f32 to vector<128x128xf32>
    %64 = arith.select %18, %63, %62 : vector<128x128xi1>, vector<128x128xf32>
    %c127_i32 = arith.constant 127 : i32
    %65 = tpu.dynamic_rotate %59 by %c127_i32 dim 0 : vector<128x128xf32>, i32 -> vector<128x128xf32>
    %cst_31 = arith.constant 0.000000e+00 : f32
    %66 = vector.broadcast %cst_31 : f32 to vector<128x128xf32>
    %67 = arith.select %20, %66, %65 : vector<128x128xi1>, vector<128x128xf32>
    %68 = tpu.concatenate %64, %59, %67 in 1 : vector<128x128xf32>, vector<128x128xf32>, vector<128x128xf32> -> vector<128x384xf32>
    %69 = arith.truncf %68 : vector<128x384xf32> to vector<128x384xbf16>
    %c0_32 = arith.constant 0 : index
    %c0_33 = arith.constant 0 : index
    %c0_34 = arith.constant 0 : index
    %c0_35 = arith.constant 0 : index
    %70 = vector.load %arg6[%c0_32, %c0_33, %c0_34, %c0_35] : memref<3x2x384x128xbf16, #tpu.memory_space<vmem>>, vector<1x1x384x128xbf16>
    %71 = vector.shape_cast %70 : vector<1x1x384x128xbf16> to vector<384x128xbf16>
    %cst_36 = arith.constant dense<0.000000e+00> : vector<128x128xf32>
    %72 = tpu.matmul %69, %71, %cst_36 {dimension_numbers = #tpu.dot_dimension_numbers<[1], [0], [0], [1], [0, 0, 1, 1], [], []>} : vector<128x384xbf16>, vector<384x128xbf16>, vector<128x128xf32> -> vector<128x128xf32>
    %73 = vector.broadcast %61 : vector<1x128xf32> to vector<128x128xf32>
    %74 = arith.addf %72, %73 : vector<128x128xf32>
    %c0_37 = arith.constant 0 : index
    %c1 = arith.constant 1 : index
    %c0_38 = arith.constant 0 : index
    %c0_39 = arith.constant 0 : index
    %75 = vector.load %arg4[%c0_37, %c1, %c0_38, %c0_39] : memref<3x2x1x128xf32, #tpu.memory_space<vmem>>, vector<1x1x1x128xf32>
    %76 = vector.shape_cast %75 : vector<1x1x1x128xf32> to vector<1x128xf32>
    %77 = vector.broadcast %76 : vector<1x128xf32> to vector<128x128xf32>
    %78 = arith.mulf %74, %77 : vector<128x128xf32>
    %c0_40 = arith.constant 0 : index
    %c1_41 = arith.constant 1 : index
    %c0_42 = arith.constant 0 : index
    %c0_43 = arith.constant 0 : index
    %79 = vector.load %arg5[%c0_40, %c1_41, %c0_42, %c0_43] : memref<3x2x1x128xf32, #tpu.memory_space<vmem>>, vector<1x1x1x128xf32>
    %80 = vector.shape_cast %79 : vector<1x1x1x128xf32> to vector<1x128xf32>
    %81 = vector.broadcast %80 : vector<1x128xf32> to vector<128x128xf32>
    %82 = arith.addf %78, %81 : vector<128x128xf32>
    %cst_44 = arith.constant 0.000000e+00 : f32
    %83 = vector.broadcast %cst_44 : f32 to vector<128x128xf32>
    %84 = arith.maximumf %82, %83 : vector<128x128xf32>
    %c0_45 = arith.constant 0 : index
    %c1_46 = arith.constant 1 : index
    %c0_47 = arith.constant 0 : index
    %c0_48 = arith.constant 0 : index
    %85 = vector.load %arg7[%c0_45, %c1_46, %c0_47, %c0_48] : memref<3x2x1x128xf32, #tpu.memory_space<vmem>>, vector<1x1x1x128xf32>
    %86 = vector.shape_cast %85 : vector<1x1x1x128xf32> to vector<1x128xf32>
    %c1_i32_49 = arith.constant 1 : i32
    %87 = tpu.dynamic_rotate %84 by %c1_i32_49 dim 0 : vector<128x128xf32>, i32 -> vector<128x128xf32>
    %cst_50 = arith.constant 0.000000e+00 : f32
    %88 = vector.broadcast %cst_50 : f32 to vector<128x128xf32>
    %89 = arith.select %18, %88, %87 : vector<128x128xi1>, vector<128x128xf32>
    %c127_i32_51 = arith.constant 127 : i32
    %90 = tpu.dynamic_rotate %84 by %c127_i32_51 dim 0 : vector<128x128xf32>, i32 -> vector<128x128xf32>
    %cst_52 = arith.constant 0.000000e+00 : f32
    %91 = vector.broadcast %cst_52 : f32 to vector<128x128xf32>
    %92 = arith.select %20, %91, %90 : vector<128x128xi1>, vector<128x128xf32>
    %93 = tpu.concatenate %89, %84, %92 in 1 : vector<128x128xf32>, vector<128x128xf32>, vector<128x128xf32> -> vector<128x384xf32>
    %94 = arith.truncf %93 : vector<128x384xf32> to vector<128x384xbf16>
    %c0_53 = arith.constant 0 : index
    %c1_54 = arith.constant 1 : index
    %c0_55 = arith.constant 0 : index
    %c0_56 = arith.constant 0 : index
    %95 = vector.load %arg6[%c0_53, %c1_54, %c0_55, %c0_56] : memref<3x2x384x128xbf16, #tpu.memory_space<vmem>>, vector<1x1x384x128xbf16>
    %96 = vector.shape_cast %95 : vector<1x1x384x128xbf16> to vector<384x128xbf16>
    %cst_57 = arith.constant dense<0.000000e+00> : vector<128x128xf32>
    %97 = tpu.matmul %94, %96, %cst_57 {dimension_numbers = #tpu.dot_dimension_numbers<[1], [0], [0], [1], [0, 0, 1, 1], [], []>} : vector<128x384xbf16>, vector<384x128xbf16>, vector<128x128xf32> -> vector<128x128xf32>
    %98 = vector.broadcast %86 : vector<1x128xf32> to vector<128x128xf32>
    %99 = arith.addf %97, %98 : vector<128x128xf32>
    %100 = arith.addf %49, %99 : vector<128x128xf32>
    %c1_58 = arith.constant 1 : index
    %c0_59 = arith.constant 0 : index
    %c0_60 = arith.constant 0 : index
    %c0_61 = arith.constant 0 : index
    %101 = vector.load %arg4[%c1_58, %c0_59, %c0_60, %c0_61] : memref<3x2x1x128xf32, #tpu.memory_space<vmem>>, vector<1x1x1x128xf32>
    %102 = vector.shape_cast %101 : vector<1x1x1x128xf32> to vector<1x128xf32>
    %103 = vector.broadcast %102 : vector<1x128xf32> to vector<128x128xf32>
    %104 = arith.mulf %100, %103 : vector<128x128xf32>
    %c1_62 = arith.constant 1 : index
    %c0_63 = arith.constant 0 : index
    %c0_64 = arith.constant 0 : index
    %c0_65 = arith.constant 0 : index
    %105 = vector.load %arg5[%c1_62, %c0_63, %c0_64, %c0_65] : memref<3x2x1x128xf32, #tpu.memory_space<vmem>>, vector<1x1x1x128xf32>
    %106 = vector.shape_cast %105 : vector<1x1x1x128xf32> to vector<1x128xf32>
    %107 = vector.broadcast %106 : vector<1x128xf32> to vector<128x128xf32>
    %108 = arith.addf %104, %107 : vector<128x128xf32>
    %cst_66 = arith.constant 0.000000e+00 : f32
    %109 = vector.broadcast %cst_66 : f32 to vector<128x128xf32>
    %110 = arith.maximumf %108, %109 : vector<128x128xf32>
    %c1_67 = arith.constant 1 : index
    %c0_68 = arith.constant 0 : index
    %c0_69 = arith.constant 0 : index
    %c0_70 = arith.constant 0 : index
    %111 = vector.load %arg7[%c1_67, %c0_68, %c0_69, %c0_70] : memref<3x2x1x128xf32, #tpu.memory_space<vmem>>, vector<1x1x1x128xf32>
    %112 = vector.shape_cast %111 : vector<1x1x1x128xf32> to vector<1x128xf32>
    %c1_i32_71 = arith.constant 1 : i32
    %113 = tpu.dynamic_rotate %110 by %c1_i32_71 dim 0 : vector<128x128xf32>, i32 -> vector<128x128xf32>
    %cst_72 = arith.constant 0.000000e+00 : f32
    %114 = vector.broadcast %cst_72 : f32 to vector<128x128xf32>
    %115 = arith.select %18, %114, %113 : vector<128x128xi1>, vector<128x128xf32>
    %c127_i32_73 = arith.constant 127 : i32
    %116 = tpu.dynamic_rotate %110 by %c127_i32_73 dim 0 : vector<128x128xf32>, i32 -> vector<128x128xf32>
    %cst_74 = arith.constant 0.000000e+00 : f32
    %117 = vector.broadcast %cst_74 : f32 to vector<128x128xf32>
    %118 = arith.select %20, %117, %116 : vector<128x128xi1>, vector<128x128xf32>
    %119 = tpu.concatenate %115, %110, %118 in 1 : vector<128x128xf32>, vector<128x128xf32>, vector<128x128xf32> -> vector<128x384xf32>
    %120 = arith.truncf %119 : vector<128x384xf32> to vector<128x384xbf16>
    %c1_75 = arith.constant 1 : index
    %c0_76 = arith.constant 0 : index
    %c0_77 = arith.constant 0 : index
    %c0_78 = arith.constant 0 : index
    %121 = vector.load %arg6[%c1_75, %c0_76, %c0_77, %c0_78] : memref<3x2x384x128xbf16, #tpu.memory_space<vmem>>, vector<1x1x384x128xbf16>
    %122 = vector.shape_cast %121 : vector<1x1x384x128xbf16> to vector<384x128xbf16>
    %cst_79 = arith.constant dense<0.000000e+00> : vector<128x128xf32>
    %123 = tpu.matmul %120, %122, %cst_79 {dimension_numbers = #tpu.dot_dimension_numbers<[1], [0], [0], [1], [0, 0, 1, 1], [], []>} : vector<128x384xbf16>, vector<384x128xbf16>, vector<128x128xf32> -> vector<128x128xf32>
    %124 = vector.broadcast %112 : vector<1x128xf32> to vector<128x128xf32>
    %125 = arith.addf %123, %124 : vector<128x128xf32>
    %c1_80 = arith.constant 1 : index
    %c1_81 = arith.constant 1 : index
    %c0_82 = arith.constant 0 : index
    %c0_83 = arith.constant 0 : index
    %126 = vector.load %arg4[%c1_80, %c1_81, %c0_82, %c0_83] : memref<3x2x1x128xf32, #tpu.memory_space<vmem>>, vector<1x1x1x128xf32>
    %127 = vector.shape_cast %126 : vector<1x1x1x128xf32> to vector<1x128xf32>
    %128 = vector.broadcast %127 : vector<1x128xf32> to vector<128x128xf32>
    %129 = arith.mulf %125, %128 : vector<128x128xf32>
    %c1_84 = arith.constant 1 : index
    %c1_85 = arith.constant 1 : index
    %c0_86 = arith.constant 0 : index
    %c0_87 = arith.constant 0 : index
    %130 = vector.load %arg5[%c1_84, %c1_85, %c0_86, %c0_87] : memref<3x2x1x128xf32, #tpu.memory_space<vmem>>, vector<1x1x1x128xf32>
    %131 = vector.shape_cast %130 : vector<1x1x1x128xf32> to vector<1x128xf32>
    %132 = vector.broadcast %131 : vector<1x128xf32> to vector<128x128xf32>
    %133 = arith.addf %129, %132 : vector<128x128xf32>
    %cst_88 = arith.constant 0.000000e+00 : f32
    %134 = vector.broadcast %cst_88 : f32 to vector<128x128xf32>
    %135 = arith.maximumf %133, %134 : vector<128x128xf32>
    %c1_89 = arith.constant 1 : index
    %c1_90 = arith.constant 1 : index
    %c0_91 = arith.constant 0 : index
    %c0_92 = arith.constant 0 : index
    %136 = vector.load %arg7[%c1_89, %c1_90, %c0_91, %c0_92] : memref<3x2x1x128xf32, #tpu.memory_space<vmem>>, vector<1x1x1x128xf32>
    %137 = vector.shape_cast %136 : vector<1x1x1x128xf32> to vector<1x128xf32>
    %c1_i32_93 = arith.constant 1 : i32
    %138 = tpu.dynamic_rotate %135 by %c1_i32_93 dim 0 : vector<128x128xf32>, i32 -> vector<128x128xf32>
    %cst_94 = arith.constant 0.000000e+00 : f32
    %139 = vector.broadcast %cst_94 : f32 to vector<128x128xf32>
    %140 = arith.select %18, %139, %138 : vector<128x128xi1>, vector<128x128xf32>
    %c127_i32_95 = arith.constant 127 : i32
    %141 = tpu.dynamic_rotate %135 by %c127_i32_95 dim 0 : vector<128x128xf32>, i32 -> vector<128x128xf32>
    %cst_96 = arith.constant 0.000000e+00 : f32
    %142 = vector.broadcast %cst_96 : f32 to vector<128x128xf32>
    %143 = arith.select %20, %142, %141 : vector<128x128xi1>, vector<128x128xf32>
    %144 = tpu.concatenate %140, %135, %143 in 1 : vector<128x128xf32>, vector<128x128xf32>, vector<128x128xf32> -> vector<128x384xf32>
    %145 = arith.truncf %144 : vector<128x384xf32> to vector<128x384xbf16>
    %c1_97 = arith.constant 1 : index
    %c1_98 = arith.constant 1 : index
    %c0_99 = arith.constant 0 : index
    %c0_100 = arith.constant 0 : index
    %146 = vector.load %arg6[%c1_97, %c1_98, %c0_99, %c0_100] : memref<3x2x384x128xbf16, #tpu.memory_space<vmem>>, vector<1x1x384x128xbf16>
    %147 = vector.shape_cast %146 : vector<1x1x384x128xbf16> to vector<384x128xbf16>
    %cst_101 = arith.constant dense<0.000000e+00> : vector<128x128xf32>
    %148 = tpu.matmul %145, %147, %cst_101 {dimension_numbers = #tpu.dot_dimension_numbers<[1], [0], [0], [1], [0, 0, 1, 1], [], []>} : vector<128x384xbf16>, vector<384x128xbf16>, vector<128x128xf32> -> vector<128x128xf32>
    %149 = vector.broadcast %137 : vector<1x128xf32> to vector<128x128xf32>
    %150 = arith.addf %148, %149 : vector<128x128xf32>
    %151 = arith.addf %100, %150 : vector<128x128xf32>
    %c2 = arith.constant 2 : index
    %c0_102 = arith.constant 0 : index
    %c0_103 = arith.constant 0 : index
    %c0_104 = arith.constant 0 : index
    %152 = vector.load %arg4[%c2, %c0_102, %c0_103, %c0_104] : memref<3x2x1x128xf32, #tpu.memory_space<vmem>>, vector<1x1x1x128xf32>
    %153 = vector.shape_cast %152 : vector<1x1x1x128xf32> to vector<1x128xf32>
    %154 = vector.broadcast %153 : vector<1x128xf32> to vector<128x128xf32>
    %155 = arith.mulf %151, %154 : vector<128x128xf32>
    %c2_105 = arith.constant 2 : index
    %c0_106 = arith.constant 0 : index
    %c0_107 = arith.constant 0 : index
    %c0_108 = arith.constant 0 : index
    %156 = vector.load %arg5[%c2_105, %c0_106, %c0_107, %c0_108] : memref<3x2x1x128xf32, #tpu.memory_space<vmem>>, vector<1x1x1x128xf32>
    %157 = vector.shape_cast %156 : vector<1x1x1x128xf32> to vector<1x128xf32>
    %158 = vector.broadcast %157 : vector<1x128xf32> to vector<128x128xf32>
    %159 = arith.addf %155, %158 : vector<128x128xf32>
    %cst_109 = arith.constant 0.000000e+00 : f32
    %160 = vector.broadcast %cst_109 : f32 to vector<128x128xf32>
    %161 = arith.maximumf %159, %160 : vector<128x128xf32>
    %c2_110 = arith.constant 2 : index
    %c0_111 = arith.constant 0 : index
    %c0_112 = arith.constant 0 : index
    %c0_113 = arith.constant 0 : index
    %162 = vector.load %arg7[%c2_110, %c0_111, %c0_112, %c0_113] : memref<3x2x1x128xf32, #tpu.memory_space<vmem>>, vector<1x1x1x128xf32>
    %163 = vector.shape_cast %162 : vector<1x1x1x128xf32> to vector<1x128xf32>
    %c1_i32_114 = arith.constant 1 : i32
    %164 = tpu.dynamic_rotate %161 by %c1_i32_114 dim 0 : vector<128x128xf32>, i32 -> vector<128x128xf32>
    %cst_115 = arith.constant 0.000000e+00 : f32
    %165 = vector.broadcast %cst_115 : f32 to vector<128x128xf32>
    %166 = arith.select %18, %165, %164 : vector<128x128xi1>, vector<128x128xf32>
    %c127_i32_116 = arith.constant 127 : i32
    %167 = tpu.dynamic_rotate %161 by %c127_i32_116 dim 0 : vector<128x128xf32>, i32 -> vector<128x128xf32>
    %cst_117 = arith.constant 0.000000e+00 : f32
    %168 = vector.broadcast %cst_117 : f32 to vector<128x128xf32>
    %169 = arith.select %20, %168, %167 : vector<128x128xi1>, vector<128x128xf32>
    %170 = tpu.concatenate %166, %161, %169 in 1 : vector<128x128xf32>, vector<128x128xf32>, vector<128x128xf32> -> vector<128x384xf32>
    %171 = arith.truncf %170 : vector<128x384xf32> to vector<128x384xbf16>
    %c2_118 = arith.constant 2 : index
    %c0_119 = arith.constant 0 : index
    %c0_120 = arith.constant 0 : index
    %c0_121 = arith.constant 0 : index
    %172 = vector.load %arg6[%c2_118, %c0_119, %c0_120, %c0_121] : memref<3x2x384x128xbf16, #tpu.memory_space<vmem>>, vector<1x1x384x128xbf16>
    %173 = vector.shape_cast %172 : vector<1x1x384x128xbf16> to vector<384x128xbf16>
    %cst_122 = arith.constant dense<0.000000e+00> : vector<128x128xf32>
    %174 = tpu.matmul %171, %173, %cst_122 {dimension_numbers = #tpu.dot_dimension_numbers<[1], [0], [0], [1], [0, 0, 1, 1], [], []>} : vector<128x384xbf16>, vector<384x128xbf16>, vector<128x128xf32> -> vector<128x128xf32>
    %175 = vector.broadcast %163 : vector<1x128xf32> to vector<128x128xf32>
    %176 = arith.addf %174, %175 : vector<128x128xf32>
    %c2_123 = arith.constant 2 : index
    %c1_124 = arith.constant 1 : index
    %c0_125 = arith.constant 0 : index
    %c0_126 = arith.constant 0 : index
    %177 = vector.load %arg4[%c2_123, %c1_124, %c0_125, %c0_126] : memref<3x2x1x128xf32, #tpu.memory_space<vmem>>, vector<1x1x1x128xf32>
    %178 = vector.shape_cast %177 : vector<1x1x1x128xf32> to vector<1x128xf32>
    %179 = vector.broadcast %178 : vector<1x128xf32> to vector<128x128xf32>
    %180 = arith.mulf %176, %179 : vector<128x128xf32>
    %c2_127 = arith.constant 2 : index
    %c1_128 = arith.constant 1 : index
    %c0_129 = arith.constant 0 : index
    %c0_130 = arith.constant 0 : index
    %181 = vector.load %arg5[%c2_127, %c1_128, %c0_129, %c0_130] : memref<3x2x1x128xf32, #tpu.memory_space<vmem>>, vector<1x1x1x128xf32>
    %182 = vector.shape_cast %181 : vector<1x1x1x128xf32> to vector<1x128xf32>
    %183 = vector.broadcast %182 : vector<1x128xf32> to vector<128x128xf32>
    %184 = arith.addf %180, %183 : vector<128x128xf32>
    %cst_131 = arith.constant 0.000000e+00 : f32
    %185 = vector.broadcast %cst_131 : f32 to vector<128x128xf32>
    %186 = arith.maximumf %184, %185 : vector<128x128xf32>
    %c2_132 = arith.constant 2 : index
    %c1_133 = arith.constant 1 : index
    %c0_134 = arith.constant 0 : index
    %c0_135 = arith.constant 0 : index
    %187 = vector.load %arg7[%c2_132, %c1_133, %c0_134, %c0_135] : memref<3x2x1x128xf32, #tpu.memory_space<vmem>>, vector<1x1x1x128xf32>
    %188 = vector.shape_cast %187 : vector<1x1x1x128xf32> to vector<1x128xf32>
    %c1_i32_136 = arith.constant 1 : i32
    %189 = tpu.dynamic_rotate %186 by %c1_i32_136 dim 0 : vector<128x128xf32>, i32 -> vector<128x128xf32>
    %cst_137 = arith.constant 0.000000e+00 : f32
    %190 = vector.broadcast %cst_137 : f32 to vector<128x128xf32>
    %191 = arith.select %18, %190, %189 : vector<128x128xi1>, vector<128x128xf32>
    %c127_i32_138 = arith.constant 127 : i32
    %192 = tpu.dynamic_rotate %186 by %c127_i32_138 dim 0 : vector<128x128xf32>, i32 -> vector<128x128xf32>
    %cst_139 = arith.constant 0.000000e+00 : f32
    %193 = vector.broadcast %cst_139 : f32 to vector<128x128xf32>
    %194 = arith.select %20, %193, %192 : vector<128x128xi1>, vector<128x128xf32>
    %195 = tpu.concatenate %191, %186, %194 in 1 : vector<128x128xf32>, vector<128x128xf32>, vector<128x128xf32> -> vector<128x384xf32>
    %196 = arith.truncf %195 : vector<128x384xf32> to vector<128x384xbf16>
    %c2_140 = arith.constant 2 : index
    %c1_141 = arith.constant 1 : index
    %c0_142 = arith.constant 0 : index
    %c0_143 = arith.constant 0 : index
    %197 = vector.load %arg6[%c2_140, %c1_141, %c0_142, %c0_143] : memref<3x2x384x128xbf16, #tpu.memory_space<vmem>>, vector<1x1x384x128xbf16>
    %198 = vector.shape_cast %197 : vector<1x1x384x128xbf16> to vector<384x128xbf16>
    %cst_144 = arith.constant dense<0.000000e+00> : vector<128x128xf32>
    %199 = tpu.matmul %196, %198, %cst_144 {dimension_numbers = #tpu.dot_dimension_numbers<[1], [0], [0], [1], [0, 0, 1, 1], [], []>} : vector<128x384xbf16>, vector<384x128xbf16>, vector<128x128xf32> -> vector<128x128xf32>
    %200 = vector.broadcast %188 : vector<1x128xf32> to vector<128x128xf32>
    %201 = arith.addf %199, %200 : vector<128x128xf32>
    %202 = arith.addf %151, %201 : vector<128x128xf32>
    %203 = vector.shape_cast %202 : vector<128x128xf32> to vector<64x2x128xf32>
    %204 = vector.extract_strided_slice %203 {offsets = [0, 0, 0], sizes = [64, 1, 128], strides = [1, 1, 1]} : vector<64x2x128xf32> to vector<64x1x128xf32>
    %205 = vector.shape_cast %204 : vector<64x1x128xf32> to vector<64x128xf32>
    %206 = vector.extract_strided_slice %203 {offsets = [0, 1, 0], sizes = [64, 1, 128], strides = [1, 1, 1]} : vector<64x2x128xf32> to vector<64x1x128xf32>
    %207 = vector.shape_cast %206 : vector<64x1x128xf32> to vector<64x128xf32>
    %c1_i32_145 = arith.constant 1 : i32
    %208 = tpu.dynamic_rotate %207 by %c1_i32_145 dim 0 : vector<64x128xf32>, i32 -> vector<64x128xf32>
    %cst_146 = arith.constant 0.000000e+00 : f32
    %209 = vector.broadcast %cst_146 : f32 to vector<64x128xf32>
    %210 = arith.select %39, %209, %208 : vector<64x128xi1>, vector<64x128xf32>
    %211 = tpu.concatenate %210, %205, %207 in 1 : vector<64x128xf32>, vector<64x128xf32>, vector<64x128xf32> -> vector<64x384xf32>
    %212 = arith.truncf %211 : vector<64x384xf32> to vector<64x384xbf16>
    %c0_147 = arith.constant 0 : index
    %c0_148 = arith.constant 0 : index
    %213 = vector.load %arg8[%c0_147, %c0_148] : memref<384x128xbf16, #tpu.memory_space<vmem>>, vector<384x128xbf16>
    %cst_149 = arith.constant dense<0.000000e+00> : vector<64x128xf32>
    %214 = tpu.matmul %212, %213, %cst_149 {dimension_numbers = #tpu.dot_dimension_numbers<[1], [0], [0], [1], [0, 0, 1, 1], [], []>} : vector<64x384xbf16>, vector<384x128xbf16>, vector<64x128xf32> -> vector<64x128xf32>
    %c0_150 = arith.constant 0 : index
    %c0_151 = arith.constant 0 : index
    %215 = vector.load %arg9[%c0_150, %c0_151] : memref<1x128xf32, #tpu.memory_space<vmem>>, vector<1x128xf32>
    %216 = vector.broadcast %215 : vector<1x128xf32> to vector<64x128xf32>
    %217 = arith.addf %214, %216 : vector<64x128xf32>
    %c0_152 = arith.constant 0 : index
    %c0_153 = arith.constant 0 : index
    %c0_154 = arith.constant 0 : index
    %c0_155 = arith.constant 0 : index
    %218 = vector.load %arg10[%c0_152, %c0_153, %c0_154, %c0_155] : memref<3x2x1x128xf32, #tpu.memory_space<vmem>>, vector<1x1x1x128xf32>
    %219 = vector.shape_cast %218 : vector<1x1x1x128xf32> to vector<1x128xf32>
    %220 = vector.broadcast %219 : vector<1x128xf32> to vector<64x128xf32>
    %221 = arith.mulf %217, %220 : vector<64x128xf32>
    %c0_156 = arith.constant 0 : index
    %c0_157 = arith.constant 0 : index
    %c0_158 = arith.constant 0 : index
    %c0_159 = arith.constant 0 : index
    %222 = vector.load %arg11[%c0_156, %c0_157, %c0_158, %c0_159] : memref<3x2x1x128xf32, #tpu.memory_space<vmem>>, vector<1x1x1x128xf32>
    %223 = vector.shape_cast %222 : vector<1x1x1x128xf32> to vector<1x128xf32>
    %224 = vector.broadcast %223 : vector<1x128xf32> to vector<64x128xf32>
    %225 = arith.addf %221, %224 : vector<64x128xf32>
    %cst_160 = arith.constant 0.000000e+00 : f32
    %226 = vector.broadcast %cst_160 : f32 to vector<64x128xf32>
    %227 = arith.maximumf %225, %226 : vector<64x128xf32>
    %c0_161 = arith.constant 0 : index
    %c0_162 = arith.constant 0 : index
    %c0_163 = arith.constant 0 : index
    %c0_164 = arith.constant 0 : index
    %228 = vector.load %arg13[%c0_161, %c0_162, %c0_163, %c0_164] : memref<3x2x1x128xf32, #tpu.memory_space<vmem>>, vector<1x1x1x128xf32>
    %229 = vector.shape_cast %228 : vector<1x1x1x128xf32> to vector<1x128xf32>
    %c1_i32_165 = arith.constant 1 : i32
    %230 = tpu.dynamic_rotate %227 by %c1_i32_165 dim 0 : vector<64x128xf32>, i32 -> vector<64x128xf32>
    %cst_166 = arith.constant 0.000000e+00 : f32
    %231 = vector.broadcast %cst_166 : f32 to vector<64x128xf32>
    %232 = arith.select %39, %231, %230 : vector<64x128xi1>, vector<64x128xf32>
    %c63_i32 = arith.constant 63 : i32
    %233 = tpu.dynamic_rotate %227 by %c63_i32 dim 0 : vector<64x128xf32>, i32 -> vector<64x128xf32>
    %cst_167 = arith.constant 0.000000e+00 : f32
    %234 = vector.broadcast %cst_167 : f32 to vector<64x128xf32>
    %235 = arith.select %41, %234, %233 : vector<64x128xi1>, vector<64x128xf32>
    %236 = tpu.concatenate %232, %227, %235 in 1 : vector<64x128xf32>, vector<64x128xf32>, vector<64x128xf32> -> vector<64x384xf32>
    %237 = arith.truncf %236 : vector<64x384xf32> to vector<64x384xbf16>
    %c0_168 = arith.constant 0 : index
    %c0_169 = arith.constant 0 : index
    %c0_170 = arith.constant 0 : index
    %c0_171 = arith.constant 0 : index
    %238 = vector.load %arg12[%c0_168, %c0_169, %c0_170, %c0_171] : memref<3x2x384x128xbf16, #tpu.memory_space<vmem>>, vector<1x1x384x128xbf16>
    %239 = vector.shape_cast %238 : vector<1x1x384x128xbf16> to vector<384x128xbf16>
    %cst_172 = arith.constant dense<0.000000e+00> : vector<64x128xf32>
    %240 = tpu.matmul %237, %239, %cst_172 {dimension_numbers = #tpu.dot_dimension_numbers<[1], [0], [0], [1], [0, 0, 1, 1], [], []>} : vector<64x384xbf16>, vector<384x128xbf16>, vector<64x128xf32> -> vector<64x128xf32>
    %241 = vector.broadcast %229 : vector<1x128xf32> to vector<64x128xf32>
    %242 = arith.addf %240, %241 : vector<64x128xf32>
    %c0_173 = arith.constant 0 : index
    %c1_174 = arith.constant 1 : index
    %c0_175 = arith.constant 0 : index
    %c0_176 = arith.constant 0 : index
    %243 = vector.load %arg10[%c0_173, %c1_174, %c0_175, %c0_176] : memref<3x2x1x128xf32, #tpu.memory_space<vmem>>, vector<1x1x1x128xf32>
    %244 = vector.shape_cast %243 : vector<1x1x1x128xf32> to vector<1x128xf32>
    %245 = vector.broadcast %244 : vector<1x128xf32> to vector<64x128xf32>
    %246 = arith.mulf %242, %245 : vector<64x128xf32>
    %c0_177 = arith.constant 0 : index
    %c1_178 = arith.constant 1 : index
    %c0_179 = arith.constant 0 : index
    %c0_180 = arith.constant 0 : index
    %247 = vector.load %arg11[%c0_177, %c1_178, %c0_179, %c0_180] : memref<3x2x1x128xf32, #tpu.memory_space<vmem>>, vector<1x1x1x128xf32>
    %248 = vector.shape_cast %247 : vector<1x1x1x128xf32> to vector<1x128xf32>
    %249 = vector.broadcast %248 : vector<1x128xf32> to vector<64x128xf32>
    %250 = arith.addf %246, %249 : vector<64x128xf32>
    %cst_181 = arith.constant 0.000000e+00 : f32
    %251 = vector.broadcast %cst_181 : f32 to vector<64x128xf32>
    %252 = arith.maximumf %250, %251 : vector<64x128xf32>
    %c0_182 = arith.constant 0 : index
    %c1_183 = arith.constant 1 : index
    %c0_184 = arith.constant 0 : index
    %c0_185 = arith.constant 0 : index
    %253 = vector.load %arg13[%c0_182, %c1_183, %c0_184, %c0_185] : memref<3x2x1x128xf32, #tpu.memory_space<vmem>>, vector<1x1x1x128xf32>
    %254 = vector.shape_cast %253 : vector<1x1x1x128xf32> to vector<1x128xf32>
    %c1_i32_186 = arith.constant 1 : i32
    %255 = tpu.dynamic_rotate %252 by %c1_i32_186 dim 0 : vector<64x128xf32>, i32 -> vector<64x128xf32>
    %cst_187 = arith.constant 0.000000e+00 : f32
    %256 = vector.broadcast %cst_187 : f32 to vector<64x128xf32>
    %257 = arith.select %39, %256, %255 : vector<64x128xi1>, vector<64x128xf32>
    %c63_i32_188 = arith.constant 63 : i32
    %258 = tpu.dynamic_rotate %252 by %c63_i32_188 dim 0 : vector<64x128xf32>, i32 -> vector<64x128xf32>
    %cst_189 = arith.constant 0.000000e+00 : f32
    %259 = vector.broadcast %cst_189 : f32 to vector<64x128xf32>
    %260 = arith.select %41, %259, %258 : vector<64x128xi1>, vector<64x128xf32>
    %261 = tpu.concatenate %257, %252, %260 in 1 : vector<64x128xf32>, vector<64x128xf32>, vector<64x128xf32> -> vector<64x384xf32>
    %262 = arith.truncf %261 : vector<64x384xf32> to vector<64x384xbf16>
    %c0_190 = arith.constant 0 : index
    %c1_191 = arith.constant 1 : index
    %c0_192 = arith.constant 0 : index
    %c0_193 = arith.constant 0 : index
    %263 = vector.load %arg12[%c0_190, %c1_191, %c0_192, %c0_193] : memref<3x2x384x128xbf16, #tpu.memory_space<vmem>>, vector<1x1x384x128xbf16>
    %264 = vector.shape_cast %263 : vector<1x1x384x128xbf16> to vector<384x128xbf16>
    %cst_194 = arith.constant dense<0.000000e+00> : vector<64x128xf32>
    %265 = tpu.matmul %262, %264, %cst_194 {dimension_numbers = #tpu.dot_dimension_numbers<[1], [0], [0], [1], [0, 0, 1, 1], [], []>} : vector<64x384xbf16>, vector<384x128xbf16>, vector<64x128xf32> -> vector<64x128xf32>
    %266 = vector.broadcast %254 : vector<1x128xf32> to vector<64x128xf32>
    %267 = arith.addf %265, %266 : vector<64x128xf32>
    %268 = arith.addf %217, %267 : vector<64x128xf32>
    %c1_195 = arith.constant 1 : index
    %c0_196 = arith.constant 0 : index
    %c0_197 = arith.constant 0 : index
    %c0_198 = arith.constant 0 : index
    %269 = vector.load %arg10[%c1_195, %c0_196, %c0_197, %c0_198] : memref<3x2x1x128xf32, #tpu.memory_space<vmem>>, vector<1x1x1x128xf32>
    %270 = vector.shape_cast %269 : vector<1x1x1x128xf32> to vector<1x128xf32>
    %271 = vector.broadcast %270 : vector<1x128xf32> to vector<64x128xf32>
    %272 = arith.mulf %268, %271 : vector<64x128xf32>
    %c1_199 = arith.constant 1 : index
    %c0_200 = arith.constant 0 : index
    %c0_201 = arith.constant 0 : index
    %c0_202 = arith.constant 0 : index
    %273 = vector.load %arg11[%c1_199, %c0_200, %c0_201, %c0_202] : memref<3x2x1x128xf32, #tpu.memory_space<vmem>>, vector<1x1x1x128xf32>
    %274 = vector.shape_cast %273 : vector<1x1x1x128xf32> to vector<1x128xf32>
    %275 = vector.broadcast %274 : vector<1x128xf32> to vector<64x128xf32>
    %276 = arith.addf %272, %275 : vector<64x128xf32>
    %cst_203 = arith.constant 0.000000e+00 : f32
    %277 = vector.broadcast %cst_203 : f32 to vector<64x128xf32>
    %278 = arith.maximumf %276, %277 : vector<64x128xf32>
    %c1_204 = arith.constant 1 : index
    %c0_205 = arith.constant 0 : index
    %c0_206 = arith.constant 0 : index
    %c0_207 = arith.constant 0 : index
    %279 = vector.load %arg13[%c1_204, %c0_205, %c0_206, %c0_207] : memref<3x2x1x128xf32, #tpu.memory_space<vmem>>, vector<1x1x1x128xf32>
    %280 = vector.shape_cast %279 : vector<1x1x1x128xf32> to vector<1x128xf32>
    %c1_i32_208 = arith.constant 1 : i32
    %281 = tpu.dynamic_rotate %278 by %c1_i32_208 dim 0 : vector<64x128xf32>, i32 -> vector<64x128xf32>
    %cst_209 = arith.constant 0.000000e+00 : f32
    %282 = vector.broadcast %cst_209 : f32 to vector<64x128xf32>
    %283 = arith.select %39, %282, %281 : vector<64x128xi1>, vector<64x128xf32>
    %c63_i32_210 = arith.constant 63 : i32
    %284 = tpu.dynamic_rotate %278 by %c63_i32_210 dim 0 : vector<64x128xf32>, i32 -> vector<64x128xf32>
    %cst_211 = arith.constant 0.000000e+00 : f32
    %285 = vector.broadcast %cst_211 : f32 to vector<64x128xf32>
    %286 = arith.select %41, %285, %284 : vector<64x128xi1>, vector<64x128xf32>
    %287 = tpu.concatenate %283, %278, %286 in 1 : vector<64x128xf32>, vector<64x128xf32>, vector<64x128xf32> -> vector<64x384xf32>
    %288 = arith.truncf %287 : vector<64x384xf32> to vector<64x384xbf16>
    %c1_212 = arith.constant 1 : index
    %c0_213 = arith.constant 0 : index
    %c0_214 = arith.constant 0 : index
    %c0_215 = arith.constant 0 : index
    %289 = vector.load %arg12[%c1_212, %c0_213, %c0_214, %c0_215] : memref<3x2x384x128xbf16, #tpu.memory_space<vmem>>, vector<1x1x384x128xbf16>
    %290 = vector.shape_cast %289 : vector<1x1x384x128xbf16> to vector<384x128xbf16>
    %cst_216 = arith.constant dense<0.000000e+00> : vector<64x128xf32>
    %291 = tpu.matmul %288, %290, %cst_216 {dimension_numbers = #tpu.dot_dimension_numbers<[1], [0], [0], [1], [0, 0, 1, 1], [], []>} : vector<64x384xbf16>, vector<384x128xbf16>, vector<64x128xf32> -> vector<64x128xf32>
    %292 = vector.broadcast %280 : vector<1x128xf32> to vector<64x128xf32>
    %293 = arith.addf %291, %292 : vector<64x128xf32>
    %c1_217 = arith.constant 1 : index
    %c1_218 = arith.constant 1 : index
    %c0_219 = arith.constant 0 : index
    %c0_220 = arith.constant 0 : index
    %294 = vector.load %arg10[%c1_217, %c1_218, %c0_219, %c0_220] : memref<3x2x1x128xf32, #tpu.memory_space<vmem>>, vector<1x1x1x128xf32>
    %295 = vector.shape_cast %294 : vector<1x1x1x128xf32> to vector<1x128xf32>
    %296 = vector.broadcast %295 : vector<1x128xf32> to vector<64x128xf32>
    %297 = arith.mulf %293, %296 : vector<64x128xf32>
    %c1_221 = arith.constant 1 : index
    %c1_222 = arith.constant 1 : index
    %c0_223 = arith.constant 0 : index
    %c0_224 = arith.constant 0 : index
    %298 = vector.load %arg11[%c1_221, %c1_222, %c0_223, %c0_224] : memref<3x2x1x128xf32, #tpu.memory_space<vmem>>, vector<1x1x1x128xf32>
    %299 = vector.shape_cast %298 : vector<1x1x1x128xf32> to vector<1x128xf32>
    %300 = vector.broadcast %299 : vector<1x128xf32> to vector<64x128xf32>
    %301 = arith.addf %297, %300 : vector<64x128xf32>
    %cst_225 = arith.constant 0.000000e+00 : f32
    %302 = vector.broadcast %cst_225 : f32 to vector<64x128xf32>
    %303 = arith.maximumf %301, %302 : vector<64x128xf32>
    %c1_226 = arith.constant 1 : index
    %c1_227 = arith.constant 1 : index
    %c0_228 = arith.constant 0 : index
    %c0_229 = arith.constant 0 : index
    %304 = vector.load %arg13[%c1_226, %c1_227, %c0_228, %c0_229] : memref<3x2x1x128xf32, #tpu.memory_space<vmem>>, vector<1x1x1x128xf32>
    %305 = vector.shape_cast %304 : vector<1x1x1x128xf32> to vector<1x128xf32>
    %c1_i32_230 = arith.constant 1 : i32
    %306 = tpu.dynamic_rotate %303 by %c1_i32_230 dim 0 : vector<64x128xf32>, i32 -> vector<64x128xf32>
    %cst_231 = arith.constant 0.000000e+00 : f32
    %307 = vector.broadcast %cst_231 : f32 to vector<64x128xf32>
    %308 = arith.select %39, %307, %306 : vector<64x128xi1>, vector<64x128xf32>
    %c63_i32_232 = arith.constant 63 : i32
    %309 = tpu.dynamic_rotate %303 by %c63_i32_232 dim 0 : vector<64x128xf32>, i32 -> vector<64x128xf32>
    %cst_233 = arith.constant 0.000000e+00 : f32
    %310 = vector.broadcast %cst_233 : f32 to vector<64x128xf32>
    %311 = arith.select %41, %310, %309 : vector<64x128xi1>, vector<64x128xf32>
    %312 = tpu.concatenate %308, %303, %311 in 1 : vector<64x128xf32>, vector<64x128xf32>, vector<64x128xf32> -> vector<64x384xf32>
    %313 = arith.truncf %312 : vector<64x384xf32> to vector<64x384xbf16>
    %c1_234 = arith.constant 1 : index
    %c1_235 = arith.constant 1 : index
    %c0_236 = arith.constant 0 : index
    %c0_237 = arith.constant 0 : index
    %314 = vector.load %arg12[%c1_234, %c1_235, %c0_236, %c0_237] : memref<3x2x384x128xbf16, #tpu.memory_space<vmem>>, vector<1x1x384x128xbf16>
    %315 = vector.shape_cast %314 : vector<1x1x384x128xbf16> to vector<384x128xbf16>
    %cst_238 = arith.constant dense<0.000000e+00> : vector<64x128xf32>
    %316 = tpu.matmul %313, %315, %cst_238 {dimension_numbers = #tpu.dot_dimension_numbers<[1], [0], [0], [1], [0, 0, 1, 1], [], []>} : vector<64x384xbf16>, vector<384x128xbf16>, vector<64x128xf32> -> vector<64x128xf32>
    %317 = vector.broadcast %305 : vector<1x128xf32> to vector<64x128xf32>
    %318 = arith.addf %316, %317 : vector<64x128xf32>
    %319 = arith.addf %268, %318 : vector<64x128xf32>
    %c2_239 = arith.constant 2 : index
    %c0_240 = arith.constant 0 : index
    %c0_241 = arith.constant 0 : index
    %c0_242 = arith.constant 0 : index
    %320 = vector.load %arg10[%c2_239, %c0_240, %c0_241, %c0_242] : memref<3x2x1x128xf32, #tpu.memory_space<vmem>>, vector<1x1x1x128xf32>
    %321 = vector.shape_cast %320 : vector<1x1x1x128xf32> to vector<1x128xf32>
    %322 = vector.broadcast %321 : vector<1x128xf32> to vector<64x128xf32>
    %323 = arith.mulf %319, %322 : vector<64x128xf32>
    %c2_243 = arith.constant 2 : index
    %c0_244 = arith.constant 0 : index
    %c0_245 = arith.constant 0 : index
    %c0_246 = arith.constant 0 : index
    %324 = vector.load %arg11[%c2_243, %c0_244, %c0_245, %c0_246] : memref<3x2x1x128xf32, #tpu.memory_space<vmem>>, vector<1x1x1x128xf32>
    %325 = vector.shape_cast %324 : vector<1x1x1x128xf32> to vector<1x128xf32>
    %326 = vector.broadcast %325 : vector<1x128xf32> to vector<64x128xf32>
    %327 = arith.addf %323, %326 : vector<64x128xf32>
    %cst_247 = arith.constant 0.000000e+00 : f32
    %328 = vector.broadcast %cst_247 : f32 to vector<64x128xf32>
    %329 = arith.maximumf %327, %328 : vector<64x128xf32>
    %c2_248 = arith.constant 2 : index
    %c0_249 = arith.constant 0 : index
    %c0_250 = arith.constant 0 : index
    %c0_251 = arith.constant 0 : index
    %330 = vector.load %arg13[%c2_248, %c0_249, %c0_250, %c0_251] : memref<3x2x1x128xf32, #tpu.memory_space<vmem>>, vector<1x1x1x128xf32>
    %331 = vector.shape_cast %330 : vector<1x1x1x128xf32> to vector<1x128xf32>
    %c1_i32_252 = arith.constant 1 : i32
    %332 = tpu.dynamic_rotate %329 by %c1_i32_252 dim 0 : vector<64x128xf32>, i32 -> vector<64x128xf32>
    %cst_253 = arith.constant 0.000000e+00 : f32
    %333 = vector.broadcast %cst_253 : f32 to vector<64x128xf32>
    %334 = arith.select %39, %333, %332 : vector<64x128xi1>, vector<64x128xf32>
    %c63_i32_254 = arith.constant 63 : i32
    %335 = tpu.dynamic_rotate %329 by %c63_i32_254 dim 0 : vector<64x128xf32>, i32 -> vector<64x128xf32>
    %cst_255 = arith.constant 0.000000e+00 : f32
    %336 = vector.broadcast %cst_255 : f32 to vector<64x128xf32>
    %337 = arith.select %41, %336, %335 : vector<64x128xi1>, vector<64x128xf32>
    %338 = tpu.concatenate %334, %329, %337 in 1 : vector<64x128xf32>, vector<64x128xf32>, vector<64x128xf32> -> vector<64x384xf32>
    %339 = arith.truncf %338 : vector<64x384xf32> to vector<64x384xbf16>
    %c2_256 = arith.constant 2 : index
    %c0_257 = arith.constant 0 : index
    %c0_258 = arith.constant 0 : index
    %c0_259 = arith.constant 0 : index
    %340 = vector.load %arg12[%c2_256, %c0_257, %c0_258, %c0_259] : memref<3x2x384x128xbf16, #tpu.memory_space<vmem>>, vector<1x1x384x128xbf16>
    %341 = vector.shape_cast %340 : vector<1x1x384x128xbf16> to vector<384x128xbf16>
    %cst_260 = arith.constant dense<0.000000e+00> : vector<64x128xf32>
    %342 = tpu.matmul %339, %341, %cst_260 {dimension_numbers = #tpu.dot_dimension_numbers<[1], [0], [0], [1], [0, 0, 1, 1], [], []>} : vector<64x384xbf16>, vector<384x128xbf16>, vector<64x128xf32> -> vector<64x128xf32>
    %343 = vector.broadcast %331 : vector<1x128xf32> to vector<64x128xf32>
    %344 = arith.addf %342, %343 : vector<64x128xf32>
    %c2_261 = arith.constant 2 : index
    %c1_262 = arith.constant 1 : index
    %c0_263 = arith.constant 0 : index
    %c0_264 = arith.constant 0 : index
    %345 = vector.load %arg10[%c2_261, %c1_262, %c0_263, %c0_264] : memref<3x2x1x128xf32, #tpu.memory_space<vmem>>, vector<1x1x1x128xf32>
    %346 = vector.shape_cast %345 : vector<1x1x1x128xf32> to vector<1x128xf32>
    %347 = vector.broadcast %346 : vector<1x128xf32> to vector<64x128xf32>
    %348 = arith.mulf %344, %347 : vector<64x128xf32>
    %c2_265 = arith.constant 2 : index
    %c1_266 = arith.constant 1 : index
    %c0_267 = arith.constant 0 : index
    %c0_268 = arith.constant 0 : index
    %349 = vector.load %arg11[%c2_265, %c1_266, %c0_267, %c0_268] : memref<3x2x1x128xf32, #tpu.memory_space<vmem>>, vector<1x1x1x128xf32>
    %350 = vector.shape_cast %349 : vector<1x1x1x128xf32> to vector<1x128xf32>
    %351 = vector.broadcast %350 : vector<1x128xf32> to vector<64x128xf32>
    %352 = arith.addf %348, %351 : vector<64x128xf32>
    %cst_269 = arith.constant 0.000000e+00 : f32
    %353 = vector.broadcast %cst_269 : f32 to vector<64x128xf32>
    %354 = arith.maximumf %352, %353 : vector<64x128xf32>
    %c2_270 = arith.constant 2 : index
    %c1_271 = arith.constant 1 : index
    %c0_272 = arith.constant 0 : index
    %c0_273 = arith.constant 0 : index
    %355 = vector.load %arg13[%c2_270, %c1_271, %c0_272, %c0_273] : memref<3x2x1x128xf32, #tpu.memory_space<vmem>>, vector<1x1x1x128xf32>
    %356 = vector.shape_cast %355 : vector<1x1x1x128xf32> to vector<1x128xf32>
    %c1_i32_274 = arith.constant 1 : i32
    %357 = tpu.dynamic_rotate %354 by %c1_i32_274 dim 0 : vector<64x128xf32>, i32 -> vector<64x128xf32>
    %cst_275 = arith.constant 0.000000e+00 : f32
    %358 = vector.broadcast %cst_275 : f32 to vector<64x128xf32>
    %359 = arith.select %39, %358, %357 : vector<64x128xi1>, vector<64x128xf32>
    %c63_i32_276 = arith.constant 63 : i32
    %360 = tpu.dynamic_rotate %354 by %c63_i32_276 dim 0 : vector<64x128xf32>, i32 -> vector<64x128xf32>
    %cst_277 = arith.constant 0.000000e+00 : f32
    %361 = vector.broadcast %cst_277 : f32 to vector<64x128xf32>
    %362 = arith.select %41, %361, %360 : vector<64x128xi1>, vector<64x128xf32>
    %363 = tpu.concatenate %359, %354, %362 in 1 : vector<64x128xf32>, vector<64x128xf32>, vector<64x128xf32> -> vector<64x384xf32>
    %364 = arith.truncf %363 : vector<64x384xf32> to vector<64x384xbf16>
    %c2_278 = arith.constant 2 : index
    %c1_279 = arith.constant 1 : index
    %c0_280 = arith.constant 0 : index
    %c0_281 = arith.constant 0 : index
    %365 = vector.load %arg12[%c2_278, %c1_279, %c0_280, %c0_281] : memref<3x2x384x128xbf16, #tpu.memory_space<vmem>>, vector<1x1x384x128xbf16>
    %366 = vector.shape_cast %365 : vector<1x1x384x128xbf16> to vector<384x128xbf16>
    %cst_282 = arith.constant dense<0.000000e+00> : vector<64x128xf32>
    %367 = tpu.matmul %364, %366, %cst_282 {dimension_numbers = #tpu.dot_dimension_numbers<[1], [0], [0], [1], [0, 0, 1, 1], [], []>} : vector<64x384xbf16>, vector<384x128xbf16>, vector<64x128xf32> -> vector<64x128xf32>
    %368 = vector.broadcast %356 : vector<1x128xf32> to vector<64x128xf32>
    %369 = arith.addf %367, %368 : vector<64x128xf32>
    %370 = arith.addf %319, %369 : vector<64x128xf32>
    %371 = vector.shape_cast %370 : vector<64x128xf32> to vector<4x16x128xf32>
    %c0_283 = arith.constant 0 : index
    %c0_284 = arith.constant 0 : index
    %c0_285 = arith.constant 0 : index
    %372 = vector.load %arg14[%c0_283, %c0_284, %c0_285] : memref<4x16x128xf32, #tpu.memory_space<vmem>>, vector<4x16x128xf32>
    tpu.vector_store %arg14[%c0_283, %c0_284, %c0_285], %371 {strides = array<i32>} : memref<4x16x128xf32, #tpu.memory_space<vmem>>, vector<4x16x128xf32>,
    return
  }
  func.func @transform_0(%arg0: i32) -> (i32, i32, i32) {
    %c0_i32 = arith.constant 0 : i32
    %c0_i32_0 = arith.constant 0 : i32
    %c0_i32_1 = arith.constant 0 : i32
    return %arg0, %c0_i32, %c0_i32_0 : i32, i32, i32
  }
  func.func @transform_1(%arg0: i32) -> (i32, i32) {
    %c0_i32 = arith.constant 0 : i32
    %c0_i32_0 = arith.constant 0 : i32
    %c0_i32_1 = arith.constant 0 : i32
    return %c0_i32, %c0_i32_0 : i32, i32
  }
  func.func @transform_2(%arg0: i32) -> (i32, i32) {
    %c0_i32 = arith.constant 0 : i32
    %c0_i32_0 = arith.constant 0 : i32
    %c0_i32_1 = arith.constant 0 : i32
    return %c0_i32, %c0_i32_0 : i32, i32
  }
  func.func @transform_3(%arg0: i32) -> (i32, i32, i32, i32) {
    %c0_i32 = arith.constant 0 : i32
    %c0_i32_0 = arith.constant 0 : i32
    %c0_i32_1 = arith.constant 0 : i32
    %c0_i32_2 = arith.constant 0 : i32
    %c0_i32_3 = arith.constant 0 : i32
    return %c0_i32, %c0_i32_0, %c0_i32_1, %c0_i32_2 : i32, i32, i32, i32
  }
  func.func @transform_4(%arg0: i32) -> (i32, i32, i32, i32) {
    %c0_i32 = arith.constant 0 : i32
    %c0_i32_0 = arith.constant 0 : i32
    %c0_i32_1 = arith.constant 0 : i32
    %c0_i32_2 = arith.constant 0 : i32
    %c0_i32_3 = arith.constant 0 : i32
    return %c0_i32, %c0_i32_0, %c0_i32_1, %c0_i32_2 : i32, i32, i32, i32
  }
  func.func @transform_5(%arg0: i32) -> (i32, i32, i32, i32) {
    %c0_i32 = arith.constant 0 : i32
    %c0_i32_0 = arith.constant 0 : i32
    %c0_i32_1 = arith.constant 0 : i32
    %c0_i32_2 = arith.constant 0 : i32
    %c0_i32_3 = arith.constant 0 : i32
    return %c0_i32, %c0_i32_0, %c0_i32_1, %c0_i32_2 : i32, i32, i32, i32
  }
  func.func @transform_6(%arg0: i32) -> (i32, i32, i32, i32) {
    %c0_i32 = arith.constant 0 : i32
    %c0_i32_0 = arith.constant 0 : i32
    %c0_i32_1 = arith.constant 0 : i32
    %c0_i32_2 = arith.constant 0 : i32
    %c0_i32_3 = arith.constant 0 : i32
    return %c0_i32, %c0_i32_0, %c0_i32_1, %c0_i32_2 : i32, i32, i32, i32
  }
  func.func @transform_7(%arg0: i32) -> (i32, i32) {
    %c0_i32 = arith.constant 0 : i32
    %c0_i32_0 = arith.constant 0 : i32
    %c0_i32_1 = arith.constant 0 : i32
    return %c0_i32, %c0_i32_0 : i32, i32
  }
  func.func @transform_8(%arg0: i32) -> (i32, i32) {
    %c0_i32 = arith.constant 0 : i32
    %c0_i32_0 = arith.constant 0 : i32
    %c0_i32_1 = arith.constant 0 : i32
    return %c0_i32, %c0_i32_0 : i32, i32
  }
  func.func @transform_9(%arg0: i32) -> (i32, i32, i32, i32) {
    %c0_i32 = arith.constant 0 : i32
    %c0_i32_0 = arith.constant 0 : i32
    %c0_i32_1 = arith.constant 0 : i32
    %c0_i32_2 = arith.constant 0 : i32
    %c0_i32_3 = arith.constant 0 : i32
    return %c0_i32, %c0_i32_0, %c0_i32_1, %c0_i32_2 : i32, i32, i32, i32
  }
  func.func @transform_10(%arg0: i32) -> (i32, i32, i32, i32) {
    %c0_i32 = arith.constant 0 : i32
    %c0_i32_0 = arith.constant 0 : i32
    %c0_i32_1 = arith.constant 0 : i32
    %c0_i32_2 = arith.constant 0 : i32
    %c0_i32_3 = arith.constant 0 : i32
    return %c0_i32, %c0_i32_0, %c0_i32_1, %c0_i32_2 : i32, i32, i32, i32
  }
  func.func @transform_11(%arg0: i32) -> (i32, i32, i32, i32) {
    %c0_i32 = arith.constant 0 : i32
    %c0_i32_0 = arith.constant 0 : i32
    %c0_i32_1 = arith.constant 0 : i32
    %c0_i32_2 = arith.constant 0 : i32
    %c0_i32_3 = arith.constant 0 : i32
    return %c0_i32, %c0_i32_0, %c0_i32_1, %c0_i32_2 : i32, i32, i32, i32
  }
  func.func @transform_12(%arg0: i32) -> (i32, i32, i32, i32) {
    %c0_i32 = arith.constant 0 : i32
    %c0_i32_0 = arith.constant 0 : i32
    %c0_i32_1 = arith.constant 0 : i32
    %c0_i32_2 = arith.constant 0 : i32
    %c0_i32_3 = arith.constant 0 : i32
    return %c0_i32, %c0_i32_0, %c0_i32_1, %c0_i32_2 : i32, i32, i32, i32
  }
  func.func @transform_13(%arg0: i32) -> (i32, i32, i32) {
    %c0_i32 = arith.constant 0 : i32
    %c0_i32_0 = arith.constant 0 : i32
    %c0_i32_1 = arith.constant 0 : i32
    return %arg0, %c0_i32, %c0_i32_0 : i32, i32, i32
  }
}

</mosaic_0001>

<bundles_post_ra>
// kernel: tpu_custom_call.1
= control target key start
LH: loop header
LB: loop body
LE: loop exit
PB: predicated region body
PF: predicated region fallthrough
CT: control target
= control target key end

     0   :  { %s15505_s0 = inlined_call_operand.hbm [shape: f32[8,32,64], index: 0, kind: input, shape index: {}]   ;;  %s15506_s1 = inlined_call_operand.hbm [shape: bf16[64,128], index: 1, kind: input, shape index: {}]   ;;  %s15507_s2 = inlined_call_operand.hbm [shape: f32[1,128], index: 2, kind: input, shape index: {}]   ;;  %s15508_s3 = inlined_call_operand.vmem [shape: f32[3,2,1,128], index: 3, kind: input, shape index: {}]   ;;  %s15509_s4 = inlined_call_operand.vmem [shape: f32[3,2,1,128], index: 4, kind: input, shape index: {}]   ;;  %s15510_s5 = inlined_call_operand.hbm [shape: bf16[3,2,384,128], index: 5, kind: input, shape index: {}]   ;;  %s15511_s6 = inlined_call_operand.vmem [shape: f32[3,2,1,128], index: 6, kind: input, shape index: {}]   ;;  %s15512_s7 = inlined_call_operand.hbm [shape: bf16[384,128], index: 7, kind: input, shape index: {}]   ;;  %s15513_s8 = inlined_call_operand.hbm [shape: f32[1,128], index: 8, kind: input, shape index: {}]   ;;  %s15514_s9 = inlined_call_operand.vmem [shape: f32[3,2,1,128], index: 9, kind: input, shape index: {}]   ;;  %s15515_s10 = inlined_call_operand.vmem [shape: f32[3,2,1,128], index: 10, kind: input, shape index: {}]   ;;  %s15516_s11 = inlined_call_operand.hbm [shape: bf16[3,2,384,128], index: 11, kind: input, shape index: {}]   ;;  %s15517_s12 = inlined_call_operand.vmem [shape: f32[3,2,1,128], index: 12, kind: input, shape index: {}]   ;;  %s15518_s13 = inlined_call_operand.hbm [shape: f32[8,16,128], index: 13, kind: output, shape index: {}]  }
   0x1   :  { %15578 = sst [smem:[#allocation35_spill]] %s15505_s0 }
   0x2   :  { %15579 = sst [smem:[#allocation36_spill]] %s15506_s1 }
   0x3   :  { %15580 = sst [smem:[#allocation37_spill]] %s15507_s2 }
   0x4   :  { %15581 = sst [smem:[#allocation38_spill]] %s15511_s6 }
   0x5   :  { %15582 = sst [smem:[#allocation39_spill]] %s15514_s9 }
   0x6   :  { %15583 = sst [smem:[#allocation40_spill]] %s15515_s10 }
   0x7   :  { %15584 = sst [smem:[#allocation41_spill]] %s15517_s12 }
   0x8   :  { %15585 = sst [smem:[#allocation42_spill]] %s15518_s13 }
   0x9   :  { %18 = vsyncpa [#allocation3], 0 }
   0xa   :  { %20 = vsyncpa [#allocation3 + $0x1], 0 }
   0xb   :  { %21 = vsyncpa [#allocation6], 0 }
   0xc   :  { %22 = vsyncpa [#allocation9], 0 }
   0xd   :  { %23 = vsyncpa [#allocation12], 0 }
   0xe   :  { %24 = vsyncpa [#allocation4], 0 }
   0xf   :  { %26 = vsyncpa [#allocation4 + $0x1], 0  ;;  %s11538_s25 = smov 0   ;;  %s11540_s26 = smov 0  }
  0x10   :  { %s11542_s27 = smov 0   ;;  %s11544_s28 = smov 0  }
  0x11 LB: > { %s11452_s29 = smov [#allocation5]   ;;  %s11559_s14 = sadd.s32 4294967295, %s11450_s28   ;;  %s11450_s28 = sphi %s11544_s28, %s15816_s28   ;;  %s11446_s27 = sphi %s11542_s27, %s15815_s27   ;;  %s11442_s26 = sphi %s11540_s26, %s15814_s26   ;;  %s11438_s25 = sphi %s11538_s25, %s15813_s25  }
  0x12   : > { %s353_s30 = sshll.u32 %s11452_s29, 4  ;;  %p8664_p0 = scmp.ge.s32.totalorder %s11450_s28, 1  ;;  %s11564_s30 = int_to_ptr.vmem [resolvable:$true] %s353_s30 }
  0x13   : > { %p15526_p1 = scmp.eq.s32.totalorder %s11559_s14, 0  ;;  %p341_p2 = scmp.lt.s32.totalorder %s11450_s28, 3 }
  0x14   : > { %s11453_s16 = smov [#allocation8]   ;;  %s11454_s19 = smov [#allocation11]  }
  0x15   : > { %p11566_p3 = pnand %p8664_p0, %p341_p2  ;;  %s383_s17 = sshll.u32 %s11453_s16, 4  ;;  %s11579_s17 = int_to_ptr.vmem [resolvable:$true] %s383_s17 }
  0x16   : > { %s413_s20 = sshll.u32 %s11454_s19, 4  ;;  %s15588_s1 = sld [smem:[#allocation36_spill]]  ;;  %s11581_s20 = int_to_ptr.vmem [resolvable:$true] %s413_s20 }
  0x17   : > { %s15586_s15 = scalar_select %p11566_p3, 1, 0 }
  0x18   : > { %p10771_p5 = pneg %p11566_p3 }
  0x1a   : > { %p11575_p6 = pnand %p10771_p5, %p15526_p1 }
  0x1c   : > { %s11174_s23 = scalar_lea.hbm %s15588_s1, 512  ;;  %p11591_p8 = pneg %p11575_p6 }
  0x1d   : > { %p11175_p7 = scmp.ne.s32.totalorder %s15588_s1, %s11174_s23  ;;  %p11181_p11 = scmp.lt.u32.totalorder %s11174_s23, %s15588_s1 }
  0x1f   : > { %p11177_p9 = pnand %p11591_p8, %p11175_p7 }
  0x21   : > { %p11178_p10 = pneg %p11177_p9 }
  0x23   : > { %p11183_p12 = pnand %p11181_p11, %p11178_p10 }
  0x25   : > { %11186 = shalt.err (!%p11183_p12)
}
  0x26   : > { %s11187_s21 = scalar_lea.vmem %s11564_s30, 512  ;;  %p11195_p5 = scmp.lt.s32.totalorder %s11564_s30, %s11564_s30 }
  0x27   : > { %p11188_p13 = scmp.ne.s32.totalorder %s11564_s30, %s11187_s21  ;;  %p11196_p4 = scmp.lt.s32.totalorder %s11187_s21, %s11187_s21 }
  0x29   : > { %p11190_p0 = pnand %p11188_p13, %p11591_p8  ;;  %p11197_p7 = por %p11196_p4, %p11195_p5 }
  0x2b   : > { %p11191_p2 = pneg %p11190_p0 }
  0x2d   : > { %p11198_p9 = pnand %p11197_p7, %p11191_p2 }
  0x2f   : > { %11201 = shalt.err (!%p11198_p9)
}
  0x30   : > { %s15524_s22 = smov 64   ;;  %s11456_s13 = smov 4  }
  0x31   : > { %10774 = dma.hbm_to_vmem [thread:$0]  (!%p11575_p6), %s15588_s1, 512, %s11564_s30, [#allocation6], %s15524_s22, %s15524_s22, %s11456_s13  }
  0x32   : > { %s11202_s21 = scalar_lea.hbm %s15510_s5, 18432 }
  0x33   : > { %p11203_p4 = scmp.ne.s32.totalorder %s15510_s5, %s11202_s21  ;;  %p11209_p12 = scmp.lt.u32.totalorder %s11202_s21, %s15510_s5 }
  0x35   : > { %p11205_p10 = pnand %p11203_p4, %p11591_p8 }
  0x37   : > { %p11206_p11 = pneg %p11205_p10 }
  0x39   : > { %p11211_p13 = pnand %p11209_p12, %p11206_p11 }
  0x3b   : > { %11214 = shalt.err (!%p11211_p13)
}
  0x3c   : > { %s11215_s30 = scalar_lea.vmem %s11579_s17, 18432  ;;  %p11223_p7 = scmp.lt.s32.totalorder %s11579_s17, %s11579_s17 }
  0x3d   : > { %p11216_p0 = scmp.ne.s32.totalorder %s11579_s17, %s11215_s30  ;;  %p11224_p9 = scmp.lt.s32.totalorder %s11215_s30, %s11215_s30 }
  0x3f   : > { %p11218_p2 = pnand %p11216_p0, %p11591_p8  ;;  %p11225_p4 = por %p11224_p9, %p11223_p7 }
  0x41   : > { %p11219_p5 = pneg %p11218_p2 }
  0x43   : > { %p11226_p10 = pnand %p11225_p4, %p11219_p5 }
  0x45   : > { %11229 = shalt.err (!%p11226_p10)
}
  0x46   : > { %10780 = dma.hbm_to_vmem [thread:$0]  (!%p11575_p6), %s15510_s5, 18432, %s11579_s17, [#allocation9], %s15524_s22, %s15524_s22, %s11456_s13  }
  0x47   : > { %s11230_s23 = scalar_lea.hbm %s15513_s8, 16 }
  0x48   : > { %p11231_p11 = scmp.ne.s32.totalorder %s15513_s8, %s11230_s23  ;;  %p11237_p0 = scmp.lt.u32.totalorder %s11230_s23, %s15513_s8 }
  0x4a   : > { %p11233_p12 = pnand %p11231_p11, %p11591_p8 }
  0x4c   : > { %p11234_p13 = pneg %p11233_p12 }
  0x4e   : > { %p11239_p2 = pnand %p11237_p0, %p11234_p13 }
  0x50   : > { %11242 = shalt.err (!%p11239_p2)
}
  0x51   : > { %s11243_s17 = scalar_lea.vmem %s11581_s20, 16  ;;  %s11250_s30 = scalar_lea.vmem %s11581_s20, 32 }
  0x52   : > { %p11244_p5 = scmp.ne.s32.totalorder %s11581_s20, %s11243_s17  ;;  %p11251_p4 = scmp.lt.s32.totalorder %s11581_s20, %s11581_s20 }
  0x53   : > { %p11252_p10 = scmp.lt.s32.totalorder %s11250_s30, %s11243_s17 }
  0x54   : > { %p11246_p7 = pnand %p11244_p5, %p11591_p8 }
  0x55   : > { %p11253_p11 = por %p11252_p10, %p11251_p4 }
  0x56   : > { %p11247_p9 = pneg %p11246_p7 }
  0x58   : > { %p11254_p12 = pnand %p11253_p11, %p11247_p9 }
  0x5a   : > { %11257 = shalt.err (!%p11254_p12)
}
  0x5b   : > { %10786 = dma.hbm_to_vmem [thread:$0]  (!%p11575_p6), %s15513_s8, 16, %s11581_s20, [#allocation12]  }
  0x5c   : > { %s11457_s10 = smov [#allocation7]   ;;  %s11458_s23 = smov [#allocation10]  }
  0x5d   : > { %s367_s12 = sshll.u32 %s11457_s10, 4  ;;  %s399_s24 = sshll.u32 %s11458_s23, 4  ;;  %s368_s12 = int_to_ptr.vmem [resolvable:$true] %s367_s12  ;;  %s400_s24 = int_to_ptr.vmem [resolvable:$true] %s399_s24 }
  0x5e   : > { %s15590_s2 = sld [smem:[#allocation37_spill]] }
  0x64   : > { %s11258_s21 = scalar_lea.hbm %s15590_s2, 16 }
  0x65   : > { %p11259_p13 = scmp.ne.s32.totalorder %s15590_s2, %s11258_s21  ;;  %p11265_p5 = scmp.lt.u32.totalorder %s11258_s21, %s15590_s2 }
  0x67   : > { %p11261_p0 = pnand %p11259_p13, %p11591_p8 }
  0x69   : > { %p11262_p2 = pneg %p11261_p0 }
  0x6b   : > { %p11267_p7 = pnand %p11265_p5, %p11262_p2 }
  0x6d   : > { %11270 = shalt.err (!%p11267_p7)
}
  0x6e   : > { %s11271_s20 = scalar_lea.vmem %s368_s12, 16  ;;  %s11278_s9 = scalar_lea.vmem %s368_s12, 32 }
  0x6f   : > { %p11272_p9 = scmp.ne.s32.totalorder %s368_s12, %s11271_s20  ;;  %p11279_p11 = scmp.lt.s32.totalorder %s368_s12, %s368_s12 }
  0x70   : > { %p11280_p12 = scmp.lt.s32.totalorder %s11278_s9, %s11271_s20 }
  0x71   : > { %p11274_p4 = pnand %p11272_p9, %p11591_p8 }
  0x72   : > { %p11281_p1 = por %p11280_p12, %p11279_p11 }
  0x73   : > { %p11275_p10 = pneg %p11274_p4 }
  0x75   : > { %p11282_p3 = pnand %p11281_p1, %p11275_p10 }
  0x77   : > { %11285 = shalt.err (!%p11282_p3)
}
  0x78   : > { %10777 = dma.hbm_to_vmem [thread:$0]  (!%p11575_p6), %s15590_s2, 16, %s368_s12, [#allocation6]  }
  0x79   : > { %s11286_s19 = scalar_lea.hbm %s15512_s7, 3072 }
  0x7a   : > { %p11287_p13 = scmp.ne.s32.totalorder %s15512_s7, %s11286_s19  ;;  %p11293_p3 = scmp.lt.u32.totalorder %s11286_s19, %s15512_s7 }
  0x7c   : > { %p11289_p0 = pnand %p11287_p13, %p11591_p8 }
  0x7e   : > { %p11290_p1 = pneg %p11289_p0 }
  0x80   : > { %p11295_p2 = pnand %p11293_p3, %p11290_p1 }
  0x82   : > { %11298 = shalt.err (!%p11295_p2)
}
  0x83   : > { %s11299_s20 = scalar_lea.vmem %s400_s24, 3072  ;;  %p11307_p4 = scmp.lt.s32.totalorder %s400_s24, %s400_s24 }
  0x84   : > { %p11300_p5 = scmp.ne.s32.totalorder %s400_s24, %s11299_s20  ;;  %p11308_p10 = scmp.lt.s32.totalorder %s11299_s20, %s11299_s20 }
  0x86   : > { %p11302_p7 = pnand %p11300_p5, %p11591_p8  ;;  %p11309_p11 = por %p11308_p10, %p11307_p4 }
  0x88   : > { %p11303_p9 = pneg %p11302_p7 }
  0x8a   : > { %p11310_p12 = pnand %p11309_p11, %p11303_p9 }
  0x8c   : > { %11313 = shalt.err (!%p11310_p12)
}
  0x8d   : > { %s15591_s12 = smov 64   ;;  %s11459_s23 = smov [#allocation13]  }
  0x8e   : > { %10783 = dma.hbm_to_vmem [thread:$0]  (!%p11575_p6), %s15512_s7, 3072, %s400_s24, [#allocation9], %s15591_s12, %s15591_s12, %s11456_s13  }
  0x8f   : > { %s429_s22 = sshll.u32 %s11459_s23, 4  ;;  %s11314_s21 = scalar_lea.hbm %s15516_s11, 18432  ;;  %s430_s22 = int_to_ptr.vmem [resolvable:$true] %s429_s22 }
  0x90   : > { %p11315_p13 = scmp.ne.s32.totalorder %s15516_s11, %s11314_s21  ;;  %p11321_p3 = scmp.lt.u32.totalorder %s11314_s21, %s15516_s11 }
  0x92   : > { %p11317_p0 = pnand %p11315_p13, %p11591_p8 }
  0x94   : > { %p11318_p1 = pneg %p11317_p0 }
  0x96   : > { %p11323_p2 = pnand %p11321_p3, %p11318_p1 }
  0x98   : > { %11326 = shalt.err (!%p11323_p2)
}
  0x99   : > { %s11327_s24 = scalar_lea.vmem %s430_s22, 18432  ;;  %p11335_p4 = scmp.lt.s32.totalorder %s430_s22, %s430_s22 }
  0x9a   : > { %p11328_p5 = scmp.ne.s32.totalorder %s430_s22, %s11327_s24  ;;  %p11336_p10 = scmp.lt.s32.totalorder %s11327_s24, %s11327_s24 }
  0x9c   : > { %p11330_p7 = pnand %p11328_p5, %p11591_p8  ;;  %p11337_p11 = por %p11336_p10, %p11335_p4 }
  0x9e   : > { %p11331_p9 = pneg %p11330_p7 }
  0xa0   : > { %p11338_p12 = pnand %p11337_p11, %p11331_p9 }
  0xa2   : > { %11341 = shalt.err (!%p11338_p12)
}
  0xa3   : > { %10789 = dma.hbm_to_vmem [thread:$0]  (!%p11575_p6), %s15516_s11, 18432, %s430_s22, [#allocation12], %s15591_s12, %s15591_s12, %s11456_s13  }
  0xa4   : > { %s8663_s18 = sadd.s32 4294967294, %s11450_s28   ;;  %s11727_s16 = sadd.s32 1, %s11450_s28  }
  0xa5   : > { %s36_s23 = ssub.s32 %s11450_s28, %s11727_s16  ;;  %s39_s29 = sadd.s32 1, %s11446_s27 }
  0xa6   : > { %p37_p8 = scmp.eq.s32.totalorder %s36_s23, 0  ;;  %p46_p13 = scmp.ne.s32.totalorder %s11446_s27, %s11442_s26 }
  0xa7   : > { %p47_p0 = scmp.eq.s32.totalorder %s11450_s28, 0  ;;  %p52_p1 = scmp.ne.s32.totalorder %s11442_s26, %s11438_s25 }
  0xa8   : > { %s11738_s19 = scalar_select %p37_p8, %s11446_s27, %s39_s29  }
  0xa9   : > { %p11740_p3 = por %p47_p0, %p46_p13  ;;  %p15593_p2 = scmp.eq.s32.totalorder %s11559_s14, 0 }
  0xaa   : > { %p328_p5 = scmp.eq.s32.totalorder %s11559_s14, 1  ;;  %p334_p7 = scmp.eq.s32.totalorder %s8663_s18, 1 }
  0xab   : > { %p11746_p6 = por %p15593_p2, %p52_p1  ;;  %p10804_p9 = scmp.lt.s32.totalorder %s11450_s28, 2 }
  0xac   : > { %s446_s12 = sand.u32 1, %s11446_s27   ;;  %p11753_p4 = por %p328_p5, %p46_p13 }
  0xad   : > { %p11757_p10 = por %p334_p7, %p52_p1  ;;  %s8672_s30 = sshll.u32 %s446_s12, 7 }
  0xae   : > { %s15595_s22 = scalar_select %p11753_p4, 1, 0 }
  0xaf   : > { %s15596_s17 = scalar_select %p11757_p10, 1, 0 }
  0xb0   : > { %s9484_s6 = sshll.u32 %s11450_s28, 11  ;;  %s15597_s0 = sld [smem:[#allocation35_spill]] }
  0xb1   : > { %s450_s10 = scalar_lea.vmem [#allocation2], %s8672_s30  ;;  %p11771_p11 = pnand %p10804_p9, %p11740_p3 }
  0xb2   : > { %s458_s18 = sshll.u32 %s450_s10, 4  ;;  %s11775_s29 = scalar_lea.sflag [#allocation3], %s446_s12  ;;  %s11767_s18 = int_to_ptr.vmem [resolvable:$true] %s458_s18 }
  0xb3   : > { %p11344_p8 = pneg %p11771_p11 }
  0xb6   : > { %s11765_s9 = scalar_lea.hbm %s15597_s0, %s9484_s6  ;;  %s11347_s21 = scalar_lea.hbm %s15597_s0, 4096 }
  0xb7   : > { %s11342_s20 = scalar_lea.hbm %s11765_s9, 2048  ;;  %p11348_p1 = scmp.lt.u32.totalorder %s11765_s9, %s15597_s0 }
  0xb8   : > { %p11343_p12 = scmp.ne.s32.totalorder %s11765_s9, %s11342_s20  ;;  %p11349_p3 = scmp.lt.u32.totalorder %s11347_s21, %s11342_s20 }
  0xb9   : > { %p11351_p5 = scmp.lt.u32.totalorder %s11342_s20, %s11765_s9 }
  0xba   : > { %p11345_p13 = pnand %p11344_p8, %p11343_p12  ;;  %p11350_p2 = por %p11349_p3, %p11348_p1 }
  0xbc   : > { %p11346_p0 = pneg %p11345_p13  ;;  %p11352_p7 = por %p11351_p5, %p11350_p2 }
  0xbe   : > { %p11353_p9 = pnand %p11352_p7, %p11346_p0 }
  0xc0   : > { %11356 = shalt.err (!%p11353_p9)
}
  0xc1   : > { %s11357_s12 = scalar_lea.vmem %s11767_s18, 2048  ;;  %s11460_s30 = smov [#allocation2]  }
  0xc2   : > { %p11358_p12 = scmp.ne.s32.totalorder %s11767_s18, %s11357_s12  ;;  %s11362_s6 = sshll.u32 %s11460_s30, 4  ;;  %s11363_s6 = int_to_ptr.vmem [resolvable:$false] %s11362_s6 }
  0xc3   : > { %s11364_s24 = scalar_lea.vmem %s11363_s6, 4096  ;;  %p11365_p4 = scmp.lt.s32.totalorder %s11767_s18, %s11363_s6 }
  0xc4   : > { %p11360_p13 = pnand %p11358_p12, %p11344_p8  ;;  %p11366_p1 = scmp.lt.s32.totalorder %s11364_s24, %s11357_s12 }
  0xc6   : > { %p11361_p10 = pneg %p11360_p13  ;;  %p11367_p3 = por %p11366_p1, %p11365_p4 }
  0xc8   : > { %p11368_p2 = pnand %p11367_p3, %p11361_p10 }
  0xca   : > { %11371 = shalt.err (!%p11368_p2)
}
  0xcb   : > { %s11461_s20 = smov 128   ;;  %s11462_s21 = smov 8  }
  0xcc   : > { %10793 = dma.hbm_to_vmem [thread:$0]  (!%p11771_p11), %s11765_s9, 2048, %s11767_s18, %s11775_s29, %s11461_s20, %s11461_s20, %s11462_s21  }
  0xcd   : > { %p15599_p8 = scmp.ne.s32.totalorder %s15586_s15, 0 }
  0xcf   : > { %470 = sbr.rel (%p15599_p8) target bundleno = 4056 (0xfd8), region = 72 }
  0xd6   : > { %s11806_s10 = sand.u32 1, %s11442_s26  }
  0xd7   : > { %s8677_s12 = sshll.u32 %s11806_s10, 7  ;;  %s473_s30 = scalar_lea.sflag [#allocation3], %s11806_s10 }
  0xd8   : > { %s11810_s6 = scalar_lea.vmem [#allocation2], %s8677_s12 }
  0xd9   : > { %11417 = dma.done.wait (%p11746_p6), %s473_s30, 2048  }
  0xda   : > { %11419 = vsyncadd (%p11746_p6), %s473_s30, 4294965248  ;;  %p15600_p4 = scmp.eq.s32.totalorder %s11559_s14, 0 }
  0xdc   : > { %11421 = dma.done.wait (%p15600_p4), [#allocation6], 528   ;;  %p15601_p10 = pmov %p15600_p4 }
  0xdd   : > { %p15602_p11 = pmov %p15600_p4 }
  0xde   : > { %11423 = vsyncadd (%p15601_p10), [#allocation6], 4294966768 }
  0xdf   : > { %11425 = dma.done.wait (%p15602_p11), [#allocation9], 21504   ;;  %p15603_p0 = pmov %p15600_p4 }
  0xe1   : > { %11427 = vsyncadd (%p15603_p0), [#allocation9], 4294945792  ;;  %p15604_p5 = pmov %p15603_p0 }
  0xe2   : > { %p15605_p7 = pmov %p15603_p0 }
  0xe3   : > { %11429 = dma.done.wait (%p15604_p5), [#allocation12], 18448  }
  0xe4   : > { %11431 = vsyncadd (%p15605_p7), [#allocation12], 4294948848  ;;  %v10858_v0 = vld [vmem:[#allocation5] sm:$0xff]   ;;  %v10859_v1 = vld [vmem:[#allocation5 + $0x8] sm:$0xff]   ;;  %vm962_vm0 = vcmask 523264   ;;  %v546_v53 = vlaneseq  ;;  %vm11463_vm3 = vmmov 1  }
  0xe5   : > { %10359 = vmatprep.subr.bf16.mxu0 %v10858_v0  ;;  %v10860_v2 = vld [vmem:[#allocation5 + $0x10] sm:$0xff]   ;;  %v899_v3 = vld [vmem:[%s11810_s6] sm:$0xff]  ;;  %v900_v4 = vld [vmem:[%s11810_s6 + $0x8] sm:$0xff]  ;;  %s15638_s24 = sld [smem:[#allocation38_spill]]  ;;  %s15795_s29 = sld [smem:[#allocation39_spill]] }
  0xe6   : > { %10360 = vmatpush3.bf16.msra.mxu0 %v10858_v0  ;;  %v915_v5 = vpack.c.bf16 %v900_v4, %v899_v3  ;;  %v10861_v6 = vld [vmem:[#allocation5 + $0x18] sm:$0xff]   ;;  %v901_v7 = vld [vmem:[%s11810_s6 + $0x10] sm:$0xff]  ;;  %v903_v9 = vld [vmem:[%s11810_s6 + $0x20] sm:$0xff]  ;;  %v11867_v59 = vshrl.u32 %v546_v53, 7  ;;  %s15796_s12 = sld [smem:[#allocation40_spill]]  ;;  %s15807_s15 = sld [smem:[#allocation41_spill]] }
  0xe7   : > { %10361 = vmatprep.subr.bf16.mxu0 %v10859_v1  ;;  %v902_v8 = vld [vmem:[%s11810_s6 + $0x18] sm:$0xff]  ;;  %v904_v10 = vld [vmem:[%s11810_s6 + $0x28] sm:$0xff]  ;;  %v905_v15 = vld [vmem:[%s11810_s6 + $0x30] sm:$0xff]  ;;  %s8684_s30 = sshll.u32 %s11806_s10, 6  ;;  %s9486_s13 = sshll.u32 %s11559_s14, 10 }
  0xe8   : > { %10367 = vmatprep.mubr.msk.bf16.mxu0 %vm962_vm0, %v915_v5  ;;  %v10862_v11 = vld [vmem:[#allocation8 + $0x80] sm:$0xff]   ;;  %v916_v12 = vpack.c.bf16 %v902_v8, %v901_v7  ;;  %v10863_v13 = vld [vmem:[#allocation8 + $0x88] sm:$0xff]   ;;  %v917_v14 = vpack.c.bf16 %v904_v10, %v903_v9  ;;  %v906_v16 = vld [vmem:[%s11810_s6 + $0x38] sm:$0xff]  ;;  %vm1212_vm1 = vcmp.lt.s32.totalorder %v11867_v59, 7  ;;  %vm1163_vm8 = vcmp.lt.s32.totalorder %v11867_v59, 1  ;;  %s15808_s20 = sld [smem:[#allocation42_spill]] }
  0xe9   : > { %v907_v17 = vld [vmem:[%s11810_s6 + $0x40] sm:$0xff]  ;;  %v908_v18 = vld [vmem:[%s11810_s6 + $0x48] sm:$0xff]  ;;  %v10864_v19 = vld [vmem:[#allocation8 + $0x90] sm:$0xff]   ;;  %v918_v20 = vpack.c.bf16 %v906_v16, %v905_v15  ;;  %p15809_p9 = scmp.ne.s32.totalorder %s15595_s22, 0  ;;  %s11465_s0 = smov [#allocation14]  }
  0xea   : > { %10362 = vmatpush3.bf16.msra.mxu0 %v10859_v1  ;;  %v919_v21 = vpack.c.bf16 %v908_v18, %v907_v17  ;;  %v909_v22 = vld [vmem:[%s11810_s6 + $0x50] sm:$0xff]  ;;  %v910_v23 = vld [vmem:[%s11810_s6 + $0x58] sm:$0xff]  ;;  %v911_v24 = vld [vmem:[%s11810_s6 + $0x60] sm:$0xff]  ;;  %v11878_v1 = vadd.s32 24, %v11867_v59  ;;  %s11376_s1 = sshll.u32 %s11465_s0, 4  ;;  %s11377_s1 = int_to_ptr.vmem [resolvable:$false] %s11376_s1 }
  0xeb   : > { %10363 = vmatprep.subr.bf16.mxu0 %v10860_v2  ;;  %v912_v25 = vld [vmem:[%s11810_s6 + $0x68] sm:$0xff]  ;;  %v920_v26 = vpack.c.bf16 %v910_v23, %v909_v22  ;;  %v913_v28 = vld [vmem:[%s11810_s6 + $0x70] sm:$0xff]  ;;  %v914_v29 = vld [vmem:[%s11810_s6 + $0x78] sm:$0xff]  ;;  %s15437_s6 = scalar_lea.vmem [#allocation14], %s8684_s30 }
  0xec   : > { %v921_v27 = vpack.c.bf16 %v912_v25, %v911_v24  ;;  %v922_v30 = vpack.c.bf16 %v914_v29, %v913_v28  ;;  %v10865_v31 = vld [vmem:[#allocation8 + $0x98] sm:$0xff]   ;;  %v10866_v32 = vld [vmem:[#allocation8 + $0xa0] sm:$0xff]   ;;  %v10869_v35 = vld [vmem:[#allocation8 + $0xa8] sm:$0xff]   ;;  %15606 = vst [vmem:[#allocation20_spill] sm:$0xff] %v11878_v1  ;;  %v588_v18 = vand.u32 31, %v11878_v1  ;;  %s8533_s9 = sshll.u32 %s15437_s6, 4  ;;  %s15458_s9 = int_to_ptr.vmem [resolvable:$true] %s8533_s9 }
  0xed   : > { %v10867_v33 = vld [vmem:[#allocation8 + $0x40] sm:$0xff]   ;;  %v10870_v36 = vld [vmem:[#allocation8 + $0x48] sm:$0xff]   ;;  %v10872_v38 = vld [vmem:[#allocation8 + $0xb0] sm:$0xff]   ;;  %s11372_s14 = scalar_lea.vmem %s15458_s9, 1024  ;;  %p11379_p1 = scmp.lt.s32.totalorder %s15458_s9, %s11377_s1 }
  0xee   : > { %10364 = vmatpush3.bf16.msra.mxu0 %v10860_v2  ;;  %v10868_v34 = vld [vmem:[#allocation8] sm:$0xff]   ;;  %9515 = vmatprep.subr.bf16.mxu1 %v10867_v33  ;;  %v10871_v37 = vld [vmem:[#allocation8 + $0x8] sm:$0xff]   ;;  %v10873_v39 = vld [vmem:[#allocation8 + $0x50] sm:$0xff]   ;;  %vm11949_vm2 = vcmp.ne.s32.totalorder %v588_v18, 31  ;;  %s15456_s21 = scalar_lea.hbm %s15808_s20, %s9486_s13  ;;  %p11373_p6 = scmp.ne.s32.totalorder %s15458_s9, %s11372_s14 }
  0xef   : > { %10365 = vmatprep.subr.bf16.mxu0 %v10861_v6  ;;  %9516 = vmatpush3.bf16.msra.mxu1 %v10868_v34  ;;  %v10874_v40 = vld [vmem:[#allocation8 + $0x10] sm:$0xff]   ;;  %v10875_v41 = vld [vmem:[#allocation8 + $0xb8] sm:$0xff]   ;;  %v10878_v44 = vld [vmem:[#allocation8 + $0x60] sm:$0xff]   ;;  %s11378_s13 = scalar_lea.vmem %s11377_s1, 2048 }
  0xf0   : > { %9517 = vmatprep.subr.bf16.mxu1 %v10870_v36  ;;  %v10876_v42 = vld [vmem:[#allocation8 + $0x58] sm:$0xff]   ;;  %v10879_v45 = vld [vmem:[#allocation8 + $0x20] sm:$0xff]   ;;  %v10880_v46 = vld [vmem:[#allocation8 + $0x68] sm:$0xff]   ;;  %p11374_p12 = pnand %p11373_p6, %p15809_p9  ;;  %p11380_p3 = scmp.lt.s32.totalorder %s11378_s13, %s11372_s14 }
  0xf1   : > { %v10877_v43 = vld [vmem:[#allocation8 + $0x18] sm:$0xff]   ;;  %v10881_v47 = vld [vmem:[#allocation8 + $0x28] sm:$0xff]   ;;  %v10882_v48 = vld [vmem:[#allocation8 + $0x70] sm:$0xff]  }
  0xf2   : > { %10366 = vmatpush3.bf16.msra.mxu0 %v10861_v6  ;;  %v10883_v49 = vld [vmem:[#allocation8 + $0x30] sm:$0xff]   ;;  %v10884_v50 = vld [vmem:[#allocation8 + $0x78] sm:$0xff]   ;;  %vm11979_vm4 = vmpackc.low %vm11949_vm2, %vm11463_vm3  ;;  %p11375_p13 = pneg %p11374_p12  ;;  %p11381_p2 = por %p11380_p3, %p11379_p1 }
  0xf3   : > { %10383 = vmatprep.subr.bf16.mxu0 %v10862_v11  ;;  %9518 = vmatpush3.bf16.msra.mxu1 %v10871_v37  ;;  %v10885_v51 = vld [vmem:[#allocation8 + $0x38] sm:$0xff]  }
  0xf4   : > { %9519 = vmatprep.subr.bf16.mxu1 %v10873_v39  ;;  %v11852_v52 = vld [vmem:[#allocation7] ss:$0 sm:$0xff]  ;;  %p11382_p8 = pnand %p11381_p2, %p11375_p13 }
  0xf5   : > { %10368 = vmatmul.mubr.msk.bf16.vlgmr.msra.gmra.mrb[0].mxu0 %vm962_vm0, %v916_v12  ;;  %v11857_v54 = vld [vmem:[%s15508_s3] ss:$0 sm:$0xff] }
  0xf6   : > { %10371 = vmatprep.mubr.msk.bf16.mxu0 %vm962_vm0, %v917_v14  ;;  %10384 = vmatpush3.bf16.msra.mxu0 %v10862_v11  ;;  %v11862_v56 = vld [vmem:[%s15509_s4] ss:$0 sm:$0xff] }
  0xf7   : > { %10385 = vmatprep.subr.bf16.mxu0 %v10863_v13  ;;  %9520 = vmatpush3.bf16.msra.mxu1 %v10874_v40 }
  0xf8   : > { %9521 = vmatprep.subr.bf16.mxu1 %v10876_v42 }
  0xfa   : > { %10386 = vmatpush3.bf16.msra.mxu0 %v10863_v13 }
  0xfb   : > { %10387 = vmatprep.subr.bf16.mxu0 %v10864_v19  ;;  %9522 = vmatpush3.bf16.msra.mxu1 %v10877_v43 }
  0xfc   : > { %9523 = vmatprep.subr.bf16.mxu1 %v10878_v44 }
  0xfd   : > { %10372 = vmatmul.mubr.msk.bf16.gmra.mrb[4].mxu0 %vm962_vm0, %v918_v20 }
  0xfe   : > { %10375 = vmatprep.mubr.msk.bf16.mxu0 %vm962_vm0, %v919_v21  ;;  %10388 = vmatpush3.bf16.msra.mxu0 %v10864_v19 }
  0xff   : > { %10389 = vmatprep.subr.bf16.mxu0 %v10865_v31  ;;  %9524 = vmatpush3.bf16.msra.mxu1 %v10879_v45 }
 0x100   : > { %9525 = vmatprep.subr.bf16.mxu1 %v10880_v46 }
 0x102   : > { %10390 = vmatpush3.bf16.msra.mxu0 %v10865_v31  ;;  %v11928_v31 = vadd.s32 56, %v11867_v59 }
 0x103   : > { %10391 = vmatprep.subr.bf16.mxu0 %v10866_v32  ;;  %9526 = vmatpush3.bf16.msra.mxu1 %v10881_v47 }
 0x104   : > { %9527 = vmatprep.subr.bf16.mxu1 %v10882_v48  ;;  %15607 = vst [vmem:[#allocation21_spill] sm:$0xff] %v11928_v31 }
 0x105   : > { %10376 = vmatmul.mubr.msk.bf16.gmra.mrb[8].mxu0 %vm962_vm0, %v920_v26 }
 0x106   : > { %10379 = vmatprep.mubr.msk.bf16.mxu0 %vm962_vm0, %v921_v27  ;;  %10392 = vmatpush3.bf16.msra.mxu0 %v10866_v32 }
 0x107   : > { %10393 = vmatprep.subr.bf16.mxu0 %v10869_v35  ;;  %9528 = vmatpush3.bf16.msra.mxu1 %v10883_v49 }
 0x108   : > { %9529 = vmatprep.subr.bf16.mxu1 %v10884_v50  ;;  %v616_v50 = vand.u32 31, %v11928_v31 }
 0x10a   : > { %10394 = vmatpush3.bf16.msra.mxu0 %v10869_v35  ;;  %vm12008_vm5 = vcmp.ne.s32.totalorder %v616_v50, 31 }
 0x10b   : > { %10395 = vmatprep.subr.bf16.mxu0 %v10872_v38  ;;  %9530 = vmatpush3.bf16.msra.mxu1 %v10885_v51  ;;  %vm12037_vm6 = vmpackc.low %vm12008_vm5, %vm11463_vm3 }
 0x10d   : > { %10380 = vmatmul.mubr.msk.bf16.gmra.mrb[12].mxu0 %vm962_vm0, %v922_v30 }
 0x10e   : > { %10396 = vmatpush3.bf16.msra.mxu0 %v10872_v38 }
 0x10f   : > { %10397 = vmatprep.subr.bf16.mxu0 %v10875_v41 }
 0x112   : > { %10398 = vmatpush3.bf16.msra.mxu0 %v10875_v41 }
 0x1c8   : > { %v10369_v55 = vpop.f32.mrb[0].mxu0 }
 0x1c9   : > { %v11865_v57 = vadd.f32 %v10369_v55, %v11852_v52  ;;  %v1021_v58 = vpop.f32.mrb[1].mxu0 }
 0x1ca   : > { %v11870_v60 = vadd.f32 %v11852_v52, %v1021_v58  ;;  %v10370_v61 = vpop.f32.mrb[2].mxu0 }
 0x1cb   : > { %v1093_v62 = vmul.f32 %v11857_v54, %v11865_v57  ;;  %v11875_v63 = vadd.f32 %v10370_v61, %v11852_v52  ;;  %v1024_v0 = vpop.f32.mrb[3].mxu0 }
 0x1cc   : > { %v1091_v2 = vmul.f32 %v11857_v54, %v11870_v60  ;;  %v11883_v3 = vadd.f32 %v11852_v52, %v1024_v0 }
 0x1cd   : > { %v1116_v4 = vadd.f32 %v11862_v56, %v1093_v62  ;;  %v1094_v5 = vmul.f32 %v11857_v54, %v11875_v63 }
 0x1ce   : > { %v1114_v6 = vadd.f32 %v11862_v56, %v1091_v2  ;;  %v1092_v7 = vmul.f32 %v11857_v54, %v11883_v3 }
 0x1cf   : > { %v11891_v8 = vmax.f32 %v1116_v4, 0.0  ;;  %v1117_v9 = vadd.f32 %v11862_v56, %v1094_v5 }
 0x1d0   : > { %v1115_v10 = vadd.f32 %v11862_v56, %v1092_v7  ;;  %v10373_v11 = vpop.f32.mrb[4].mxu0  ;;  %v11895_v12 = vmax.f32 %v1114_v6, 0.0 }
 0x1d1   : > { %v11898_v13 = vadd.f32 %v10373_v11, %v11852_v52  ;;  %v1037_v14 = vpop.f32.mrb[5].mxu0  ;;  %v11907_v19 = vmax.f32 %v1117_v9, 0.0  ;;  %v1198_v23 = vrot.slane %v11891_v8, 1 }
 0x1d2   : > { %v11901_v15 = vadd.f32 %v11852_v52, %v1037_v14  ;;  %v10374_v16 = vpop.f32.mrb[6].mxu0  ;;  %v11904_v17 = vmax.f32 %v1115_v10, 0.0  ;;  %v1196_v26 = vrot.slane %v11895_v12, 1 }
 0x1d3   : > { %v1097_v20 = vmul.f32 %v11857_v54, %v11898_v13  ;;  %v11912_v21 = vadd.f32 %v10374_v16, %v11852_v52  ;;  %v1040_v22 = vpop.f32.mrb[7].mxu0  ;;  %v1199_v36 = vrot.slane %v11907_v19, 1  ;;  %v558_v16 = vadd.s32 88, %v11867_v59 }
 0x1d4   : > { %v1095_v24 = vmul.f32 %v11857_v54, %v11901_v15  ;;  %v11918_v25 = vadd.f32 %v11852_v52, %v1040_v22  ;;  %v1197_v27 = vrot.slane %v11904_v17, 1  ;;  %v1246_v30 = vpack.c.bf16 %v11904_v17, %v11895_v12 }
 0x1d5   : > { %v1120_v28 = vadd.f32 %v11862_v56, %v1097_v20  ;;  %v1098_v29 = vmul.f32 %v11857_v54, %v11912_v21  ;;  %v1225_v55 = vsel %vm1212_vm1, %v1198_v23, %v1199_v36 }
 0x1d6   : > { %v1118_v32 = vadd.f32 %v11862_v56, %v1095_v24  ;;  %v1096_v33 = vmul.f32 %v11857_v54, %v11918_v25  ;;  %v1226_v34 = vsel %vm1212_vm1, %v1197_v27, %v1198_v23  ;;  %v1227_v35 = vsel %vm1212_vm1, %v1196_v26, %v1197_v27  ;;  %1499 = vmatprep.mubr.bf16.mxu1 %v1246_v30 }
 0x1d7   : > { %v1121_v37 = vadd.f32 %v11862_v56, %v1098_v29  ;;  %v1247_v38 = vpack.c.bf16 %v1226_v34, %v1227_v35  ;;  %v11941_v39 = vmax.f32 %v1120_v28, 0.0 }
 0x1d8   : > { %v11943_v40 = vmax.f32 %v1118_v32, 0.0  ;;  %v1119_v41 = vadd.f32 %v11862_v56, %v1096_v33  ;;  %v10377_v42 = vpop.f32.mrb[8].mxu0 }
 0x1d9   : > { %v11947_v43 = vadd.f32 %v10377_v42, %v11852_v52  ;;  %v1053_v44 = vpop.f32.mrb[9].mxu0  ;;  %10399 = vmatprep.mubr.bf16.mxu0 %v1247_v38  ;;  %v11960_v51 = vmax.f32 %v1121_v37, 0.0  ;;  %v1202_v5 = vrot.slane %v11941_v39, 1 }
 0x1da   : > { %v1200_v46 = vrot.slane %v11943_v40, 1  ;;  %v11954_v47 = vmax.f32 %v1119_v41, 0.0  ;;  %v11957_v48 = vadd.f32 %v11852_v52, %v1053_v44  ;;  %v10378_v49 = vpop.f32.mrb[10].mxu0  ;;  %v644_v41 = vand.u32 31, %v558_v16 }
 0x1db   : > { %15608 = vst [vmem:[#allocation22_spill] sm:$0xff] %v11947_v43  ;;  %v1101_v53 = vmul.f32 %v11857_v54, %v11947_v43  ;;  %v11967_v58 = vadd.f32 %v10378_v49, %v11852_v52  ;;  %v1056_v61 = vpop.f32.mrb[11].mxu0  ;;  %v1203_v18 = vrot.slane %v11960_v51, 1 }
 0x1dc   : > { %15611 = vst [vmem:[#allocation23_spill] sm:$0xff] %v11957_v48  ;;  %v1224_v62 = vsel %vm1212_vm1, %v1199_v36, %v1200_v46  ;;  %v1099_v0 = vmul.f32 %v11857_v54, %v11957_v48  ;;  %v11974_v2 = vadd.f32 %v11852_v52, %v1056_v61  ;;  %v1201_v10 = vrot.slane %v11954_v47, 1 }
 0x1dd   : > { %15612 = vst [vmem:[#allocation24_spill] sm:$0xff] %v11967_v58  ;;  %v1124_v6 = vadd.f32 %v11862_v56, %v1101_v53  ;;  %v8743_v7 = vpack.c.bf16 %v1224_v62, %v1225_v55  ;;  %v1102_v9 = vmul.f32 %v11857_v54, %v11967_v58  ;;  %v1221_v49 = vsel %vm1212_vm1, %v1202_v5, %v1203_v18 }
 0x1de   : > { %15613 = vst [vmem:[#allocation25_spill] sm:$0xff] %v11974_v2  ;;  %v1122_v11 = vadd.f32 %v11862_v56, %v1099_v0  ;;  %v1100_v14 = vmul.f32 %v11857_v54, %v11974_v2  ;;  %v1222_v22 = vsel %vm1212_vm1, %v1201_v10, %v1202_v5  ;;  %v1223_v23 = vsel %vm1212_vm1, %v1200_v46, %v1201_v10 }
 0x1df   : > { %v1125_v20 = vadd.f32 %v11862_v56, %v1102_v9  ;;  %10400 = vmatmul.mubr.msk.bf16.vlgmr.msra.gmra.mrb[16].mxu0 %vm11979_vm4, %v8743_v7  ;;  %v12000_v24 = vmax.f32 %v1124_v6, 0.0  ;;  %v1253_v30 = vpack.c.bf16 %v1222_v22, %v1223_v23  ;;  %v15622_v61 = vmov 0 }
 0x1e0   : > { %v12002_v27 = vmax.f32 %v1122_v11, 0.0  ;;  %v1123_v28 = vadd.f32 %v11862_v56, %v1100_v14  ;;  %v10381_v29 = vpop.f32.mrb[12].mxu0  ;;  %v15623_v61 = vsel %vm12037_vm6, 4294967295, %v15622_v61  ;;  %v567_v10 = vand.u32 31, %v11867_v59 }
 0x1e1   : > { %v12006_v32 = vadd.f32 %v10381_v29, %v11852_v52  ;;  %v1069_v33 = vpop.f32.mrb[13].mxu0  ;;  %10403 = vmatprep.mubr.bf16.mxu0 %v1253_v30  ;;  %v12018_v42 = vmax.f32 %v1125_v20, 0.0  ;;  %15624 = vst [vmem:[#allocation30_spill] sm:$0xff] %v15623_v61  ;;  %v1206_v62 = vrot.slane %v12000_v24, 1  ;;  %vm9493_vm7 = vcmp.ne.s32.totalorder %v644_v41, 31 }
 0x1e2   : > { %v1204_v35 = vrot.slane %v12002_v27, 1  ;;  %v12013_v36 = vmax.f32 %v1123_v28, 0.0  ;;  %v12016_v37 = vadd.f32 %v11852_v52, %v1069_v33  ;;  %v10382_v38 = vpop.f32.mrb[14].mxu0  ;;  %v1148_v28 = vrot.slane %v11904_v17, 7  ;;  %vm12078_vm10 = vmpackc.low %vm9493_vm7, %vm11463_vm3 }
 0x1e3   : > { %15616 = vst [vmem:[#allocation26_spill] sm:$0xff] %v12006_v32  ;;  %v1105_v44 = vmul.f32 %v11857_v54, %v12006_v32  ;;  %v12023_v45 = vadd.f32 %v10382_v38, %v11852_v52  ;;  %v1072_v46 = vpop.f32.mrb[15].mxu0  ;;  %v1207_v11 = vrot.slane %v12018_v42, 1  ;;  %v562_v30 = vadd.s32 120, %v11867_v59 }
 0x1e4   : > { %15619 = vst [vmem:[#allocation27_spill] sm:$0xff] %v12016_v37  ;;  %v1103_v50 = vmul.f32 %v11857_v54, %v12016_v37  ;;  %v12030_v53 = vadd.f32 %v11852_v52, %v1072_v46  ;;  %v1220_v55 = vsel %vm1212_vm1, %v1203_v18, %v1204_v35  ;;  %v1205_v52 = vrot.slane %v12013_v36, 1 }
 0x1e5   : > { %15620 = vst [vmem:[#allocation28_spill] sm:$0xff] %v12023_v45  ;;  %v1128_v0 = vadd.f32 %v11862_v56, %v1105_v44  ;;  %v1106_v5 = vmul.f32 %v11857_v54, %v12023_v45  ;;  %v8747_v6 = vpack.c.bf16 %v1220_v55, %v1221_v49  ;;  %vm9487_vm9 = vcmp.ne.s32.totalorder %v567_v10, 0 }
 0x1e6   : > { %15621 = vst [vmem:[#allocation29_spill] sm:$0xff] %v12030_v53  ;;  %v1126_v7 = vadd.f32 %v11862_v56, %v1103_v50  ;;  %v1104_v9 = vmul.f32 %v11857_v54, %v12030_v53  ;;  %v1218_v16 = vsel %vm1212_vm1, %v1205_v52, %v1206_v62  ;;  %v1219_v18 = vsel %vm1212_vm1, %v1204_v35, %v1205_v52  ;;  %vm12091_vm11 = vmpackc.low %vm11463_vm3, %vm9487_vm9 }
 0x1e7   : > { %v1129_v14 = vadd.f32 %v11862_v56, %v1106_v5  ;;  %10404 = vmatmul.mubr.msk.bf16.gmra.mrb[20].mxu0 %vm12037_vm6, %v8747_v6  ;;  %v12058_v20 = vmax.f32 %v1128_v0, 0.0  ;;  %v1259_v23 = vpack.c.bf16 %v1218_v16, %v1219_v18  ;;  %v1147_v35 = vrot.slane %v11895_v12, 7 }
 0x1e8   : > { %v12060_v22 = vmax.f32 %v1126_v7, 0.0  ;;  %v1127_v54 = vadd.f32 %v11862_v56, %v1104_v9  ;;  %v1217_v38 = vsel %vm1212_vm1, %v1206_v62, %v1207_v11  ;;  %v672_v0 = vand.u32 31, %v562_v30 }
 0x1e9   : > { %v12064_v29 = vmax.f32 %v1129_v14, 0.0  ;;  %10407 = vmatprep.mubr.bf16.mxu0 %v1259_v23  ;;  %v1210_v46 = vrot.slane %v12058_v20, 1  ;;  %v1178_v50 = vsel %vm1163_vm8, %v1147_v35, %v1148_v28  ;;  %v1249_v9 = vpack.c.bf16 %v11907_v19, %v11891_v8 }
 0x1ea   : > { %v1208_v33 = vrot.slane %v12060_v22, 1  ;;  %v12069_v34 = vmax.f32 %v1127_v54, 0.0  ;;  %vm9494_vm12 = vcmp.ne.s32.totalorder %v672_v0, 31  ;;  %v1149_v14 = vrot.slane %v11891_v8, 7 }
 0x1eb   : > { %v1162_v56 = vrot.slane %v12064_v29, 7  ;;  %v1211_v5 = vrot.slane %v12064_v29, 1  ;;  %v12115_v54 = vadd.s32 32, %v11867_v59  ;;  %vm12122_vm13 = vmpackc.low %vm9494_vm12, %vm11463_vm3  ;;  %vm5152_vm9 = vcmask 1043459  }
 0x1ec   : > { %v1216_v17 = vsel %vm1212_vm1, %v1207_v11, %v1208_v33  ;;  %v1209_v44 = vrot.slane %v12069_v34, 1  ;;  %v1150_v11 = vrot.slane %v11907_v19, 7  ;;  %v1177_v23 = vsel %vm1163_vm8, %v1148_v28, %v1149_v14 }
 0x1ed   : > { %v8751_v49 = vpack.c.bf16 %v1216_v17, %v1217_v38  ;;  %v1179_v55 = vsel %vm1163_vm8, %v1162_v56, %v1147_v35  ;;  %v1213_v16 = vsel %vm1212_vm1, %v1210_v46, %v1211_v5  ;;  %v1228_v18 = vsel %vm1212_vm1, %v1211_v5, %v1196_v26  ;;  %15629 = vst [vmem:[#allocation31_spill] sm:$0xff] %v12115_v54 }
 0x1ee   : > { %v8727_v6 = vpack.c.bf16 %v1178_v50, %v1179_v55  ;;  %v1214_v52 = vsel %vm1212_vm1, %v1209_v44, %v1210_v46  ;;  %v1215_v7 = vsel %vm1212_vm1, %v1208_v33, %v1209_v44  ;;  %v1176_v19 = vsel %vm1163_vm8, %v1149_v14, %v1150_v11 }
 0x1ef   : > { %10408 = vmatmul.mubr.msk.bf16.gmra.mrb[24].mxu0 %vm12078_vm10, %v8751_v49  ;;  %v1265_v10 = vpack.c.bf16 %v1214_v52, %v1215_v7  ;;  %v8755_v30 = vpack.c.bf16 %v1228_v18, %v1213_v16  ;;  %v1248_v33 = vpack.c.bf16 %v1176_v19, %v1177_v23  ;;  %v595_v12 = vand.u32 31, %v12115_v54 }
 0x1f0   : > { %8728 = vmatmul.mubr.msk.bf16.vlgmr.msra.gmra.mrb[0].mxu1 %vm12091_vm11, %v8727_v6  ;;  %v1152_v26 = vrot.slane %v11954_v47, 7  ;;  %v1252_v35 = vpack.c.bf16 %v11954_v47, %v11943_v40  ;;  %v1151_v28 = vrot.slane %v11943_v40, 7  ;;  %v1255_v47 = vpack.c.bf16 %v11960_v51, %v11941_v39 }
 0x1f1   : > { %1507 = vmatprep.mubr.bf16.mxu1 %v1249_v9  ;;  %10411 = vmatprep.mubr.bf16.mxu0 %v1265_v10  ;;  %vm9488_vm14 = vcmp.ne.s32.totalorder %v595_v12, 0  ;;  %v1154_v49 = vrot.slane %v11960_v51, 7  ;;  %v1153_v40 = vrot.slane %v11941_v39, 7  ;;  %v555_v50 = vadd.s32 64, %v11867_v59  ;;  %v11009_v10 = vld [vmem:[#allocation10 + $0x98] sm:$0xff]  }
 0x1f2   : > { %v1174_v17 = vsel %vm1163_vm8, %v1151_v28, %v1152_v26  ;;  %v1175_v38 = vsel %vm1163_vm8, %v1150_v11, %v1151_v28  ;;  %vm12138_vm15 = vmpackc.low %vm11463_vm3, %vm9488_vm14  ;;  %v1156_v52 = vrot.slane %v12013_v36, 7  ;;  %v1258_v51 = vpack.c.bf16 %v12013_v36, %v12002_v27 }
 0x1f3   : > { %v8731_v46 = vpack.c.bf16 %v1174_v17, %v1175_v38  ;;  %v1172_v55 = vsel %vm1163_vm8, %v1153_v40, %v1154_v49  ;;  %v1173_v0 = vsel %vm1163_vm8, %v1152_v26, %v1153_v40  ;;  %v623_v6 = vand.u32 31, %v555_v50  ;;  %v10888_v40 = vld [vmem:[#allocation8 + $0x150] sm:$0xff]   ;;  %v10889_v50 = vld [vmem:[#allocation8 + $0x158] sm:$0xff]  }
 0x1f4   : > { %v1254_v5 = vpack.c.bf16 %v1172_v55, %v1173_v0  ;;  %v1155_v7 = vrot.slane %v12002_v27, 7  ;;  %v1261_v36 = vpack.c.bf16 %v12018_v42, %v12000_v24  ;;  %v1158_v14 = vrot.slane %v12018_v42, 7  ;;  %v10893_v55 = vld [vmem:[#allocation8 + $0x178] sm:$0xff]   ;;  %v10894_v0 = vld [vmem:[#allocation8 + $0x100] sm:$0xff]  }
 0x1f5   : > { %vm9489_vm0 = vcmp.ne.s32.totalorder %v623_v6, 0  ;;  %v1157_v27 = vrot.slane %v12000_v24, 7  ;;  %v559_v16 = vadd.s32 96, %v11867_v59  ;;  %v1264_v42 = vpack.c.bf16 %v12069_v34, %v12060_v22  ;;  %v10896_v6 = vld [vmem:[#allocation8 + $0x108] sm:$0xff]   ;;  %9595 = vmatprep.subr.bf16.mxu0 %v10894_v0  ;;  %v12224_v0 = vld [vmem:[%s15508_s3 + $0x1] ss:$0 sm:$0xff] }
 0x1f6   : > { %v1170_v39 = vsel %vm1163_vm8, %v1155_v7, %v1156_v52  ;;  %v1171_v9 = vsel %vm1163_vm8, %v1154_v49, %v1155_v7  ;;  %vm12162_vm2 = vmpackc.low %vm11463_vm3, %vm9489_vm0  ;;  %v1159_v12 = vrot.slane %v12060_v22, 7  ;;  %v1161_v22 = vrot.slane %v12058_v20, 7  ;;  %v10887_v49 = vld [vmem:[#allocation8 + $0x148] sm:$0xff]   ;;  %v10899_v7 = vld [vmem:[#allocation8 + $0xd0] sm:$0xff]  }
 0x1f7   : > { %10412 = vmatmul.mubr.msk.bf16.gmra.mrb[28].mxu0 %vm12122_vm13, %v8755_v30  ;;  %v8735_v11 = vpack.c.bf16 %v1170_v39, %v1171_v9  ;;  %v1168_v18 = vsel %vm1163_vm8, %v1157_v27, %v1158_v14  ;;  %v1169_v19 = vsel %vm1163_vm8, %v1156_v52, %v1157_v27  ;;  %v651_v30 = vand.u32 31, %v559_v16  ;;  %v10897_v52 = vld [vmem:[#allocation8 + $0xc8] sm:$0xff]   ;;  %v10900_v39 = vld [vmem:[#allocation8 + $0x118] sm:$0xff]   ;;  %v10906_v16 = vld [vmem:[#allocation8 + $0x130] sm:$0xff]  }
 0x1f8   : > { %1508 = vmatmul.mubr.bf16.gmra.mrb[4].mxu1 %v1248_v33  ;;  %v1260_v23 = vpack.c.bf16 %v1168_v18, %v1169_v19  ;;  %v1160_v33 = vrot.slane %v12069_v34, 7  ;;  %v1167_v26 = vsel %vm1163_vm8, %v1158_v14, %v1159_v12  ;;  %v1267_v34 = vpack.c.bf16 %v12064_v29, %v12058_v20  ;;  %v10890_v20 = vld [vmem:[#allocation8 + $0x160] sm:$0xff]   ;;  %v10891_v29 = vld [vmem:[#allocation8 + $0x168] sm:$0xff]   ;;  %v10901_v9 = vld [vmem:[#allocation8 + $0xd8] sm:$0xff]  }
 0x1f9   : > { %1515 = vmatprep.mubr.bf16.mxu1 %v1252_v35  ;;  %vm9490_vm5 = vcmp.ne.s32.totalorder %v651_v30, 0  ;;  %v1164_v17 = vsel %vm1163_vm8, %v1161_v22, %v1162_v56  ;;  %v10892_v56 = vld [vmem:[#allocation8 + $0x170] sm:$0xff]   ;;  %v10904_v14 = vld [vmem:[#allocation8 + $0x128] sm:$0xff]   ;;  %v10908_v19 = vld [vmem:[#allocation8 + $0x138] sm:$0xff]   ;;  %vm5158_vm12 = vcmask 1046534  }
 0x1fa   : > { %v1166_v24 = vsel %vm1163_vm8, %v1159_v12, %v1160_v33  ;;  %vm12186_vm7 = vmpackc.low %vm11463_vm3, %vm9490_vm5  ;;  %v1165_v38 = vsel %vm1163_vm8, %v1160_v33, %v1161_v22  ;;  %v10905_v27 = vld [vmem:[#allocation8 + $0xe8] sm:$0xff]   ;;  %v10907_v18 = vld [vmem:[#allocation8 + $0xf0] sm:$0xff]  }
 0x1fb   : > { %v8739_v28 = vpack.c.bf16 %v1166_v24, %v1167_v26  ;;  %v11012_v35 = vld [vmem:[#allocation10 + $0xb0] sm:$0xff]  }
 0x200   : > { %8732 = vmatmul.mubr.msk.bf16.gmra.mrb[8].mxu1 %vm12138_vm15, %v8731_v46  ;;  %v1266_v46 = vpack.c.bf16 %v1164_v17, %v1165_v38 }
 0x201   : > { %1523 = vmatprep.mubr.bf16.mxu1 %v1255_v47  ;;  %v10886_v47 = vld [vmem:[#allocation8 + $0x140] sm:$0xff]  }
 0x202   : > { %10415 = vmatprep.subr.bf16.mxu1 %v10886_v47 }
 0x203   : > { %10416 = vmatpush3.bf16.msra.mxu1 %v10886_v47 }
 0x204   : > { %10417 = vmatprep.subr.bf16.mxu1 %v10887_v49 }
 0x207   : > { %10418 = vmatpush3.bf16.msra.mxu1 %v10887_v49 }
 0x208   : > { %1524 = vmatmul.mubr.bf16.gmra.mrb[12].mxu1 %v1254_v5  ;;  %10419 = vmatprep.subr.bf16.mxu1 %v10888_v40  ;;  %v10895_v5 = vld [vmem:[#allocation8 + $0xc0] sm:$0xff]  }
 0x209   : > { %1531 = vmatprep.mubr.bf16.mxu1 %v1258_v51  ;;  %9596 = vmatpush3.bf16.msra.mxu0 %v10895_v5  ;;  %v10898_v51 = vld [vmem:[#allocation8 + $0x110] sm:$0xff]  }
 0x20a   : > { %9597 = vmatprep.subr.bf16.mxu0 %v10896_v6 }
 0x20b   : > { %10420 = vmatpush3.bf16.msra.mxu1 %v10888_v40 }
 0x20c   : > { %10421 = vmatprep.subr.bf16.mxu1 %v10889_v50 }
 0x20d   : > { %9598 = vmatpush3.bf16.msra.mxu0 %v10897_v52  ;;  %v12230_v52 = vld [vmem:[%s15509_s4 + $0x1] ss:$0 sm:$0xff] }
 0x20e   : > { %9599 = vmatprep.subr.bf16.mxu0 %v10898_v51 }
 0x20f   : > { %10422 = vmatpush3.bf16.msra.mxu1 %v10889_v50 }
 0x210   : > { %8736 = vmatmul.mubr.msk.bf16.gmra.mrb[16].mxu1 %vm12162_vm2, %v8735_v11  ;;  %10423 = vmatprep.subr.bf16.mxu1 %v10890_v20  ;;  %v10902_v11 = vld [vmem:[#allocation8 + $0x120] sm:$0xff]  }
 0x211   : > { %1539 = vmatprep.mubr.bf16.mxu1 %v1261_v36  ;;  %9600 = vmatpush3.bf16.msra.mxu0 %v10899_v7  ;;  %v10903_v36 = vld [vmem:[#allocation8 + $0xe0] sm:$0xff]  }
 0x212   : > { %9601 = vmatprep.subr.bf16.mxu0 %v10900_v39 }
 0x213   : > { %10424 = vmatpush3.bf16.msra.mxu1 %v10890_v20 }
 0x214   : > { %10425 = vmatprep.subr.bf16.mxu1 %v10891_v29 }
 0x215   : > { %9602 = vmatpush3.bf16.msra.mxu0 %v10901_v9 }
 0x216   : > { %9603 = vmatprep.subr.bf16.mxu0 %v10902_v11 }
 0x217   : > { %10426 = vmatpush3.bf16.msra.mxu1 %v10891_v29 }
 0x218   : > { %1540 = vmatmul.mubr.bf16.gmra.mrb[20].mxu1 %v1260_v23  ;;  %10427 = vmatprep.subr.bf16.mxu1 %v10892_v56  ;;  %v10909_v23 = vld [vmem:[#allocation8 + $0xf8] sm:$0xff]  }
 0x219   : > { %1547 = vmatprep.mubr.bf16.mxu1 %v1264_v42  ;;  %9604 = vmatpush3.bf16.msra.mxu0 %v10903_v36 }
 0x21a   : > { %9605 = vmatprep.subr.bf16.mxu0 %v10904_v14 }
 0x21b   : > { %10428 = vmatpush3.bf16.msra.mxu1 %v10892_v56 }
 0x21c   : > { %10429 = vmatprep.subr.bf16.mxu1 %v10893_v55 }
 0x21d   : > { %9606 = vmatpush3.bf16.msra.mxu0 %v10905_v27 }
 0x21e   : > { %9607 = vmatprep.subr.bf16.mxu0 %v10906_v16 }
 0x21f   : > { %10430 = vmatpush3.bf16.msra.mxu1 %v10893_v55 }
 0x220   : > { %8740 = vmatmul.mubr.msk.bf16.gmra.mrb[24].mxu1 %vm12186_vm7, %v8739_v28 }
 0x221   : > { %1555 = vmatprep.mubr.bf16.mxu1 %v1267_v34  ;;  %9608 = vmatpush3.bf16.msra.mxu0 %v10907_v18 }
 0x222   : > { %9609 = vmatprep.subr.bf16.mxu0 %v10908_v19 }
 0x225   : > { %9610 = vmatpush3.bf16.msra.mxu0 %v10909_v23 }
 0x228   : > { %1556 = vmatmul.mubr.bf16.gmra.mrb[28].mxu1 %v1266_v46  ;;  %v12214_v46 = vld [vmem:[%s15638_s24] ss:$0 sm:$0xff] }
 0x2b2   : > { %v10401_v30 = vpop.f32.mrb[16].mxu0 }
 0x2b3   : > { %v1598_v33 = vpop.f32.mrb[17].mxu0 }
 0x2b4   : > { %v10402_v42 = vpop.f32.mrb[18].mxu0 }
 0x2b5   : > { %v1601_v12 = vpop.f32.mrb[19].mxu0 }
 0x2ba   : > { %v12201_v24 = vpop.f32.mrb[20].mxu0 }
 0x2bb   : > { %v1614_v26 = vpop.f32.mrb[21].mxu0 }
 0x2bc   : > { %v12203_v28 = vpop.f32.mrb[22].mxu0 }
 0x2bd   : > { %v12205_v34 = vpop.f32.mrb[23].mxu0 }
 0x2c2   : > { %v12207_v22 = vpop.f32.mrb[24].mxu0 }
 0x2c3   : > { %v9531_v17 = vpop.f32.mrb[0].mxu1  ;;  %v12209_v38 = vpop.f32.mrb[25].mxu0 }
 0x2c4   : > { %v9532_v47 = vpop.f32.mrb[1].mxu1  ;;  %v12216_v49 = vpop.f32.mrb[26].mxu0 }
 0x2c5   : > { %v9533_v40 = vadd.f32 %v9532_v47, %v9531_v17  ;;  %v9534_v50 = vpop.f32.mrb[2].mxu1  ;;  %v12218_v20 = vpop.f32.mrb[27].mxu0 }
 0x2c6   : > { %v9535_v29 = vpop.f32.mrb[3].mxu1 }
 0x2c7   : > { %v1502_v56 = vadd.f32 %v9533_v40, %v12214_v46  ;;  %v9536_v55 = vadd.f32 %v9535_v29, %v9534_v50 }
 0x2c9   : > { %v1599_v5 = vadd.f32 %v1598_v33, %v1502_v56  ;;  %v1505_v6 = vadd.f32 %v9536_v55, %v12214_v46 }
 0x2ca   : > { %v12232_v51 = vpop.f32.mrb[28].mxu0 }
 0x2cb   : > { %v1669_v7 = vmul.f32 %v12224_v0, %v1599_v5  ;;  %v1602_v39 = vadd.f32 %v1601_v12, %v1505_v6  ;;  %v9537_v9 = vpop.f32.mrb[4].mxu1  ;;  %v12235_v11 = vpop.f32.mrb[29].mxu0 }
 0x2cc   : > { %v9538_v36 = vpop.f32.mrb[5].mxu1  ;;  %v12237_v14 = vpop.f32.mrb[30].mxu0 }
 0x2cd   : > { %v1693_v27 = vadd.f32 %v12230_v52, %v1669_v7  ;;  %v1670_v16 = vmul.f32 %v12224_v0, %v1602_v39  ;;  %v9539_v18 = vadd.f32 %v9538_v36, %v9537_v9  ;;  %v9540_v19 = vpop.f32.mrb[6].mxu1  ;;  %v12241_v23 = vpop.f32.mrb[31].mxu0 }
 0x2ce   : > { %v9541_v33 = vpop.f32.mrb[7].mxu1 }
 0x2cf   : > { %v1694_v17 = vadd.f32 %v12230_v52, %v1670_v16  ;;  %v1510_v47 = vadd.f32 %v9539_v18, %v12214_v46  ;;  %v9542_v12 = vadd.f32 %v9541_v33, %v9540_v19  ;;  %v12245_v40 = vmax.f32 %v1693_v27, 0.0 }
 0x2d1   : > { %v1607_v50 = vadd.f32 %v10401_v30, %v1510_v47  ;;  %v1513_v29 = vadd.f32 %v9542_v12, %v12214_v46  ;;  %v1710_v56 = vmax.f32 %v1694_v17, 0.0  ;;  %v15529_v55 = vrot.slane %v12245_v40, 7 }
 0x2d2   : > { %v15530_v16 = vrot.slane %v12245_v40, 1 }
 0x2d3   : > { %v1671_v5 = vmul.f32 %v12224_v0, %v1607_v50  ;;  %v1610_v6 = vadd.f32 %v10402_v42, %v1513_v29  ;;  %v9543_v7 = vpop.f32.mrb[8].mxu1  ;;  %v1728_v39 = vrot.slane %v1710_v56, 7  ;;  %v1824_v9 = vpack.c.bf16 %v1710_v56, %v12245_v40 }
 0x2d4   : > { %v9544_v36 = vpop.f32.mrb[9].mxu1  ;;  %v1776_v18 = vrot.slane %v1710_v56, 1 }
 0x2d5   : > { %v1695_v27 = vadd.f32 %v12230_v52, %v1671_v5  ;;  %v1672_v30 = vmul.f32 %v12224_v0, %v1610_v6  ;;  %v9545_v19 = vadd.f32 %v9544_v36, %v9543_v7  ;;  %v9546_v33 = vpop.f32.mrb[10].mxu1  ;;  %v12258_v17 = vsel %vm1163_vm8, %v15529_v55, %v1728_v39  ;;  %2078 = vmatprep.mubr.bf16.mxu0 %v1824_v9 }
 0x2d6   : > { %v9547_v42 = vpop.f32.mrb[11].mxu1  ;;  %v1805_v47 = vsel %vm1212_vm1, %v15530_v16, %v1776_v18 }
 0x2d7   : > { %v12264_v12 = vmax.f32 %v1695_v27, 0.0  ;;  %v1696_v50 = vadd.f32 %v12230_v52, %v1672_v30  ;;  %v1518_v29 = vadd.f32 %v9545_v19, %v12214_v46  ;;  %v9548_v56 = vadd.f32 %v9547_v42, %v9546_v33 }
 0x2d9   : > { %v12268_v5 = vmax.f32 %v1696_v50, 0.0  ;;  %v1615_v6 = vadd.f32 %v1614_v26, %v1518_v29  ;;  %v1521_v7 = vadd.f32 %v9548_v56, %v12214_v46  ;;  %v1777_v9 = vrot.slane %v12264_v12, 1 }
 0x2da   : > { %v1729_v36 = vrot.slane %v12264_v12, 7 }
 0x2db   : > { %v1778_v55 = vrot.slane %v12268_v5, 1  ;;  %v1673_v16 = vmul.f32 %v12224_v0, %v1615_v6  ;;  %v1618_v27 = vadd.f32 %v12205_v34, %v1521_v7  ;;  %v9549_v31 = vpop.f32.mrb[12].mxu1  ;;  %v1804_v30 = vsel %vm1212_vm1, %v1776_v18, %v1777_v9 }
 0x2dc   : > { %v9550_v19 = vpop.f32.mrb[13].mxu1  ;;  %v1825_v33 = vpack.c.bf16 %v1804_v30, %v1805_v47  ;;  %v1730_v42 = vrot.slane %v12268_v5, 7  ;;  %v12283_v50 = vsel %vm1163_vm8, %v1728_v39, %v1729_v36 }
 0x2dd   : > { %v1697_v29 = vadd.f32 %v12230_v52, %v1673_v16  ;;  %v1674_v56 = vmul.f32 %v12224_v0, %v1618_v27  ;;  %v9551_v34 = vadd.f32 %v9550_v19, %v9549_v31  ;;  %v9552_v6 = vpop.f32.mrb[14].mxu1  ;;  %v1803_v18 = vsel %vm1212_vm1, %v1777_v9, %v1778_v55 }
 0x2de   : > { %v9553_v7 = vpop.f32.mrb[15].mxu1  ;;  %10431 = vmatprep.mubr.bf16.mxu1 %v1825_v33  ;;  %v12291_v47 = vsel %vm1163_vm8, %v1729_v36, %v1730_v42 }
 0x2df   : > { %v12293_v30 = vmax.f32 %v1697_v29, 0.0  ;;  %v1698_v39 = vadd.f32 %v12230_v52, %v1674_v56  ;;  %v1526_v26 = vadd.f32 %v9551_v34, %v12214_v46  ;;  %v9554_v16 = vadd.f32 %v9553_v7, %v9552_v6 }
 0x2e1   : > { %v1779_v27 = vrot.slane %v12293_v30, 1  ;;  %v12300_v19 = vmax.f32 %v1698_v39, 0.0  ;;  %v1623_v9 = vadd.f32 %v12201_v24, %v1526_v26  ;;  %v1529_v33 = vadd.f32 %v9554_v16, %v12214_v46 }
 0x2e2   : > { %v1731_v36 = vrot.slane %v12293_v30, 7 }
 0x2e3   : > { %v1675_v29 = vmul.f32 %v12224_v0, %v1623_v9  ;;  %v1626_v56 = vadd.f32 %v12203_v28, %v1529_v33  ;;  %v1802_v34 = vsel %vm1212_vm1, %v1778_v55, %v1779_v27  ;;  %v9555_v6 = vpop.f32.mrb[16].mxu1  ;;  %v1780_v7 = vrot.slane %v12300_v19, 1 }
 0x2e4   : > { %v8805_v31 = vpack.c.bf16 %v1802_v34, %v1803_v18  ;;  %v9556_v1 = vpop.f32.mrb[17].mxu1  ;;  %v1732_v24 = vrot.slane %v12300_v19, 7  ;;  %v12315_v26 = vsel %vm1163_vm8, %v1730_v42, %v1731_v36 }
 0x2e5   : > { %v1699_v16 = vadd.f32 %v12230_v52, %v1675_v29  ;;  %v1676_v28 = vmul.f32 %v12224_v0, %v1626_v56  ;;  %v9557_v9 = vadd.f32 %v9556_v1, %v9555_v6  ;;  %v9558_v55 = vpop.f32.mrb[18].mxu1  ;;  %v1801_v33 = vsel %vm1212_vm1, %v1779_v27, %v1780_v7 }
 0x2e6   : > { %v9559_v18 = vpop.f32.mrb[19].mxu1  ;;  %10432 = vmatmul.mubr.msk.bf16.vlgmr.msra.gmra.mrb[32].mxu1 %vm11979_vm4, %v8805_v31  ;;  %v12325_v34 = vsel %vm1163_vm8, %v1731_v36, %v1732_v24 }
 0x2e7   : > { %v12327_v39 = vmax.f32 %v1699_v16, 0.0  ;;  %v1700_v42 = vadd.f32 %v12230_v52, %v1676_v28  ;;  %v1534_v29 = vadd.f32 %v9557_v9, %v12214_v46  ;;  %v9560_v56 = vadd.f32 %v9559_v18, %v9558_v55 }
 0x2e9   : > { %v12333_v6 = vmax.f32 %v1700_v42, 0.0  ;;  %v1631_v27 = vadd.f32 %v12209_v38, %v1534_v29  ;;  %v1537_v31 = vadd.f32 %v9560_v56, %v12214_v46  ;;  %v1781_v54 = vrot.slane %v12327_v39, 1 }
 0x2ea   : > { %v1733_v36 = vrot.slane %v12327_v39, 7 }
 0x2eb   : > { %v1677_v16 = vmul.f32 %v12224_v0, %v1631_v27  ;;  %v1634_v28 = vadd.f32 %v12218_v20, %v1537_v31  ;;  %v9561_v45 = vpop.f32.mrb[20].mxu1  ;;  %v1800_v9 = vsel %vm1212_vm1, %v1780_v7, %v1781_v54  ;;  %v1782_v55 = vrot.slane %v12333_v6, 1 }
 0x2ec   : > { %v9562_v18 = vpop.f32.mrb[21].mxu1  ;;  %v1831_v42 = vpack.c.bf16 %v1800_v9, %v1801_v33  ;;  %v1734_v29 = vrot.slane %v12333_v6, 7  ;;  %v12349_v56 = vsel %vm1163_vm8, %v1732_v24, %v1733_v36 }
 0x2ed   : > { %v1701_v27 = vadd.f32 %v12230_v52, %v1677_v16  ;;  %v1678_v20 = vmul.f32 %v12224_v0, %v1634_v28  ;;  %v9563_v31 = vadd.f32 %v9562_v18, %v9561_v45  ;;  %v9564_v1 = vpop.f32.mrb[22].mxu1  ;;  %v1799_v7 = vsel %vm1212_vm1, %v1781_v54, %v1782_v55 }
 0x2ee   : > { %v9565_v32 = vpop.f32.mrb[23].mxu1  ;;  %10435 = vmatprep.mubr.bf16.mxu1 %v1831_v42  ;;  %v12357_v33 = vsel %vm1163_vm8, %v1733_v36, %v1734_v29 }
 0x2ef   : > { %v12359_v9 = vmax.f32 %v1701_v27, 0.0  ;;  %v1702_v24 = vadd.f32 %v12230_v52, %v1678_v20  ;;  %v1542_v38 = vadd.f32 %v9563_v31, %v12214_v46  ;;  %v9566_v16 = vadd.f32 %v9565_v32, %v9564_v1 }
 0x2f1   : > { %v12365_v28 = vmax.f32 %v1702_v24, 0.0  ;;  %v1639_v54 = vadd.f32 %v12207_v22, %v1542_v38  ;;  %v1545_v18 = vadd.f32 %v9566_v16, %v12214_v46  ;;  %v1783_v42 = vrot.slane %v12359_v9, 1 }
 0x2f2   : > { %v1735_v36 = vrot.slane %v12359_v9, 7 }
 0x2f3   : > { %v1679_v27 = vmul.f32 %v12224_v0, %v1639_v54  ;;  %v1642_v20 = vadd.f32 %v12216_v49, %v1545_v18  ;;  %v9567_v53 = vpop.f32.mrb[24].mxu1  ;;  %v1798_v32 = vsel %vm1212_vm1, %v1782_v55, %v1783_v42  ;;  %v1784_v1 = vrot.slane %v12365_v28, 1 }
 0x2f4   : > { %v9568_v31 = vpop.f32.mrb[25].mxu1  ;;  %v8809_v24 = vpack.c.bf16 %v1798_v32, %v1799_v7  ;;  %v1736_v38 = vrot.slane %v12365_v28, 7  ;;  %v12381_v16 = vsel %vm1163_vm8, %v1734_v29, %v1735_v36 }
 0x2f5   : > { %v1703_v54 = vadd.f32 %v12230_v52, %v1679_v27  ;;  %v1680_v49 = vmul.f32 %v12224_v0, %v1642_v20  ;;  %v9569_v18 = vadd.f32 %v9568_v31, %v9567_v53  ;;  %v9570_v45 = vpop.f32.mrb[26].mxu1  ;;  %v1797_v55 = vsel %vm1212_vm1, %v1783_v42, %v1784_v1 }
 0x2f6   : > { %v9571_v37 = vpop.f32.mrb[27].mxu1  ;;  %10436 = vmatmul.mubr.msk.bf16.gmra.mrb[36].mxu1 %vm12037_vm6, %v8809_v24  ;;  %v12391_v7 = vsel %vm1163_vm8, %v1735_v36, %v1736_v38 }
 0x2f7   : > { %v12393_v32 = vmax.f32 %v1703_v54, 0.0  ;;  %v1704_v29 = vadd.f32 %v12230_v52, %v1680_v49  ;;  %v1550_v27 = vadd.f32 %v9569_v18, %v12214_v46  ;;  %v9572_v20 = vadd.f32 %v9571_v37, %v9570_v45 }
 0x2f9   : > { %v12399_v31 = vmax.f32 %v1704_v29, 0.0  ;;  %v1647_v42 = vadd.f32 %v12235_v11, %v1550_v27  ;;  %v1553_v24 = vadd.f32 %v9572_v20, %v12214_v46  ;;  %v1785_v22 = vrot.slane %v12393_v32, 1 }
 0x2fa   : > { %v1737_v36 = vrot.slane %v12393_v32, 7 }
 0x2fb   : > { %v1681_v54 = vmul.f32 %v12224_v0, %v1647_v42  ;;  %v1650_v49 = vadd.f32 %v12241_v23, %v1553_v24  ;;  %v9573_v61 = vpop.f32.mrb[28].mxu1  ;;  %v1796_v37 = vsel %vm1212_vm1, %v1784_v1, %v1785_v22  ;;  %v1786_v45 = vrot.slane %v12399_v31, 1 }
 0x2fc   : > { %v9574_v18 = vpop.f32.mrb[29].mxu1  ;;  %v1837_v29 = vpack.c.bf16 %v1796_v37, %v1797_v55  ;;  %v1738_v27 = vrot.slane %v12399_v31, 7  ;;  %v12415_v20 = vsel %vm1163_vm8, %v1736_v38, %v1737_v36 }
 0x2fd   : > { %v1705_v42 = vadd.f32 %v12230_v52, %v1681_v54  ;;  %v1682_v23 = vmul.f32 %v12224_v0, %v1650_v49  ;;  %v9575_v24 = vadd.f32 %v9574_v18, %v9573_v61  ;;  %v9576_v53 = vpop.f32.mrb[30].mxu1  ;;  %v1795_v1 = vsel %vm1212_vm1, %v1785_v22, %v1786_v45 }
 0x2fe   : > { %v9577_v58 = vpop.f32.mrb[31].mxu1  ;;  %10439 = vmatprep.mubr.bf16.mxu1 %v1837_v29  ;;  %v1747_v55 = vsel %vm1163_vm8, %v1737_v36, %v1738_v27 }
 0x2ff   : > { %v1721_v37 = vmax.f32 %v1705_v42, 0.0  ;;  %v1706_v11 = vadd.f32 %v12230_v52, %v1682_v23  ;;  %v1558_v38 = vadd.f32 %v9575_v24, %v12214_v46  ;;  %v9578_v43 = vadd.f32 %v9577_v58, %v9576_v53 }
 0x300   : > { %v1838_v54 = vpack.c.bf16 %v1747_v55, %v12415_v20 }
 0x301   : > { %v1722_v2 = vmax.f32 %v1706_v11, 0.0  ;;  %v1655_v61 = vadd.f32 %v12232_v51, %v1558_v38  ;;  %v1561_v49 = vadd.f32 %v9578_v43, %v12214_v46  ;;  %v1787_v18 = vrot.slane %v1721_v37, 1 }
 0x302   : > { %v1739_v22 = vrot.slane %v1721_v37, 7 }
 0x303   : > { %v1683_v29 = vmul.f32 %v12224_v0, %v1655_v61  ;;  %v1658_v48 = vadd.f32 %v12237_v14, %v1561_v49  ;;  %v1794_v36 = vsel %vm1212_vm1, %v1786_v45, %v1787_v18  ;;  %v1788_v42 = vrot.slane %v1722_v2, 1 }
 0x304   : > { %v8813_v23 = vpack.c.bf16 %v1794_v36, %v1795_v1  ;;  %v1842_v24 = vpack.c.bf16 %v1722_v2, %v1721_v37  ;;  %v1740_v58 = vrot.slane %v1722_v2, 7  ;;  %v1746_v53 = vsel %vm1163_vm8, %v1738_v27, %v1739_v22 }
 0x305   : > { %v1707_v51 = vadd.f32 %v12230_v52, %v1683_v29  ;;  %v1684_v43 = vmul.f32 %v12224_v0, %v1658_v48  ;;  %v1793_v46 = vsel %vm1212_vm1, %v1787_v18, %v1788_v42  ;;  %v15639_v49 = vrot.slane %v12245_v40, 7 }
 0x306   : > { %10440 = vmatmul.mubr.msk.bf16.gmra.mrb[40].mxu1 %vm12078_vm10, %v8813_v23  ;;  %v1745_v14 = vsel %vm1163_vm8, %v1739_v22, %v1740_v58  ;;  %v15640_v22 = vrot.slane %v12245_v40, 1  ;;  %v15641_v40 = vpack.c.bf16 %v12268_v5, %v12264_v12  ;;  %v15646_v12 = vpack.c.bf16 %v12357_v33, %v12349_v56  ;;  %v10916_v56 = vld [vmem:[#allocation8 + $0x230] sm:$0xff]   ;;  %v10917_v33 = vld [vmem:[#allocation8 + $0x238] sm:$0xff]  }
 0x307   : > { %v1723_v45 = vmax.f32 %v1707_v51, 0.0  ;;  %v1708_v11 = vadd.f32 %v12230_v52, %v1684_v43  ;;  %v8801_v2 = vpack.c.bf16 %v1745_v14, %v1746_v53  ;;  %v15642_v53 = vpack.c.bf16 %v12291_v47, %v12283_v50  ;;  %v10927_v14 = vld [vmem:[#allocation8 + $0x1a0] sm:$0xff]  }
 0x308   : > { %v15643_v51 = vpack.c.bf16 %v12300_v19, %v12293_v30  ;;  %v15645_v43 = vpack.c.bf16 %v12333_v6, %v12327_v39  ;;  %v15647_v5 = vpack.c.bf16 %v12365_v28, %v12359_v9  ;;  %v15648_v50 = vpack.c.bf16 %v12391_v7, %v12381_v16  ;;  %v10910_v30 = vld [vmem:[#allocation8 + $0x200] sm:$0xff]   ;;  %v10911_v19 = vld [vmem:[#allocation8 + $0x208] sm:$0xff]   ;;  %v10912_v39 = vld [vmem:[#allocation8 + $0x210] sm:$0xff]  }
 0x309   : > { %v1724_v20 = vmax.f32 %v1708_v11, 0.0  ;;  %v1789_v1 = vrot.slane %v1723_v45, 1  ;;  %v1741_v27 = vrot.slane %v1723_v45, 7  ;;  %v15649_v47 = vpack.c.bf16 %v12399_v31, %v12393_v32  ;;  %10447 = vmatprep.subr.bf16.mxu0 %v10910_v30  ;;  %v10915_v6 = vld [vmem:[#allocation8 + $0x228] sm:$0xff]   ;;  %v10918_v9 = vld [vmem:[#allocation8 + $0x1c0] sm:$0xff]   ;;  %v10922_v32 = vld [vmem:[#allocation8 + $0x1d0] sm:$0xff]  }
 0x30a   : > { %v10919_v28 = vld [vmem:[#allocation8 + $0x180] sm:$0xff]   ;;  %9675 = vmatprep.subr.bf16.mxu1 %v10918_v9  ;;  %v10920_v16 = vld [vmem:[#allocation8 + $0x1c8] sm:$0xff]   ;;  %v10923_v31 = vld [vmem:[#allocation8 + $0x190] sm:$0xff]  }
 0x30b   : > { %v1742_v55 = vrot.slane %v1724_v20, 7  ;;  %v1792_v48 = vsel %vm1212_vm1, %v1788_v42, %v1789_v1  ;;  %v1790_v0 = vrot.slane %v1724_v20, 1  ;;  %v1845_v37 = vpack.c.bf16 %v1724_v20, %v1723_v45  ;;  %9676 = vmatpush3.bf16.msra.mxu1 %v10919_v28  ;;  %v10921_v7 = vld [vmem:[#allocation8 + $0x188] sm:$0xff]   ;;  %v10931_v20 = vld [vmem:[#allocation8 + $0x1b0] sm:$0xff]  }
 0x30c   : > { %v1843_v38 = vpack.c.bf16 %v1792_v48, %v1793_v46  ;;  %v1744_v61 = vsel %vm1163_vm8, %v1740_v58, %v1741_v27  ;;  %9677 = vmatprep.subr.bf16.mxu1 %v10920_v16  ;;  %v10926_v46 = vld [vmem:[#allocation8 + $0x1e0] sm:$0xff]   ;;  %v10928_v45 = vld [vmem:[#allocation8 + $0x1e8] sm:$0xff]  }
 0x30d   : > { %v1758_v18 = vsel %vm1163_vm8, %v1742_v55, %v15639_v49  ;;  %v1791_v52 = vsel %vm1212_vm1, %v1789_v1, %v1790_v0  ;;  %v1806_v29 = vsel %vm1212_vm1, %v1790_v0, %v15640_v22  ;;  %v1743_v36 = vsel %vm1163_vm8, %v1741_v27, %v1742_v55  ;;  %v10929_v11 = vld [vmem:[#allocation8 + $0x1a8] sm:$0xff]   ;;  %v10932_v1 = vld [vmem:[#allocation8 + $0x1f8] sm:$0xff]   ;;  %v12540_v16 = vld [vmem:[%s15509_s4 + $0x2] ss:$0 sm:$0xff] }
 0x30e   : > { %10443 = vmatprep.mubr.bf16.mxu1 %v1843_v38  ;;  %v8789_v42 = vpack.c.bf16 %v12258_v17, %v1758_v18  ;;  %v8817_v23 = vpack.c.bf16 %v1806_v29, %v1791_v52  ;;  %v1844_v58 = vpack.c.bf16 %v1743_v36, %v1744_v61  ;;  %v15644_v17 = vpack.c.bf16 %v12325_v34, %v12315_v26  ;;  %v10913_v26 = vld [vmem:[#allocation8 + $0x218] sm:$0xff]   ;;  %v10914_v34 = vld [vmem:[#allocation8 + $0x220] sm:$0xff]  }
 0x30f   : > { %9678 = vmatpush3.bf16.msra.mxu1 %v10921_v7  ;;  %v10933_v55 = vld [vmem:[#allocation8 + $0x1b8] sm:$0xff]  }
 0x310   : > { %8790 = vmatmul.mubr.msk.bf16.vlgmr.msra.gmra.mrb[32].mxu0 %vm12091_vm11, %v8789_v42  ;;  %10444 = vmatmul.mubr.msk.bf16.gmra.mrb[44].mxu1 %vm12122_vm13, %v8817_v23 }
 0x311   : > { %2086 = vmatprep.mubr.bf16.mxu0 %v15641_v40  ;;  %10448 = vmatpush3.bf16.msra.mxu0 %v10910_v30 }
 0x312   : > { %10449 = vmatprep.subr.bf16.mxu0 %v10911_v19  ;;  %9679 = vmatprep.subr.bf16.mxu1 %v10922_v32 }
 0x313   : > { %9680 = vmatpush3.bf16.msra.mxu1 %v10923_v31 }
 0x315   : > { %10450 = vmatpush3.bf16.msra.mxu0 %v10911_v19 }
 0x316   : > { %10451 = vmatprep.subr.bf16.mxu0 %v10912_v39 }
 0x318   : > { %2087 = vmatmul.mubr.bf16.gmra.mrb[36].mxu0 %v15642_v53 }
 0x319   : > { %2094 = vmatprep.mubr.bf16.mxu0 %v15643_v51  ;;  %10452 = vmatpush3.bf16.msra.mxu0 %v10912_v39  ;;  %v12527_v39 = vld [vmem:[%s15508_s3 + $0x2] ss:$0 sm:$0xff] }
 0x31a   : > { %10453 = vmatprep.subr.bf16.mxu0 %v10913_v26 }
 0x31d   : > { %10454 = vmatpush3.bf16.msra.mxu0 %v10913_v26 }
 0x31e   : > { %10455 = vmatprep.subr.bf16.mxu0 %v10914_v34 }
 0x320   : > { %8794 = vmatmul.mubr.msk.bf16.gmra.mrb[40].mxu0 %vm12138_vm15, %v15644_v17 }
 0x321   : > { %2102 = vmatprep.mubr.bf16.mxu0 %v15645_v43  ;;  %10456 = vmatpush3.bf16.msra.mxu0 %v10914_v34 }
 0x322   : > { %10457 = vmatprep.subr.bf16.mxu0 %v10915_v6 }
 0x325   : > { %10458 = vmatpush3.bf16.msra.mxu0 %v10915_v6 }
 0x326   : > { %10459 = vmatprep.subr.bf16.mxu0 %v10916_v56 }
 0x328   : > { %2103 = vmatmul.mubr.bf16.gmra.mrb[44].mxu0 %v15646_v12 }
 0x329   : > { %2110 = vmatprep.mubr.bf16.mxu0 %v15647_v5  ;;  %10460 = vmatpush3.bf16.msra.mxu0 %v10916_v56 }
 0x32a   : > { %10461 = vmatprep.subr.bf16.mxu0 %v10917_v33 }
 0x32d   : > { %10462 = vmatpush3.bf16.msra.mxu0 %v10917_v33 }
 0x330   : > { %8798 = vmatmul.mubr.msk.bf16.gmra.mrb[48].mxu0 %vm12162_vm2, %v15648_v50 }
 0x331   : > { %2118 = vmatprep.mubr.bf16.mxu0 %v15649_v47 }
 0x338   : > { %2119 = vmatmul.mubr.bf16.gmra.mrb[52].mxu0 %v1838_v54  ;;  %v10924_v54 = vld [vmem:[#allocation8 + $0x1d8] sm:$0xff]  }
 0x339   : > { %2126 = vmatprep.mubr.bf16.mxu0 %v1842_v24  ;;  %9681 = vmatprep.subr.bf16.mxu1 %v10924_v54  ;;  %v10925_v24 = vld [vmem:[#allocation8 + $0x198] sm:$0xff]  }
 0x33a   : > { %9682 = vmatpush3.bf16.msra.mxu1 %v10925_v24 }
 0x33b   : > { %9683 = vmatprep.subr.bf16.mxu1 %v10926_v46 }
 0x33e   : > { %9684 = vmatpush3.bf16.msra.mxu1 %v10927_v14 }
 0x33f   : > { %9685 = vmatprep.subr.bf16.mxu1 %v10928_v45 }
 0x340   : > { %8802 = vmatmul.mubr.msk.bf16.gmra.mrb[56].mxu0 %vm12186_vm7, %v8801_v2  ;;  %v10930_v2 = vld [vmem:[#allocation8 + $0x1f0] sm:$0xff]  }
 0x341   : > { %2134 = vmatprep.mubr.bf16.mxu0 %v1845_v37 }
 0x342   : > { %9686 = vmatpush3.bf16.msra.mxu1 %v10929_v11 }
 0x343   : > { %9687 = vmatprep.subr.bf16.mxu1 %v10930_v2 }
 0x346   : > { %9688 = vmatpush3.bf16.msra.mxu1 %v10931_v20 }
 0x347   : > { %9689 = vmatprep.subr.bf16.mxu1 %v10932_v1 }
 0x348   : > { %2135 = vmatmul.mubr.bf16.gmra.mrb[60].mxu0 %v1844_v58  ;;  %v12514_v58 = vld [vmem:[%s15638_s24 + $0x1] ss:$0 sm:$0xff] }
 0x34a   : > { %9690 = vmatpush3.bf16.msra.mxu1 %v10933_v55 }
 0x3b9   : > { %v10433_v27 = vpop.f32.mrb[32].mxu1 }
 0x3ba   : > { %v2177_v48 = vpop.f32.mrb[33].mxu1 }
 0x3bb   : > { %v10434_v0 = vpop.f32.mrb[34].mxu1 }
 0x3bc   : > { %v2180_v37 = vpop.f32.mrb[35].mxu1 }
 0x3c9   : > { %v12497_v38 = vpop.f32.mrb[36].mxu1 }
 0x3ca   : > { %v2193_v61 = vpop.f32.mrb[37].mxu1 }
 0x3cb   : > { %v12499_v49 = vpop.f32.mrb[38].mxu1 }
 0x3cc   : > { %v2196_v18 = vpop.f32.mrb[39].mxu1 }
 0x3d9   : > { %v12501_v52 = vpop.f32.mrb[40].mxu1 }
 0x3da   : > { %v12503_v22 = vpop.f32.mrb[41].mxu1 }
 0x3db   : > { %v12505_v29 = vpop.f32.mrb[42].mxu1 }
 0x3dc   : > { %v12507_v36 = vpop.f32.mrb[43].mxu1 }
 0x3e3   : > { %v9611_v42 = vpop.f32.mrb[32].mxu0  ;;  %v12509_v23 = vpop.f32.mrb[44].mxu1 }
 0x3e4   : > { %v9612_v40 = vpop.f32.mrb[33].mxu0  ;;  %v12516_v53 = vpop.f32.mrb[45].mxu1 }
 0x3e5   : > { %v9613_v51 = vadd.f32 %v9612_v40, %v9611_v42  ;;  %v9614_v17 = vpop.f32.mrb[34].mxu0  ;;  %v12518_v43 = vpop.f32.mrb[46].mxu1 }
 0x3e6   : > { %v9615_v12 = vpop.f32.mrb[35].mxu0  ;;  %v12520_v5 = vpop.f32.mrb[47].mxu1 }
 0x3e7   : > { %v2081_v50 = vadd.f32 %v9613_v51, %v12514_v58  ;;  %v9616_v47 = vadd.f32 %v9615_v12, %v9614_v17 }
 0x3e9   : > { %v2178_v30 = vadd.f32 %v2177_v48, %v2081_v50  ;;  %v2084_v19 = vadd.f32 %v9616_v47, %v12514_v58 }
 0x3eb   : > { %v12530_v26 = vadd.f32 %v2178_v30, %v11870_v60  ;;  %v2181_v34 = vadd.f32 %v2180_v37, %v2084_v19  ;;  %v9617_v6 = vpop.f32.mrb[36].mxu0 }
 0x3ec   : > { %v9618_v56 = vpop.f32.mrb[37].mxu0 }
 0x3ed   : > { %v2264_v33 = vmul.f32 %v12527_v39, %v12530_v26  ;;  %v12535_v9 = vadd.f32 %v2181_v34, %v11883_v3  ;;  %v9619_v28 = vadd.f32 %v9618_v56, %v9617_v6  ;;  %v9620_v7 = vpop.f32.mrb[38].mxu0 }
 0x3ee   : > { %v9621_v32 = vpop.f32.mrb[39].mxu0 }
 0x3ef   : > { %v2265_v60 = vmul.f32 %v12527_v39, %v12535_v9  ;;  %v2089_v31 = vadd.f32 %v9619_v28, %v12514_v58  ;;  %v9622_v54 = vadd.f32 %v9621_v32, %v9620_v7  ;;  %v2288_v24 = vadd.f32 %v12540_v16, %v2264_v33 }
 0x3f1   : > { %v2186_v46 = vadd.f32 %v10433_v27, %v2089_v31  ;;  %v2092_v3 = vadd.f32 %v9622_v54, %v12514_v58  ;;  %v2289_v14 = vadd.f32 %v12540_v16, %v2265_v60  ;;  %v12553_v55 = vmax.f32 %v2288_v24, 0.0 }
 0x3f3   : > { %v12549_v45 = vadd.f32 %v2186_v46, %v11865_v57  ;;  %v2189_v11 = vadd.f32 %v10434_v0, %v2092_v3  ;;  %v9623_v2 = vpop.f32.mrb[40].mxu0  ;;  %v12551_v20 = vmax.f32 %v2289_v14, 0.0  ;;  %v2370_v32 = vrot.slane %v12553_v55, 1 }
 0x3f4   : > { %v9624_v1 = vpop.f32.mrb[41].mxu0 }
 0x3f5   : > { %v2266_v48 = vmul.f32 %v12527_v39, %v12549_v45  ;;  %v12558_v37 = vadd.f32 %v2189_v11, %v11875_v63  ;;  %v9625_v27 = vadd.f32 %v9624_v1, %v9623_v2  ;;  %v9626_v42 = vpop.f32.mrb[42].mxu0  ;;  %v2419_v57 = vpack.c.bf16 %v12551_v20, %v12553_v55 }
 0x3f6   : > { %v9627_v40 = vpop.f32.mrb[43].mxu0  ;;  %v2371_v19 = vrot.slane %v12551_v20, 1 }
 0x3f7   : > { %v2290_v0 = vadd.f32 %v12540_v16, %v2266_v48  ;;  %v2267_v51 = vmul.f32 %v12527_v39, %v12558_v37  ;;  %v2097_v17 = vadd.f32 %v9625_v27, %v12514_v58  ;;  %v9628_v12 = vadd.f32 %v9627_v40, %v9626_v42  ;;  %2673 = vmatprep.mubr.bf16.mxu1 %v2419_v57 }
 0x3f9   : > { %v12566_v50 = vmax.f32 %v2290_v0, 0.0  ;;  %v2291_v63 = vadd.f32 %v12540_v16, %v2267_v51  ;;  %v2194_v47 = vadd.f32 %v2193_v61, %v2097_v17  ;;  %v2100_v30 = vadd.f32 %v9628_v12, %v12514_v58 }
 0x3fb   : > { %v12572_v34 = vadd.f32 %v2194_v47, %v11901_v15  ;;  %v2197_v6 = vadd.f32 %v2196_v18, %v2100_v30  ;;  %v9629_v56 = vpop.f32.mrb[44].mxu0  ;;  %v2372_v33 = vrot.slane %v12566_v50, 1  ;;  %v12575_v28 = vmax.f32 %v2291_v63, 0.0 }
 0x3fc   : > { %v9630_v7 = vpop.f32.mrb[45].mxu0  ;;  %v2400_v18 = vsel %vm1212_vm1, %v2370_v32, %v2371_v19 }
 0x3fd   : > { %v2268_v60 = vmul.f32 %v12527_v39, %v12572_v34  ;;  %v12581_v61 = vadd.f32 %v2197_v6, %v11918_v25  ;;  %v9631_v31 = vadd.f32 %v9630_v7, %v9629_v56  ;;  %v9632_v54 = vpop.f32.mrb[46].mxu0  ;;  %v2399_v15 = vsel %vm1212_vm1, %v2371_v19, %v2372_v33 }
 0x3fe   : > { %v9633_v24 = vpop.f32.mrb[47].mxu0  ;;  %v2373_v11 = vrot.slane %v12575_v28, 1  ;;  %v2420_v2 = vpack.c.bf16 %v2399_v15, %v2400_v18  ;;  %v15650_v18 = vld [vmem:[#allocation23_spill] sm:$0xff] }
 0x3ff   : > { %v2292_v46 = vadd.f32 %v12540_v16, %v2268_v60  ;;  %v2269_v3 = vmul.f32 %v12527_v39, %v12581_v61  ;;  %v2105_v14 = vadd.f32 %v9631_v31, %v12514_v58  ;;  %v9634_v25 = vadd.f32 %v9633_v24, %v9632_v54 }
 0x400   : > { %10463 = vmatprep.mubr.bf16.mxu0 %v2420_v2  ;;  %v2398_v12 = vsel %vm1212_vm1, %v2372_v33, %v2373_v11 }
 0x401   : > { %v12594_v1 = vmax.f32 %v2292_v46, 0.0  ;;  %v2293_v48 = vadd.f32 %v12540_v16, %v2269_v3  ;;  %v2202_v27 = vadd.f32 %v12497_v38, %v2105_v14  ;;  %v2108_v42 = vadd.f32 %v9634_v25, %v12514_v58 }
 0x403   : > { %v2374_v40 = vrot.slane %v12594_v1, 1  ;;  %v12601_v57 = vadd.f32 %v2202_v27, %v11898_v13  ;;  %v2205_v0 = vadd.f32 %v12499_v49, %v2108_v42  ;;  %v9635_v51 = vpop.f32.mrb[48].mxu0  ;;  %v12604_v17 = vmax.f32 %v2293_v48, 0.0 }
 0x404   : > { %v9636_v63 = vpop.f32.mrb[49].mxu0 }
 0x405   : > { %v2270_v38 = vmul.f32 %v12527_v39, %v12601_v57  ;;  %v12611_v47 = vadd.f32 %v2205_v0, %v11912_v21  ;;  %v2397_v30 = vsel %vm1212_vm1, %v2373_v11, %v2374_v40  ;;  %v9637_v13 = vadd.f32 %v9636_v63, %v9635_v51  ;;  %v9638_v19 = vpop.f32.mrb[50].mxu0 }
 0x406   : > { %v8867_v6 = vpack.c.bf16 %v2397_v30, %v2398_v12  ;;  %v9639_v49 = vpop.f32.mrb[51].mxu0  ;;  %v2375_v21 = vrot.slane %v12604_v17, 1 }
 0x407   : > { %v2294_v56 = vadd.f32 %v12540_v16, %v2270_v38  ;;  %v2271_v7 = vmul.f32 %v12527_v39, %v12611_v47  ;;  %v2113_v33 = vadd.f32 %v9637_v13, %v12514_v58  ;;  %v9640_v60 = vadd.f32 %v9639_v49, %v9638_v19 }
 0x408   : > { %10464 = vmatmul.mubr.msk.bf16.vlgmr.msra.gmra.mrb[64].mxu0 %vm11979_vm4, %v8867_v6  ;;  %v2396_v48 = vsel %vm1212_vm1, %v2374_v40, %v2375_v21 }
 0x409   : > { %v12622_v31 = vmax.f32 %v2294_v56, 0.0  ;;  %v2295_v54 = vadd.f32 %v12540_v16, %v2271_v7  ;;  %v2210_v24 = vadd.f32 %v12503_v22, %v2113_v33  ;;  %v2116_v15 = vadd.f32 %v9640_v60, %v12514_v58  ;;  %v15652_v22 = vld [vmem:[#allocation25_spill] sm:$0xff]  ;;  %v15654_v33 = vld [vmem:[#allocation22_spill] sm:$0xff] }
 0x40b   : > { %v12628_v46 = vadd.f32 %v2210_v24, %v15650_v18  ;;  %v2213_v3 = vadd.f32 %v12507_v36, %v2116_v15  ;;  %v9641_v14 = vpop.f32.mrb[52].mxu0  ;;  %v2376_v25 = vrot.slane %v12622_v31, 1  ;;  %v12632_v11 = vmax.f32 %v2295_v54, 0.0 }
 0x40c   : > { %v9642_v2 = vpop.f32.mrb[53].mxu0 }
 0x40d   : > { %15651 = vst [vmem:[#allocation23_spill] sm:$0xff] %v12628_v46  ;;  %v2272_v27 = vmul.f32 %v12527_v39, %v12628_v46  ;;  %v12639_v42 = vadd.f32 %v2213_v3, %v15652_v22  ;;  %v9643_v0 = vadd.f32 %v9642_v2, %v9641_v14  ;;  %v9644_v51 = vpop.f32.mrb[54].mxu0  ;;  %v2395_v36 = vsel %vm1212_vm1, %v2375_v21, %v2376_v25 }
 0x40e   : > { %v9645_v12 = vpop.f32.mrb[55].mxu0  ;;  %v2426_v63 = vpack.c.bf16 %v2395_v36, %v2396_v48  ;;  %v2377_v19 = vrot.slane %v12632_v11, 1 }
 0x40f   : > { %15653 = vst [vmem:[#allocation25_spill] sm:$0xff] %v12639_v42  ;;  %v2296_v38 = vadd.f32 %v12540_v16, %v2272_v27  ;;  %v2273_v30 = vmul.f32 %v12527_v39, %v12639_v42  ;;  %v2121_v40 = vadd.f32 %v9643_v0, %v12514_v58  ;;  %v9646_v13 = vadd.f32 %v9645_v12, %v9644_v51 }
 0x410   : > { %10467 = vmatprep.mubr.bf16.mxu0 %v2426_v63  ;;  %v2394_v3 = vsel %vm1212_vm1, %v2376_v25, %v2377_v19 }
 0x411   : > { %v12648_v6 = vmax.f32 %v2296_v38, 0.0  ;;  %v2297_v49 = vadd.f32 %v12540_v16, %v2273_v30  ;;  %v2218_v56 = vadd.f32 %v12501_v52, %v2121_v40  ;;  %v2124_v7 = vadd.f32 %v9646_v13, %v12514_v58  ;;  %v15656_v52 = vld [vmem:[#allocation24_spill] sm:$0xff] }
 0x413   : > { %v12654_v60 = vadd.f32 %v2218_v56, %v15654_v33  ;;  %v2221_v21 = vadd.f32 %v12505_v29, %v2124_v7  ;;  %v9647_v54 = vpop.f32.mrb[56].mxu0  ;;  %v2378_v24 = vrot.slane %v12648_v6, 1  ;;  %v12658_v15 = vmax.f32 %v2297_v49, 0.0  ;;  %v15659_v49 = vld [vmem:[#allocation27_spill] sm:$0xff] }
 0x414   : > { %v9648_v18 = vpop.f32.mrb[57].mxu0 }
 0x415   : > { %15655 = vst [vmem:[#allocation22_spill] sm:$0xff] %v12654_v60  ;;  %v2274_v14 = vmul.f32 %v12527_v39, %v12654_v60  ;;  %v12665_v2 = vadd.f32 %v2221_v21, %v15656_v52  ;;  %v9649_v48 = vadd.f32 %v9648_v18, %v9647_v54  ;;  %v9650_v27 = vpop.f32.mrb[58].mxu0  ;;  %v2393_v29 = vsel %vm1212_vm1, %v2377_v19, %v2378_v24 }
 0x416   : > { %v9651_v22 = vpop.f32.mrb[59].mxu0  ;;  %v8871_v0 = vpack.c.bf16 %v2393_v29, %v2394_v3  ;;  %v2379_v38 = vrot.slane %v12658_v15, 1 }
 0x417   : > { %15657 = vst [vmem:[#allocation24_spill] sm:$0xff] %v12665_v2  ;;  %v2298_v51 = vadd.f32 %v12540_v16, %v2274_v14  ;;  %v2275_v36 = vmul.f32 %v12527_v39, %v12665_v2  ;;  %v2129_v25 = vadd.f32 %v9649_v48, %v12514_v58  ;;  %v9652_v12 = vadd.f32 %v9651_v22, %v9650_v27 }
 0x418   : > { %10468 = vmatmul.mubr.msk.bf16.gmra.mrb[68].mxu0 %vm12037_vm6, %v8871_v0  ;;  %v2392_v3 = vsel %vm1212_vm1, %v2378_v24, %v2379_v38 }
 0x419   : > { %v12676_v30 = vmax.f32 %v2298_v51, 0.0  ;;  %v2299_v40 = vadd.f32 %v12540_v16, %v2275_v36  ;;  %v2226_v13 = vadd.f32 %v12516_v53, %v2129_v25  ;;  %v2132_v19 = vadd.f32 %v9652_v12, %v12514_v58  ;;  %v15661_v53 = vld [vmem:[#allocation29_spill] sm:$0xff] }
 0x41b   : > { %v12682_v56 = vadd.f32 %v2226_v13, %v15659_v49  ;;  %v2229_v7 = vadd.f32 %v12520_v5, %v2132_v19  ;;  %v9653_v33 = vpop.f32.mrb[60].mxu0  ;;  %v2380_v21 = vrot.slane %v12676_v30, 1  ;;  %v12686_v54 = vmax.f32 %v2299_v40, 0.0  ;;  %v15663_v19 = vld [vmem:[#allocation26_spill] sm:$0xff] }
 0x41c   : > { %v9654_v18 = vpop.f32.mrb[61].mxu0 }
 0x41d   : > { %15660 = vst [vmem:[#allocation27_spill] sm:$0xff] %v12682_v56  ;;  %v2276_v14 = vmul.f32 %v12527_v39, %v12682_v56  ;;  %v12693_v52 = vadd.f32 %v2229_v7, %v15661_v53  ;;  %v9655_v48 = vadd.f32 %v9654_v18, %v9653_v33  ;;  %v9656_v27 = vpop.f32.mrb[62].mxu0  ;;  %v2391_v5 = vsel %vm1212_vm1, %v2379_v38, %v2380_v21  ;;  %v15665_v53 = vld [vmem:[#allocation28_spill] sm:$0xff] }
 0x41e   : > { %v9657_v29 = vpop.f32.mrb[63].mxu0  ;;  %v2432_v22 = vpack.c.bf16 %v2391_v5, %v2392_v3  ;;  %v2381_v25 = vrot.slane %v12686_v54, 1 }
 0x41f   : > { %15662 = vst [vmem:[#allocation29_spill] sm:$0xff] %v12693_v52  ;;  %v2300_v0 = vadd.f32 %v12540_v16, %v2276_v14  ;;  %v2277_v51 = vmul.f32 %v12527_v39, %v12693_v52  ;;  %v2137_v24 = vadd.f32 %v9655_v48, %v12514_v58  ;;  %v9658_v36 = vadd.f32 %v9657_v29, %v9656_v27 }
 0x420   : > { %10471 = vmatprep.mubr.bf16.mxu0 %v2432_v22  ;;  %v2390_v18 = vsel %vm1212_vm1, %v2380_v21, %v2381_v25  ;;  %v2323_v22 = vrot.slane %v12551_v20, 7 }
 0x421   : > { %v12702_v12 = vmax.f32 %v2300_v0, 0.0  ;;  %v2301_v40 = vadd.f32 %v12540_v16, %v2277_v51  ;;  %v2234_v13 = vadd.f32 %v12509_v23, %v2137_v24  ;;  %v2140_v38 = vadd.f32 %v9658_v36, %v12514_v58 }
 0x422   : > { %v2322_v24 = vrot.slane %v12553_v55, 7  ;;  %v2324_v55 = vrot.slane %v12566_v50, 7 }
 0x423   : > { %v12708_v49 = vadd.f32 %v2234_v13, %v15663_v19  ;;  %v2237_v7 = vadd.f32 %v12518_v43, %v2140_v38  ;;  %v2382_v33 = vrot.slane %v12702_v12, 1  ;;  %v12714_v3 = vmax.f32 %v2301_v40, 0.0 }
 0x424   : > { %v2352_v20 = vsel %vm1163_vm8, %v2322_v24, %v2323_v22 }
 0x425   : > { %15664 = vst [vmem:[#allocation26_spill] sm:$0xff] %v12708_v49  ;;  %v2278_v14 = vmul.f32 %v12527_v39, %v12708_v49  ;;  %v12719_v48 = vadd.f32 %v2237_v7, %v15665_v53  ;;  %v2389_v23 = vsel %vm1212_vm1, %v2381_v25, %v2382_v33  ;;  %v2383_v29 = vrot.slane %v12714_v3, 1 }
 0x426   : > { %v8875_v58 = vpack.c.bf16 %v2389_v23, %v2390_v18  ;;  %v2422_v18 = vpack.c.bf16 %v12575_v28, %v12566_v50  ;;  %v2351_v53 = vsel %vm1163_vm8, %v2323_v22, %v2324_v55  ;;  %v2329_v22 = vrot.slane %v12632_v11, 7 }
 0x427   : > { %15666 = vst [vmem:[#allocation28_spill] sm:$0xff] %v12719_v48  ;;  %v2302_v27 = vadd.f32 %v12540_v16, %v2278_v14  ;;  %v2279_v43 = vmul.f32 %v12527_v39, %v12719_v48  ;;  %v2388_v25 = vsel %vm1212_vm1, %v2382_v33, %v2383_v29  ;;  %v2325_v14 = vrot.slane %v12575_v28, 7 }
 0x428   : > { %10472 = vmatmul.mubr.msk.bf16.gmra.mrb[72].mxu0 %vm12078_vm10, %v8875_v58  ;;  %v2425_v58 = vpack.c.bf16 %v12604_v17, %v12594_v1  ;;  %v2327_v28 = vrot.slane %v12604_v17, 7  ;;  %v2328_v17 = vrot.slane %v12622_v31, 7 }
 0x429   : > { %v12728_v21 = vmax.f32 %v2302_v27, 0.0  ;;  %v2303_v5 = vadd.f32 %v12540_v16, %v2279_v43  ;;  %v2326_v27 = vrot.slane %v12594_v1, 7 }
 0x42a   : > { %v2346_v1 = vsel %vm1163_vm8, %v2328_v17, %v2329_v22 }
 0x42b   : > { %v12733_v0 = vmax.f32 %v2303_v5, 0.0  ;;  %v2384_v51 = vrot.slane %v12728_v21, 1  ;;  %v2348_v43 = vsel %vm1163_vm8, %v2326_v27, %v2327_v28  ;;  %v2349_v50 = vsel %vm1163_vm8, %v2325_v14, %v2326_v27  ;;  %v10937_v27 = vld [vmem:[#allocation8 + $0x2d8] sm:$0xff]  }
 0x42c   : > { %v8855_v5 = vpack.c.bf16 %v2348_v43, %v2349_v50  ;;  %v10941_v43 = vld [vmem:[#allocation8 + $0x2f8] sm:$0xff]   ;;  %v10942_v50 = vld [vmem:[#allocation8 + $0x280] sm:$0xff]  }
 0x42d   : > { %v2337_v36 = vrot.slane %v12733_v0, 7  ;;  %v2387_v39 = vsel %vm1212_vm1, %v2383_v29, %v2384_v51  ;;  %v2385_v16 = vrot.slane %v12733_v0, 1  ;;  %v2428_v29 = vpack.c.bf16 %v12632_v11, %v12622_v31  ;;  %9755 = vmatprep.subr.bf16.mxu0 %v10942_v50 }
 0x42e   : > { %v2438_v40 = vpack.c.bf16 %v2387_v39, %v2388_v25  ;;  %v2431_v39 = vpack.c.bf16 %v12658_v15, %v12648_v6  ;;  %v2331_v25 = vrot.slane %v12658_v15, 7  ;;  %v2330_v11 = vrot.slane %v12648_v6, 7 }
 0x42f   : > { %v2353_v13 = vsel %vm1163_vm8, %v2337_v36, %v2322_v24  ;;  %v2386_v38 = vsel %vm1212_vm1, %v2384_v51, %v2385_v16  ;;  %v2401_v19 = vsel %vm1212_vm1, %v2385_v16, %v2370_v32  ;;  %v2350_v32 = vsel %vm1163_vm8, %v2324_v55, %v2325_v14 }
 0x430   : > { %10475 = vmatprep.mubr.bf16.mxu0 %v2438_v40  ;;  %v8851_v7 = vpack.c.bf16 %v2352_v20, %v2353_v13  ;;  %v8879_v33 = vpack.c.bf16 %v2401_v19, %v2386_v38  ;;  %v2421_v23 = vpack.c.bf16 %v2350_v32, %v2351_v53  ;;  %v2347_v51 = vsel %vm1163_vm8, %v2327_v28, %v2328_v17  ;;  %v10936_v28 = vld [vmem:[#allocation8 + $0x2d0] sm:$0xff]  }
 0x431   : > { %v2427_v24 = vpack.c.bf16 %v2346_v1, %v2347_v51  ;;  %v2344_v16 = vsel %vm1163_vm8, %v2330_v11, %v2331_v25  ;;  %v2345_v31 = vsel %vm1163_vm8, %v2329_v22, %v2330_v11  ;;  %v2434_v20 = vpack.c.bf16 %v12686_v54, %v12676_v30  ;;  %v10945_v22 = vld [vmem:[#allocation8 + $0x248] sm:$0xff]   ;;  %v10946_v17 = vld [vmem:[#allocation8 + $0x290] sm:$0xff]   ;;  %v10948_v51 = vld [vmem:[#allocation8 + $0x298] sm:$0xff]  }
 0x432   : > { %8852 = vmatmul.mubr.msk.bf16.vlgmr.msra.gmra.mrb[48].mxu1 %vm12091_vm11, %v8851_v7  ;;  %10476 = vmatmul.mubr.msk.bf16.gmra.mrb[76].mxu0 %vm12122_vm13, %v8879_v33  ;;  %v8859_v40 = vpack.c.bf16 %v2344_v16, %v2345_v31  ;;  %v2333_v13 = vrot.slane %v12686_v54, 7  ;;  %v2332_v15 = vrot.slane %v12676_v30, 7  ;;  %v2437_v7 = vpack.c.bf16 %v12714_v3, %v12702_v12  ;;  %v10947_v1 = vld [vmem:[#allocation8 + $0x250] sm:$0xff]   ;;  %v10952_v11 = vld [vmem:[#allocation8 + $0x2a8] sm:$0xff]  }
 0x433   : > { %2681 = vmatprep.mubr.bf16.mxu1 %v2422_v18  ;;  %v2335_v33 = vrot.slane %v12714_v3, 7  ;;  %v2334_v54 = vrot.slane %v12702_v12, 7  ;;  %v2440_v55 = vpack.c.bf16 %v12733_v0, %v12728_v21  ;;  %v2336_v3 = vrot.slane %v12728_v21, 7  ;;  %v10938_v21 = vld [vmem:[#allocation8 + $0x2e0] sm:$0xff]   ;;  %v10939_v0 = vld [vmem:[#allocation8 + $0x2e8] sm:$0xff]   ;;  %v10954_v31 = vld [vmem:[#allocation8 + $0x2b0] sm:$0xff]  }
 0x434   : > { %v2342_v6 = vsel %vm1163_vm8, %v2332_v15, %v2333_v13  ;;  %v2343_v38 = vsel %vm1163_vm8, %v2331_v25, %v2332_v15  ;;  %v10951_v25 = vld [vmem:[#allocation8 + $0x260] sm:$0xff]   ;;  %v10953_v16 = vld [vmem:[#allocation8 + $0x268] sm:$0xff]  }
 0x435   : > { %v2433_v19 = vpack.c.bf16 %v2342_v6, %v2343_v38  ;;  %v2340_v18 = vsel %vm1163_vm8, %v2334_v54, %v2335_v33  ;;  %v2341_v30 = vsel %vm1163_vm8, %v2333_v13, %v2334_v54  ;;  %v2338_v12 = vsel %vm1163_vm8, %v2336_v3, %v2337_v36  ;;  %v10940_v36 = vld [vmem:[#allocation8 + $0x2f0] sm:$0xff]   ;;  %v10957_v13 = vld [vmem:[#allocation8 + $0x278] sm:$0xff]  }
 0x436   : > { %v8863_v14 = vpack.c.bf16 %v2340_v18, %v2341_v30  ;;  %v2339_v32 = vsel %vm1163_vm8, %v2335_v33, %v2336_v3 }
 0x437   : > { %v2439_v53 = vpack.c.bf16 %v2338_v12, %v2339_v32 }
 0x43a   : > { %2682 = vmatmul.mubr.bf16.gmra.mrb[52].mxu1 %v2421_v23  ;;  %v10934_v23 = vld [vmem:[#allocation8 + $0x2c0] sm:$0xff]  }
 0x43b   : > { %2689 = vmatprep.mubr.bf16.mxu1 %v2425_v58  ;;  %v10935_v58 = vld [vmem:[#allocation8 + $0x2c8] sm:$0xff]   ;;  %10479 = vmatprep.subr.bf16.mxu1 %v10934_v23 }
 0x43c   : > { %10480 = vmatpush3.bf16.msra.mxu1 %v10934_v23 }
 0x43d   : > { %10481 = vmatprep.subr.bf16.mxu1 %v10935_v58 }
 0x440   : > { %10482 = vmatpush3.bf16.msra.mxu1 %v10935_v58 }
 0x441   : > { %10483 = vmatprep.subr.bf16.mxu1 %v10936_v28 }
 0x442   : > { %8856 = vmatmul.mubr.msk.bf16.gmra.mrb[56].mxu1 %vm12138_vm15, %v8855_v5  ;;  %v10943_v5 = vld [vmem:[#allocation8 + $0x240] sm:$0xff]  }
 0x443   : > { %2697 = vmatprep.mubr.bf16.mxu1 %v2428_v29  ;;  %v10944_v29 = vld [vmem:[#allocation8 + $0x288] sm:$0xff]   ;;  %9756 = vmatpush3.bf16.msra.mxu0 %v10943_v5  ;;  %v12853_v5 = vld [vmem:[%s15508_s3 + $0x3] ss:$0 sm:$0xff] }
 0x444   : > { %10484 = vmatpush3.bf16.msra.mxu1 %v10936_v28  ;;  %9757 = vmatprep.subr.bf16.mxu0 %v10944_v29 }
 0x445   : > { %10485 = vmatprep.subr.bf16.mxu1 %v10937_v27 }
 0x447   : > { %9758 = vmatpush3.bf16.msra.mxu0 %v10945_v22 }
 0x448   : > { %10486 = vmatpush3.bf16.msra.mxu1 %v10937_v27  ;;  %9759 = vmatprep.subr.bf16.mxu0 %v10946_v17  ;;  %v12859_v17 = vld [vmem:[%s15509_s4 + $0x3] ss:$0 sm:$0xff] }
 0x449   : > { %10487 = vmatprep.subr.bf16.mxu1 %v10938_v21 }
 0x44a   : > { %2698 = vmatmul.mubr.bf16.gmra.mrb[60].mxu1 %v2427_v24  ;;  %v10949_v24 = vld [vmem:[#allocation8 + $0x258] sm:$0xff]  }
 0x44b   : > { %2705 = vmatprep.mubr.bf16.mxu1 %v2431_v39  ;;  %9760 = vmatpush3.bf16.msra.mxu0 %v10947_v1  ;;  %v10950_v39 = vld [vmem:[#allocation8 + $0x2a0] sm:$0xff]  }
 0x44c   : > { %10488 = vmatpush3.bf16.msra.mxu1 %v10938_v21  ;;  %9761 = vmatprep.subr.bf16.mxu0 %v10948_v51 }
 0x44d   : > { %10489 = vmatprep.subr.bf16.mxu1 %v10939_v0 }
 0x44f   : > { %9762 = vmatpush3.bf16.msra.mxu0 %v10949_v24 }
 0x450   : > { %10490 = vmatpush3.bf16.msra.mxu1 %v10939_v0  ;;  %9763 = vmatprep.subr.bf16.mxu0 %v10950_v39 }
 0x451   : > { %10491 = vmatprep.subr.bf16.mxu1 %v10940_v36 }
 0x452   : > { %8860 = vmatmul.mubr.msk.bf16.gmra.mrb[64].mxu1 %vm12162_vm2, %v8859_v40  ;;  %v10955_v40 = vld [vmem:[#allocation8 + $0x270] sm:$0xff]  }
 0x453   : > { %2713 = vmatprep.mubr.bf16.mxu1 %v2434_v20  ;;  %9764 = vmatpush3.bf16.msra.mxu0 %v10951_v25  ;;  %v10956_v20 = vld [vmem:[#allocation8 + $0x2b8] sm:$0xff]  }
 0x454   : > { %10492 = vmatpush3.bf16.msra.mxu1 %v10940_v36  ;;  %9765 = vmatprep.subr.bf16.mxu0 %v10952_v11 }
 0x455   : > { %10493 = vmatprep.subr.bf16.mxu1 %v10941_v43 }
 0x457   : > { %9766 = vmatpush3.bf16.msra.mxu0 %v10953_v16 }
 0x458   : > { %10494 = vmatpush3.bf16.msra.mxu1 %v10941_v43  ;;  %9767 = vmatprep.subr.bf16.mxu0 %v10954_v31 }
 0x45a   : > { %2714 = vmatmul.mubr.bf16.gmra.mrb[68].mxu1 %v2433_v19 }
 0x45b   : > { %2721 = vmatprep.mubr.bf16.mxu1 %v2437_v7  ;;  %9768 = vmatpush3.bf16.msra.mxu0 %v10955_v40 }
 0x45c   : > { %9769 = vmatprep.subr.bf16.mxu0 %v10956_v20 }
 0x45f   : > { %9770 = vmatpush3.bf16.msra.mxu0 %v10957_v13 }
 0x462   : > { %8864 = vmatmul.mubr.msk.bf16.gmra.mrb[72].mxu1 %vm12186_vm7, %v8863_v14 }
 0x463   : > { %2729 = vmatprep.mubr.bf16.mxu1 %v2440_v55 }
 0x46a   : > { %2730 = vmatmul.mubr.bf16.gmra.mrb[76].mxu1 %v2439_v53  ;;  %v12841_v53 = vld [vmem:[%s15638_s24 + $0x2] ss:$0 sm:$0xff] }
 0x4db   : > { %v10465_v15 = vpop.f32.mrb[64].mxu0 }
 0x4dc   : > { %v2772_v6 = vpop.f32.mrb[65].mxu0 }
 0x4dd   : > { %v10466_v38 = vpop.f32.mrb[66].mxu0 }
 0x4de   : > { %v2775_v19 = vpop.f32.mrb[67].mxu0 }
 0x4eb   : > { %v12822_v7 = vpop.f32.mrb[68].mxu0 }
 0x4ec   : > { %v2788_v33 = vpop.f32.mrb[69].mxu0 }
 0x4ed   : > { %v12824_v54 = vpop.f32.mrb[70].mxu0 }
 0x4ee   : > { %v12826_v18 = vpop.f32.mrb[71].mxu0 }
 0x4fb   : > { %v12828_v30 = vpop.f32.mrb[72].mxu0 }
 0x4fc   : > { %v12830_v14 = vpop.f32.mrb[73].mxu0 }
 0x4fd   : > { %v12832_v55 = vpop.f32.mrb[74].mxu0 }
 0x4fe   : > { %v12834_v3 = vpop.f32.mrb[75].mxu0 }
 0x505   : > { %v9691_v12 = vpop.f32.mrb[48].mxu1  ;;  %v12836_v32 = vpop.f32.mrb[76].mxu0 }
 0x506   : > { %v9692_v23 = vpop.f32.mrb[49].mxu1  ;;  %v12843_v58 = vpop.f32.mrb[77].mxu0 }
 0x507   : > { %v9693_v28 = vadd.f32 %v9692_v23, %v9691_v12  ;;  %v9694_v27 = vpop.f32.mrb[50].mxu1  ;;  %v12845_v21 = vpop.f32.mrb[78].mxu0 }
 0x508   : > { %v9695_v0 = vpop.f32.mrb[51].mxu1  ;;  %v12847_v36 = vpop.f32.mrb[79].mxu0 }
 0x509   : > { %v2676_v43 = vadd.f32 %v9693_v28, %v12841_v53  ;;  %v9696_v50 = vadd.f32 %v9695_v0, %v9694_v27 }
 0x50b   : > { %v2773_v29 = vadd.f32 %v2772_v6, %v2676_v43  ;;  %v2679_v22 = vadd.f32 %v9696_v50, %v12841_v53 }
 0x50d   : > { %v2843_v1 = vmul.f32 %v12853_v5, %v2773_v29  ;;  %v2776_v51 = vadd.f32 %v2775_v19, %v2679_v22  ;;  %v9697_v24 = vpop.f32.mrb[52].mxu1 }
 0x50e   : > { %v9698_v39 = vpop.f32.mrb[53].mxu1 }
 0x50f   : > { %v2867_v25 = vadd.f32 %v12859_v17, %v2843_v1  ;;  %v2844_v11 = vmul.f32 %v12853_v5, %v2776_v51  ;;  %v9699_v16 = vadd.f32 %v9698_v39, %v9697_v24  ;;  %v9700_v31 = vpop.f32.mrb[54].mxu1 }
 0x510   : > { %v9701_v40 = vpop.f32.mrb[55].mxu1 }
 0x511   : > { %v2868_v20 = vadd.f32 %v12859_v17, %v2844_v11  ;;  %v2684_v13 = vadd.f32 %v9699_v16, %v12841_v53  ;;  %v9702_v6 = vadd.f32 %v9701_v40, %v9700_v31  ;;  %v12866_v12 = vmax.f32 %v2867_v25, 0.0 }
 0x513   : > { %v2781_v23 = vadd.f32 %v10465_v15, %v2684_v13  ;;  %v2687_v28 = vadd.f32 %v9702_v6, %v12841_v53  ;;  %v2884_v19 = vmax.f32 %v2868_v20, 0.0  ;;  %v15546_v27 = vrot.slane %v12866_v12, 7 }
 0x514   : > { %v15545_v51 = vrot.slane %v12866_v12, 1 }
 0x515   : > { %v2845_v0 = vmul.f32 %v12853_v5, %v2781_v23  ;;  %v2784_v43 = vadd.f32 %v10466_v38, %v2687_v28  ;;  %v9703_v50 = vpop.f32.mrb[56].mxu1  ;;  %v2902_v29 = vrot.slane %v2884_v19, 7  ;;  %v2998_v22 = vpack.c.bf16 %v2884_v19, %v12866_v12 }
 0x516   : > { %v9704_v1 = vpop.f32.mrb[57].mxu1  ;;  %v2950_v24 = vrot.slane %v2884_v19, 1 }
 0x517   : > { %v2869_v39 = vadd.f32 %v12859_v17, %v2845_v0  ;;  %v2846_v15 = vmul.f32 %v12853_v5, %v2784_v43  ;;  %v9705_v25 = vadd.f32 %v9704_v1, %v9703_v50  ;;  %v9706_v11 = vpop.f32.mrb[58].mxu1  ;;  %v12879_v16 = vsel %vm1163_vm8, %v15546_v27, %v2902_v29  ;;  %3252 = vmatprep.mubr.bf16.mxu0 %v2998_v22 }
 0x518   : > { %v9707_v38 = vpop.f32.mrb[59].mxu1  ;;  %v2979_v31 = vsel %vm1212_vm1, %v15545_v51, %v2950_v24 }
 0x519   : > { %v12885_v40 = vmax.f32 %v2869_v39, 0.0  ;;  %v2870_v20 = vadd.f32 %v12859_v17, %v2846_v15  ;;  %v2692_v13 = vadd.f32 %v9705_v25, %v12841_v53  ;;  %v9708_v6 = vadd.f32 %v9707_v38, %v9706_v11 }
 0x51b   : > { %v12889_v23 = vmax.f32 %v2870_v20, 0.0  ;;  %v2789_v28 = vadd.f32 %v2788_v33, %v2692_v13  ;;  %v2695_v19 = vadd.f32 %v9708_v6, %v12841_v53  ;;  %v2951_v0 = vrot.slane %v12885_v40, 1 }
 0x51c   : > { %v2903_v43 = vrot.slane %v12885_v40, 7 }
 0x51d   : > { %v2952_v50 = vrot.slane %v12889_v23, 1  ;;  %v2847_v22 = vmul.f32 %v12853_v5, %v2789_v28  ;;  %v2792_v1 = vadd.f32 %v12826_v18, %v2695_v19  ;;  %v9709_v39 = vpop.f32.mrb[60].mxu1  ;;  %v2978_v15 = vsel %vm1212_vm1, %v2950_v24, %v2951_v0 }
 0x51e   : > { %v9710_v25 = vpop.f32.mrb[61].mxu1  ;;  %v2999_v11 = vpack.c.bf16 %v2978_v15, %v2979_v31  ;;  %v2904_v38 = vrot.slane %v12889_v23, 7  ;;  %v12904_v20 = vsel %vm1163_vm8, %v2902_v29, %v2903_v43 }
 0x51f   : > { %v2871_v13 = vadd.f32 %v12859_v17, %v2847_v22  ;;  %v2848_v6 = vmul.f32 %v12853_v5, %v2792_v1  ;;  %v9711_v18 = vadd.f32 %v9710_v25, %v9709_v39  ;;  %v9712_v28 = vpop.f32.mrb[62].mxu1  ;;  %v2977_v24 = vsel %vm1212_vm1, %v2951_v0, %v2952_v50 }
 0x520   : > { %v9713_v19 = vpop.f32.mrb[63].mxu1  ;;  %10495 = vmatprep.mubr.bf16.mxu1 %v2999_v11  ;;  %v12912_v31 = vsel %vm1163_vm8, %v2903_v43, %v2904_v38 }
 0x521   : > { %v12914_v15 = vmax.f32 %v2871_v13, 0.0  ;;  %v2872_v29 = vadd.f32 %v12859_v17, %v2848_v6  ;;  %v2700_v33 = vadd.f32 %v9711_v18, %v12841_v53  ;;  %v9714_v22 = vadd.f32 %v9713_v19, %v9712_v28 }
 0x523   : > { %v2953_v39 = vrot.slane %v12914_v15, 1  ;;  %v12921_v25 = vmax.f32 %v2872_v29, 0.0  ;;  %v2797_v0 = vadd.f32 %v12822_v7, %v2700_v33  ;;  %v2703_v11 = vadd.f32 %v9714_v22, %v12841_v53 }
 0x524   : > { %v2905_v43 = vrot.slane %v12914_v15, 7 }
 0x525   : > { %v2849_v13 = vmul.f32 %v12853_v5, %v2797_v0  ;;  %v2800_v6 = vadd.f32 %v12824_v54, %v2703_v11  ;;  %v2976_v18 = vsel %vm1212_vm1, %v2952_v50, %v2953_v39  ;;  %v9715_v28 = vpop.f32.mrb[64].mxu1  ;;  %v2954_v19 = vrot.slane %v12921_v25, 1 }
 0x526   : > { %v8929_v1 = vpack.c.bf16 %v2976_v18, %v2977_v24  ;;  %v9716_v51 = vpop.f32.mrb[65].mxu1  ;;  %v2906_v7 = vrot.slane %v12921_v25, 7  ;;  %v12936_v33 = vsel %vm1163_vm8, %v2904_v38, %v2905_v43 }
 0x527   : > { %v2873_v22 = vadd.f32 %v12859_v17, %v2849_v13  ;;  %v2850_v54 = vmul.f32 %v12853_v5, %v2800_v6  ;;  %v9717_v0 = vadd.f32 %v9716_v51, %v9715_v28  ;;  %v9718_v50 = vpop.f32.mrb[66].mxu1  ;;  %v2975_v11 = vsel %vm1212_vm1, %v2953_v39, %v2954_v19 }
 0x528   : > { %v9719_v24 = vpop.f32.mrb[67].mxu1  ;;  %10496 = vmatmul.mubr.msk.bf16.vlgmr.msra.gmra.mrb[80].mxu1 %vm11979_vm4, %v8929_v1  ;;  %v12946_v18 = vsel %vm1163_vm8, %v2905_v43, %v2906_v7 }
 0x529   : > { %v12948_v29 = vmax.f32 %v2873_v22, 0.0  ;;  %v2874_v38 = vadd.f32 %v12859_v17, %v2850_v54  ;;  %v2708_v13 = vadd.f32 %v9717_v0, %v12841_v53  ;;  %v9720_v6 = vadd.f32 %v9719_v24, %v9718_v50 }
 0x52b   : > { %v12954_v28 = vmax.f32 %v2874_v38, 0.0  ;;  %v2805_v39 = vadd.f32 %v12830_v14, %v2708_v13  ;;  %v2711_v1 = vadd.f32 %v9720_v6, %v12841_v53  ;;  %v2955_v27 = vrot.slane %v12948_v29, 1 }
 0x52c   : > { %v2907_v43 = vrot.slane %v12948_v29, 7 }
 0x52d   : > { %v2851_v22 = vmul.f32 %v12853_v5, %v2805_v39  ;;  %v2808_v54 = vadd.f32 %v12834_v3, %v2711_v1  ;;  %v9721_v48 = vpop.f32.mrb[68].mxu1  ;;  %v2974_v0 = vsel %vm1212_vm1, %v2954_v19, %v2955_v27  ;;  %v2956_v50 = vrot.slane %v12954_v28, 1 }
 0x52e   : > { %v9722_v24 = vpop.f32.mrb[69].mxu1  ;;  %v3005_v38 = vpack.c.bf16 %v2974_v0, %v2975_v11  ;;  %v2908_v13 = vrot.slane %v12954_v28, 7  ;;  %v12970_v6 = vsel %vm1163_vm8, %v2906_v7, %v2907_v43 }
 0x52f   : > { %v2875_v39 = vadd.f32 %v12859_v17, %v2851_v22  ;;  %v2852_v3 = vmul.f32 %v12853_v5, %v2808_v54  ;;  %v9723_v1 = vadd.f32 %v9722_v24, %v9721_v48  ;;  %v9724_v51 = vpop.f32.mrb[70].mxu1  ;;  %v2973_v19 = vsel %vm1212_vm1, %v2955_v27, %v2956_v50 }
 0x530   : > { %v9725_v49 = vpop.f32.mrb[71].mxu1  ;;  %10499 = vmatprep.mubr.bf16.mxu1 %v3005_v38  ;;  %v12978_v11 = vsel %vm1163_vm8, %v2907_v43, %v2908_v13 }
 0x531   : > { %v12980_v0 = vmax.f32 %v2875_v39, 0.0  ;;  %v2876_v7 = vadd.f32 %v12859_v17, %v2852_v3  ;;  %v2716_v14 = vadd.f32 %v9723_v1, %v12841_v53  ;;  %v9726_v22 = vadd.f32 %v9725_v49, %v9724_v51 }
 0x533   : > { %v12986_v54 = vmax.f32 %v2876_v7, 0.0  ;;  %v2813_v27 = vadd.f32 %v12828_v30, %v2716_v14  ;;  %v2719_v24 = vadd.f32 %v9726_v22, %v12841_v53  ;;  %v2957_v38 = vrot.slane %v12980_v0, 1 }
 0x534   : > { %v2909_v43 = vrot.slane %v12980_v0, 7 }
 0x535   : > { %v2853_v39 = vmul.f32 %v12853_v5, %v2813_v27  ;;  %v2816_v3 = vadd.f32 %v12832_v55, %v2719_v24  ;;  %v9727_v52 = vpop.f32.mrb[72].mxu1  ;;  %v2972_v49 = vsel %vm1212_vm1, %v2956_v50, %v2957_v38  ;;  %v2958_v51 = vrot.slane %v12986_v54, 1 }
 0x536   : > { %v9728_v1 = vpop.f32.mrb[73].mxu1  ;;  %v8933_v7 = vpack.c.bf16 %v2972_v49, %v2973_v19  ;;  %v2910_v14 = vrot.slane %v12986_v54, 7  ;;  %v13002_v22 = vsel %vm1163_vm8, %v2908_v13, %v2909_v43 }
 0x537   : > { %v2877_v27 = vadd.f32 %v12859_v17, %v2853_v39  ;;  %v2854_v55 = vmul.f32 %v12853_v5, %v2816_v3  ;;  %v9729_v24 = vadd.f32 %v9728_v1, %v9727_v52  ;;  %v9730_v48 = vpop.f32.mrb[74].mxu1  ;;  %v2971_v50 = vsel %vm1212_vm1, %v2957_v38, %v2958_v51 }
 0x538   : > { %v9731_v56 = vpop.f32.mrb[75].mxu1  ;;  %10500 = vmatmul.mubr.msk.bf16.gmra.mrb[84].mxu1 %vm12037_vm6, %v8933_v7  ;;  %v13012_v19 = vsel %vm1163_vm8, %v2909_v43, %v2910_v14 }
 0x539   : > { %v13014_v49 = vmax.f32 %v2877_v27, 0.0  ;;  %v2878_v13 = vadd.f32 %v12859_v17, %v2854_v55  ;;  %v2724_v39 = vadd.f32 %v9729_v24, %v12841_v53  ;;  %v9732_v3 = vadd.f32 %v9731_v56, %v9730_v48 }
 0x53b   : > { %v13020_v1 = vmax.f32 %v2878_v13, 0.0  ;;  %v2821_v38 = vadd.f32 %v12843_v58, %v2724_v39  ;;  %v2727_v7 = vadd.f32 %v9732_v3, %v12841_v53  ;;  %v2959_v30 = vrot.slane %v13014_v49, 1 }
 0x53c   : > { %v2911_v43 = vrot.slane %v13014_v49, 7 }
 0x53d   : > { %v2855_v27 = vmul.f32 %v12853_v5, %v2821_v38  ;;  %v2824_v55 = vadd.f32 %v12847_v36, %v2727_v7  ;;  %v9733_v63 = vpop.f32.mrb[76].mxu1  ;;  %v2970_v56 = vsel %vm1212_vm1, %v2958_v51, %v2959_v30  ;;  %v2960_v48 = vrot.slane %v13020_v1, 1 }
 0x53e   : > { %v9734_v24 = vpop.f32.mrb[77].mxu1  ;;  %v3011_v13 = vpack.c.bf16 %v2970_v56, %v2971_v50  ;;  %v2912_v39 = vrot.slane %v13020_v1, 7  ;;  %v13036_v3 = vsel %vm1163_vm8, %v2910_v14, %v2911_v43 }
 0x53f   : > { %v2879_v38 = vadd.f32 %v12859_v17, %v2855_v27  ;;  %v2856_v36 = vmul.f32 %v12853_v5, %v2824_v55  ;;  %v9735_v7 = vadd.f32 %v9734_v24, %v9733_v63  ;;  %v9736_v52 = vpop.f32.mrb[78].mxu1  ;;  %v2969_v51 = vsel %vm1212_vm1, %v2959_v30, %v2960_v48 }
 0x540   : > { %v9737_v2 = vpop.f32.mrb[79].mxu1  ;;  %10503 = vmatprep.mubr.bf16.mxu1 %v3011_v13  ;;  %v2921_v50 = vsel %vm1163_vm8, %v2911_v43, %v2912_v39 }
 0x541   : > { %v2895_v56 = vmax.f32 %v2879_v38, 0.0  ;;  %v2880_v58 = vadd.f32 %v12859_v17, %v2856_v36  ;;  %v2732_v14 = vadd.f32 %v9735_v7, %v12841_v53  ;;  %v9738_v60 = vadd.f32 %v9737_v2, %v9736_v52 }
 0x542   : > { %v3012_v27 = vpack.c.bf16 %v2921_v50, %v13036_v3 }
 0x543   : > { %v2896_v42 = vmax.f32 %v2880_v58, 0.0  ;;  %v2829_v63 = vadd.f32 %v12836_v32, %v2732_v14  ;;  %v2735_v55 = vadd.f32 %v9738_v60, %v12841_v53  ;;  %v2961_v24 = vrot.slane %v2895_v56, 1 }
 0x544   : > { %v2913_v30 = vrot.slane %v2895_v56, 7 }
 0x545   : > { %v2857_v13 = vmul.f32 %v12853_v5, %v2829_v63  ;;  %v2832_v46 = vadd.f32 %v12845_v21, %v2735_v55  ;;  %v2968_v43 = vsel %vm1212_vm1, %v2960_v48, %v2961_v24  ;;  %v2962_v38 = vrot.slane %v2896_v42, 1 }
 0x546   : > { %v8937_v36 = vpack.c.bf16 %v2968_v43, %v2969_v51  ;;  %v3016_v7 = vpack.c.bf16 %v2896_v42, %v2895_v56  ;;  %v2914_v2 = vrot.slane %v2896_v42, 7  ;;  %v2920_v52 = vsel %vm1163_vm8, %v2912_v39, %v2913_v30 }
 0x547   : > { %v2881_v32 = vadd.f32 %v12859_v17, %v2857_v13  ;;  %v2858_v60 = vmul.f32 %v12853_v5, %v2832_v46  ;;  %v2967_v53 = vsel %vm1212_vm1, %v2961_v24, %v2962_v38  ;;  %v15667_v55 = vrot.slane %v12866_v12, 7 }
 0x548   : > { %10504 = vmatmul.mubr.msk.bf16.gmra.mrb[88].mxu1 %vm12078_vm10, %v8937_v36  ;;  %v2919_v21 = vsel %vm1163_vm8, %v2913_v30, %v2914_v2  ;;  %v15668_v30 = vrot.slane %v12866_v12, 1  ;;  %v15669_v12 = vpack.c.bf16 %v12889_v23, %v12885_v40  ;;  %v15674_v40 = vpack.c.bf16 %v12978_v11, %v12970_v6  ;;  %v10964_v6 = vld [vmem:[#allocation8 + $0x3b0] sm:$0xff]   ;;  %v10965_v11 = vld [vmem:[#allocation8 + $0x3b8] sm:$0xff]  }
 0x549   : > { %v2897_v48 = vmax.f32 %v2881_v32, 0.0  ;;  %v2882_v58 = vadd.f32 %v12859_v17, %v2858_v60  ;;  %v8925_v42 = vpack.c.bf16 %v2919_v21, %v2920_v52  ;;  %v15670_v52 = vpack.c.bf16 %v12912_v31, %v12904_v20  ;;  %v10975_v21 = vld [vmem:[#allocation8 + $0x320] sm:$0xff]  }
 0x54a   : > { %v15671_v32 = vpack.c.bf16 %v12921_v25, %v12914_v15  ;;  %v15673_v60 = vpack.c.bf16 %v12954_v28, %v12948_v29  ;;  %v15675_v23 = vpack.c.bf16 %v12986_v54, %v12980_v0  ;;  %v15676_v20 = vpack.c.bf16 %v13012_v19, %v13002_v22  ;;  %v10958_v15 = vld [vmem:[#allocation8 + $0x380] sm:$0xff]   ;;  %v10959_v25 = vld [vmem:[#allocation8 + $0x388] sm:$0xff]   ;;  %v10960_v29 = vld [vmem:[#allocation8 + $0x390] sm:$0xff]  }
 0x54b   : > { %v2898_v3 = vmax.f32 %v2882_v58, 0.0  ;;  %v2963_v51 = vrot.slane %v2897_v48, 1  ;;  %v2915_v39 = vrot.slane %v2897_v48, 7  ;;  %v15677_v31 = vpack.c.bf16 %v13020_v1, %v13014_v49  ;;  %10511 = vmatprep.subr.bf16.mxu0 %v10958_v15  ;;  %v10963_v28 = vld [vmem:[#allocation8 + $0x3a8] sm:$0xff]   ;;  %v10966_v0 = vld [vmem:[#allocation8 + $0x340] sm:$0xff]   ;;  %v10970_v49 = vld [vmem:[#allocation8 + $0x350] sm:$0xff]  }
 0x54c   : > { %v10967_v54 = vld [vmem:[#allocation8 + $0x300] sm:$0xff]   ;;  %9835 = vmatprep.subr.bf16.mxu1 %v10966_v0  ;;  %v10968_v22 = vld [vmem:[#allocation8 + $0x348] sm:$0xff]   ;;  %v10971_v1 = vld [vmem:[#allocation8 + $0x310] sm:$0xff]  }
 0x54d   : > { %v2916_v50 = vrot.slane %v2898_v3, 7  ;;  %v2966_v46 = vsel %vm1212_vm1, %v2962_v38, %v2963_v51  ;;  %v2964_v5 = vrot.slane %v2898_v3, 1  ;;  %v3019_v56 = vpack.c.bf16 %v2898_v3, %v2897_v48  ;;  %9836 = vmatpush3.bf16.msra.mxu1 %v10967_v54  ;;  %v10969_v19 = vld [vmem:[#allocation8 + $0x308] sm:$0xff]   ;;  %v10979_v3 = vld [vmem:[#allocation8 + $0x330] sm:$0xff]  }
 0x54e   : > { %v3017_v14 = vpack.c.bf16 %v2966_v46, %v2967_v53  ;;  %v2918_v63 = vsel %vm1163_vm8, %v2914_v2, %v2915_v39  ;;  %9837 = vmatprep.subr.bf16.mxu1 %v10968_v22  ;;  %v10974_v53 = vld [vmem:[#allocation8 + $0x360] sm:$0xff]   ;;  %v10976_v48 = vld [vmem:[#allocation8 + $0x368] sm:$0xff]  }
 0x54f   : > { %v2932_v24 = vsel %vm1163_vm8, %v2916_v50, %v15667_v55  ;;  %v2965_v17 = vsel %vm1212_vm1, %v2963_v51, %v2964_v5  ;;  %v2980_v13 = vsel %vm1212_vm1, %v2964_v5, %v15668_v30  ;;  %v2917_v43 = vsel %vm1163_vm8, %v2915_v39, %v2916_v50  ;;  %v10977_v58 = vld [vmem:[#allocation8 + $0x328] sm:$0xff]   ;;  %v10980_v51 = vld [vmem:[#allocation8 + $0x378] sm:$0xff]   ;;  %v13161_v22 = vld [vmem:[%s15509_s4 + $0x4] ss:$0 sm:$0xff] }
 0x550   : > { %10507 = vmatprep.mubr.bf16.mxu1 %v3017_v14  ;;  %v8913_v38 = vpack.c.bf16 %v12879_v16, %v2932_v24  ;;  %v8941_v36 = vpack.c.bf16 %v2980_v13, %v2965_v17  ;;  %v3018_v2 = vpack.c.bf16 %v2917_v43, %v2918_v63  ;;  %v15672_v16 = vpack.c.bf16 %v12946_v18, %v12936_v33  ;;  %v10961_v33 = vld [vmem:[#allocation8 + $0x398] sm:$0xff]   ;;  %v10962_v18 = vld [vmem:[#allocation8 + $0x3a0] sm:$0xff]  }
 0x551   : > { %9838 = vmatpush3.bf16.msra.mxu1 %v10969_v19  ;;  %v10981_v50 = vld [vmem:[#allocation8 + $0x338] sm:$0xff]  }
 0x552   : > { %8914 = vmatmul.mubr.msk.bf16.vlgmr.msra.gmra.mrb[80].mxu0 %vm12091_vm11, %v8913_v38  ;;  %10508 = vmatmul.mubr.msk.bf16.gmra.mrb[92].mxu1 %vm12122_vm13, %v8941_v36 }
 0x553   : > { %3260 = vmatprep.mubr.bf16.mxu0 %v15669_v12  ;;  %10512 = vmatpush3.bf16.msra.mxu0 %v10958_v15 }
 0x554   : > { %10513 = vmatprep.subr.bf16.mxu0 %v10959_v25  ;;  %9839 = vmatprep.subr.bf16.mxu1 %v10970_v49 }
 0x555   : > { %9840 = vmatpush3.bf16.msra.mxu1 %v10971_v1 }
 0x557   : > { %10514 = vmatpush3.bf16.msra.mxu0 %v10959_v25 }
 0x558   : > { %10515 = vmatprep.subr.bf16.mxu0 %v10960_v29 }
 0x55a   : > { %3261 = vmatmul.mubr.bf16.gmra.mrb[84].mxu0 %v15670_v52 }
 0x55b   : > { %3268 = vmatprep.mubr.bf16.mxu0 %v15671_v32  ;;  %10516 = vmatpush3.bf16.msra.mxu0 %v10960_v29  ;;  %v13148_v29 = vld [vmem:[%s15508_s3 + $0x4] ss:$0 sm:$0xff] }
 0x55c   : > { %10517 = vmatprep.subr.bf16.mxu0 %v10961_v33 }
 0x55f   : > { %10518 = vmatpush3.bf16.msra.mxu0 %v10961_v33 }
 0x560   : > { %10519 = vmatprep.subr.bf16.mxu0 %v10962_v18 }
 0x562   : > { %8918 = vmatmul.mubr.msk.bf16.gmra.mrb[88].mxu0 %vm12138_vm15, %v15672_v16 }
 0x563   : > { %3276 = vmatprep.mubr.bf16.mxu0 %v15673_v60  ;;  %10520 = vmatpush3.bf16.msra.mxu0 %v10962_v18 }
 0x564   : > { %10521 = vmatprep.subr.bf16.mxu0 %v10963_v28 }
 0x567   : > { %10522 = vmatpush3.bf16.msra.mxu0 %v10963_v28 }
 0x568   : > { %10523 = vmatprep.subr.bf16.mxu0 %v10964_v6 }
 0x56a   : > { %3277 = vmatmul.mubr.bf16.gmra.mrb[92].mxu0 %v15674_v40 }
 0x56b   : > { %3284 = vmatprep.mubr.bf16.mxu0 %v15675_v23  ;;  %10524 = vmatpush3.bf16.msra.mxu0 %v10964_v6 }
 0x56c   : > { %10525 = vmatprep.subr.bf16.mxu0 %v10965_v11 }
 0x56f   : > { %10526 = vmatpush3.bf16.msra.mxu0 %v10965_v11 }
 0x572   : > { %8922 = vmatmul.mubr.msk.bf16.gmra.mrb[96].mxu0 %vm12162_vm2, %v15676_v20 }
 0x573   : > { %3292 = vmatprep.mubr.bf16.mxu0 %v15677_v31 }
 0x57a   : > { %3293 = vmatmul.mubr.bf16.gmra.mrb[100].mxu0 %v3012_v27  ;;  %v10972_v27 = vld [vmem:[#allocation8 + $0x358] sm:$0xff]  }
 0x57b   : > { %3300 = vmatprep.mubr.bf16.mxu0 %v3016_v7  ;;  %9841 = vmatprep.subr.bf16.mxu1 %v10972_v27  ;;  %v10973_v7 = vld [vmem:[#allocation8 + $0x318] sm:$0xff]  }
 0x57c   : > { %9842 = vmatpush3.bf16.msra.mxu1 %v10973_v7 }
 0x57d   : > { %9843 = vmatprep.subr.bf16.mxu1 %v10974_v53 }
 0x580   : > { %9844 = vmatpush3.bf16.msra.mxu1 %v10975_v21 }
 0x581   : > { %9845 = vmatprep.subr.bf16.mxu1 %v10976_v48 }
 0x582   : > { %8926 = vmatmul.mubr.msk.bf16.gmra.mrb[104].mxu0 %vm12186_vm7, %v8925_v42  ;;  %v10978_v42 = vld [vmem:[#allocation8 + $0x370] sm:$0xff]  }
 0x583   : > { %3308 = vmatprep.mubr.bf16.mxu0 %v3019_v56 }
 0x584   : > { %9846 = vmatpush3.bf16.msra.mxu1 %v10977_v58 }
 0x585   : > { %9847 = vmatprep.subr.bf16.mxu1 %v10978_v42 }
 0x588   : > { %9848 = vmatpush3.bf16.msra.mxu1 %v10979_v3 }
 0x589   : > { %9849 = vmatprep.subr.bf16.mxu1 %v10980_v51 }
 0x58a   : > { %3309 = vmatmul.mubr.bf16.gmra.mrb[108].mxu0 %v3018_v2  ;;  %v13135_v2 = vld [vmem:[%s15638_s24 + $0x3] ss:$0 sm:$0xff] }
 0x58c   : > { %9850 = vmatpush3.bf16.msra.mxu1 %v10981_v50 }
 0x5fb   : > { %v10497_v39 = vpop.f32.mrb[80].mxu1 }
 0x5fc   : > { %v3351_v46 = vpop.f32.mrb[81].mxu1 }
 0x5fd   : > { %v10498_v5 = vpop.f32.mrb[82].mxu1 }
 0x5fe   : > { %v3354_v56 = vpop.f32.mrb[83].mxu1 }
 0x60b   : > { %v13118_v14 = vpop.f32.mrb[84].mxu1 }
 0x60c   : > { %v3367_v63 = vpop.f32.mrb[85].mxu1 }
 0x60d   : > { %v13120_v55 = vpop.f32.mrb[86].mxu1 }
 0x60e   : > { %v3370_v24 = vpop.f32.mrb[87].mxu1 }
 0x61b   : > { %v13122_v17 = vpop.f32.mrb[88].mxu1 }
 0x61c   : > { %v13124_v30 = vpop.f32.mrb[89].mxu1 }
 0x61d   : > { %v13126_v13 = vpop.f32.mrb[90].mxu1 }
 0x61e   : > { %v13128_v43 = vpop.f32.mrb[91].mxu1 }
 0x625   : > { %v9771_v38 = vpop.f32.mrb[80].mxu0  ;;  %v13130_v36 = vpop.f32.mrb[92].mxu1 }
 0x626   : > { %v9772_v12 = vpop.f32.mrb[81].mxu0  ;;  %v13137_v52 = vpop.f32.mrb[93].mxu1 }
 0x627   : > { %v9773_v32 = vadd.f32 %v9772_v12, %v9771_v38  ;;  %v9774_v16 = vpop.f32.mrb[82].mxu0  ;;  %v13139_v60 = vpop.f32.mrb[94].mxu1 }
 0x628   : > { %v9775_v40 = vpop.f32.mrb[83].mxu0  ;;  %v13141_v23 = vpop.f32.mrb[95].mxu1 }
 0x629   : > { %v3255_v20 = vadd.f32 %v9773_v32, %v13135_v2  ;;  %v9776_v31 = vadd.f32 %v9775_v40, %v9774_v16 }
 0x62b   : > { %v3352_v15 = vadd.f32 %v3351_v46, %v3255_v20  ;;  %v3258_v25 = vadd.f32 %v9776_v31, %v13135_v2 }
 0x62d   : > { %v13151_v33 = vadd.f32 %v3352_v15, %v12530_v26  ;;  %v3355_v18 = vadd.f32 %v3354_v56, %v3258_v25  ;;  %v9777_v28 = vpop.f32.mrb[84].mxu0 }
 0x62e   : > { %v9778_v6 = vpop.f32.mrb[85].mxu0 }
 0x62f   : > { %v3438_v11 = vmul.f32 %v13148_v29, %v13151_v33  ;;  %v13156_v0 = vadd.f32 %v3355_v18, %v12535_v9  ;;  %v9779_v54 = vadd.f32 %v9778_v6, %v9777_v28  ;;  %v9780_v19 = vpop.f32.mrb[86].mxu0 }
 0x630   : > { %v9781_v49 = vpop.f32.mrb[87].mxu0 }
 0x631   : > { %v3439_v26 = vmul.f32 %v13148_v29, %v13156_v0  ;;  %v3263_v1 = vadd.f32 %v9779_v54, %v13135_v2  ;;  %v9782_v27 = vadd.f32 %v9781_v49, %v9780_v19  ;;  %v3462_v7 = vadd.f32 %v13161_v22, %v3438_v11 }
 0x633   : > { %v3360_v53 = vadd.f32 %v10497_v39, %v3263_v1  ;;  %v3266_v9 = vadd.f32 %v9782_v27, %v13135_v2  ;;  %v3463_v21 = vadd.f32 %v13161_v22, %v3439_v26  ;;  %v13174_v50 = vmax.f32 %v3462_v7, 0.0 }
 0x635   : > { %v13170_v48 = vadd.f32 %v3360_v53, %v12549_v45  ;;  %v3363_v58 = vadd.f32 %v10498_v5, %v3266_v9  ;;  %v9783_v42 = vpop.f32.mrb[88].mxu0  ;;  %v13172_v3 = vmax.f32 %v3463_v21, 0.0  ;;  %v3544_v49 = vrot.slane %v13174_v50, 1 }
 0x636   : > { %v9784_v51 = vpop.f32.mrb[89].mxu0 }
 0x637   : > { %v3440_v46 = vmul.f32 %v13148_v29, %v13170_v48  ;;  %v13179_v56 = vadd.f32 %v3363_v58, %v12558_v37  ;;  %v9785_v39 = vadd.f32 %v9784_v51, %v9783_v42  ;;  %v9786_v38 = vpop.f32.mrb[90].mxu0  ;;  %v3593_v45 = vpack.c.bf16 %v13172_v3, %v13174_v50 }
 0x638   : > { %v9787_v12 = vpop.f32.mrb[91].mxu0  ;;  %v3545_v25 = vrot.slane %v13172_v3, 1 }
 0x639   : > { %v3464_v5 = vadd.f32 %v13161_v22, %v3440_v46  ;;  %v3441_v32 = vmul.f32 %v13148_v29, %v13179_v56  ;;  %v3271_v16 = vadd.f32 %v9785_v39, %v13135_v2  ;;  %v9788_v40 = vadd.f32 %v9787_v12, %v9786_v38  ;;  %3847 = vmatprep.mubr.bf16.mxu1 %v3593_v45 }
 0x63b   : > { %v13187_v20 = vmax.f32 %v3464_v5, 0.0  ;;  %v3465_v37 = vadd.f32 %v13161_v22, %v3441_v32  ;;  %v3368_v31 = vadd.f32 %v3367_v63, %v3271_v16  ;;  %v3274_v15 = vadd.f32 %v9788_v40, %v13135_v2 }
 0x63d   : > { %v13193_v18 = vadd.f32 %v3368_v31, %v12572_v34  ;;  %v3371_v28 = vadd.f32 %v3370_v24, %v3274_v15  ;;  %v9789_v6 = vpop.f32.mrb[92].mxu0  ;;  %v3546_v11 = vrot.slane %v13187_v20, 1  ;;  %v13196_v54 = vmax.f32 %v3465_v37, 0.0 }
 0x63e   : > { %v9790_v19 = vpop.f32.mrb[93].mxu0  ;;  %v3574_v24 = vsel %vm1212_vm1, %v3544_v49, %v3545_v25 }
 0x63f   : > { %v3442_v26 = vmul.f32 %v13148_v29, %v13193_v18  ;;  %v13202_v63 = vadd.f32 %v3371_v28, %v12581_v61  ;;  %v9791_v1 = vadd.f32 %v9790_v19, %v9789_v6  ;;  %v9792_v27 = vpop.f32.mrb[94].mxu0  ;;  %v3573_v34 = vsel %vm1212_vm1, %v3545_v25, %v3546_v11 }
 0x640   : > { %v9793_v7 = vpop.f32.mrb[95].mxu0  ;;  %v3547_v58 = vrot.slane %v13196_v54, 1  ;;  %v3594_v42 = vpack.c.bf16 %v3573_v34, %v3574_v24  ;;  %v15678_v24 = vld [vmem:[#allocation23_spill] sm:$0xff] }
 0x641   : > { %v3466_v53 = vadd.f32 %v13161_v22, %v3442_v26  ;;  %v3443_v9 = vmul.f32 %v13148_v29, %v13202_v63  ;;  %v3279_v21 = vadd.f32 %v9791_v1, %v13135_v2  ;;  %v9794_v61 = vadd.f32 %v9793_v7, %v9792_v27 }
 0x642   : > { %10527 = vmatprep.mubr.bf16.mxu0 %v3594_v42  ;;  %v3572_v40 = vsel %vm1212_vm1, %v3546_v11, %v3547_v58 }
 0x643   : > { %v13215_v51 = vmax.f32 %v3466_v53, 0.0  ;;  %v3467_v46 = vadd.f32 %v13161_v22, %v3443_v9  ;;  %v3376_v39 = vadd.f32 %v13118_v14, %v3279_v21  ;;  %v3282_v38 = vadd.f32 %v9794_v61, %v13135_v2 }
 0x645   : > { %v3548_v12 = vrot.slane %v13215_v51, 1  ;;  %v13222_v45 = vadd.f32 %v3376_v39, %v12601_v57  ;;  %v3379_v5 = vadd.f32 %v13120_v55, %v3282_v38  ;;  %v9795_v32 = vpop.f32.mrb[96].mxu0  ;;  %v13225_v16 = vmax.f32 %v3467_v46, 0.0 }
 0x646   : > { %v9796_v37 = vpop.f32.mrb[97].mxu0 }
 0x647   : > { %v3444_v14 = vmul.f32 %v13148_v29, %v13222_v45  ;;  %v13232_v31 = vadd.f32 %v3379_v5, %v12611_v47  ;;  %v3571_v15 = vsel %vm1212_vm1, %v3547_v58, %v3548_v12  ;;  %v9797_v57 = vadd.f32 %v9796_v37, %v9795_v32  ;;  %v9798_v25 = vpop.f32.mrb[98].mxu0 }
 0x648   : > { %v8991_v28 = vpack.c.bf16 %v3571_v15, %v3572_v40  ;;  %v9799_v55 = vpop.f32.mrb[99].mxu0  ;;  %v3549_v47 = vrot.slane %v13225_v16, 1 }
 0x649   : > { %v3468_v6 = vadd.f32 %v13161_v22, %v3444_v14  ;;  %v3445_v19 = vmul.f32 %v13148_v29, %v13232_v31  ;;  %v3287_v11 = vadd.f32 %v9797_v57, %v13135_v2  ;;  %v9800_v26 = vadd.f32 %v9799_v55, %v9798_v25 }
 0x64a   : > { %10528 = vmatmul.mubr.msk.bf16.vlgmr.msra.gmra.mrb[112].mxu0 %vm11979_vm4, %v8991_v28  ;;  %v3570_v46 = vsel %vm1212_vm1, %v3548_v12, %v3549_v47 }
 0x64b   : > { %v13243_v1 = vmax.f32 %v3468_v6, 0.0  ;;  %v3469_v27 = vadd.f32 %v13161_v22, %v3445_v19  ;;  %v3384_v7 = vadd.f32 %v13124_v30, %v3287_v11  ;;  %v3290_v34 = vadd.f32 %v9800_v26, %v13135_v2  ;;  %v15679_v30 = vld [vmem:[#allocation25_spill] sm:$0xff]  ;;  %v15681_v11 = vld [vmem:[#allocation22_spill] sm:$0xff] }
 0x64d   : > { %v13249_v53 = vadd.f32 %v3384_v7, %v15678_v24  ;;  %v3387_v9 = vadd.f32 %v13128_v43, %v3290_v34  ;;  %v9801_v21 = vpop.f32.mrb[100].mxu0  ;;  %v3550_v61 = vrot.slane %v13243_v1, 1  ;;  %v13253_v58 = vmax.f32 %v3469_v27, 0.0 }
 0x64e   : > { %v9802_v42 = vpop.f32.mrb[101].mxu0 }
 0x64f   : > { %v3446_v39 = vmul.f32 %v13148_v29, %v13249_v53  ;;  %v13260_v38 = vadd.f32 %v3387_v9, %v15679_v30  ;;  %v9803_v5 = vadd.f32 %v9802_v42, %v9801_v21  ;;  %v9804_v32 = vpop.f32.mrb[102].mxu0  ;;  %v3569_v43 = vsel %vm1212_vm1, %v3549_v47, %v3550_v61 }
 0x650   : > { %v9805_v40 = vpop.f32.mrb[103].mxu0  ;;  %v3600_v37 = vpack.c.bf16 %v3569_v43, %v3570_v46  ;;  %v3551_v25 = vrot.slane %v13253_v58, 1 }
 0x651   : > { %15680 = vst [vmem:[#allocation23_spill] sm:$0xff] %v13260_v38  ;;  %v3470_v14 = vadd.f32 %v13161_v22, %v3446_v39  ;;  %v3447_v15 = vmul.f32 %v13148_v29, %v13260_v38  ;;  %v3295_v12 = vadd.f32 %v9803_v5, %v13135_v2  ;;  %v9806_v57 = vadd.f32 %v9805_v40, %v9804_v32 }
 0x652   : > { %10531 = vmatprep.mubr.bf16.mxu0 %v3600_v37  ;;  %v3568_v9 = vsel %vm1212_vm1, %v3550_v61, %v3551_v25 }
 0x653   : > { %v13269_v28 = vmax.f32 %v3470_v14, 0.0  ;;  %v3471_v55 = vadd.f32 %v13161_v22, %v3447_v15  ;;  %v3392_v6 = vadd.f32 %v13122_v17, %v3295_v12  ;;  %v3298_v19 = vadd.f32 %v9806_v57, %v13135_v2  ;;  %v15683_v17 = vld [vmem:[#allocation24_spill] sm:$0xff] }
 0x655   : > { %v13275_v26 = vadd.f32 %v3392_v6, %v15681_v11  ;;  %v3395_v47 = vadd.f32 %v13126_v13, %v3298_v19  ;;  %v9807_v27 = vpop.f32.mrb[104].mxu0  ;;  %v3552_v7 = vrot.slane %v13269_v28, 1  ;;  %v13279_v34 = vmax.f32 %v3471_v55, 0.0  ;;  %v15686_v55 = vld [vmem:[#allocation27_spill] sm:$0xff] }
 0x656   : > { %v9808_v24 = vpop.f32.mrb[105].mxu0 }
 0x657   : > { %15682 = vst [vmem:[#allocation25_spill] sm:$0xff] %v13275_v26  ;;  %v3448_v21 = vmul.f32 %v13148_v29, %v13275_v26  ;;  %v13286_v42 = vadd.f32 %v3395_v47, %v15683_v17  ;;  %v9809_v46 = vadd.f32 %v9808_v24, %v9807_v27  ;;  %v9810_v39 = vpop.f32.mrb[106].mxu0  ;;  %v3567_v13 = vsel %vm1212_vm1, %v3551_v25, %v3552_v7 }
 0x658   : > { %v9811_v30 = vpop.f32.mrb[107].mxu0  ;;  %v8995_v5 = vpack.c.bf16 %v3567_v13, %v3568_v9  ;;  %v3553_v14 = vrot.slane %v13279_v34, 1 }
 0x659   : > { %15684 = vst [vmem:[#allocation22_spill] sm:$0xff] %v13286_v42  ;;  %v3472_v32 = vadd.f32 %v13161_v22, %v3448_v21  ;;  %v3449_v43 = vmul.f32 %v13148_v29, %v13286_v42  ;;  %v3303_v61 = vadd.f32 %v9809_v46, %v13135_v2  ;;  %v9812_v40 = vadd.f32 %v9811_v30, %v9810_v39 }
 0x65a   : > { %10532 = vmatmul.mubr.msk.bf16.gmra.mrb[116].mxu0 %vm12037_vm6, %v8995_v5  ;;  %v3566_v9 = vsel %vm1212_vm1, %v3552_v7, %v3553_v14 }
 0x65b   : > { %v13297_v15 = vmax.f32 %v3472_v32, 0.0  ;;  %v3473_v12 = vadd.f32 %v13161_v22, %v3449_v43  ;;  %v3400_v57 = vadd.f32 %v13137_v52, %v3303_v61  ;;  %v3306_v25 = vadd.f32 %v9812_v40, %v13135_v2  ;;  %v15688_v52 = vld [vmem:[#allocation29_spill] sm:$0xff] }
 0x65d   : > { %v13303_v6 = vadd.f32 %v3400_v57, %v15686_v55  ;;  %v3403_v19 = vadd.f32 %v13141_v23, %v3306_v25  ;;  %v9813_v11 = vpop.f32.mrb[108].mxu0  ;;  %v3554_v47 = vrot.slane %v13297_v15, 1  ;;  %v13307_v27 = vmax.f32 %v3473_v12, 0.0  ;;  %v15690_v25 = vld [vmem:[#allocation26_spill] sm:$0xff] }
 0x65e   : > { %v9814_v24 = vpop.f32.mrb[109].mxu0 }
 0x65f   : > { %15687 = vst [vmem:[#allocation24_spill] sm:$0xff] %v13303_v6  ;;  %v3450_v21 = vmul.f32 %v13148_v29, %v13303_v6  ;;  %v13314_v17 = vadd.f32 %v3403_v19, %v15688_v52  ;;  %v9815_v46 = vadd.f32 %v9814_v24, %v9813_v11  ;;  %v9816_v39 = vpop.f32.mrb[110].mxu0  ;;  %v3565_v23 = vsel %vm1212_vm1, %v3553_v14, %v3554_v47  ;;  %v15692_v52 = vld [vmem:[#allocation28_spill] sm:$0xff] }
 0x660   : > { %v9817_v13 = vpop.f32.mrb[111].mxu0  ;;  %v3606_v30 = vpack.c.bf16 %v3565_v23, %v3566_v9  ;;  %v3555_v61 = vrot.slane %v13307_v27, 1 }
 0x661   : > { %15689 = vst [vmem:[#allocation30_spill] sm:$0xff] %v13314_v17  ;;  %v3474_v5 = vadd.f32 %v13161_v22, %v3450_v21  ;;  %v3451_v32 = vmul.f32 %v13148_v29, %v13314_v17  ;;  %v3311_v7 = vadd.f32 %v9815_v46, %v13135_v2  ;;  %v9818_v43 = vadd.f32 %v9817_v13, %v9816_v39 }
 0x662   : > { %10535 = vmatprep.mubr.bf16.mxu0 %v3606_v30  ;;  %v3564_v24 = vsel %vm1212_vm1, %v3554_v47, %v3555_v61  ;;  %v3497_v30 = vrot.slane %v13172_v3, 7 }
 0x663   : > { %v13323_v40 = vmax.f32 %v3474_v5, 0.0  ;;  %v3475_v12 = vadd.f32 %v13161_v22, %v3451_v32  ;;  %v3408_v57 = vadd.f32 %v13130_v36, %v3311_v7  ;;  %v3314_v14 = vadd.f32 %v9818_v43, %v13135_v2 }
 0x664   : > { %v3496_v7 = vrot.slane %v13174_v50, 7  ;;  %v3498_v50 = vrot.slane %v13187_v20, 7 }
 0x665   : > { %v13329_v55 = vadd.f32 %v3408_v57, %v15690_v25  ;;  %v3411_v19 = vadd.f32 %v13139_v60, %v3314_v14  ;;  %v3556_v11 = vrot.slane %v13323_v40, 1  ;;  %v13335_v9 = vmax.f32 %v3475_v12, 0.0 }
 0x666   : > { %v3526_v3 = vsel %vm1163_vm8, %v3496_v7, %v3497_v30 }
 0x667   : > { %15691 = vst [vmem:[#allocation27_spill] sm:$0xff] %v13329_v55  ;;  %v3452_v21 = vmul.f32 %v13148_v29, %v13329_v55  ;;  %v13340_v46 = vadd.f32 %v3411_v19, %v15692_v52  ;;  %v3563_v36 = vsel %vm1212_vm1, %v3555_v61, %v3556_v11  ;;  %v3557_v13 = vrot.slane %v13335_v9, 1 }
 0x668   : > { %v8999_v2 = vpack.c.bf16 %v3563_v36, %v3564_v24  ;;  %v3596_v24 = vpack.c.bf16 %v13196_v54, %v13187_v20  ;;  %v3525_v52 = vsel %vm1163_vm8, %v3497_v30, %v3498_v50  ;;  %v3503_v30 = vrot.slane %v13253_v58, 7 }
 0x669   : > { %15693 = vst [vmem:[#allocation29_spill] sm:$0xff] %v13340_v46  ;;  %v3476_v39 = vadd.f32 %v13161_v22, %v3452_v21  ;;  %v3453_v60 = vmul.f32 %v13148_v29, %v13340_v46  ;;  %v3562_v61 = vsel %vm1212_vm1, %v3556_v11, %v3557_v13  ;;  %v3499_v21 = vrot.slane %v13196_v54, 7 }
 0x66a   : > { %10536 = vmatmul.mubr.msk.bf16.gmra.mrb[120].mxu0 %vm12078_vm10, %v8999_v2  ;;  %v3599_v2 = vpack.c.bf16 %v13225_v16, %v13215_v51  ;;  %v3501_v54 = vrot.slane %v13225_v16, 7  ;;  %v3502_v16 = vrot.slane %v13243_v1, 7 }
 0x66b   : > { %v13349_v47 = vmax.f32 %v3476_v39, 0.0  ;;  %v3477_v23 = vadd.f32 %v13161_v22, %v3453_v60  ;;  %v3500_v39 = vrot.slane %v13215_v51, 7 }
 0x66c   : > { %v3520_v51 = vsel %vm1163_vm8, %v3502_v16, %v3503_v30 }
 0x66d   : > { %v13354_v5 = vmax.f32 %v3477_v23, 0.0  ;;  %v3558_v32 = vrot.slane %v13349_v47, 1  ;;  %v3522_v60 = vsel %vm1163_vm8, %v3500_v39, %v3501_v54  ;;  %v3523_v20 = vsel %vm1163_vm8, %v3499_v21, %v3500_v39  ;;  %v10985_v39 = vld [vmem:[#allocation8 + $0x458] sm:$0xff]  }
 0x66e   : > { %v8979_v23 = vpack.c.bf16 %v3522_v60, %v3523_v20  ;;  %v10989_v60 = vld [vmem:[#allocation8 + $0x478] sm:$0xff]   ;;  %v10990_v20 = vld [vmem:[#allocation8 + $0x400] sm:$0xff]  }
 0x66f   : > { %v3511_v43 = vrot.slane %v13354_v5, 7  ;;  %v3561_v29 = vsel %vm1212_vm1, %v3557_v13, %v3558_v32  ;;  %v3559_v22 = vrot.slane %v13354_v5, 1  ;;  %v3602_v13 = vpack.c.bf16 %v13253_v58, %v13243_v1  ;;  %9915 = vmatprep.subr.bf16.mxu0 %v10990_v20 }
 0x670   : > { %v3612_v12 = vpack.c.bf16 %v3561_v29, %v3562_v61  ;;  %v3605_v29 = vpack.c.bf16 %v13279_v34, %v13269_v28  ;;  %v3505_v61 = vrot.slane %v13279_v34, 7  ;;  %v3504_v58 = vrot.slane %v13269_v28, 7 }
 0x671   : > { %v3527_v57 = vsel %vm1163_vm8, %v3511_v43, %v3496_v7  ;;  %v3560_v14 = vsel %vm1212_vm1, %v3558_v32, %v3559_v22  ;;  %v3575_v25 = vsel %vm1212_vm1, %v3559_v22, %v3544_v49  ;;  %v3524_v49 = vsel %vm1163_vm8, %v3498_v50, %v3499_v21 }
 0x672   : > { %10539 = vmatprep.mubr.bf16.mxu0 %v3612_v12  ;;  %v8975_v19 = vpack.c.bf16 %v3526_v3, %v3527_v57  ;;  %v9003_v11 = vpack.c.bf16 %v3575_v25, %v3560_v14  ;;  %v3595_v36 = vpack.c.bf16 %v3524_v49, %v3525_v52  ;;  %v3521_v32 = vsel %vm1163_vm8, %v3501_v54, %v3502_v16  ;;  %v10984_v54 = vld [vmem:[#allocation8 + $0x450] sm:$0xff]  }
 0x673   : > { %v3601_v7 = vpack.c.bf16 %v3520_v51, %v3521_v32  ;;  %v3518_v22 = vsel %vm1163_vm8, %v3504_v58, %v3505_v61  ;;  %v3519_v1 = vsel %vm1163_vm8, %v3503_v30, %v3504_v58  ;;  %v3608_v3 = vpack.c.bf16 %v13307_v27, %v13297_v15  ;;  %v10993_v30 = vld [vmem:[#allocation8 + $0x3c8] sm:$0xff]   ;;  %v10994_v16 = vld [vmem:[#allocation8 + $0x410] sm:$0xff]   ;;  %v10996_v32 = vld [vmem:[#allocation8 + $0x418] sm:$0xff]  }
 0x674   : > { %8976 = vmatmul.mubr.msk.bf16.vlgmr.msra.gmra.mrb[96].mxu1 %vm12091_vm11, %v8975_v19  ;;  %10540 = vmatmul.mubr.msk.bf16.gmra.mrb[124].mxu0 %vm12122_vm13, %v9003_v11  ;;  %v8983_v12 = vpack.c.bf16 %v3518_v22, %v3519_v1  ;;  %v3507_v57 = vrot.slane %v13307_v27, 7  ;;  %v3506_v34 = vrot.slane %v13297_v15, 7  ;;  %v3611_v19 = vpack.c.bf16 %v13335_v9, %v13323_v40  ;;  %v10995_v51 = vld [vmem:[#allocation8 + $0x3d0] sm:$0xff]   ;;  %v11000_v58 = vld [vmem:[#allocation8 + $0x428] sm:$0xff]  }
 0x675   : > { %3855 = vmatprep.mubr.bf16.mxu1 %v3596_v24  ;;  %v3509_v11 = vrot.slane %v13335_v9, 7  ;;  %v3508_v27 = vrot.slane %v13323_v40, 7  ;;  %v3614_v50 = vpack.c.bf16 %v13354_v5, %v13349_v47  ;;  %v3510_v9 = vrot.slane %v13349_v47, 7  ;;  %v10986_v47 = vld [vmem:[#allocation8 + $0x460] sm:$0xff]   ;;  %v10987_v5 = vld [vmem:[#allocation8 + $0x468] sm:$0xff]   ;;  %v11002_v1 = vld [vmem:[#allocation8 + $0x430] sm:$0xff]  }
 0x676   : > { %v3516_v28 = vsel %vm1163_vm8, %v3506_v34, %v3507_v57  ;;  %v3517_v14 = vsel %vm1163_vm8, %v3505_v61, %v3506_v34  ;;  %v10999_v61 = vld [vmem:[#allocation8 + $0x3e0] sm:$0xff]   ;;  %v11001_v22 = vld [vmem:[#allocation8 + $0x3e8] sm:$0xff]  }
 0x677   : > { %v3607_v25 = vpack.c.bf16 %v3516_v28, %v3517_v14  ;;  %v3514_v24 = vsel %vm1163_vm8, %v3508_v27, %v3509_v11  ;;  %v3515_v15 = vsel %vm1163_vm8, %v3507_v57, %v3508_v27  ;;  %v3512_v40 = vsel %vm1163_vm8, %v3510_v9, %v3511_v43  ;;  %v10988_v43 = vld [vmem:[#allocation8 + $0x470] sm:$0xff]   ;;  %v11005_v57 = vld [vmem:[#allocation8 + $0x3f8] sm:$0xff]  }
 0x678   : > { %v8987_v21 = vpack.c.bf16 %v3514_v24, %v3515_v15  ;;  %v3513_v49 = vsel %vm1163_vm8, %v3509_v11, %v3510_v9 }
 0x679   : > { %v3613_v52 = vpack.c.bf16 %v3512_v40, %v3513_v49 }
 0x67c   : > { %3856 = vmatmul.mubr.bf16.gmra.mrb[100].mxu1 %v3595_v36  ;;  %v10982_v36 = vld [vmem:[#allocation8 + $0x440] sm:$0xff]  }
 0x67d   : > { %3863 = vmatprep.mubr.bf16.mxu1 %v3599_v2  ;;  %v10983_v2 = vld [vmem:[#allocation8 + $0x448] sm:$0xff]   ;;  %10543 = vmatprep.subr.bf16.mxu1 %v10982_v36 }
 0x67e   : > { %10544 = vmatpush3.bf16.msra.mxu1 %v10982_v36 }
 0x67f   : > { %10545 = vmatprep.subr.bf16.mxu1 %v10983_v2 }
 0x682   : > { %10546 = vmatpush3.bf16.msra.mxu1 %v10983_v2 }
 0x683   : > { %10547 = vmatprep.subr.bf16.mxu1 %v10984_v54 }
 0x684   : > { %8980 = vmatmul.mubr.msk.bf16.gmra.mrb[104].mxu1 %vm12138_vm15, %v8979_v23  ;;  %v10991_v23 = vld [vmem:[#allocation8 + $0x3c0] sm:$0xff]  }
 0x685   : > { %3871 = vmatprep.mubr.bf16.mxu1 %v3602_v13  ;;  %v10992_v13 = vld [vmem:[#allocation8 + $0x408] sm:$0xff]   ;;  %9916 = vmatpush3.bf16.msra.mxu0 %v10991_v23  ;;  %v13474_v23 = vld [vmem:[%s15508_s3 + $0x5] ss:$0 sm:$0xff] }
 0x686   : > { %10548 = vmatpush3.bf16.msra.mxu1 %v10984_v54  ;;  %9917 = vmatprep.subr.bf16.mxu0 %v10992_v13 }
 0x687   : > { %10549 = vmatprep.subr.bf16.mxu1 %v10985_v39 }
 0x689   : > { %9918 = vmatpush3.bf16.msra.mxu0 %v10993_v30 }
 0x68a   : > { %10550 = vmatpush3.bf16.msra.mxu1 %v10985_v39  ;;  %9919 = vmatprep.subr.bf16.mxu0 %v10994_v16  ;;  %v13480_v16 = vld [vmem:[%s15509_s4 + $0x5] ss:$0 sm:$0xff] }
 0x68b   : > { %10551 = vmatprep.subr.bf16.mxu1 %v10986_v47 }
 0x68c   : > { %3872 = vmatmul.mubr.bf16.gmra.mrb[108].mxu1 %v3601_v7  ;;  %v10997_v7 = vld [vmem:[#allocation8 + $0x3d8] sm:$0xff]  }
 0x68d   : > { %3879 = vmatprep.mubr.bf16.mxu1 %v3605_v29  ;;  %9920 = vmatpush3.bf16.msra.mxu0 %v10995_v51  ;;  %v10998_v29 = vld [vmem:[#allocation8 + $0x420] sm:$0xff]  }
 0x68e   : > { %10552 = vmatpush3.bf16.msra.mxu1 %v10986_v47  ;;  %9921 = vmatprep.subr.bf16.mxu0 %v10996_v32 }
 0x68f   : > { %10553 = vmatprep.subr.bf16.mxu1 %v10987_v5 }
 0x691   : > { %9922 = vmatpush3.bf16.msra.mxu0 %v10997_v7 }
 0x692   : > { %10554 = vmatpush3.bf16.msra.mxu1 %v10987_v5  ;;  %9923 = vmatprep.subr.bf16.mxu0 %v10998_v29 }
 0x693   : > { %10555 = vmatprep.subr.bf16.mxu1 %v10988_v43 }
 0x694   : > { %8984 = vmatmul.mubr.msk.bf16.gmra.mrb[112].mxu1 %vm12162_vm2, %v8983_v12  ;;  %v11003_v12 = vld [vmem:[#allocation8 + $0x3f0] sm:$0xff]  }
 0x695   : > { %3887 = vmatprep.mubr.bf16.mxu1 %v3608_v3  ;;  %9924 = vmatpush3.bf16.msra.mxu0 %v10999_v61  ;;  %v11004_v3 = vld [vmem:[#allocation8 + $0x438] sm:$0xff]  }
 0x696   : > { %10556 = vmatpush3.bf16.msra.mxu1 %v10988_v43  ;;  %9925 = vmatprep.subr.bf16.mxu0 %v11000_v58 }
 0x697   : > { %10557 = vmatprep.subr.bf16.mxu1 %v10989_v60 }
 0x699   : > { %9926 = vmatpush3.bf16.msra.mxu0 %v11001_v22 }
 0x69a   : > { %10558 = vmatpush3.bf16.msra.mxu1 %v10989_v60  ;;  %9927 = vmatprep.subr.bf16.mxu0 %v11002_v1 }
 0x69c   : > { %3888 = vmatmul.mubr.bf16.gmra.mrb[116].mxu1 %v3607_v25 }
 0x69d   : > { %3895 = vmatprep.mubr.bf16.mxu1 %v3611_v19  ;;  %9928 = vmatpush3.bf16.msra.mxu0 %v11003_v12 }
 0x69e   : > { %9929 = vmatprep.subr.bf16.mxu0 %v11004_v3 }
 0x6a1   : > { %9930 = vmatpush3.bf16.msra.mxu0 %v11005_v57 }
 0x6a4   : > { %8988 = vmatmul.mubr.msk.bf16.gmra.mrb[120].mxu1 %vm12186_vm7, %v8987_v21 }
 0x6a5   : > { %3903 = vmatprep.mubr.bf16.mxu1 %v3614_v50 }
 0x6ac   : > { %3904 = vmatmul.mubr.bf16.gmra.mrb[124].mxu1 %v3613_v52  ;;  %v13462_v52 = vld [vmem:[%s15638_s24 + $0x4] ss:$0 sm:$0xff] }
 0x71d   : > { %v10529_v34 = vpop.f32.mrb[112].mxu0 }
 0x71e   : > { %v3946_v28 = vpop.f32.mrb[113].mxu0 }
 0x71f   : > { %v10530_v14 = vpop.f32.mrb[114].mxu0 }
 0x720   : > { %v3949_v25 = vpop.f32.mrb[115].mxu0 }
 0x72d   : > { %v13443_v19 = vpop.f32.mrb[116].mxu0 }
 0x72e   : > { %v3962_v11 = vpop.f32.mrb[117].mxu0 }
 0x72f   : > { %v13445_v27 = vpop.f32.mrb[118].mxu0 }
 0x730   : > { %v13447_v24 = vpop.f32.mrb[119].mxu0 }
 0x73d   : > { %v13449_v15 = vpop.f32.mrb[120].mxu0 }
 0x73e   : > { %v13451_v21 = vpop.f32.mrb[121].mxu0 }
 0x73f   : > { %v13453_v50 = vpop.f32.mrb[122].mxu0 }
 0x740   : > { %v13455_v9 = vpop.f32.mrb[123].mxu0 }
 0x747   : > { %v9851_v40 = vpop.f32.mrb[96].mxu1  ;;  %v13457_v49 = vpop.f32.mrb[124].mxu0 }
 0x748   : > { %v9852_v36 = vpop.f32.mrb[97].mxu1  ;;  %v13464_v2 = vpop.f32.mrb[125].mxu0 }
 0x749   : > { %v9853_v54 = vadd.f32 %v9852_v36, %v9851_v40  ;;  %v9854_v39 = vpop.f32.mrb[98].mxu1  ;;  %v13466_v47 = vpop.f32.mrb[126].mxu0 }
 0x74a   : > { %v9855_v5 = vpop.f32.mrb[99].mxu1  ;;  %v13468_v43 = vpop.f32.mrb[127].mxu0 }
 0x74b   : > { %v3850_v60 = vadd.f32 %v9853_v54, %v13462_v52  ;;  %v9856_v20 = vadd.f32 %v9855_v5, %v9854_v39 }
 0x74d   : > { %v3947_v13 = vadd.f32 %v3946_v28, %v3850_v60  ;;  %v3853_v30 = vadd.f32 %v9856_v20, %v13462_v52 }
 0x74f   : > { %v4017_v51 = vmul.f32 %v13474_v23, %v3947_v13  ;;  %v3950_v32 = vadd.f32 %v3949_v25, %v3853_v30  ;;  %v9857_v7 = vpop.f32.mrb[100].mxu1 }
 0x750   : > { %v9858_v29 = vpop.f32.mrb[101].mxu1 }
 0x751   : > { %v4041_v61 = vadd.f32 %v13480_v16, %v4017_v51  ;;  %v4018_v58 = vmul.f32 %v13474_v23, %v3950_v32  ;;  %v9859_v22 = vadd.f32 %v9858_v29, %v9857_v7  ;;  %v9860_v1 = vpop.f32.mrb[102].mxu1 }
 0x752   : > { %v9861_v12 = vpop.f32.mrb[103].mxu1 }
 0x753   : > { %v4042_v3 = vadd.f32 %v13480_v16, %v4018_v58  ;;  %v3858_v57 = vadd.f32 %v9859_v22, %v13462_v52  ;;  %v9862_v28 = vadd.f32 %v9861_v12, %v9860_v1  ;;  %v13487_v40 = vmax.f32 %v4041_v61, 0.0 }
 0x755   : > { %v3955_v36 = vadd.f32 %v10529_v34, %v3858_v57  ;;  %v3861_v54 = vadd.f32 %v9862_v28, %v13462_v52  ;;  %v4058_v25 = vmax.f32 %v4042_v3, 0.0  ;;  %v15557_v39 = vrot.slane %v13487_v40, 7 }
 0x756   : > { %v15556_v32 = vrot.slane %v13487_v40, 1 }
 0x757   : > { %v4019_v5 = vmul.f32 %v13474_v23, %v3955_v36  ;;  %v3958_v60 = vadd.f32 %v10530_v14, %v3861_v54  ;;  %v9863_v20 = vpop.f32.mrb[104].mxu1  ;;  %v4076_v13 = vrot.slane %v4058_v25, 7  ;;  %v4172_v30 = vpack.c.bf16 %v4058_v25, %v13487_v40 }
 0x758   : > { %v9864_v51 = vpop.f32.mrb[105].mxu1  ;;  %v4124_v7 = vrot.slane %v4058_v25, 1 }
 0x759   : > { %v4043_v29 = vadd.f32 %v13480_v16, %v4019_v5  ;;  %v4020_v34 = vmul.f32 %v13474_v23, %v3958_v60  ;;  %v9865_v61 = vadd.f32 %v9864_v51, %v9863_v20  ;;  %v9866_v58 = vpop.f32.mrb[106].mxu1  ;;  %v13500_v22 = vsel %vm1163_vm8, %v15557_v39, %v4076_v13  ;;  %4426 = vmatprep.mubr.bf16.mxu0 %v4172_v30 }
 0x75a   : > { %v9867_v14 = vpop.f32.mrb[107].mxu1  ;;  %v4153_v1 = vsel %vm1212_vm1, %v15556_v32, %v4124_v7 }
 0x75b   : > { %v13506_v12 = vmax.f32 %v4043_v29, 0.0  ;;  %v4044_v3 = vadd.f32 %v13480_v16, %v4020_v34  ;;  %v3866_v57 = vadd.f32 %v9865_v61, %v13462_v52  ;;  %v9868_v28 = vadd.f32 %v9867_v14, %v9866_v58 }
 0x75d   : > { %v13510_v36 = vmax.f32 %v4044_v3, 0.0  ;;  %v3963_v54 = vadd.f32 %v3962_v11, %v3866_v57  ;;  %v3869_v25 = vadd.f32 %v9868_v28, %v13462_v52  ;;  %v4125_v5 = vrot.slane %v13506_v12, 1 }
 0x75e   : > { %v4077_v60 = vrot.slane %v13506_v12, 7 }
 0x75f   : > { %v4126_v20 = vrot.slane %v13510_v36, 1  ;;  %v4021_v30 = vmul.f32 %v13474_v23, %v3963_v54  ;;  %v3966_v51 = vadd.f32 %v13447_v24, %v3869_v25  ;;  %v9869_v29 = vpop.f32.mrb[108].mxu1  ;;  %v4152_v34 = vsel %vm1212_vm1, %v4124_v7, %v4125_v5 }
 0x760   : > { %v9870_v61 = vpop.f32.mrb[109].mxu1  ;;  %v4173_v58 = vpack.c.bf16 %v4152_v34, %v4153_v1  ;;  %v4078_v14 = vrot.slane %v13510_v36, 7  ;;  %v13525_v3 = vsel %vm1163_vm8, %v4076_v13, %v4077_v60 }
 0x761   : > { %v4045_v57 = vadd.f32 %v13480_v16, %v4021_v30  ;;  %v4022_v28 = vmul.f32 %v13474_v23, %v3966_v51  ;;  %v9871_v24 = vadd.f32 %v9870_v61, %v9869_v29  ;;  %v9872_v54 = vpop.f32.mrb[110].mxu1  ;;  %v4151_v7 = vsel %vm1212_vm1, %v4125_v5, %v4126_v20 }
 0x762   : > { %v9873_v25 = vpop.f32.mrb[111].mxu1  ;;  %10559 = vmatprep.mubr.bf16.mxu1 %v4173_v58  ;;  %v13533_v1 = vsel %vm1163_vm8, %v4077_v60, %v4078_v14 }
 0x763   : > { %v13535_v34 = vmax.f32 %v4045_v57, 0.0  ;;  %v4046_v13 = vadd.f32 %v13480_v16, %v4022_v28  ;;  %v3874_v11 = vadd.f32 %v9871_v24, %v13462_v52  ;;  %v9874_v30 = vadd.f32 %v9873_v25, %v9872_v54 }
 0x765   : > { %v4127_v29 = vrot.slane %v13535_v34, 1  ;;  %v13542_v61 = vmax.f32 %v4046_v13, 0.0  ;;  %v3971_v5 = vadd.f32 %v13443_v19, %v3874_v11  ;;  %v3877_v58 = vadd.f32 %v9874_v30, %v13462_v52 }
 0x766   : > { %v4079_v60 = vrot.slane %v13535_v34, 7 }
 0x767   : > { %v4023_v57 = vmul.f32 %v13474_v23, %v3971_v5  ;;  %v3974_v28 = vadd.f32 %v13445_v27, %v3877_v58  ;;  %v4150_v24 = vsel %vm1212_vm1, %v4126_v20, %v4127_v29  ;;  %v9875_v54 = vpop.f32.mrb[112].mxu1  ;;  %v4128_v25 = vrot.slane %v13542_v61, 1 }
 0x768   : > { %v9053_v51 = vpack.c.bf16 %v4150_v24, %v4151_v7  ;;  %v9876_v32 = vpop.f32.mrb[113].mxu1  ;;  %v4080_v19 = vrot.slane %v13542_v61, 7  ;;  %v13557_v11 = vsel %vm1163_vm8, %v4078_v14, %v4079_v60 }
 0x769   : > { %v4047_v30 = vadd.f32 %v13480_v16, %v4023_v57  ;;  %v4024_v27 = vmul.f32 %v13474_v23, %v3974_v28  ;;  %v9877_v5 = vadd.f32 %v9876_v32, %v9875_v54  ;;  %v9878_v20 = vpop.f32.mrb[114].mxu1  ;;  %v4149_v58 = vsel %vm1212_vm1, %v4127_v29, %v4128_v25 }
 0x76a   : > { %v9879_v7 = vpop.f32.mrb[115].mxu1  ;;  %10560 = vmatmul.mubr.msk.bf16.vlgmr.msra.gmra.mrb[128].mxu1 %vm11979_vm4, %v9053_v51  ;;  %v13567_v24 = vsel %vm1163_vm8, %v4079_v60, %v4080_v19  ;;  %vm5148_vm4 = vcmask 1041409  }
 0x76b   : > { %v13569_v13 = vmax.f32 %v4047_v30, 0.0  ;;  %v4048_v14 = vadd.f32 %v13480_v16, %v4024_v27  ;;  %v3882_v57 = vadd.f32 %v9877_v5, %v13462_v52  ;;  %v9880_v28 = vadd.f32 %v9879_v7, %v9878_v20 }
 0x76d   : > { %v13575_v54 = vmax.f32 %v4048_v14, 0.0  ;;  %v3979_v29 = vadd.f32 %v13451_v21, %v3882_v57  ;;  %v3885_v4 = vadd.f32 %v9880_v28, %v13462_v52  ;;  %v4129_v51 = vrot.slane %v13569_v13, 1 }
 0x76e   : > { %v4081_v60 = vrot.slane %v13569_v13, 7 }
 0x76f   : > { %v4025_v30 = vmul.f32 %v13474_v23, %v3979_v29  ;;  %v3982_v27 = vadd.f32 %v13455_v9, %v3885_v4  ;;  %v9881_v39 = vpop.f32.mrb[116].mxu1  ;;  %v4148_v5 = vsel %vm1212_vm1, %v4128_v25, %v4129_v51  ;;  %v4130_v20 = vrot.slane %v13575_v54, 1 }
 0x770   : > { %v9882_v7 = vpop.f32.mrb[117].mxu1  ;;  %v4179_v14 = vpack.c.bf16 %v4148_v5, %v4149_v58  ;;  %v4082_v57 = vrot.slane %v13575_v54, 7  ;;  %v13591_v28 = vsel %vm1163_vm8, %v4080_v19, %v4081_v60  ;;  %v15700_v62 = vpack.c.bf16 %v13575_v54, %v13569_v13  ;;  %v11011_v13 = vld [vmem:[#allocation10 + $0xa8] sm:$0xff]   ;;  %v11015_v54 = vld [vmem:[#allocation10] sm:$0xff]  }
 0x771   : > { %v4049_v29 = vadd.f32 %v13480_v16, %v4025_v30  ;;  %v4026_v9 = vmul.f32 %v13474_v23, %v3982_v27  ;;  %v9883_v4 = vadd.f32 %v9882_v7, %v9881_v39  ;;  %v9884_v32 = vpop.f32.mrb[118].mxu1  ;;  %v4147_v25 = vsel %vm1212_vm1, %v4129_v51, %v4130_v20 }
 0x772   : > { %v9885_v46 = vpop.f32.mrb[119].mxu1  ;;  %10563 = vmatprep.mubr.bf16.mxu1 %v4179_v14  ;;  %v13599_v58 = vsel %vm1163_vm8, %v4081_v60, %v4082_v57 }
 0x773   : > { %v13601_v5 = vmax.f32 %v4049_v29, 0.0  ;;  %v4050_v19 = vadd.f32 %v13480_v16, %v4026_v9  ;;  %v3890_v21 = vadd.f32 %v9883_v4, %v13462_v52  ;;  %v9886_v30 = vadd.f32 %v9885_v46, %v9884_v32 }
 0x774   : > { %v15701_v8 = vpack.c.bf16 %v13599_v58, %v13591_v28  ;;  %v11016_v28 = vld [vmem:[#allocation10 + $0x48] sm:$0xff]  }
 0x775   : > { %v13607_v27 = vmax.f32 %v4050_v19, 0.0  ;;  %v3987_v51 = vadd.f32 %v13449_v15, %v3890_v21  ;;  %v3893_v7 = vadd.f32 %v9886_v30, %v13462_v52  ;;  %v4131_v14 = vrot.slane %v13601_v5, 1  ;;  %v11017_v58 = vld [vmem:[#allocation10 + $0x8] sm:$0xff]  }
 0x776   : > { %v4083_v60 = vrot.slane %v13601_v5, 7 }
 0x777   : > { %v4027_v29 = vmul.f32 %v13474_v23, %v3987_v51  ;;  %v3990_v9 = vadd.f32 %v13453_v50, %v3893_v7  ;;  %v9887_v55 = vpop.f32.mrb[120].mxu1  ;;  %v4146_v46 = vsel %vm1212_vm1, %v4130_v20, %v4131_v14  ;;  %v4132_v32 = vrot.slane %v13607_v27, 1 }
 0x778   : > { %v9888_v4 = vpop.f32.mrb[121].mxu1  ;;  %v9057_v19 = vpack.c.bf16 %v4146_v46, %v4147_v25  ;;  %v4084_v21 = vrot.slane %v13607_v27, 7  ;;  %v13623_v30 = vsel %vm1163_vm8, %v4082_v57, %v4083_v60 }
 0x779   : > { %v4051_v51 = vadd.f32 %v13480_v16, %v4027_v29  ;;  %v4028_v50 = vmul.f32 %v13474_v23, %v3990_v9  ;;  %v9889_v7 = vadd.f32 %v9888_v4, %v9887_v55  ;;  %v9890_v39 = vpop.f32.mrb[122].mxu1  ;;  %v4145_v20 = vsel %vm1212_vm1, %v4131_v14, %v4132_v32 }
 0x77a   : > { %v9891_v17 = vpop.f32.mrb[123].mxu1  ;;  %10564 = vmatmul.mubr.msk.bf16.gmra.mrb[132].mxu1 %vm12037_vm6, %v9057_v19  ;;  %v13633_v25 = vsel %vm1163_vm8, %v4083_v60, %v4084_v21  ;;  %vm5150_vm6 = vcmask 1042434  }
 0x77b   : > { %v13635_v46 = vmax.f32 %v4051_v51, 0.0  ;;  %v4052_v57 = vadd.f32 %v13480_v16, %v4028_v50  ;;  %v3898_v29 = vadd.f32 %v9889_v7, %v13462_v52  ;;  %v9892_v9 = vadd.f32 %v9891_v17, %v9890_v39 }
 0x77d   : > { %v13641_v4 = vmax.f32 %v4052_v57, 0.0  ;;  %v3995_v14 = vadd.f32 %v13464_v2, %v3898_v29  ;;  %v3901_v37 = vadd.f32 %v9892_v9, %v13462_v52  ;;  %v4133_v19 = vrot.slane %v13635_v46, 1 }
 0x77e   : > { %v4085_v60 = vrot.slane %v13635_v46, 7 }
 0x77f   : > { %v4029_v51 = vmul.f32 %v13474_v23, %v3995_v14  ;;  %v3998_v50 = vadd.f32 %v13468_v43, %v3901_v37  ;;  %v9893_v15 = vpop.f32.mrb[124].mxu1  ;;  %v4144_v17 = vsel %vm1212_vm1, %v4132_v32, %v4133_v19  ;;  %v4134_v39 = vrot.slane %v13641_v4, 1 }
 0x780   : > { %v9894_v7 = vpop.f32.mrb[125].mxu1  ;;  %v4185_v57 = vpack.c.bf16 %v4144_v17, %v4145_v20  ;;  %v4086_v29 = vrot.slane %v13641_v4, 7  ;;  %v13657_v9 = vsel %vm1163_vm8, %v4084_v21, %v4085_v60  ;;  %v15704_v44 = vpack.c.bf16 %v13641_v4, %v13635_v46  ;;  %v11020_v46 = vld [vmem:[#allocation10 + $0x58] sm:$0xff]  }
 0x781   : > { %v4053_v14 = vadd.f32 %v13480_v16, %v4029_v51  ;;  %v4030_v43 = vmul.f32 %v13474_v23, %v3998_v50  ;;  %v9895_v37 = vadd.f32 %v9894_v7, %v9893_v15  ;;  %v9896_v55 = vpop.f32.mrb[126].mxu1  ;;  %v4143_v32 = vsel %vm1212_vm1, %v4133_v19, %v4134_v39 }
 0x782   : > { %v9897_v6 = vpop.f32.mrb[127].mxu1  ;;  %10567 = vmatprep.mubr.bf16.mxu1 %v4185_v57  ;;  %v4095_v20 = vsel %vm1163_vm8, %v4085_v60, %v4086_v29 }
 0x783   : > { %v4069_v17 = vmax.f32 %v4053_v14, 0.0  ;;  %v4054_v2 = vadd.f32 %v13480_v16, %v4030_v43  ;;  %v3906_v21 = vadd.f32 %v9895_v37, %v13462_v52  ;;  %v9898_v42 = vadd.f32 %v9897_v6, %v9896_v55 }
 0x784   : > { %v4186_v51 = vpack.c.bf16 %v4095_v20, %v13657_v9 }
 0x785   : > { %v4070_v26 = vmax.f32 %v4054_v2, 0.0  ;;  %v4003_v15 = vadd.f32 %v13457_v49, %v3906_v21  ;;  %v3909_v50 = vadd.f32 %v9898_v42, %v13462_v52  ;;  %v4135_v7 = vrot.slane %v4069_v17, 1 }
 0x786   : > { %v4087_v19 = vrot.slane %v4069_v17, 7 }
 0x787   : > { %v4031_v57 = vmul.f32 %v13474_v23, %v4003_v15  ;;  %v4006_v38 = vadd.f32 %v13466_v47, %v3909_v50  ;;  %v4142_v60 = vsel %vm1212_vm1, %v4134_v39, %v4135_v7  ;;  %v4136_v14 = vrot.slane %v4070_v26, 1 }
 0x788   : > { %v9061_v43 = vpack.c.bf16 %v4142_v60, %v4143_v32  ;;  %v4190_v37 = vpack.c.bf16 %v4070_v26, %v4069_v17  ;;  %v4088_v6 = vrot.slane %v4070_v26, 7  ;;  %v4094_v55 = vsel %vm1163_vm8, %v4086_v29, %v4087_v19 }
 0x789   : > { %v4055_v49 = vadd.f32 %v13480_v16, %v4031_v57  ;;  %v4032_v42 = vmul.f32 %v13474_v23, %v4006_v38  ;;  %v4141_v52 = vsel %vm1212_vm1, %v4135_v7, %v4136_v14  ;;  %v15694_v15 = vrot.slane %v13487_v40, 7 }
 0x78a   : > { %10568 = vmatmul.mubr.msk.bf16.gmra.mrb[136].mxu1 %vm12078_vm10, %v9061_v43  ;;  %v4093_v47 = vsel %vm1163_vm8, %v4087_v19, %v4088_v6  ;;  %v15695_v7 = vrot.slane %v13487_v40, 1  ;;  %v15696_v40 = vpack.c.bf16 %v13510_v36, %v13506_v12  ;;  %v15702_v12 = vpack.c.bf16 %v13607_v27, %v13601_v5  ;;  %v11018_v27 = vld [vmem:[#allocation10 + $0x50] sm:$0xff]  }
 0x78b   : > { %v4071_v39 = vmax.f32 %v4055_v49, 0.0  ;;  %v4056_v2 = vadd.f32 %v13480_v16, %v4032_v42  ;;  %v9049_v26 = vpack.c.bf16 %v4093_v47, %v4094_v55  ;;  %v15698_v55 = vpack.c.bf16 %v13542_v61, %v13535_v34  ;;  %v11008_v34 = vld [vmem:[#allocation10 + $0x90] sm:$0xff]   ;;  %v11010_v61 = vld [vmem:[#allocation10 + $0xa0] sm:$0xff]   ;;  %v11025_v47 = vld [vmem:[#allocation10 + $0x28] sm:$0xff]  }
 0x78c   : > { %v15703_v36 = vpack.c.bf16 %v13633_v25, %v13623_v30  ;;  %v11019_v30 = vld [vmem:[#allocation10 + $0x10] sm:$0xff]   ;;  %v11022_v49 = vld [vmem:[#allocation10 + $0x60] sm:$0xff]   ;;  %vm5154_vm10 = vcmask 1044484  }
 0x78d   : > { %v4072_v9 = vmax.f32 %v4056_v2, 0.0  ;;  %v4137_v32 = vrot.slane %v4071_v39, 1  ;;  %v4089_v29 = vrot.slane %v4071_v39, 7  ;;  %v11023_v42 = vld [vmem:[#allocation10 + $0x20] sm:$0xff]  }
 0x78f   : > { %v4090_v20 = vrot.slane %v4072_v9, 7  ;;  %v4140_v38 = vsel %vm1212_vm1, %v4136_v14, %v4137_v32  ;;  %v4138_v23 = vrot.slane %v4072_v9, 1  ;;  %v4193_v17 = vpack.c.bf16 %v4072_v9, %v4071_v39  ;;  %v11026_v39 = vld [vmem:[#allocation10 + $0x70] sm:$0xff]  }
 0x790   : > { %v4191_v21 = vpack.c.bf16 %v4140_v38, %v4141_v52  ;;  %v4092_v41 = vsel %vm1163_vm8, %v4088_v6, %v4089_v29  ;;  %v15697_v6 = vpack.c.bf16 %v13533_v1, %v13525_v3  ;;  %v11006_v3 = vld [vmem:[#allocation10 + $0x80] sm:$0xff]   ;;  %v11007_v1 = vld [vmem:[#allocation10 + $0x88] sm:$0xff]   ;;  %v11029_v38 = vld [vmem:[#allocation10 + $0x38] sm:$0xff]  }
 0x791   : > { %v4106_v50 = vsel %vm1163_vm8, %v4090_v20, %v15694_v15  ;;  %v4139_v16 = vsel %vm1212_vm1, %v4137_v32, %v4138_v23  ;;  %v4154_v19 = vsel %vm1212_vm1, %v4138_v23, %v15695_v7  ;;  %v4091_v57 = vsel %vm1163_vm8, %v4089_v29, %v4090_v20  ;;  %10575 = vmatprep.subr.bf16.mxu0 %v11006_v3  ;;  %v11024_v52 = vld [vmem:[#allocation10 + $0x68] sm:$0xff]   ;;  %v11028_v32 = vld [vmem:[#allocation10 + $0x78] sm:$0xff]  }
 0x792   : > { %10571 = vmatprep.mubr.bf16.mxu1 %v4191_v21  ;;  %v9037_v60 = vpack.c.bf16 %v13500_v22, %v4106_v50  ;;  %v9065_v14 = vpack.c.bf16 %v4154_v19, %v4139_v16  ;;  %v4192_v43 = vpack.c.bf16 %v4091_v57, %v4092_v41  ;;  %v15699_v22 = vpack.c.bf16 %v13567_v24, %v13557_v11  ;;  %v11013_v11 = vld [vmem:[#allocation10 + $0xb8] sm:$0xff]   ;;  %v11014_v24 = vld [vmem:[#allocation10 + $0x40] sm:$0xff]  }
 0x793   : > { %9995 = vmatprep.subr.bf16.mxu1 %v11014_v24  ;;  %v11464_v15 = vmov 1983009808   ;;  %v13764_v19 = vld [vmem:[%s15638_s24 + $0x5] ss:$0 sm:$0xff] }
 0x794   : > { %9038 = vmatmul.mubr.msk.bf16.vlgmr.msra.gmra.mrb[128].mxu0 %vm12091_vm11, %v9037_v60  ;;  %10572 = vmatmul.mubr.msk.bf16.gmra.mrb[140].mxu1 %vm12122_vm13, %v9065_v14  ;;  %v4622_v50 = vunpack.c.l.s4 %v11464_v15  ;;  %vm5156_vm11 = vcmask 1045509   ;;  %vm5160_vm13 = vcmask 1047559  }
 0x795   : > { %4434 = vmatprep.mubr.bf16.mxu0 %v15696_v40  ;;  %10576 = vmatpush3.bf16.msra.mxu0 %v11006_v3 }
 0x796   : > { %10577 = vmatprep.subr.bf16.mxu0 %v11007_v1  ;;  %9996 = vmatpush3.bf16.msra.mxu1 %v11015_v54 }
 0x797   : > { %9997 = vmatprep.subr.bf16.mxu1 %v11016_v28 }
 0x799   : > { %10578 = vmatpush3.bf16.msra.mxu0 %v11007_v1  ;;  %v13779_v1 = vsub.s32 1, %v11867_v59 }
 0x79a   : > { %10579 = vmatprep.subr.bf16.mxu0 %v11008_v34  ;;  %9998 = vmatpush3.bf16.msra.mxu1 %v11017_v58 }
 0x79b   : > { %9999 = vmatprep.subr.bf16.mxu1 %v11018_v27 }
 0x79c   : > { %4435 = vmatmul.mubr.bf16.gmra.mrb[132].mxu0 %v15697_v6 }
 0x79d   : > { %4442 = vmatprep.mubr.bf16.mxu0 %v15698_v55  ;;  %10580 = vmatpush3.bf16.msra.mxu0 %v11008_v34 }
 0x79e   : > { %10581 = vmatprep.subr.bf16.mxu0 %v11009_v10  ;;  %10000 = vmatpush3.bf16.msra.mxu1 %v11019_v30 }
 0x79f   : > { %10001 = vmatprep.subr.bf16.mxu1 %v11020_v46 }
 0x7a1   : > { %10582 = vmatpush3.bf16.msra.mxu0 %v11009_v10 }
 0x7a2   : > { %10583 = vmatprep.subr.bf16.mxu0 %v11010_v61 }
 0x7a4   : > { %9042 = vmatmul.mubr.msk.bf16.gmra.mrb[136].mxu0 %vm12138_vm15, %v15699_v22 }
 0x7a5   : > { %4450 = vmatprep.mubr.bf16.mxu0 %v15700_v62  ;;  %10584 = vmatpush3.bf16.msra.mxu0 %v11010_v61  ;;  %v13782_v61 = vadd.s32 16, %v11867_v59 }
 0x7a6   : > { %10585 = vmatprep.subr.bf16.mxu0 %v11011_v13 }
 0x7a7   : > { %15705 = vst [vmem:[#allocation26_spill] sm:$0xff] %v13782_v61 }
 0x7a9   : > { %10586 = vmatpush3.bf16.msra.mxu0 %v11011_v13  ;;  %v13785_v13 = vsub.s32 0, %v11867_v59 }
 0x7aa   : > { %10587 = vmatprep.subr.bf16.mxu0 %v11012_v35 }
 0x7ac   : > { %4451 = vmatmul.mubr.bf16.gmra.mrb[140].mxu0 %v15701_v8 }
 0x7ad   : > { %4458 = vmatprep.mubr.bf16.mxu0 %v15702_v12  ;;  %10588 = vmatpush3.bf16.msra.mxu0 %v11012_v35 }
 0x7ae   : > { %10589 = vmatprep.subr.bf16.mxu0 %v11013_v11 }
 0x7b1   : > { %10590 = vmatpush3.bf16.msra.mxu0 %v11013_v11 }
 0x7b4   : > { %9046 = vmatmul.mubr.msk.bf16.gmra.mrb[144].mxu0 %vm12162_vm2, %v15703_v36 }
 0x7b5   : > { %4466 = vmatprep.mubr.bf16.mxu0 %v15704_v44 }
 0x7bc   : > { %4467 = vmatmul.mubr.bf16.gmra.mrb[148].mxu0 %v4186_v51 }
 0x7bd   : > { %4474 = vmatprep.mubr.bf16.mxu0 %v4190_v37  ;;  %v11021_v37 = vld [vmem:[#allocation10 + $0x18] sm:$0xff]  }
 0x7be   : > { %10002 = vmatpush3.bf16.msra.mxu1 %v11021_v37 }
 0x7bf   : > { %10003 = vmatprep.subr.bf16.mxu1 %v11022_v49 }
 0x7c2   : > { %10004 = vmatpush3.bf16.msra.mxu1 %v11023_v42 }
 0x7c3   : > { %10005 = vmatprep.subr.bf16.mxu1 %v11024_v52 }
 0x7c4   : > { %9050 = vmatmul.mubr.msk.bf16.gmra.mrb[152].mxu0 %vm12186_vm7, %v9049_v26  ;;  %v11027_v26 = vld [vmem:[#allocation10 + $0x30] sm:$0xff]  }
 0x7c5   : > { %4482 = vmatprep.mubr.bf16.mxu0 %v4193_v17 }
 0x7c6   : > { %10006 = vmatpush3.bf16.msra.mxu1 %v11025_v47 }
 0x7c7   : > { %10007 = vmatprep.subr.bf16.mxu1 %v11026_v39 }
 0x7ca   : > { %10008 = vmatpush3.bf16.msra.mxu1 %v11027_v26 }
 0x7cb   : > { %10009 = vmatprep.subr.bf16.mxu1 %v11028_v32 }
 0x7cc   : > { %4483 = vmatmul.mubr.bf16.gmra.mrb[156].mxu0 %v4192_v43  ;;  %v4623_v43 = vunpack.c.0.s8 %v4622_v50 }
 0x7ce   : > { %10010 = vmatpush3.bf16.msra.mxu1 %v11029_v38  ;;  %v13774_v36 = vsub.s32 %v4623_v43, %v11867_v59 }
 0x83d   : > { %v13739_v5 = vpop.f32.mrb[128].mxu1 }
 0x83e   : > { %v4525_v25 = vpop.f32.mrb[129].mxu1 }
 0x83f   : > { %v13741_v4 = vpop.f32.mrb[130].mxu1 }
 0x840   : > { %v4528_v51 = vpop.f32.mrb[131].mxu1 }
 0x84d   : > { %v13743_v2 = vpop.f32.mrb[132].mxu1 }
 0x84e   : > { %v13745_v9 = vpop.f32.mrb[133].mxu1 }
 0x84f   : > { %v13747_v29 = vpop.f32.mrb[134].mxu1 }
 0x850   : > { %v13749_v20 = vpop.f32.mrb[135].mxu1 }
 0x85d   : > { %v13751_v23 = vpop.f32.mrb[136].mxu1 }
 0x85e   : > { %v13753_v17 = vpop.f32.mrb[137].mxu1 }
 0x85f   : > { %v13755_v21 = vpop.f32.mrb[138].mxu1 }
 0x860   : > { %v13757_v41 = vpop.f32.mrb[139].mxu1 }
 0x867   : > { %v9931_v16 = vpop.f32.mrb[128].mxu0  ;;  %v13759_v7 = vpop.f32.mrb[140].mxu1 }
 0x868   : > { %v9932_v57 = vpop.f32.mrb[129].mxu0  ;;  %v13766_v60 = vpop.f32.mrb[141].mxu1 }
 0x869   : > { %v9933_v14 = vadd.f32 %v9932_v57, %v9931_v16  ;;  %v9934_v40 = vpop.f32.mrb[130].mxu0  ;;  %v13768_v6 = vpop.f32.mrb[142].mxu1 }
 0x86a   : > { %v9935_v55 = vpop.f32.mrb[131].mxu0  ;;  %v13770_v22 = vpop.f32.mrb[143].mxu1 }
 0x86b   : > { %v4429_v62 = vadd.f32 %v9933_v14, %v13764_v19  ;;  %v9936_v8 = vadd.f32 %v9935_v55, %v9934_v40 }
 0x86d   : > { %v4526_v12 = vadd.f32 %v4525_v25, %v4429_v62  ;;  %v4432_v44 = vadd.f32 %v9936_v8, %v13764_v19 }
 0x86f   : > { %v4588_v3 = vadd.f32 %v4526_v12, %v13151_v33  ;;  %v4529_v34 = vadd.f32 %v4528_v51, %v4432_v44  ;;  %v9937_v10 = vpop.f32.mrb[132].mxu0 }
 0x870   : > { %v9938_v35 = vpop.f32.mrb[133].mxu0 }
 0x871   : > { %v4620_v11 = vcombine.high %v4588_v3, %v4588_v3  ;;  %v4627_v24 = vrot.slane %v4588_v3, %v13774_v36  ;;  %v4589_v33 = vadd.f32 %v4529_v34, %v13156_v0  ;;  %v9939_v54 = vadd.f32 %v9938_v35, %v9937_v10  ;;  %v9940_v28 = vpop.f32.mrb[134].mxu0 }
 0x872   : > { %v9941_v58 = vpop.f32.mrb[135].mxu0 }
 0x873   : > { %v13791_v30 = vrot.slane %v4620_v11, %v13774_v36  ;;  %v4635_v25 = vcombine.high %v4627_v24, %v4627_v24  ;;  %v4637_v49 = vcombine.high %v4589_v33, %v4589_v33  ;;  %v13796_v42 = vrot.slane %v4589_v33, %v13774_v36 }
 0x874   : > { %v4437_v0 = vadd.f32 %v9939_v54, %v13764_v19  ;;  %v9942_v52 = vadd.f32 %v9941_v58, %v9940_v28  ;;  %v5246_v26 = vrot.slane %v4627_v24, %v13785_v13  ;;  %v4895_v38 = vrot.slane %v4627_v24, %v13779_v1 }
 0x875   : > { %v13801_v47 = vcombine.high %v13791_v30, %v13791_v30  ;;  %v4899_v39 = vrot.slane %v4635_v25, %v13779_v1  ;;  %v5250_v32 = vrot.slane %v4635_v25, %v13785_v13  ;;  %v5254_v15 = vrot.slane %v13791_v30, %v13785_v13 }
 0x876   : > { %v13810_v50 = vrot.slane %v4637_v49, %v13774_v36  ;;  %v13814_v16 = vcombine.high %v13796_v42, %v13796_v42  ;;  %v4534_v12 = vadd.f32 %v13739_v5, %v4437_v0  ;;  %v4440_v44 = vadd.f32 %v9942_v52, %v13764_v19 }
 0x877   : > { %v5258_v14 = vrot.slane %v13801_v47, %v13785_v13  ;;  %v5499_v43 = vsel %vm5148_vm4, %v5250_v32, %v5246_v26  ;;  %v9943_v55 = vpop.f32.mrb[136].mxu0  ;;  %v13826_v8 = vsel %vm5148_vm4, %v4899_v39, %v4895_v38  ;;  %v5262_v34 = vrot.slane %v13796_v42, %v13785_v13 }
 0x878   : > { %v9944_v3 = vpop.f32.mrb[137].mxu0  ;;  %v13834_v11 = vcombine.high %v13810_v50, %v13810_v50  ;;  %v5500_v24 = vsel %vm5150_vm6, %v5254_v15, %v5499_v43  ;;  %v4590_v33 = vadd.f32 %v4534_v12, %v13170_v48  ;;  %v4537_v54 = vadd.f32 %v13741_v4, %v4440_v44 }
 0x879   : > { %v9945_v10 = vadd.f32 %v9944_v3, %v9943_v55  ;;  %v9946_v35 = vpop.f32.mrb[138].mxu0  ;;  %v5266_v5 = vrot.slane %v13814_v16, %v13785_v13  ;;  %v5501_v58 = vsel %vm5152_vm9, %v5258_v14, %v5500_v24  ;;  %v5270_v0 = vrot.slane %v13810_v50, %v13785_v13 }
 0x87a   : > { %v9947_v28 = vpop.f32.mrb[139].mxu0  ;;  %v5502_v52 = vsel %vm5154_vm10, %v5262_v34, %v5501_v58  ;;  %v4654_v39 = vcombine.high %v4590_v33, %v4590_v33  ;;  %v4661_v26 = vrot.slane %v4590_v33, %v13774_v36  ;;  %v4591_v48 = vadd.f32 %v4537_v54, %v13179_v56 }
 0x87b   : > { %v4445_v25 = vadd.f32 %v9945_v10, %v13764_v19  ;;  %v9948_v49 = vadd.f32 %v9947_v28, %v9946_v35  ;;  %v5503_v4 = vsel %vm5156_vm11, %v5266_v5, %v5502_v52  ;;  %v5274_v15 = vrot.slane %v13834_v11, %v13785_v13 }
 0x87c   : > { %v13854_v14 = vsel %vm5158_vm12, %v5270_v0, %v5503_v4  ;;  %v13857_v43 = vrot.slane %v4654_v39, %v13774_v36  ;;  %v4669_v55 = vcombine.high %v4661_v26, %v4661_v26  ;;  %v4671_v44 = vcombine.high %v4591_v48, %v4591_v48 }
 0x87d   : > { %v4542_v32 = vadd.f32 %v13745_v9, %v4445_v25  ;;  %v4448_v38 = vadd.f32 %v9948_v49, %v13764_v19  ;;  %v13864_v9 = vrot.slane %v4591_v48, %v13774_v36  ;;  %v4927_v24 = vrot.slane %v4661_v26, %v13779_v1 }
 0x87e   : > { %v13870_v35 = vcombine.high %v13857_v43, %v13857_v43  ;;  %v4931_v33 = vrot.slane %v4669_v55, %v13779_v1  ;;  %v5282_v54 = vrot.slane %v4669_v55, %v13785_v13  ;;  %v5278_v58 = vrot.slane %v4661_v26, %v13785_v13 }
 0x87f   : > { %v4592_v3 = vadd.f32 %v4542_v32, %v13193_v18  ;;  %v4545_v34 = vadd.f32 %v13749_v20, %v4448_v38  ;;  %v9949_v10 = vpop.f32.mrb[140].mxu0  ;;  %v5286_v18 = vrot.slane %v13857_v43, %v13785_v13  ;;  %v13881_v20 = vrot.slane %v4671_v44, %v13774_v36 }
 0x880   : > { %v9950_v28 = vpop.f32.mrb[141].mxu0  ;;  %v13886_v0 = vsel %vm5148_vm4, %v4931_v33, %v4927_v24  ;;  %v13890_v52 = vcombine.high %v13864_v9, %v13864_v9  ;;  %v5290_v48 = vrot.slane %v13870_v35, %v13785_v13  ;;  %v5506_v55 = vsel %vm5148_vm4, %v5282_v54, %v5278_v58 }
 0x881   : > { %v9952_v25 = vpop.f32.mrb[142].mxu0  ;;  %v4688_v4 = vcombine.high %v4592_v3, %v4592_v3  ;;  %v4695_v32 = vrot.slane %v4592_v3, %v13774_v36  ;;  %v4593_v38 = vadd.f32 %v4545_v34, %v13202_v63  ;;  %v9951_v24 = vadd.f32 %v9950_v28, %v9949_v10 }
 0x882   : > { %v9953_v26 = vpop.f32.mrb[143].mxu0  ;;  %v13907_v56 = vcombine.high %v13881_v20, %v13881_v20 }
 0x883   : > { %v9954_v33 = vadd.f32 %v9953_v26, %v9952_v25  ;;  %v13902_v37 = vrot.slane %v4688_v4, %v13774_v36  ;;  %v4703_v46 = vcombine.high %v4695_v32, %v4695_v32  ;;  %v4959_v27 = vrot.slane %v4695_v32, %v13779_v1 }
 0x884   : > { %v4705_v3 = vcombine.high %v4593_v38, %v4593_v38  ;;  %v13910_v63 = vrot.slane %v4593_v38, %v13774_v36  ;;  %v4453_v34 = vadd.f32 %v9951_v24, %v13764_v19  ;;  %v5310_v4 = vrot.slane %v4695_v32, %v13785_v13 }
 0x885   : > { %v4456_v54 = vadd.f32 %v9954_v33, %v13764_v19  ;;  %v13916_v10 = vcombine.high %v13902_v37, %v13902_v37  ;;  %v4963_v28 = vrot.slane %v4703_v46, %v13779_v1  ;;  %v4967_v58 = vrot.slane %v13902_v37, %v13779_v1 }
 0x886   : > { %15707 = vst [vmem:[#allocation28_spill] sm:$0xff] %v13910_v63  ;;  %v5314_v25 = vrot.slane %v4703_v46, %v13785_v13  ;;  %v13924_v38 = vrot.slane %v4705_v3, %v13774_v36  ;;  %v13928_v24 = vcombine.high %v13910_v63, %v13910_v63  ;;  %v4975_v32 = vrot.slane %v13910_v63, %v13779_v1 }
 0x887   : > { %15708 = vst [vmem:[#allocation32_spill] sm:$0xff] %v13916_v10  ;;  %v9955_v26 = vpop.f32.mrb[144].mxu0  ;;  %v4971_v39 = vrot.slane %v13916_v10, %v13779_v1  ;;  %v5169_v40 = vsel %vm5148_vm4, %v4963_v28, %v4959_v27  ;;  %v4550_v12 = vadd.f32 %v13743_v2, %v4453_v34  ;;  %v13974_v2 = vsel %vm5160_vm13, %v5274_v15, %v13854_v14 }
 0x888   : > { %v9956_v33 = vpop.f32.mrb[145].mxu0  ;;  %v5170_v49 = vsel %vm5150_vm6, %v4967_v58, %v5169_v40  ;;  %v13945_v5 = vsel %vm5148_vm4, %v5314_v25, %v5310_v4  ;;  %v13949_v57 = vcombine.high %v13924_v38, %v13924_v38  ;;  %v4553_v40 = vadd.f32 %v13747_v29, %v4456_v54 }
 0x889   : > { %v13939_v3 = vpop.f32.mrb[146].mxu0  ;;  %v5171_v46 = vsel %vm5152_vm9, %v4971_v39, %v5170_v49  ;;  %v9957_v62 = vadd.f32 %v9956_v33, %v9955_v26  ;;  %v4594_v28 = vadd.f32 %v4550_v12, %v13222_v45  ;;  %v5302_v39 = vrot.slane %v13881_v20, %v13785_v13 }
 0x88a   : > { %v13951_v27 = vpop.f32.mrb[147].mxu0  ;;  %v13961_v25 = vsel %vm5154_vm10, %v4975_v32, %v5171_v46  ;;  %v4595_v49 = vadd.f32 %v4553_v40, %v13232_v31  ;;  %v5306_v34 = vrot.slane %v13907_v56, %v13785_v13  ;;  %v5507_v54 = vsel %vm5150_vm6, %v5286_v18, %v5506_v55 }
 0x88b   : > { %v4461_v29 = vadd.f32 %v9957_v62, %v13764_v19  ;;  %v4722_v45 = vcombine.high %v4594_v28, %v4594_v28  ;;  %v4729_v31 = vrot.slane %v4594_v28, %v13774_v36  ;;  %v5508_v62 = vsel %vm5152_vm9, %v5290_v48, %v5507_v54 }
 0x88c   : > { %v4739_v12 = vcombine.high %v4595_v49, %v4595_v49  ;;  %v13984_v26 = vrot.slane %v4595_v49, %v13774_v36  ;;  %v4947_v46 = vrot.slane %v13890_v52, %v13779_v1  ;;  %v15711_v28 = vrot.slane %v13864_v9, %v13785_v13 }
 0x88d   : > { %v4558_v15 = vadd.f32 %v13753_v17, %v4461_v29  ;;  %v13997_v55 = vrot.slane %v4722_v45, %v13774_v36  ;;  %v4737_v32 = vcombine.high %v4729_v31, %v4729_v31  ;;  %v4991_v48 = vrot.slane %v4729_v31, %v13779_v1 }
 0x88e   : > { %15709 = vst [vmem:[#allocation33_spill] sm:$0xff] %v13984_v26  ;;  %v5342_v49 = vrot.slane %v4729_v31, %v13785_v13  ;;  %v14008_v29 = vrot.slane %v4739_v12, %v13774_v36  ;;  %v14012_v54 = vcombine.high %v13984_v26, %v13984_v26  ;;  %v5007_v31 = vrot.slane %v13984_v26, %v13779_v1 }
 0x88f   : > { %v13986_v33 = vpop.f32.mrb[148].mxu0  ;;  %15710 = vst [vmem:[#allocation34_spill] sm:$0xff] %v13997_v55  ;;  %v14016_v4 = vcombine.high %v13997_v55, %v13997_v55  ;;  %v4995_v44 = vrot.slane %v4737_v32, %v13779_v1  ;;  %v4999_v58 = vrot.slane %v13997_v55, %v13779_v1  ;;  %v5346_v12 = vrot.slane %v4737_v32, %v13785_v13 }
 0x890   : > { %v13994_v18 = vpop.f32.mrb[149].mxu0  ;;  %v14028_v14 = vcombine.high %v14008_v29, %v14008_v29  ;;  %v5015_v32 = vrot.slane %v14008_v29, %v13779_v1  ;;  %v4596_v55 = vadd.f32 %v4558_v15, %v13249_v53  ;;  %v5509_v26 = vsel %vm5154_vm10, %v15711_v28, %v5508_v62 }
 0x891   : > { %v14003_v40 = vpop.f32.mrb[150].mxu0  ;;  %v5003_v51 = vrot.slane %v14016_v4, %v13779_v1  ;;  %v5176_v63 = vsel %vm5148_vm4, %v4995_v44, %v4991_v48  ;;  %v15712_v48 = vrot.slane %v13890_v52, %v13785_v13  ;;  %v15714_v53 = vrot.slane %v13857_v43, %v13779_v1 }
 0x892   : > { %v9965_v45 = vpop.f32.mrb[151].mxu0  ;;  %v5177_v17 = vsel %vm5150_vm6, %v4999_v58, %v5176_v63  ;;  %v15713_v63 = vrot.slane %v13791_v30, %v13779_v1  ;;  %v4756_v28 = vcombine.high %v4596_v55, %v4596_v55  ;;  %v4763_v52 = vrot.slane %v4596_v55, %v13774_v36 }
 0x893   : > { %v5178_v44 = vsel %vm5152_vm9, %v5003_v51, %v5177_v17  ;;  %v5510_v61 = vsel %vm5156_vm11, %v15712_v48, %v5509_v26  ;;  %v5163_v15 = vsel %vm5150_vm6, %v15714_v53, %v13886_v0  ;;  %v15715_v30 = vrot.slane %v13801_v47, %v13779_v1 }
 0x894   : > { %v5151_v58 = vsel %vm5150_vm6, %v15713_v63, %v13826_v8  ;;  %v5179_v51 = vsel %vm5154_vm10, %v5007_v31, %v5178_v44  ;;  %v5511_v26 = vsel %vm5158_vm12, %v5302_v39, %v5510_v61  ;;  %v15716_v43 = vrot.slane %v13870_v35, %v13779_v1 }
 0x895   : > { %v5512_v48 = vsel %vm5160_vm13, %v5306_v34, %v5511_v26  ;;  %v5153_v8 = vsel %vm5152_vm9, %v15715_v30, %v5151_v58  ;;  %v9960_v31 = vadd.f32 %v13951_v27, %v13939_v3  ;;  %v14077_v55 = vsel %vm5148_vm4, %v5346_v12, %v5342_v49 }
 0x896   : > { %v5164_v0 = vsel %vm5152_vm9, %v15716_v43, %v5163_v15  ;;  %v5019_v61 = vrot.slane %v14028_v14, %v13779_v1  ;;  %v14082_v39 = vrot.slane %v4756_v28, %v13774_v36  ;;  %v4771_v47 = vcombine.high %v4763_v52, %v4763_v52 }
 0x897   : > { %v9967_v62 = vpop.f32.mrb[152].mxu0  ;;  %v5564_v63 = vpack.c.bf16 %v5512_v48, %v13974_v2  ;;  %v15717_v35 = vrot.slane %v13796_v42, %v13779_v1  ;;  %v15718_v3 = vrot.slane %v13864_v9, %v13779_v1  ;;  %v4464_v49 = vadd.f32 %v9960_v31, %v13764_v19  ;;  %v15722_v31 = vld [vmem:[#allocation23_spill] sm:$0xff] }
 0x898   : > { %v9968_v17 = vpop.f32.mrb[153].mxu0  ;;  %v14096_v12 = vcombine.high %v14082_v39, %v14082_v39  ;;  %v5023_v53 = vrot.slane %v4763_v52, %v13779_v1  ;;  %v5027_v2 = vrot.slane %v4771_v47, %v13779_v1  ;;  %v5374_v15 = vrot.slane %v4763_v52, %v13785_v13 }
 0x899   : > { %v9970_v44 = vpop.f32.mrb[154].mxu0  ;;  %v5155_v58 = vsel %vm5154_vm10, %v15717_v35, %v5153_v8  ;;  %v5165_v27 = vsel %vm5154_vm10, %v15718_v3, %v5164_v0  ;;  %v5031_v42 = vrot.slane %v14082_v39, %v13779_v1  ;;  %5806 = vmatprep.mubr.bf16.mxu1 %v5564_v63  ;;  %v15719_v9 = vrot.slane %v13814_v16, %v13779_v1 }
 0x89a   : > { %v9971_v34 = vpop.f32.mrb[155].mxu0  ;;  %v5166_v26 = vsel %vm5156_vm11, %v4947_v46, %v5165_v27  ;;  %v4561_v48 = vadd.f32 %v13757_v41, %v4464_v49  ;;  %v14112_v8 = vsel %vm5148_vm4, %v5027_v2, %v5023_v53  ;;  %v5378_v52 = vrot.slane %v4771_v47, %v13785_v13 }
 0x89b   : > { %v5157_v28 = vsel %vm5156_vm11, %v15719_v9, %v5155_v58  ;;  %v15720_v16 = vrot.slane %v13810_v50, %v13779_v1  ;;  %v15721_v46 = vrot.slane %v13881_v20, %v13779_v1  ;;  %v9963_v35 = vadd.f32 %v13994_v18, %v13986_v33 }
 0x89c   : > { %v4597_v63 = vadd.f32 %v4561_v48, %v15722_v31  ;;  %v15723_v47 = vrot.slane %v13834_v11, %v13779_v1  ;;  %v15724_v50 = vrot.slane %v13907_v56, %v13779_v1  ;;  %v9966_v20 = vadd.f32 %v9965_v45, %v14003_v40 }
 0x89d   : > { %v5159_v0 = vsel %vm5158_vm12, %v15720_v16, %v5157_v28  ;;  %v5167_v41 = vsel %vm5158_vm12, %v15721_v46, %v5166_v26  ;;  %v9969_v49 = vadd.f32 %v9968_v17, %v9967_v62  ;;  %v4469_v56 = vadd.f32 %v9963_v35, %v13764_v19 }
 0x89e   : > { %v14132_v3 = vsel %vm5160_vm13, %v15723_v47, %v5159_v0  ;;  %v14138_v27 = vsel %vm5160_vm13, %v15724_v50, %v5167_v41  ;;  %v4773_v18 = vcombine.high %v4597_v63, %v4597_v63  ;;  %v14146_v28 = vrot.slane %v4597_v63, %v13774_v36 }
 0x89f   : > { %v9973_v58 = vpop.f32.mrb[156].mxu0  ;;  %v15570_v2 = vrot.slane %v14132_v3, 7  ;;  %v15571_v33 = vrot.slane %v14138_v27, 7  ;;  %v5565_v11 = vpack.c.bf16 %v14138_v27, %v14132_v3  ;;  %v4472_v26 = vadd.f32 %v9966_v20, %v13764_v19 }
 0x8a0   : > { %v9974_v53 = vpop.f32.mrb[157].mxu0  ;;  %v4477_v40 = vadd.f32 %v9969_v49, %v13764_v19  ;;  %v15725_v48 = vrot.slane %v13928_v24, %v13779_v1  ;;  %v15726_v0 = vrot.slane %v14012_v54, %v13779_v1  ;;  %v14171_v41 = vsel %vm5148_vm4, %v5378_v52, %v5374_v15  ;;  %v15728_v52 = vld [vmem:[#allocation25_spill] sm:$0xff] }
 0x8a1   : > { %v9976_v9 = vpop.f32.mrb[158].mxu0  ;;  %v14159_v17 = vsel %vm1163_vm8, %v15570_v2, %v15571_v33  ;;  %10591 = vmatprep.mubr.bf16.mxu0 %v5565_v11  ;;  %v14174_v31 = vrot.slane %v4773_v18, %v13774_v36  ;;  %v14178_v63 = vcombine.high %v14146_v28, %v14146_v28  ;;  %v4566_v35 = vadd.f32 %v13751_v23, %v4469_v56  ;;  %v15730_v11 = vld [vmem:[#allocation22_spill] sm:$0xff]  ;;  %v15731_v56 = vld [vmem:[#allocation24_spill] sm:$0xff] }
 0x8a2   : > { %v9977_v45 = vpop.f32.mrb[159].mxu0  ;;  %v5173_v16 = vsel %vm5156_vm11, %v15725_v48, %v13961_v25  ;;  %v5180_v46 = vsel %vm5156_vm11, %v15726_v0, %v5179_v51  ;;  %v4569_v47 = vadd.f32 %v13755_v21, %v4472_v26  ;;  %v4574_v25 = vadd.f32 %v13766_v60, %v4477_v40  ;;  %v15734_v2 = vld [vmem:[#allocation30_spill] sm:$0xff] }
 0x8a3   : > { %v15727_v50 = vrot.slane %v13924_v38, %v13779_v1  ;;  %v5181_v15 = vsel %vm5158_vm12, %v5015_v32, %v5180_v46  ;;  %v4598_v20 = vadd.f32 %v4566_v35, %v15728_v52  ;;  %v15729_v49 = vrot.slane %v13949_v57, %v13779_v1 }
 0x8a4   : > { %v14199_v21 = vsel %vm5160_vm13, %v5019_v61, %v5181_v15  ;;  %v9972_v60 = vadd.f32 %v9971_v34, %v9970_v44  ;;  %v4599_v18 = vadd.f32 %v4569_v47, %v15730_v11  ;;  %v4600_v26 = vadd.f32 %v4574_v25, %v15731_v56 }
 0x8a5   : > { %v5174_v51 = vsel %vm5158_vm12, %v15727_v50, %v5173_v16  ;;  %v9975_v32 = vadd.f32 %v9974_v53, %v9973_v58  ;;  %v4790_v16 = vcombine.high %v4598_v20, %v4598_v20  ;;  %v4797_v0 = vrot.slane %v4598_v20, %v13774_v36 }
 0x8a6   : > { %v14196_v23 = vsel %vm5160_vm13, %v15729_v49, %v5174_v51  ;;  %v9978_v46 = vadd.f32 %v9977_v45, %v9976_v9  ;;  %v4807_v35 = vcombine.high %v4599_v18, %v4599_v18  ;;  %v14209_v61 = vrot.slane %v4599_v18, %v13774_v36 }
 0x8a7   : > { %v5568_v40 = vpack.c.bf16 %v14199_v21, %v14196_v23  ;;  %v4824_v44 = vcombine.high %v4600_v26, %v4600_v26  ;;  %v4831_v34 = vrot.slane %v4600_v26, %v13774_v36  ;;  %v14215_v58 = vrot.slane %v4790_v16, %v13774_v36 }
 0x8a8   : > { %v4805_v53 = vcombine.high %v4797_v0, %v4797_v0  ;;  %v4480_v25 = vadd.f32 %v9972_v60, %v13764_v19  ;;  %v5055_v50 = vrot.slane %v4797_v0, %v13779_v1  ;;  %v5406_v9 = vrot.slane %v4797_v0, %v13785_v13 }
 0x8a9   : > { %10592 = vmatmul.mubr.bf16.vlgmr.msra.gmra.mrb[160].mxu0 %v5568_v40  ;;  %v14221_v45 = vrot.slane %v4807_v35, %v13774_v36  ;;  %v14225_v51 = vcombine.high %v14209_v61, %v14209_v61  ;;  %v14229_v15 = vcombine.high %v14215_v58, %v14215_v58  ;;  %v5063_v60 = vrot.slane %v14215_v58, %v13779_v1 }
 0x8aa   : > { %v5059_v52 = vrot.slane %v4805_v53, %v13779_v1  ;;  %v5410_v20 = vrot.slane %v4805_v53, %v13785_v13  ;;  %v14240_v18 = vrot.slane %v4824_v44, %v13774_v36  ;;  %v4839_v56 = vcombine.high %v4831_v34, %v4831_v34 }
 0x8ab   : > { %15732 = vst [vmem:[#allocation23_spill] sm:$0xff] %v14221_v45  ;;  %15733 = vst [vmem:[#allocation25_spill] sm:$0xff] %v14229_v15  ;;  %v5067_v26 = vrot.slane %v14229_v15, %v13779_v1  ;;  %v5087_v0 = vrot.slane %v4831_v34, %v13779_v1  ;;  %v4577_v47 = vadd.f32 %v13770_v22, %v4480_v25 }
 0x8ac   : > { %v5190_v40 = vsel %vm5148_vm4, %v5059_v52, %v5055_v50  ;;  %v14251_v53 = vsel %vm5148_vm4, %v5410_v20, %v5406_v9  ;;  %v14255_v44 = vcombine.high %v14240_v18, %v14240_v18  ;;  %v5091_v11 = vrot.slane %v4839_v56, %v13779_v1 }
 0x8ad   : > { %v5442_v52 = vrot.slane %v4839_v56, %v13785_v13  ;;  %v4485_v16 = vadd.f32 %v9975_v32, %v13764_v19  ;;  %v5438_v9 = vrot.slane %v4831_v34, %v13785_v13  ;;  %v4488_v62 = vadd.f32 %v9978_v46, %v13764_v19 }
 0x8ae   : > { %v5197_v43 = vsel %vm5148_vm4, %v5091_v11, %v5087_v0  ;;  %v4601_v33 = vadd.f32 %v4577_v47, %v15734_v2  ;;  %v14274_v22 = vcombine.high %v14174_v31, %v14174_v31  ;;  %v14284_v19 = vcombine.high %v14221_v45, %v14221_v45 }
 0x8af   : > { %v4582_v56 = vadd.f32 %v13759_v7, %v4485_v16  ;;  %v14279_v34 = vsel %vm5148_vm4, %v5442_v52, %v5438_v9  ;;  %v4585_v25 = vadd.f32 %v13768_v6, %v4488_v62  ;;  %v15738_v7 = vld [vmem:[#allocation27_spill] sm:$0xff]  ;;  %v5043_v11 = vrot.slane %v14178_v63, %v13779_v1  ;;  %v15739_v16 = vld [vmem:[#allocation29_spill] sm:$0xff] }
 0x8b0   : > { %15735 = vst [vmem:[#allocation22_spill] sm:$0xff] %v14279_v34  ;;  %15736 = vst [vmem:[#allocation24_spill] sm:$0xff] %v14284_v19  ;;  %v4841_v46 = vcombine.high %v4601_v33, %v4601_v33  ;;  %v14287_v2 = vrot.slane %v4601_v33, %v13774_v36  ;;  %v5047_v52 = vrot.slane %v14174_v31, %v13779_v1 }
 0x8b1   : > { %v4602_v47 = vadd.f32 %v4582_v56, %v15738_v7  ;;  %v4603_v0 = vadd.f32 %v4585_v25, %v15739_v16  ;;  %v5051_v6 = vrot.slane %v14274_v22, %v13779_v1  ;;  %v5075_v62 = vrot.slane %v14225_v51, %v13779_v1 }
 0x8b2   : > { %15737 = vst [vmem:[#allocation30_spill] sm:$0xff] %v14287_v2  ;;  %v14300_v9 = vrot.slane %v4841_v46, %v13774_v36  ;;  %v14304_v33 = vcombine.high %v14287_v2, %v14287_v2  ;;  %v5079_v56 = vrot.slane %v14221_v45, %v13779_v1  ;;  %v5083_v25 = vrot.slane %v14284_v19, %v13779_v1 }
 0x8b3   : > { %v4858_v7 = vcombine.high %v4602_v47, %v4602_v47  ;;  %v4865_v16 = vrot.slane %v4602_v47, %v13774_v36  ;;  %v4875_v32 = vcombine.high %v4603_v0, %v4603_v0  ;;  %v14312_v20 = vrot.slane %v4603_v0, %v13774_v36 }
 0x8b4   : > { %15740 = vst [vmem:[#allocation27_spill] sm:$0xff] %v14304_v33  ;;  %v5103_v46 = vrot.slane %v14287_v2, %v13779_v1  ;;  %v5184_v35 = vsel %vm5150_vm6, %v5031_v42, %v14112_v8  ;;  %v5191_v50 = vsel %vm5150_vm6, %v5063_v60, %v5190_v40  ;;  %v14329_v0 = vcombine.high %v14300_v9, %v14300_v9 }
 0x8b5   : > { %15741 = vst [vmem:[#allocation29_spill] sm:$0xff] %v14312_v20  ;;  %v14325_v47 = vrot.slane %v4858_v7, %v13774_v36  ;;  %v4873_v49 = vcombine.high %v4865_v16, %v4865_v16  ;;  %v5107_v48 = vrot.slane %v14304_v33, %v13779_v1  ;;  %v5119_v10 = vrot.slane %v4865_v16, %v13779_v1 }
 0x8b6   : > { %v5470_v30 = vrot.slane %v4865_v16, %v13785_v13  ;;  %v14336_v2 = vrot.slane %v4875_v32, %v13774_v36  ;;  %v14340_v42 = vcombine.high %v14312_v20, %v14312_v20  ;;  %v5135_v7 = vrot.slane %v14312_v20, %v13779_v1 }
 0x8b7   : > { %v14344_v8 = vcombine.high %v14325_v47, %v14325_v47  ;;  %v5123_v60 = vrot.slane %v4873_v49, %v13779_v1  ;;  %v5474_v40 = vrot.slane %v4873_v49, %v13785_v13  ;;  %v5127_v16 = vrot.slane %v14325_v47, %v13779_v1 }
 0x8b8   : > { %v15742_v32 = vrot.slane %v14096_v12, %v13779_v1  ;;  %v5192_v33 = vsel %vm5152_vm9, %v5067_v26, %v5191_v50  ;;  %v14366_v45 = vcombine.high %v14336_v2, %v14336_v2  ;;  %v15743_v26 = vrot.slane %v14146_v28, %v13779_v1 }
 0x8b9   : > { %v5131_v19 = vrot.slane %v14344_v8, %v13779_v1  ;;  %v5204_v49 = vsel %vm5148_vm4, %v5123_v60, %v5119_v10  ;;  %v14371_v20 = vsel %vm5148_vm4, %v5474_v40, %v5470_v30  ;;  %v15744_v10 = vrot.slane %v14209_v61, %v13779_v1 }
 0x8ba   : > { %v5185_v34 = vsel %vm5152_vm9, %v15742_v32, %v5184_v35  ;;  %v5111_v36 = vrot.slane %v14300_v9, %v13779_v1  ;;  %v5115_v30 = vrot.slane %v14329_v0, %v13779_v1  ;;  %v15745_v40 = vand.u32 15, %v11867_v59 }
 0x8bb   : > { %v5186_v35 = vsel %vm5154_vm10, %v15743_v26, %v5185_v34  ;;  %v5193_v50 = vsel %vm5154_vm10, %v15744_v10, %v5192_v33 }
 0x8bc   : > { %v5187_v60 = vsel %vm5156_vm11, %v5043_v11, %v5186_v35  ;;  %v5194_v32 = vsel %vm5156_vm11, %v5075_v62, %v5193_v50  ;;  %vm14389_vm14 = vcmp.ne.s32.totalorder %v15745_v40, 0  ;;  %v5139_v11 = vrot.slane %v14340_v42, %v13779_v1 }
 0x8bd   : > { %v5188_v34 = vsel %vm5158_vm12, %v5047_v52, %v5187_v60  ;;  %v5195_v33 = vsel %vm5158_vm12, %v5079_v56, %v5194_v32  ;;  %v15748_v62 = vrot.slane %v14240_v18, %v13779_v1  ;;  %v15749_v50 = vrot.slane %v14255_v44, %v13779_v1  ;;  %vm14491_vm0 = vmpackc.low %vm11463_vm3, %vm14389_vm14 }
 0x8be   : > { %v14402_v35 = vsel %vm5160_vm13, %v5051_v6, %v5188_v34  ;;  %v14405_v10 = vsel %vm5160_vm13, %v5083_v25, %v5195_v33  ;;  %v5205_v56 = vsel %vm5150_vm6, %v5127_v16, %v5204_v49  ;;  %v5143_v32 = vrot.slane %v14336_v2, %v13779_v1 }
 0x8bf   : > { %v5198_v26 = vsel %vm5150_vm6, %v15748_v62, %v5197_v43  ;;  %v5571_v60 = vpack.c.bf16 %v14405_v10, %v14402_v35  ;;  %v5147_v43 = vrot.slane %v14366_v45, %v13779_v1  ;;  %v5223_v25 = vrot.slane %v14402_v35, 7 }
 0x8c0   : > { %v5199_v52 = vsel %vm5152_vm9, %v15749_v50, %v5198_v26  ;;  %v5206_v34 = vsel %vm5152_vm9, %v5131_v19, %v5205_v56  ;;  %v5330_v16 = vrot.slane %v13928_v24, %v13785_v13  ;;  %v5334_v62 = vrot.slane %v13924_v38, %v13785_v13 }
 0x8c1   : > { %v5200_v6 = vsel %vm5154_vm10, %v5103_v46, %v5199_v52  ;;  %10595 = vmatprep.mubr.bf16.mxu0 %v5571_v60  ;;  %v5207_v33 = vsel %vm5154_vm10, %v5135_v7, %v5206_v34  ;;  %v5338_v1 = vrot.slane %v13949_v57, %v13785_v13  ;;  %v5362_v19 = vrot.slane %v14012_v54, %v13785_v13  ;;  %v15756_v52 = vld [vmem:[#allocation26_spill] sm:$0xff]  ;;  %v15762_v34 = vld [vmem:[#allocation33_spill] sm:$0xff] }
 0x8c2   : > { %v5201_v40 = vsel %vm5156_vm11, %v5107_v48, %v5200_v6  ;;  %v5208_v48 = vsel %vm5156_vm11, %v5139_v11, %v5207_v33  ;;  %v5366_v24 = vrot.slane %v14008_v29, %v13785_v13  ;;  %v5370_v7 = vrot.slane %v14028_v14, %v13785_v13  ;;  %v15753_v29 = vld [vmem:[#allocation32_spill] sm:$0xff] }
 0x8c3   : > { %v5202_v49 = vsel %vm5158_vm12, %v5111_v36, %v5201_v40  ;;  %v5209_v36 = vsel %vm5158_vm12, %v5143_v32, %v5208_v48  ;;  %v15750_v57 = vrot.slane %v13902_v37, %v13785_v13  ;;  %v15754_v35 = vrot.slane %v15753_v29, %v13785_v13 }
 0x8c4   : > { %v14431_v46 = vsel %vm5160_vm13, %v5115_v30, %v5202_v49  ;;  %v15751_v30 = vld [vmem:[#allocation34_spill] sm:$0xff]  ;;  %v5210_v26 = vsel %vm5160_vm13, %v5147_v43, %v5209_v36  ;;  %v15755_v14 = vrot.slane %v14016_v4, %v13785_v13  ;;  %v15757_v56 = vand.u32 15, %v15756_v52  ;;  %v15760_v43 = vld [vmem:[#allocation28_spill] sm:$0xff] }
 0x8c5   : > { %v5514_v38 = vsel %vm5150_vm6, %v15750_v57, %v13945_v5  ;;  %v15752_v11 = vrot.slane %v15751_v30, %v13785_v13  ;;  %v5221_v5 = vrot.slane %v14196_v23, 7  ;;  %v5574_v32 = vpack.c.bf16 %v5210_v26, %v14431_v46  ;;  %v15775_v52 = vld [vmem:[#allocation24_spill] sm:$0xff] }
 0x8c6   : > { %v5515_v50 = vsel %vm5152_vm9, %v15754_v35, %v5514_v38  ;;  %vm14463_vm15 = vcmp.ne.s32.totalorder %v15757_v56, 0  ;;  %v15761_v6 = vrot.slane %v15760_v43, %v13785_v13  ;;  %v15763_v4 = vrot.slane %v15762_v34, %v13785_v13 }
 0x8c7   : > { %v5521_v54 = vsel %vm5150_vm6, %v15752_v11, %v14077_v55  ;;  %v5226_v55 = vrot.slane %v5210_v26, 7  ;;  %v5222_v48 = vrot.slane %v14199_v21, 7  ;;  %v15764_v36 = vrot.slane %v14138_v27, 7  ;;  %10596 = vmatmul.mubr.bf16.gmra.mrb[164].mxu0 %v5574_v32  ;;  %vm14559_vm2 = vmpackc.low %vm11463_vm3, %vm14463_vm15 }
 0x8c8   : > { %v5522_v37 = vsel %vm5152_vm9, %v15755_v14, %v5521_v54  ;;  %v5516_v40 = vsel %vm5154_vm10, %v15761_v6, %v5515_v50  ;;  %v5224_v38 = vrot.slane %v14405_v10, 7  ;;  %v15765_v30 = vrot.slane %v14132_v3, 7 }
 0x8c9   : > { %v5523_v49 = vsel %vm5154_vm10, %v15763_v4, %v5522_v37  ;;  %v5517_v23 = vsel %vm5156_vm11, %v5330_v16, %v5516_v40  ;;  %v5232_v57 = vsel %vm1163_vm8, %v15764_v36, %v5221_v5  ;;  %v5231_v54 = vsel %vm1163_vm8, %v5221_v5, %v5222_v48  ;;  %v15773_v37 = vld [vmem:[#allocation25_spill] sm:$0xff]  ;;  %v15780_v36 = vld [vmem:[#allocation22_spill] sm:$0xff] }
 0x8ca   : > { %v5524_v33 = vsel %vm5156_vm11, %v5362_v19, %v5523_v49  ;;  %v5234_v11 = vsel %vm1163_vm8, %v5226_v55, %v15765_v30  ;;  %v5518_v27 = vsel %vm5158_vm12, %v5334_v62, %v5517_v23  ;;  %v5225_v15 = vrot.slane %v14431_v46, 7 }
 0x8cb   : > { %v5525_v21 = vsel %vm5158_vm12, %v5366_v24, %v5524_v33  ;;  %v9094_v19 = vpack.c.bf16 %v14159_v17, %v5234_v11  ;;  %v5519_v10 = vsel %vm5160_vm13, %v5338_v1, %v5518_v27  ;;  %v9098_v29 = vpack.c.bf16 %v5231_v54, %v5232_v57 }
 0x8cc   : > { %v5526_v3 = vsel %vm5160_vm13, %v5370_v7, %v5525_v21  ;;  %v5394_v35 = vrot.slane %v14178_v63, %v13785_v13  ;;  %v5398_v17 = vrot.slane %v14174_v31, %v13785_v13  ;;  %v5402_v62 = vrot.slane %v14274_v22, %v13785_v13 }
 0x8cd   : > { %v5567_v26 = vpack.c.bf16 %v5526_v3, %v5519_v10  ;;  %9095 = vmatmul.mubr.msk.bf16.vlgmr.msra.gmra.mrb[144].mxu1 %vm14491_vm0, %v9094_v19  ;;  %v5426_v1 = vrot.slane %v14225_v51, %v13785_v13  ;;  %v15768_v46 = vrot.slane %v14082_v39, %v13785_v13  ;;  %v15769_v63 = vrot.slane %v14096_v12, %v13785_v13 }
 0x8ce   : > { %v15770_v31 = vrot.slane %v14215_v58, %v13785_v13  ;;  %v5229_v51 = vsel %vm1163_vm8, %v5223_v25, %v5224_v38  ;;  %v5230_v39 = vsel %vm1163_vm8, %v5222_v48, %v5223_v25  ;;  %v15772_v12 = vrot.slane %v14146_v28, %v13785_v13  ;;  %v15777_v28 = vld [vmem:[#allocation27_spill] sm:$0xff] }
 0x8cf   : > { %v5528_v24 = vsel %vm5150_vm6, %v15768_v46, %v14171_v41  ;;  %5814 = vmatprep.mubr.bf16.mxu1 %v5567_v26  ;;  %v15771_v41 = vld [vmem:[#allocation23_spill] sm:$0xff]  ;;  %v15774_v5 = vrot.slane %v15773_v37, %v13785_v13  ;;  %v5434_v56 = vrot.slane %v15775_v52, %v13785_v13  ;;  %v15776_v25 = vrot.slane %v14209_v61, %v13785_v13  ;;  %v11038_v37 = vld [vmem:[#allocation13 + $0xa0] sm:$0xff]  }
 0x8d0   : > { %v5529_v7 = vsel %vm5152_vm9, %v15769_v63, %v5528_v24  ;;  %v5535_v22 = vsel %vm5150_vm6, %v15770_v31, %v14251_v53  ;;  %v5430_v50 = vrot.slane %v15771_v41, %v13785_v13  ;;  %v9102_v53 = vpack.c.bf16 %v5229_v51, %v5230_v39  ;;  %v11030_v31 = vld [vmem:[#allocation13 + $0x80] sm:$0xff]   ;;  %v11032_v51 = vld [vmem:[#allocation13 + $0x90] sm:$0xff]   ;;  %v11042_v52 = vld [vmem:[#allocation13 + $0x58] sm:$0xff]  }
 0x8d1   : > { %v5530_v14 = vsel %vm5154_vm10, %v15772_v12, %v5529_v7  ;;  %v5536_v58 = vsel %vm5152_vm9, %v15774_v5, %v5535_v22  ;;  %v5458_v6 = vrot.slane %v15777_v28, %v13785_v13  ;;  %v5462_v4 = vrot.slane %v14300_v9, %v13785_v13  ;;  %v11031_v22 = vld [vmem:[#allocation13 + $0x88] sm:$0xff]   ;;  %10599 = vmatprep.subr.bf16.mxu0 %v11030_v31  ;;  %v11033_v39 = vld [vmem:[#allocation13 + $0x40] sm:$0xff]   ;;  %v11039_v5 = vld [vmem:[#allocation13 + $0x50] sm:$0xff]  }
 0x8d2   : > { %v5531_v32 = vsel %vm5156_vm11, %v5394_v35, %v5530_v14  ;;  %v5537_v43 = vsel %vm5154_vm10, %v15776_v25, %v5536_v58  ;;  %v5466_v49 = vrot.slane %v14329_v0, %v13785_v13  ;;  %v5490_v48 = vrot.slane %v14340_v42, %v13785_v13  ;;  %10600 = vmatpush3.bf16.msra.mxu0 %v11030_v31  ;;  %v11034_v41 = vld [vmem:[#allocation13] sm:$0xff]   ;;  %v11036_v12 = vld [vmem:[#allocation13 + $0x48] sm:$0xff]   ;;  %v11047_v28 = vld [vmem:[#allocation13 + $0xb8] sm:$0xff]  }
 0x8d3   : > { %v5532_v40 = vsel %vm5158_vm12, %v5398_v17, %v5531_v32  ;;  %v5538_v34 = vsel %vm5156_vm11, %v5426_v1, %v5537_v43  ;;  %v15781_v9 = vrot.slane %v14240_v18, %v13785_v13  ;;  %v15782_v57 = vrot.slane %v14255_v44, %v13785_v13  ;;  %v15784_v18 = vld [vmem:[#allocation30_spill] sm:$0xff]  ;;  %10601 = vmatprep.subr.bf16.mxu0 %v11031_v22  ;;  %v11037_v14 = vld [vmem:[#allocation13 + $0x8] sm:$0xff]   ;;  %v11045_v25 = vld [vmem:[#allocation13 + $0x60] sm:$0xff]  }
 0x8d4   : > { %v5533_v23 = vsel %vm5160_vm13, %v5402_v62, %v5532_v40  ;;  %v5539_v33 = vsel %vm5158_vm12, %v5430_v50, %v5538_v34  ;;  %v15783_v11 = vrot.slane %v14325_v47, %v13785_v13  ;;  %v5227_v42 = vsel %vm1163_vm8, %v5225_v15, %v5226_v55  ;;  %v15787_v55 = vld [vmem:[#allocation29_spill] sm:$0xff]  ;;  %v11035_v50 = vld [vmem:[#allocation13 + $0x98] sm:$0xff]   ;;  %10047 = vmatprep.subr.bf16.mxu1 %v11033_v39  ;;  %v11044_v32 = vld [vmem:[#allocation13 + $0xb0] sm:$0xff]  }
 0x8d5   : > { %v5542_v0 = vsel %vm5150_vm6, %v15781_v9, %v15780_v36  ;;  %v5540_v60 = vsel %vm5160_vm13, %v5434_v56, %v5539_v33  ;;  %v15785_v19 = vrot.slane %v15784_v18, %v13785_v13  ;;  %v15786_v44 = vrot.slane %v14344_v8, %v13785_v13  ;;  %9099 = vmatmul.mubr.msk.bf16.gmra.mrb[148].mxu1 %vm14559_vm2, %v9098_v29  ;;  %v15789_v29 = vld [vmem:[#allocation31_spill] sm:$0xff]  ;;  %v11041_v58 = vld [vmem:[#allocation13 + $0xa8] sm:$0xff]   ;;  %v11046_v43 = vld [vmem:[#allocation13 + $0x20] sm:$0xff]  }
 0x8d6   : > { %v5543_v30 = vsel %vm5152_vm9, %v15782_v57, %v5542_v0  ;;  %v5549_v27 = vsel %vm5150_vm6, %v15783_v11, %v14371_v20  ;;  %v5570_v21 = vpack.c.bf16 %v5540_v60, %v5533_v23  ;;  %v5228_v54 = vsel %vm1163_vm8, %v5224_v38, %v5225_v15  ;;  %10602 = vmatpush3.bf16.msra.mxu0 %v11031_v22  ;;  %v11043_v56 = vld [vmem:[#allocation13 + $0x18] sm:$0xff]   ;;  %v11049_v40 = vld [vmem:[#allocation13 + $0x28] sm:$0xff]   ;;  %v11050_v34 = vld [vmem:[#allocation13 + $0x70] sm:$0xff]  }
 0x8d7   : > { %v5544_v10 = vsel %vm5154_vm10, %v15785_v19, %v5543_v30  ;;  %v5550_v3 = vsel %vm5152_vm9, %v15786_v44, %v5549_v27  ;;  %v5494_v20 = vrot.slane %v14336_v2, %v13785_v13  ;;  %v15788_v26 = vrot.slane %v15787_v55, %v13785_v13  ;;  %10603 = vmatprep.subr.bf16.mxu0 %v11032_v51  ;;  %v11053_v23 = vld [vmem:[#allocation13 + $0x38] sm:$0xff]   ;;  %v9420_v61 = vld [vmem:[%s15807_s15 + $0x5] ss:$0 sm:$0xff] }
 0x8d8   : > { %v5545_v47 = vsel %vm5156_vm11, %v5458_v6, %v5544_v10  ;;  %v9106_v17 = vpack.c.bf16 %v5227_v42, %v5228_v54  ;;  %5822 = vmatprep.mubr.bf16.mxu1 %v5570_v21  ;;  %v5498_v8 = vrot.slane %v14366_v45, %v13785_v13  ;;  %v15790_v62 = vand.u32 15, %v15789_v29  ;;  %10048 = vmatpush3.bf16.msra.mxu1 %v11034_v41  ;;  %v11048_v6 = vld [vmem:[#allocation13 + $0x68] sm:$0xff]   ;;  %v14631_v27 = vld [vmem:[#allocation11] ss:$0 sm:$0xff] }
 0x8d9   : > { %v5551_v35 = vsel %vm5154_vm10, %v15788_v26, %v5550_v3  ;;  %v5546_v38 = vsel %vm5158_vm12, %v5462_v4, %v5545_v47  ;;  %v553_v46 = vadd.s32 48, %v11867_v59  ;;  %10049 = vmatprep.subr.bf16.mxu1 %v11036_v12  ;;  %v11051_v4 = vld [vmem:[#allocation13 + $0x30] sm:$0xff]   ;;  %v14637_v3 = vld [vmem:[%s15795_s29] ss:$0 sm:$0xff] }
 0x8da   : > { %v5552_v15 = vsel %vm5156_vm11, %v5490_v48, %v5551_v35  ;;  %vm9497_vm5 = vcmp.ne.s32.totalorder %v15790_v62, 0  ;;  %v5547_v2 = vsel %vm5160_vm13, %v5466_v49, %v5546_v38  ;;  %10604 = vmatpush3.bf16.msra.mxu0 %v11032_v51  ;;  %v11052_v49 = vld [vmem:[#allocation13 + $0x78] sm:$0xff]  }
 0x8db   : > { %v5553_v1 = vsel %vm5158_vm12, %v5494_v20, %v5552_v15  ;;  %vm14614_vm7 = vmpackc.low %vm11463_vm3, %vm9497_vm5  ;;  %v833_v13 = vand.u32 15, %v553_v46  ;;  %10605 = vmatprep.subr.bf16.mxu0 %v11035_v50  ;;  %v14645_v47 = vld [vmem:[%s15796_s12] ss:$0 sm:$0xff] }
 0x8dc   : > { %v5554_v24 = vsel %vm5160_vm13, %v5498_v8, %v5553_v1  ;;  %10050 = vmatpush3.bf16.msra.mxu1 %v11037_v14 }
 0x8dd   : > { %v5573_v63 = vpack.c.bf16 %v5554_v24, %v5547_v2  ;;  %9103 = vmatmul.mubr.msk.bf16.gmra.mrb[152].mxu1 %vm14614_vm7, %v9102_v53  ;;  %vm9498_vm4 = vcmp.ne.s32.totalorder %v833_v13, 0  ;;  %v11040_v53 = vld [vmem:[#allocation13 + $0x10] sm:$0xff]   ;;  %10051 = vmatprep.subr.bf16.mxu1 %v11039_v5  ;;  %v548_v24 = vadd.s32 8, %v11867_v59 }
 0x8de   : > { %vm14621_vm6 = vmpackc.low %vm11463_vm3, %vm9498_vm4  ;;  %10606 = vmatpush3.bf16.msra.mxu0 %v11035_v50 }
 0x8df   : > { %5830 = vmatprep.mubr.bf16.mxu1 %v5573_v63  ;;  %10607 = vmatprep.subr.bf16.mxu0 %v11038_v37  ;;  %v798_v14 = vand.u32 15, %v548_v24 }
 0x8e0   : > { %10052 = vmatpush3.bf16.msra.mxu1 %v11040_v53 }
 0x8e1   : > { %10053 = vmatprep.subr.bf16.mxu1 %v11042_v52  ;;  %vm9499_vm9 = vcmp.ne.s32.totalorder %v798_v14, 15  ;;  %v15802_v14 = vld [vmem:[#allocation21_spill] sm:$0xff] }
 0x8e2   : > { %10608 = vmatpush3.bf16.msra.mxu0 %v11038_v37  ;;  %vm14694_vm10 = vmpackc.low %vm9499_vm9, %vm11463_vm3 }
 0x8e3   : > { %10609 = vmatprep.subr.bf16.mxu0 %v11041_v58 }
 0x8e4   : > { %10054 = vmatpush3.bf16.msra.mxu1 %v11043_v56 }
 0x8e5   : > { %9107 = vmatmul.mubr.msk.bf16.gmra.mrb[156].mxu1 %vm14621_vm6, %v9106_v17  ;;  %10055 = vmatprep.subr.bf16.mxu1 %v11045_v25 }
 0x8e6   : > { %10610 = vmatpush3.bf16.msra.mxu0 %v11041_v58 }
 0x8e7   : > { %10611 = vmatprep.subr.bf16.mxu0 %v11044_v32 }
 0x8e8   : > { %10056 = vmatpush3.bf16.msra.mxu1 %v11046_v43 }
 0x8e9   : > { %10057 = vmatprep.subr.bf16.mxu1 %v11048_v6 }
 0x8ea   : > { %10612 = vmatpush3.bf16.msra.mxu0 %v11044_v32 }
 0x8eb   : > { %10613 = vmatprep.subr.bf16.mxu0 %v11047_v28 }
 0x8ec   : > { %10058 = vmatpush3.bf16.msra.mxu1 %v11049_v40 }
 0x8ed   : > { %10059 = vmatprep.subr.bf16.mxu1 %v11050_v34 }
 0x8ee   : > { %10614 = vmatpush3.bf16.msra.mxu0 %v11047_v28 }
 0x8f0   : > { %10060 = vmatpush3.bf16.msra.mxu1 %v11051_v4 }
 0x8f1   : > { %10061 = vmatprep.subr.bf16.mxu1 %v11052_v49 }
 0x8f4   : > { %10062 = vmatpush3.bf16.msra.mxu1 %v11053_v23 }
 0x97c   : > { %v10593_v33 = vpop.f32.mrb[160].mxu0 }
 0x97d   : > { %v5873_v48 = vpop.f32.mrb[161].mxu0 }
 0x97e   : > { %v10594_v36 = vpop.f32.mrb[162].mxu0 }
 0x97f   : > { %v5876_v9 = vpop.f32.mrb[163].mxu0 }
 0x99a   : > { %v14627_v0 = vpop.f32.mrb[164].mxu0 }
 0x99b   : > { %v5889_v60 = vpop.f32.mrb[165].mxu0 }
 0x99c   : > { %v14629_v57 = vpop.f32.mrb[166].mxu0 }
 0x99d   : > { %v5892_v11 = vpop.f32.mrb[167].mxu0 }
 0x9a0   : > { %v10011_v30 = vpop.f32.mrb[144].mxu1 }
 0x9a1   : > { %v10012_v42 = vpop.f32.mrb[145].mxu1 }
 0x9a2   : > { %v10013_v21 = vadd.f32 %v10012_v42, %v10011_v30  ;;  %v10014_v18 = vpop.f32.mrb[146].mxu1 }
 0x9a3   : > { %v10015_v19 = vpop.f32.mrb[147].mxu1 }
 0x9a4   : > { %v5809_v10 = vadd.f32 %v10013_v21, %v14631_v27  ;;  %v10016_v44 = vadd.f32 %v10015_v19, %v10014_v18  ;;  %v15799_v21 = vld [vmem:[#allocation20_spill] sm:$0xff] }
 0x9a5   : > { %v812_v18 = vand.u32 15, %v15799_v21 }
 0x9a6   : > { %v14639_v54 = vadd.f32 %v5873_v48, %v5809_v10  ;;  %v5812_v20 = vadd.f32 %v10016_v44, %v14631_v27 }
 0x9a7   : > { %vm9500_vm11 = vcmp.ne.s32.totalorder %v812_v18, 15 }
 0x9a8   : > { %v5911_v55 = vmul.f32 %v14637_v3, %v14639_v54  ;;  %v14649_v26 = vadd.f32 %v5876_v9, %v5812_v20  ;;  %v10017_v35 = vpop.f32.mrb[148].mxu1  ;;  %vm14722_vm12 = vmpackc.low %vm9500_vm11, %vm11463_vm3 }
 0x9a9   : > { %v10018_v17 = vpop.f32.mrb[149].mxu1 }
 0x9aa   : > { %v5926_v8 = vadd.f32 %v14645_v47, %v5911_v55  ;;  %v5912_v38 = vmul.f32 %v14637_v3, %v14649_v26  ;;  %v10019_v15 = vadd.f32 %v10018_v17, %v10017_v35  ;;  %v10020_v29 = vpop.f32.mrb[150].mxu1 }
 0x9ab   : > { %v10021_v62 = vpop.f32.mrb[151].mxu1 }
 0x9ac   : > { %v5927_v2 = vadd.f32 %v14645_v47, %v5912_v38  ;;  %v5817_v1 = vadd.f32 %v10019_v15, %v14631_v27  ;;  %v10022_v46 = vadd.f32 %v10021_v62, %v10020_v29  ;;  %v14660_v31 = vmax.f32 %v5926_v8, 0.0 }
 0x9ad   : > { %v552_v15 = vadd.s32 40, %v11867_v59 }
 0x9ae   : > { %v14657_v63 = vadd.f32 %v10593_v33, %v5817_v1  ;;  %v5820_v13 = vadd.f32 %v10022_v46, %v14631_v27  ;;  %v14662_v22 = vmax.f32 %v5927_v2, 0.0  ;;  %v5967_v34 = vrot.slane %v14660_v31, 1 }
 0x9b0   : > { %v5913_v51 = vmul.f32 %v14637_v3, %v14657_v63  ;;  %v14666_v39 = vadd.f32 %v10594_v36, %v5820_v13  ;;  %v10023_v41 = vpop.f32.mrb[152].mxu1  ;;  %v5992_v50 = vpack.c.bf16 %v14662_v22, %v14660_v31  ;;  %v5968_v56 = vrot.slane %v14662_v22, 1 }
 0x9b1   : > { %v10024_v12 = vpop.f32.mrb[153].mxu1 }
 0x9b2   : > { %v5928_v37 = vadd.f32 %v14645_v47, %v5913_v51  ;;  %v5914_v5 = vmul.f32 %v14637_v3, %v14666_v39  ;;  %v10025_v58 = vadd.f32 %v10024_v12, %v10023_v41  ;;  %v10026_v53 = vpop.f32.mrb[154].mxu1  ;;  %6233 = vmatprep.mubr.bf16.mxu1 %v5992_v50  ;;  %v5981_v9 = vsel %vm1212_vm1, %v5967_v34, %v5968_v56 }
 0x9b3   : > { %v10027_v52 = vpop.f32.mrb[155].mxu1 }
 0x9b4   : > { %v14674_v32 = vmax.f32 %v5928_v37, 0.0  ;;  %v5929_v25 = vadd.f32 %v14645_v47, %v5914_v5  ;;  %v5825_v43 = vadd.f32 %v10025_v58, %v14631_v27  ;;  %v10028_v28 = vadd.f32 %v10027_v52, %v10026_v53 }
 0x9b5   : > { %v840_v37 = vand.u32 15, %v15802_v14  ;;  %v5944_v53 = vrot.slane %v14662_v22, 7  ;;  %v11065_v14 = vld [vmem:[#allocation13 + $0x168] sm:$0xff]  }
 0x9b6   : > { %v14678_v6 = vadd.f32 %v5889_v60, %v5825_v43  ;;  %v5828_v40 = vadd.f32 %v10028_v28, %v14631_v27  ;;  %v5969_v4 = vrot.slane %v14674_v32, 1  ;;  %v14683_v49 = vmax.f32 %v5929_v25, 0.0 }
 0x9b7   : > { %v5943_v25 = vrot.slane %v14660_v31, 7  ;;  %vm9502_vm14 = vcmp.ne.s32.totalorder %v840_v37, 15  ;;  %v11064_v37 = vld [vmem:[#allocation13 + $0xd0] sm:$0xff]  }
 0x9b8   : > { %v5915_v23 = vmul.f32 %v14637_v3, %v14678_v6  ;;  %v14687_v33 = vadd.f32 %v5892_v11, %v5828_v40  ;;  %v10029_v48 = vpop.f32.mrb[156].mxu1  ;;  %v5980_v36 = vsel %vm1212_vm1, %v5968_v56, %v5969_v4  ;;  %v5970_v20 = vrot.slane %v14683_v49, 1  ;;  %vm14753_vm5 = vmpackc.low %vm9502_vm14, %vm11463_vm3 }
 0x9b9   : > { %v10030_v30 = vpop.f32.mrb[157].mxu1  ;;  %v9153_v42 = vpack.c.bf16 %v5980_v36, %v5981_v9  ;;  %v5957_v22 = vsel %vm1163_vm8, %v5943_v25, %v5944_v53  ;;  %v5946_v21 = vrot.slane %v14683_v49, 7 }
 0x9ba   : > { %v5930_v19 = vadd.f32 %v14645_v47, %v5915_v23  ;;  %v5916_v11 = vmul.f32 %v14637_v3, %v14687_v33  ;;  %v10031_v10 = vadd.f32 %v10030_v30, %v10029_v48  ;;  %v10032_v44 = vpop.f32.mrb[158].mxu1  ;;  %v5979_v1 = vsel %vm1212_vm1, %v5969_v4, %v5970_v20 }
 0x9bb   : > { %v10033_v55 = vpop.f32.mrb[159].mxu1  ;;  %10615 = vmatprep.mubr.msk.bf16.mxu0 %vm14694_vm10, %v9153_v42  ;;  %v5995_v42 = vpack.c.bf16 %v14683_v49, %v14674_v32 }
 0x9bc   : > { %v5938_v35 = vmax.f32 %v5930_v19, 0.0  ;;  %v5931_v17 = vadd.f32 %v14645_v47, %v5916_v11  ;;  %v5833_v8 = vadd.f32 %v10031_v10, %v14631_v27  ;;  %v10034_v38 = vadd.f32 %v10033_v55, %v10032_v44 }
 0x9be   : > { %v5971_v29 = vrot.slane %v5938_v35, 1  ;;  %v14709_v62 = vadd.f32 %v14627_v0, %v5833_v8  ;;  %v5836_v2 = vadd.f32 %v10034_v38, %v14631_v27  ;;  %v5939_v24 = vmax.f32 %v5931_v17, 0.0 }
 0x9bf   : > { %v826_v27 = vand.u32 15, %v552_v15  ;;  %v5947_v49 = vrot.slane %v5938_v35, 7 }
 0x9c0   : > { %v5978_v46 = vsel %vm1212_vm1, %v5970_v20, %v5971_v29  ;;  %v5917_v13 = vmul.f32 %v14637_v3, %v14709_v62  ;;  %v14719_v51 = vadd.f32 %v14629_v57, %v5836_v2  ;;  %v5972_v58 = vrot.slane %v5939_v24, 1  ;;  %v11055_v2 = vld [vmem:[#allocation13 + $0x148] sm:$0xff]  }
 0x9c1   : > { %v9157_v0 = vpack.c.bf16 %v5978_v46, %v5979_v1  ;;  %vm9501_vm13 = vcmp.ne.s32.totalorder %v826_v27, 15  ;;  %v5998_v10 = vpack.c.bf16 %v5939_v24, %v5938_v35  ;;  %v5948_v44 = vrot.slane %v5939_v24, 7  ;;  %v11056_v1 = vld [vmem:[#allocation13 + $0x150] sm:$0xff]   ;;  %v11057_v46 = vld [vmem:[#allocation13 + $0x100] sm:$0xff]   ;;  %v11061_v27 = vld [vmem:[#allocation13 + $0xc8] sm:$0xff]  }
 0x9c2   : > { %v5932_v50 = vadd.f32 %v14645_v47, %v5917_v13  ;;  %v5918_v12 = vmul.f32 %v14637_v3, %v14719_v51  ;;  %v5977_v28 = vsel %vm1212_vm1, %v5971_v29, %v5972_v58  ;;  %vm14740_vm15 = vmpackc.low %vm9501_vm13, %vm11463_vm3  ;;  %v11054_v29 = vld [vmem:[#allocation13 + $0x140] sm:$0xff]   ;;  %v11059_v13 = vld [vmem:[#allocation13 + $0x158] sm:$0xff]   ;;  %10099 = vmatprep.subr.bf16.mxu1 %v11057_v46 }
 0x9c3   : > { %10616 = vmatmul.mubr.msk.bf16.vlgmr.msra.gmra.mrb[168].mxu0 %vm14722_vm12, %v9157_v0  ;;  %v5953_v20 = vsel %vm1163_vm8, %v5947_v49, %v5948_v44  ;;  %10623 = vmatprep.subr.bf16.mxu0 %v11054_v29  ;;  %v11058_v24 = vld [vmem:[#allocation13 + $0xc0] sm:$0xff]   ;;  %v11060_v0 = vld [vmem:[#allocation13 + $0x108] sm:$0xff]  }
 0x9c4   : > { %v5940_v5 = vmax.f32 %v5932_v50, 0.0  ;;  %v5933_v57 = vadd.f32 %v14645_v47, %v5918_v12  ;;  %10624 = vmatpush3.bf16.msra.mxu0 %v11054_v29  ;;  %v11062_v50 = vld [vmem:[#allocation13 + $0x160] sm:$0xff]   ;;  %v11063_v12 = vld [vmem:[#allocation13 + $0x110] sm:$0xff]  }
 0x9c5   : > { %10625 = vmatprep.subr.bf16.mxu0 %v11055_v2 }
 0x9c6   : > { %v5941_v52 = vmax.f32 %v5933_v57, 0.0  ;;  %v5973_v56 = vrot.slane %v5940_v5, 1  ;;  %v5949_v8 = vrot.slane %v5940_v5, 7  ;;  %v11067_v57 = vld [vmem:[#allocation13 + $0xd8] sm:$0xff]  }
 0x9c8   : > { %v5950_v43 = vrot.slane %v5941_v52, 7  ;;  %v5976_v3 = vsel %vm1212_vm1, %v5972_v58, %v5973_v56  ;;  %v5974_v47 = vrot.slane %v5941_v52, 1  ;;  %v6001_v17 = vpack.c.bf16 %v5941_v52, %v5940_v5  ;;  %10626 = vmatpush3.bf16.msra.mxu0 %v11055_v2  ;;  %v11066_v5 = vld [vmem:[#allocation13 + $0x118] sm:$0xff]   ;;  %v11068_v58 = vld [vmem:[#allocation13 + $0x170] sm:$0xff]   ;;  %v11070_v52 = vld [vmem:[#allocation13 + $0xe0] sm:$0xff]  }
 0x9c9   : > { %v9161_v4 = vpack.c.bf16 %v5976_v3, %v5977_v28  ;;  %v5952_v15 = vsel %vm1163_vm8, %v5948_v44, %v5949_v8  ;;  %10627 = vmatprep.subr.bf16.mxu0 %v11056_v1  ;;  %v11074_v3 = vld [vmem:[#allocation13 + $0x130] sm:$0xff]  }
 0x9ca   : > { %v5958_v31 = vsel %vm1163_vm8, %v5950_v43, %v5943_v25  ;;  %v5975_v23 = vsel %vm1212_vm1, %v5973_v56, %v5974_v47  ;;  %v5982_v48 = vsel %vm1212_vm1, %v5974_v47, %v5967_v34  ;;  %v5945_v34 = vrot.slane %v14674_v32, 7  ;;  %v11071_v56 = vld [vmem:[#allocation13 + $0x178] sm:$0xff]   ;;  %v11072_v25 = vld [vmem:[#allocation13 + $0x128] sm:$0xff]   ;;  %v11075_v28 = vld [vmem:[#allocation13 + $0xf0] sm:$0xff]  }
 0x9cb   : > { %10619 = vmatprep.mubr.msk.bf16.mxu0 %vm14740_vm15, %v9161_v4  ;;  %v9137_v9 = vpack.c.bf16 %v5957_v22, %v5958_v31  ;;  %v9165_v30 = vpack.c.bf16 %v5982_v48, %v5975_v23  ;;  %v5954_v32 = vsel %vm1163_vm8, %v5946_v21, %v5947_v49  ;;  %v5951_v38 = vsel %vm1163_vm8, %v5949_v8, %v5950_v43  ;;  %v11073_v43 = vld [vmem:[#allocation13 + $0xe8] sm:$0xff]   ;;  %v11076_v47 = vld [vmem:[#allocation13 + $0x138] sm:$0xff]  }
 0x9cc   : > { %v5955_v18 = vsel %vm1163_vm8, %v5945_v34, %v5946_v21  ;;  %v5956_v19 = vsel %vm1163_vm8, %v5944_v53, %v5945_v34  ;;  %v9145_v55 = vpack.c.bf16 %v5953_v20, %v5954_v32  ;;  %v9149_v35 = vpack.c.bf16 %v5951_v38, %v5952_v15  ;;  %10628 = vmatpush3.bf16.msra.mxu0 %v11056_v1  ;;  %v11069_v53 = vld [vmem:[#allocation13 + $0x120] sm:$0xff]   ;;  %v11077_v4 = vld [vmem:[#allocation13 + $0xf8] sm:$0xff]  }
 0x9cd   : > { %9138 = vmatmul.mubr.msk.bf16.vlgmr.msra.gmra.mrb[160].mxu1 %vm14491_vm0, %v9137_v9  ;;  %10620 = vmatmul.mubr.msk.bf16.gmra.mrb[172].mxu0 %vm14753_vm5, %v9165_v30  ;;  %v9141_v11 = vpack.c.bf16 %v5955_v18, %v5956_v19  ;;  %v14798_v32 = vld [vmem:[%s15795_s29 + $0x1] ss:$0 sm:$0xff] }
 0x9ce   : > { %6241 = vmatprep.mubr.bf16.mxu1 %v5995_v42  ;;  %10100 = vmatpush3.bf16.msra.mxu1 %v11058_v24  ;;  %v14790_v42 = vld [vmem:[%s15807_s15] ss:$0 sm:$0xff]  ;;  %v14804_v8 = vld [vmem:[%s15796_s12 + $0x1] ss:$0 sm:$0xff] }
 0x9cf   : > { %10629 = vmatprep.subr.bf16.mxu0 %v11059_v13  ;;  %10101 = vmatprep.subr.bf16.mxu1 %v11060_v0 }
 0x9d0   : > { %10630 = vmatpush3.bf16.msra.mxu0 %v11059_v13 }
 0x9d1   : > { %10631 = vmatprep.subr.bf16.mxu0 %v11062_v50 }
 0x9d2   : > { %10102 = vmatpush3.bf16.msra.mxu1 %v11061_v27 }
 0x9d3   : > { %10103 = vmatprep.subr.bf16.mxu1 %v11063_v12 }
 0x9d4   : > { %10632 = vmatpush3.bf16.msra.mxu0 %v11062_v50 }
 0x9d5   : > { %9142 = vmatmul.mubr.msk.bf16.gmra.mrb[164].mxu1 %vm14559_vm2, %v9141_v11  ;;  %10633 = vmatprep.subr.bf16.mxu0 %v11065_v14 }
 0x9d6   : > { %6249 = vmatprep.mubr.bf16.mxu1 %v5998_v10  ;;  %10104 = vmatpush3.bf16.msra.mxu1 %v11064_v37 }
 0x9d7   : > { %10105 = vmatprep.subr.bf16.mxu1 %v11066_v5 }
 0x9d8   : > { %10634 = vmatpush3.bf16.msra.mxu0 %v11065_v14 }
 0x9d9   : > { %10635 = vmatprep.subr.bf16.mxu0 %v11068_v58 }
 0x9da   : > { %10106 = vmatpush3.bf16.msra.mxu1 %v11067_v57 }
 0x9db   : > { %10107 = vmatprep.subr.bf16.mxu1 %v11069_v53 }
 0x9dc   : > { %10636 = vmatpush3.bf16.msra.mxu0 %v11068_v58 }
 0x9dd   : > { %9146 = vmatmul.mubr.msk.bf16.gmra.mrb[168].mxu1 %vm14614_vm7, %v9145_v55  ;;  %10637 = vmatprep.subr.bf16.mxu0 %v11071_v56 }
 0x9de   : > { %6257 = vmatprep.mubr.bf16.mxu1 %v6001_v17  ;;  %10108 = vmatpush3.bf16.msra.mxu1 %v11070_v52 }
 0x9df   : > { %10109 = vmatprep.subr.bf16.mxu1 %v11072_v25 }
 0x9e0   : > { %10638 = vmatpush3.bf16.msra.mxu0 %v11071_v56 }
 0x9e2   : > { %10110 = vmatpush3.bf16.msra.mxu1 %v11073_v43 }
 0x9e3   : > { %10111 = vmatprep.subr.bf16.mxu1 %v11074_v3 }
 0x9e5   : > { %9150 = vmatmul.mubr.msk.bf16.gmra.mrb[172].mxu1 %vm14621_vm6, %v9149_v35 }
 0x9e6   : > { %10112 = vmatpush3.bf16.msra.mxu1 %v11075_v28 }
 0x9e7   : > { %10113 = vmatprep.subr.bf16.mxu1 %v11076_v47 }
 0x9ea   : > { %10114 = vmatpush3.bf16.msra.mxu1 %v11077_v4 }
 0xa96   : > { %v10617_v22 = vpop.f32.mrb[168].mxu0 }
 0xa97   : > { %v6300_v31 = vpop.f32.mrb[169].mxu0 }
 0xa98   : > { %v10618_v23 = vpop.f32.mrb[170].mxu0 }
 0xa99   : > { %v6303_v48 = vpop.f32.mrb[171].mxu0 }
 0xaa0   : > { %v10063_v9 = vpop.f32.mrb[160].mxu1  ;;  %v14785_v30 = vpop.f32.mrb[172].mxu0 }
 0xaa1   : > { %v10064_v21 = vpop.f32.mrb[161].mxu1  ;;  %v6316_v34 = vpop.f32.mrb[173].mxu0 }
 0xaa2   : > { %v10065_v18 = vadd.f32 %v10064_v21, %v10063_v9  ;;  %v10066_v19 = vpop.f32.mrb[162].mxu1  ;;  %v14792_v11 = vpop.f32.mrb[174].mxu0 }
 0xaa3   : > { %v10067_v10 = vpop.f32.mrb[163].mxu1  ;;  %v6319_v44 = vpop.f32.mrb[175].mxu0 }
 0xaa4   : > { %v6236_v49 = vadd.f32 %v10065_v18, %v14790_v42  ;;  %v10068_v20 = vadd.f32 %v10067_v10, %v10066_v19 }
 0xaa6   : > { %v6301_v55 = vadd.f32 %v6300_v31, %v6236_v49  ;;  %v6239_v17 = vadd.f32 %v10068_v20, %v14790_v42 }
 0xaa8   : > { %v6339_v38 = vmul.f32 %v14798_v32, %v6301_v55  ;;  %v6304_v15 = vadd.f32 %v6303_v48, %v6239_v17  ;;  %v10069_v35 = vpop.f32.mrb[164].mxu1 }
 0xaa9   : > { %v10070_v29 = vpop.f32.mrb[165].mxu1 }
 0xaaa   : > { %v6355_v2 = vadd.f32 %v14804_v8, %v6339_v38  ;;  %v6340_v1 = vmul.f32 %v14798_v32, %v6304_v15  ;;  %v10071_v46 = vadd.f32 %v10070_v29, %v10069_v35  ;;  %v10072_v24 = vpop.f32.mrb[166].mxu1 }
 0xaab   : > { %v10073_v13 = vpop.f32.mrb[167].mxu1 }
 0xaac   : > { %v6356_v0 = vadd.f32 %v14804_v8, %v6340_v1  ;;  %v6244_v27 = vadd.f32 %v10071_v46, %v14790_v42  ;;  %v10074_v50 = vadd.f32 %v10073_v13, %v10072_v24  ;;  %v14811_v12 = vmax.f32 %v6355_v2, 0.0 }
 0xaae   : > { %v6309_v14 = vadd.f32 %v10617_v22, %v6244_v27  ;;  %v6247_v37 = vadd.f32 %v10074_v50, %v14790_v42  ;;  %v6364_v5 = vmax.f32 %v6356_v0, 0.0  ;;  %v6373_v57 = vrot.slane %v14811_v12, 7 }
 0xaaf   : > { %v6397_v3 = vrot.slane %v14811_v12, 1 }
 0xab0   : > { %v6341_v58 = vmul.f32 %v14798_v32, %v6309_v14  ;;  %v6312_v53 = vadd.f32 %v10618_v23, %v6247_v37  ;;  %v10075_v52 = vpop.f32.mrb[168].mxu1  ;;  %v6374_v56 = vrot.slane %v6364_v5, 7  ;;  %v6422_v25 = vpack.c.bf16 %v6364_v5, %v14811_v12  ;;  %v11078_v12 = vld [vmem:[#allocation13 + $0x200] sm:$0xff]  }
 0xab1   : > { %v10076_v43 = vpop.f32.mrb[169].mxu1  ;;  %v6398_v28 = vrot.slane %v6364_v5, 1  ;;  %10647 = vmatprep.subr.bf16.mxu0 %v11078_v12 }
 0xab2   : > { %v6357_v47 = vadd.f32 %v14804_v8, %v6341_v58  ;;  %v6342_v4 = vmul.f32 %v14798_v32, %v6312_v53  ;;  %v10077_v22 = vadd.f32 %v10076_v43, %v10075_v52  ;;  %v10078_v31 = vpop.f32.mrb[170].mxu1  ;;  %v14824_v48 = vsel %vm1163_vm8, %v6373_v57, %v6374_v56  ;;  %6664 = vmatprep.mubr.bf16.mxu1 %v6422_v25 }
 0xab3   : > { %v10079_v23 = vpop.f32.mrb[171].mxu1  ;;  %v6411_v9 = vsel %vm1212_vm1, %v6397_v3, %v6398_v28 }
 0xab4   : > { %v14830_v21 = vmax.f32 %v6357_v47, 0.0  ;;  %v6358_v18 = vadd.f32 %v14804_v8, %v6342_v4  ;;  %v6252_v19 = vadd.f32 %v10077_v22, %v14790_v42  ;;  %v10080_v10 = vadd.f32 %v10079_v23, %v10078_v31 }
 0xab6   : > { %v14834_v49 = vmax.f32 %v6358_v18, 0.0  ;;  %v6317_v20 = vadd.f32 %v6316_v34, %v6252_v19  ;;  %v6255_v55 = vadd.f32 %v10080_v10, %v14790_v42  ;;  %v6399_v17 = vrot.slane %v14830_v21, 1 }
 0xab7   : > { %v6375_v38 = vrot.slane %v14830_v21, 7 }
 0xab8   : > { %v6400_v15 = vrot.slane %v14834_v49, 1  ;;  %v6343_v35 = vmul.f32 %v14798_v32, %v6317_v20  ;;  %v6320_v29 = vadd.f32 %v6319_v44, %v6255_v55  ;;  %v10081_v2 = vpop.f32.mrb[172].mxu1  ;;  %v6410_v1 = vsel %vm1212_vm1, %v6398_v28, %v6399_v17 }
 0xab9   : > { %v10082_v46 = vpop.f32.mrb[173].mxu1  ;;  %v9215_v24 = vpack.c.bf16 %v6410_v1, %v6411_v9  ;;  %v6425_v34 = vpack.c.bf16 %v14834_v49, %v14830_v21  ;;  %v6376_v13 = vrot.slane %v14834_v49, 7  ;;  %v6386_v0 = vsel %vm1163_vm8, %v6374_v56, %v6375_v38 }
 0xaba   : > { %v6359_v27 = vadd.f32 %v14804_v8, %v6343_v35  ;;  %v6344_v50 = vmul.f32 %v14798_v32, %v6320_v29  ;;  %v10083_v14 = vadd.f32 %v10082_v46, %v10081_v2  ;;  %v10084_v44 = vpop.f32.mrb[174].mxu1  ;;  %v6409_v37 = vsel %vm1212_vm1, %v6399_v17, %v6400_v15 }
 0xabb   : > { %v10085_v5 = vpop.f32.mrb[175].mxu1  ;;  %10639 = vmatprep.mubr.msk.bf16.mxu0 %vm14694_vm10, %v9215_v24  ;;  %v6385_v58 = vsel %vm1163_vm8, %v6375_v38, %v6376_v13 }
 0xabc   : > { %v6367_v53 = vmax.f32 %v6359_v27, 0.0  ;;  %v6360_v52 = vadd.f32 %v14804_v8, %v6344_v50  ;;  %v6260_v56 = vadd.f32 %v10083_v14, %v14790_v42  ;;  %v10086_v25 = vadd.f32 %v10085_v5, %v10084_v44 }
 0xabd   : > { %v9203_v43 = vpack.c.bf16 %v6385_v58, %v6386_v0  ;;  %v11083_v58 = vld [vmem:[#allocation13 + $0x218] sm:$0xff]  }
 0xabe   : > { %v6401_v28 = vrot.slane %v6367_v53, 1  ;;  %v6368_v47 = vmax.f32 %v6360_v52, 0.0  ;;  %v6325_v4 = vadd.f32 %v14785_v30, %v6260_v56  ;;  %v6263_v22 = vadd.f32 %v10086_v25, %v14790_v42  ;;  %v11085_v52 = vld [vmem:[#allocation13 + $0x188] sm:$0xff]   ;;  %v11086_v56 = vld [vmem:[#allocation13 + $0x220] sm:$0xff]   ;;  %v11087_v25 = vld [vmem:[#allocation13 + $0x1d0] sm:$0xff]  }
 0xabf   : > { %v6377_v31 = vrot.slane %v6367_v53, 7 }
 0xac0   : > { %v6408_v23 = vsel %vm1212_vm1, %v6400_v15, %v6401_v28  ;;  %v6345_v9 = vmul.f32 %v14798_v32, %v6325_v4  ;;  %v6328_v21 = vadd.f32 %v14792_v11, %v6263_v22  ;;  %v6402_v18 = vrot.slane %v6368_v47, 1  ;;  %v11091_v4 = vld [vmem:[#allocation13 + $0x198] sm:$0xff]   ;;  %v11092_v22 = vld [vmem:[#allocation13 + $0x230] sm:$0xff]  }
 0xac1   : > { %v9219_v19 = vpack.c.bf16 %v6408_v23, %v6409_v37  ;;  %v6428_v10 = vpack.c.bf16 %v6368_v47, %v6367_v53  ;;  %v6378_v49 = vrot.slane %v6368_v47, 7  ;;  %v6384_v20 = vsel %vm1163_vm8, %v6376_v13, %v6377_v31  ;;  %v11084_v53 = vld [vmem:[#allocation13 + $0x1c8] sm:$0xff]   ;;  %v11090_v47 = vld [vmem:[#allocation13 + $0x1d8] sm:$0xff]   ;;  %v11094_v23 = vld [vmem:[#allocation13 + $0x1a0] sm:$0xff]  }
 0xac2   : > { %v6361_v55 = vadd.f32 %v14804_v8, %v6345_v9  ;;  %v6346_v30 = vmul.f32 %v14798_v32, %v6328_v21  ;;  %v6407_v42 = vsel %vm1212_vm1, %v6401_v28, %v6402_v18  ;;  %v11089_v28 = vld [vmem:[#allocation13 + $0x228] sm:$0xff]   ;;  %v11095_v9 = vld [vmem:[#allocation13 + $0x238] sm:$0xff]  }
 0xac3   : > { %10640 = vmatmul.mubr.msk.bf16.vlgmr.msra.gmra.mrb[176].mxu0 %vm14722_vm12, %v9219_v19  ;;  %v6383_v11 = vsel %vm1163_vm8, %v6377_v31, %v6378_v49  ;;  %v11093_v31 = vld [vmem:[#allocation13 + $0x1e0] sm:$0xff]   ;;  %v11096_v21 = vld [vmem:[#allocation13 + $0x1e8] sm:$0xff]   ;;  %v11098_v19 = vld [vmem:[#allocation13 + $0x1f0] sm:$0xff]  }
 0xac4   : > { %v6369_v17 = vmax.f32 %v6361_v55, 0.0  ;;  %v6362_v38 = vadd.f32 %v14804_v8, %v6346_v30  ;;  %v9207_v15 = vpack.c.bf16 %v6383_v11, %v6384_v20  ;;  %10648 = vmatpush3.bf16.msra.mxu0 %v11078_v12  ;;  %v11101_v20 = vld [vmem:[#allocation13 + $0x1b8] sm:$0xff]  }
 0xac6   : > { %v6370_v35 = vmax.f32 %v6362_v38, 0.0  ;;  %v6403_v29 = vrot.slane %v6369_v17, 1  ;;  %v6379_v2 = vrot.slane %v6369_v17, 7 }
 0xac8   : > { %v6380_v1 = vrot.slane %v6370_v35, 7  ;;  %v6406_v32 = vsel %vm1212_vm1, %v6402_v18, %v6403_v29  ;;  %v6404_v46 = vrot.slane %v6370_v35, 1  ;;  %v6431_v24 = vpack.c.bf16 %v6370_v35, %v6369_v17  ;;  %v11097_v18 = vld [vmem:[#allocation13 + $0x1a8] sm:$0xff]  }
 0xac9   : > { %v9223_v13 = vpack.c.bf16 %v6406_v32, %v6407_v42  ;;  %v6382_v0 = vsel %vm1163_vm8, %v6378_v49, %v6379_v2  ;;  %v11100_v49 = vld [vmem:[#allocation13 + $0x1f8] sm:$0xff]  }
 0xaca   : > { %v6388_v27 = vsel %vm1163_vm8, %v6380_v1, %v6373_v57  ;;  %v6405_v8 = vsel %vm1212_vm1, %v6403_v29, %v6404_v46  ;;  %v6412_v50 = vsel %vm1212_vm1, %v6404_v46, %v6397_v3  ;;  %v6381_v14 = vsel %vm1163_vm8, %v6379_v2, %v6380_v1  ;;  %v11079_v57 = vld [vmem:[#allocation13 + $0x208] sm:$0xff]   ;;  %v11080_v3 = vld [vmem:[#allocation13 + $0x210] sm:$0xff]  }
 0xacb   : > { %10643 = vmatprep.mubr.msk.bf16.mxu0 %vm14740_vm15, %v9223_v13  ;;  %v9199_v44 = vpack.c.bf16 %v14824_v48, %v6388_v27  ;;  %v9227_v37 = vpack.c.bf16 %v6412_v50, %v6405_v8  ;;  %v9211_v5 = vpack.c.bf16 %v6381_v14, %v6382_v0  ;;  %10649 = vmatprep.subr.bf16.mxu0 %v11079_v57  ;;  %v11081_v48 = vld [vmem:[#allocation13 + $0x1c0] sm:$0xff]   ;;  %v14918_v50 = vld [vmem:[%s15795_s29 + $0x2] ss:$0 sm:$0xff] }
 0xacc   : > { %10650 = vmatpush3.bf16.msra.mxu0 %v11079_v57  ;;  %10151 = vmatprep.subr.bf16.mxu1 %v11081_v48  ;;  %v14931_v48 = vld [vmem:[%s15796_s12 + $0x2] ss:$0 sm:$0xff] }
 0xacd   : > { %9200 = vmatmul.mubr.msk.bf16.vlgmr.msra.gmra.mrb[176].mxu1 %vm14491_vm0, %v9199_v44  ;;  %10644 = vmatmul.mubr.msk.bf16.gmra.mrb[180].mxu0 %vm14753_vm5, %v9227_v37 }
 0xace   : > { %6672 = vmatprep.mubr.bf16.mxu1 %v6425_v34  ;;  %v11082_v34 = vld [vmem:[#allocation13 + $0x180] sm:$0xff]   ;;  %10651 = vmatprep.subr.bf16.mxu0 %v11080_v3 }
 0xacf   : > { %10152 = vmatpush3.bf16.msra.mxu1 %v11082_v34 }
 0xad0   : > { %10652 = vmatpush3.bf16.msra.mxu0 %v11080_v3  ;;  %10153 = vmatprep.subr.bf16.mxu1 %v11084_v53 }
 0xad1   : > { %10653 = vmatprep.subr.bf16.mxu0 %v11083_v58 }
 0xad3   : > { %10154 = vmatpush3.bf16.msra.mxu1 %v11085_v52 }
 0xad4   : > { %10654 = vmatpush3.bf16.msra.mxu0 %v11083_v58  ;;  %10155 = vmatprep.subr.bf16.mxu1 %v11087_v25 }
 0xad5   : > { %9204 = vmatmul.mubr.msk.bf16.gmra.mrb[180].mxu1 %vm14559_vm2, %v9203_v43  ;;  %v11088_v43 = vld [vmem:[#allocation13 + $0x190] sm:$0xff]   ;;  %10655 = vmatprep.subr.bf16.mxu0 %v11086_v56 }
 0xad6   : > { %6680 = vmatprep.mubr.bf16.mxu1 %v6428_v10  ;;  %v11099_v10 = vld [vmem:[#allocation13 + $0x1b0] sm:$0xff]  }
 0xad7   : > { %10156 = vmatpush3.bf16.msra.mxu1 %v11088_v43 }
 0xad8   : > { %10656 = vmatpush3.bf16.msra.mxu0 %v11086_v56  ;;  %10157 = vmatprep.subr.bf16.mxu1 %v11090_v47 }
 0xad9   : > { %10657 = vmatprep.subr.bf16.mxu0 %v11089_v28 }
 0xadb   : > { %10158 = vmatpush3.bf16.msra.mxu1 %v11091_v4 }
 0xadc   : > { %10658 = vmatpush3.bf16.msra.mxu0 %v11089_v28  ;;  %10159 = vmatprep.subr.bf16.mxu1 %v11093_v31 }
 0xadd   : > { %9208 = vmatmul.mubr.msk.bf16.gmra.mrb[184].mxu1 %vm14614_vm7, %v9207_v15  ;;  %10659 = vmatprep.subr.bf16.mxu0 %v11092_v22  ;;  %v14909_v15 = vld [vmem:[%s15807_s15 + $0x1] ss:$0 sm:$0xff] }
 0xade   : > { %6688 = vmatprep.mubr.bf16.mxu1 %v6431_v24 }
 0xadf   : > { %10160 = vmatpush3.bf16.msra.mxu1 %v11094_v23 }
 0xae0   : > { %10660 = vmatpush3.bf16.msra.mxu0 %v11092_v22  ;;  %10161 = vmatprep.subr.bf16.mxu1 %v11096_v21 }
 0xae1   : > { %10661 = vmatprep.subr.bf16.mxu0 %v11095_v9 }
 0xae3   : > { %10162 = vmatpush3.bf16.msra.mxu1 %v11097_v18 }
 0xae4   : > { %10662 = vmatpush3.bf16.msra.mxu0 %v11095_v9  ;;  %10163 = vmatprep.subr.bf16.mxu1 %v11098_v19 }
 0xae5   : > { %9212 = vmatmul.mubr.msk.bf16.gmra.mrb[188].mxu1 %vm14621_vm6, %v9211_v5 }
 0xae7   : > { %10164 = vmatpush3.bf16.msra.mxu1 %v11099_v10 }
 0xae8   : > { %10165 = vmatprep.subr.bf16.mxu1 %v11100_v49 }
 0xaeb   : > { %10166 = vmatpush3.bf16.msra.mxu1 %v11101_v20 }
 0xb96   : > { %v10641_v55 = vpop.f32.mrb[176].mxu0 }
 0xb97   : > { %v6731_v30 = vpop.f32.mrb[177].mxu0 }
 0xb98   : > { %v10642_v42 = vpop.f32.mrb[178].mxu0 }
 0xb99   : > { %v6734_v11 = vpop.f32.mrb[179].mxu0 }
 0xba0   : > { %v10115_v17 = vpop.f32.mrb[176].mxu1  ;;  %v14904_v38 = vpop.f32.mrb[180].mxu0 }
 0xba1   : > { %v10116_v35 = vpop.f32.mrb[177].mxu1  ;;  %v6747_v29 = vpop.f32.mrb[181].mxu0 }
 0xba2   : > { %v10117_v2 = vadd.f32 %v10116_v35, %v10115_v17  ;;  %v10118_v1 = vpop.f32.mrb[178].mxu1  ;;  %v14911_v32 = vpop.f32.mrb[182].mxu0 }
 0xba3   : > { %v10119_v46 = vpop.f32.mrb[179].mxu1  ;;  %v6750_v24 = vpop.f32.mrb[183].mxu0 }
 0xba4   : > { %v6667_v13 = vadd.f32 %v10117_v2, %v14909_v15  ;;  %v10120_v0 = vadd.f32 %v10119_v46, %v10118_v1 }
 0xba6   : > { %v6732_v27 = vadd.f32 %v6731_v30, %v6667_v13  ;;  %v6670_v8 = vadd.f32 %v10120_v0, %v14909_v15 }
 0xba8   : > { %v14921_v14 = vadd.f32 %v6732_v27, %v14639_v54  ;;  %v6735_v44 = vadd.f32 %v6734_v11, %v6670_v8  ;;  %v10121_v37 = vpop.f32.mrb[180].mxu1 }
 0xba9   : > { %v10122_v5 = vpop.f32.mrb[181].mxu1 }
 0xbaa   : > { %v6778_v12 = vmul.f32 %v14918_v50, %v14921_v14  ;;  %v14926_v57 = vadd.f32 %v6735_v44, %v14649_v26  ;;  %v10123_v3 = vadd.f32 %v10122_v5, %v10121_v37  ;;  %v10124_v34 = vpop.f32.mrb[182].mxu1 }
 0xbab   : > { %v10125_v58 = vpop.f32.mrb[183].mxu1 }
 0xbac   : > { %v6779_v54 = vmul.f32 %v14918_v50, %v14926_v57  ;;  %v6675_v53 = vadd.f32 %v10123_v3, %v14909_v15  ;;  %v10126_v52 = vadd.f32 %v10125_v58, %v10124_v34  ;;  %v6794_v56 = vadd.f32 %v14931_v48, %v6778_v12 }
 0xbae   : > { %v6740_v25 = vadd.f32 %v10641_v55, %v6675_v53  ;;  %v6678_v26 = vadd.f32 %v10126_v52, %v14909_v15  ;;  %v6795_v43 = vadd.f32 %v14931_v48, %v6779_v54  ;;  %v14944_v23 = vmax.f32 %v6794_v56, 0.0 }
 0xbb0   : > { %v14940_v28 = vadd.f32 %v6740_v25, %v14657_v63  ;;  %v6743_v47 = vadd.f32 %v10642_v42, %v6678_v26  ;;  %v10127_v4 = vpop.f32.mrb[184].mxu1  ;;  %v14942_v22 = vmax.f32 %v6795_v43, 0.0  ;;  %v6836_v8 = vrot.slane %v14944_v23, 1 }
 0xbb1   : > { %v10128_v31 = vpop.f32.mrb[185].mxu1 }
 0xbb2   : > { %v6780_v9 = vmul.f32 %v14918_v50, %v14940_v28  ;;  %v14949_v21 = vadd.f32 %v6743_v47, %v14666_v39  ;;  %v10129_v18 = vadd.f32 %v10128_v31, %v10127_v4  ;;  %v10130_v19 = vpop.f32.mrb[186].mxu1  ;;  %v6861_v63 = vpack.c.bf16 %v14942_v22, %v14944_v23 }
 0xbb3   : > { %v10131_v10 = vpop.f32.mrb[187].mxu1  ;;  %v6837_v35 = vrot.slane %v14942_v22, 1 }
 0xbb4   : > { %v6796_v49 = vadd.f32 %v14931_v48, %v6780_v9  ;;  %v6781_v20 = vmul.f32 %v14918_v50, %v14949_v21  ;;  %v6683_v55 = vadd.f32 %v10129_v18, %v14909_v15  ;;  %v10132_v30 = vadd.f32 %v10131_v10, %v10130_v19  ;;  %7103 = vmatprep.mubr.bf16.mxu1 %v6861_v63 }
 0xbb6   : > { %v14957_v42 = vmax.f32 %v6796_v49, 0.0  ;;  %v6797_v39 = vadd.f32 %v14931_v48, %v6781_v20  ;;  %v6748_v11 = vadd.f32 %v6747_v29, %v6683_v55  ;;  %v6686_v17 = vadd.f32 %v10132_v30, %v14909_v15 }
 0xbb7   : > { %v6813_v20 = vrot.slane %v14942_v22, 7  ;;  %v6812_v30 = vrot.slane %v14944_v23, 7 }
 0xbb8   : > { %v14963_v2 = vadd.f32 %v6748_v11, %v14678_v6  ;;  %v6751_v1 = vadd.f32 %v6750_v24, %v6686_v17  ;;  %v10133_v46 = vpop.f32.mrb[188].mxu1  ;;  %v6838_v13 = vrot.slane %v14957_v42, 1  ;;  %v14966_v0 = vmax.f32 %v6797_v39, 0.0 }
 0xbb9   : > { %v10134_v27 = vpop.f32.mrb[189].mxu1  ;;  %v6850_v24 = vsel %vm1212_vm1, %v6836_v8, %v6837_v35 }
 0xbba   : > { %v6782_v44 = vmul.f32 %v14918_v50, %v14963_v2  ;;  %v14972_v29 = vadd.f32 %v6751_v1, %v14687_v33  ;;  %v10135_v37 = vadd.f32 %v10134_v27, %v10133_v46  ;;  %v10136_v5 = vpop.f32.mrb[190].mxu1  ;;  %v6849_v6 = vsel %vm1212_vm1, %v6837_v35, %v6838_v13 }
 0xbbb   : > { %v10137_v12 = vpop.f32.mrb[191].mxu1  ;;  %v6839_v33 = vrot.slane %v14966_v0, 1  ;;  %v9277_v53 = vpack.c.bf16 %v6849_v6, %v6850_v24  ;;  %v6826_v1 = vsel %vm1163_vm8, %v6812_v30, %v6813_v20  ;;  %v6864_v27 = vpack.c.bf16 %v14966_v0, %v14957_v42 }
 0xbbc   : > { %v6798_v3 = vadd.f32 %v14931_v48, %v6782_v44  ;;  %v6783_v34 = vmul.f32 %v14918_v50, %v14972_v29  ;;  %v6691_v58 = vadd.f32 %v10135_v37, %v14909_v15  ;;  %v10138_v54 = vadd.f32 %v10137_v12, %v10136_v5 }
 0xbbd   : > { %10663 = vmatprep.mubr.msk.bf16.mxu0 %vm14694_vm10, %v9277_v53  ;;  %v6848_v31 = vsel %vm1212_vm1, %v6838_v13, %v6839_v33  ;;  %v6815_v44 = vrot.slane %v14966_v0, 7  ;;  %v6814_v37 = vrot.slane %v14957_v42, 7 }
 0xbbe   : > { %v6806_v52 = vmax.f32 %v6798_v3, 0.0  ;;  %v6799_v56 = vadd.f32 %v14931_v48, %v6783_v34  ;;  %v6756_v25 = vadd.f32 %v14904_v38, %v6691_v58  ;;  %v6694_v26 = vadd.f32 %v10138_v54, %v14909_v15 }
 0xbbf   : > { %v6825_v5 = vsel %vm1163_vm8, %v6813_v20, %v6814_v37  ;;  %v11117_v20 = vld [vmem:[#allocation13 + $0x2a0] sm:$0xff]  }
 0xbc0   : > { %v6840_v43 = vrot.slane %v6806_v52, 1  ;;  %v14989_v47 = vadd.f32 %v6756_v25, %v14709_v62  ;;  %v6759_v4 = vadd.f32 %v14911_v32, %v6694_v26  ;;  %v6807_v9 = vmax.f32 %v6799_v56, 0.0  ;;  %v11102_v56 = vld [vmem:[#allocation13 + $0x2c0] sm:$0xff]   ;;  %v11103_v25 = vld [vmem:[#allocation13 + $0x2c8] sm:$0xff]   ;;  %v11104_v26 = vld [vmem:[#allocation13 + $0x2d0] sm:$0xff]  }
 0xbc1   : > { %v6816_v0 = vrot.slane %v6806_v52, 7  ;;  %10671 = vmatprep.subr.bf16.mxu0 %v11102_v56 }
 0xbc2   : > { %v6784_v18 = vmul.f32 %v14918_v50, %v14989_v47  ;;  %v14997_v38 = vadd.f32 %v6759_v4, %v14719_v51  ;;  %v6847_v15 = vsel %vm1212_vm1, %v6839_v33, %v6840_v43  ;;  %v6841_v49 = vrot.slane %v6807_v9, 1  ;;  %v11106_v4 = vld [vmem:[#allocation13 + $0x240] sm:$0xff]  }
 0xbc3   : > { %v9281_v19 = vpack.c.bf16 %v6847_v15, %v6848_v31  ;;  %v6867_v6 = vpack.c.bf16 %v6807_v9, %v6806_v52  ;;  %v6817_v24 = vrot.slane %v6807_v9, 7  ;;  %v6823_v42 = vsel %vm1163_vm8, %v6815_v44, %v6816_v0  ;;  %v11107_v31 = vld [vmem:[#allocation13 + $0x2d8] sm:$0xff]   ;;  %v11108_v9 = vld [vmem:[#allocation13 + $0x288] sm:$0xff]   ;;  %v11110_v15 = vld [vmem:[#allocation13 + $0x2e0] sm:$0xff]  }
 0xbc4   : > { %v6800_v10 = vadd.f32 %v14931_v48, %v6784_v18  ;;  %v6785_v62 = vmul.f32 %v14918_v50, %v14997_v38  ;;  %v6846_v50 = vsel %vm1212_vm1, %v6840_v43, %v6841_v49  ;;  %v11105_v43 = vld [vmem:[#allocation13 + $0x280] sm:$0xff]   ;;  %v11109_v18 = vld [vmem:[#allocation13 + $0x248] sm:$0xff]  }
 0xbc5   : > { %10664 = vmatmul.mubr.msk.bf16.vlgmr.msra.gmra.mrb[184].mxu0 %vm14722_vm12, %v9281_v19  ;;  %v6822_v3 = vsel %vm1163_vm8, %v6816_v0, %v6817_v24  ;;  %10203 = vmatprep.subr.bf16.mxu1 %v11105_v43  ;;  %v11111_v19 = vld [vmem:[#allocation13 + $0x290] sm:$0xff]  }
 0xbc6   : > { %v6808_v32 = vmax.f32 %v6800_v10, 0.0  ;;  %v6801_v63 = vadd.f32 %v14931_v48, %v6785_v62  ;;  %v9269_v34 = vpack.c.bf16 %v6822_v3, %v6823_v42  ;;  %10672 = vmatpush3.bf16.msra.mxu0 %v11102_v56  ;;  %v11113_v10 = vld [vmem:[#allocation13 + $0x2e8] sm:$0xff]   ;;  %v11112_v62 = vld [vmem:[#allocation13 + $0x250] sm:$0xff]   ;;  %v15062_v42 = vld [vmem:[%s15795_s29 + $0x3] ss:$0 sm:$0xff] }
 0xbc7   : > { %10673 = vmatprep.subr.bf16.mxu0 %v11103_v25 }
 0xbc8   : > { %v6809_v51 = vmax.f32 %v6801_v63, 0.0  ;;  %v6842_v55 = vrot.slane %v6808_v32, 1  ;;  %v6818_v54 = vrot.slane %v6808_v32, 7  ;;  %v11115_v63 = vld [vmem:[#allocation13 + $0x258] sm:$0xff]  }
 0xbca   : > { %v6819_v39 = vrot.slane %v6809_v51, 7  ;;  %v6845_v11 = vsel %vm1212_vm1, %v6841_v49, %v6842_v55  ;;  %v6843_v17 = vrot.slane %v6809_v51, 1  ;;  %v6870_v58 = vpack.c.bf16 %v6809_v51, %v6808_v32  ;;  %10674 = vmatpush3.bf16.msra.mxu0 %v11103_v25  ;;  %v11114_v32 = vld [vmem:[#allocation13 + $0x298] sm:$0xff]   ;;  %v11116_v49 = vld [vmem:[#allocation13 + $0x2f0] sm:$0xff]   ;;  %v11118_v51 = vld [vmem:[#allocation13 + $0x260] sm:$0xff]  }
 0xbcb   : > { %v9285_v35 = vpack.c.bf16 %v6845_v11, %v6846_v50  ;;  %v6821_v53 = vsel %vm1163_vm8, %v6817_v24, %v6818_v54  ;;  %10675 = vmatprep.subr.bf16.mxu0 %v11104_v26  ;;  %v11122_v11 = vld [vmem:[#allocation13 + $0x2b0] sm:$0xff]  }
 0xbcc   : > { %v6827_v48 = vsel %vm1163_vm8, %v6819_v39, %v6812_v30  ;;  %v6844_v22 = vsel %vm1212_vm1, %v6842_v55, %v6843_v17  ;;  %v6851_v23 = vsel %vm1212_vm1, %v6843_v17, %v6836_v8  ;;  %v6824_v8 = vsel %vm1163_vm8, %v6814_v37, %v6815_v44  ;;  %v11119_v55 = vld [vmem:[#allocation13 + $0x2f8] sm:$0xff]   ;;  %v11120_v30 = vld [vmem:[#allocation13 + $0x2a8] sm:$0xff]   ;;  %v11123_v50 = vld [vmem:[#allocation13 + $0x270] sm:$0xff]  }
 0xbcd   : > { %10667 = vmatprep.mubr.msk.bf16.mxu0 %vm14740_vm15, %v9285_v35  ;;  %v9261_v46 = vpack.c.bf16 %v6826_v1, %v6827_v48  ;;  %v9289_v13 = vpack.c.bf16 %v6851_v23, %v6844_v22  ;;  %v9265_v12 = vpack.c.bf16 %v6824_v8, %v6825_v5  ;;  %v6820_v33 = vsel %vm1163_vm8, %v6818_v54, %v6819_v39  ;;  %v11121_v39 = vld [vmem:[#allocation13 + $0x268] sm:$0xff]   ;;  %v11124_v17 = vld [vmem:[#allocation13 + $0x2b8] sm:$0xff]  }
 0xbce   : > { %v9273_v52 = vpack.c.bf16 %v6820_v33, %v6821_v53  ;;  %10676 = vmatpush3.bf16.msra.mxu0 %v11104_v26  ;;  %v11125_v35 = vld [vmem:[#allocation13 + $0x278] sm:$0xff]  }
 0xbcf   : > { %9262 = vmatmul.mubr.msk.bf16.vlgmr.msra.gmra.mrb[192].mxu1 %vm14491_vm0, %v9261_v46  ;;  %10668 = vmatmul.mubr.msk.bf16.gmra.mrb[188].mxu0 %vm14753_vm5, %v9289_v13  ;;  %v15068_v54 = vld [vmem:[%s15796_s12 + $0x3] ss:$0 sm:$0xff] }
 0xbd0   : > { %7111 = vmatprep.mubr.bf16.mxu1 %v6864_v27  ;;  %10204 = vmatpush3.bf16.msra.mxu1 %v11106_v4  ;;  %v15054_v27 = vld [vmem:[%s15807_s15 + $0x2] ss:$0 sm:$0xff] }
 0xbd1   : > { %10677 = vmatprep.subr.bf16.mxu0 %v11107_v31  ;;  %10205 = vmatprep.subr.bf16.mxu1 %v11108_v9 }
 0xbd2   : > { %10678 = vmatpush3.bf16.msra.mxu0 %v11107_v31 }
 0xbd3   : > { %10679 = vmatprep.subr.bf16.mxu0 %v11110_v15 }
 0xbd4   : > { %10206 = vmatpush3.bf16.msra.mxu1 %v11109_v18 }
 0xbd5   : > { %10207 = vmatprep.subr.bf16.mxu1 %v11111_v19 }
 0xbd6   : > { %10680 = vmatpush3.bf16.msra.mxu0 %v11110_v15 }
 0xbd7   : > { %9266 = vmatmul.mubr.msk.bf16.gmra.mrb[196].mxu1 %vm14559_vm2, %v9265_v12  ;;  %10681 = vmatprep.subr.bf16.mxu0 %v11113_v10 }
 0xbd8   : > { %7119 = vmatprep.mubr.bf16.mxu1 %v6867_v6  ;;  %10208 = vmatpush3.bf16.msra.mxu1 %v11112_v62 }
 0xbd9   : > { %10209 = vmatprep.subr.bf16.mxu1 %v11114_v32 }
 0xbda   : > { %10682 = vmatpush3.bf16.msra.mxu0 %v11113_v10 }
 0xbdb   : > { %10683 = vmatprep.subr.bf16.mxu0 %v11116_v49 }
 0xbdc   : > { %10210 = vmatpush3.bf16.msra.mxu1 %v11115_v63 }
 0xbdd   : > { %10211 = vmatprep.subr.bf16.mxu1 %v11117_v20 }
 0xbde   : > { %10684 = vmatpush3.bf16.msra.mxu0 %v11116_v49 }
 0xbdf   : > { %9270 = vmatmul.mubr.msk.bf16.gmra.mrb[200].mxu1 %vm14614_vm7, %v9269_v34  ;;  %10685 = vmatprep.subr.bf16.mxu0 %v11119_v55 }
 0xbe0   : > { %7127 = vmatprep.mubr.bf16.mxu1 %v6870_v58  ;;  %10212 = vmatpush3.bf16.msra.mxu1 %v11118_v51 }
 0xbe1   : > { %10213 = vmatprep.subr.bf16.mxu1 %v11120_v30 }
 0xbe2   : > { %10686 = vmatpush3.bf16.msra.mxu0 %v11119_v55 }
 0xbe4   : > { %10214 = vmatpush3.bf16.msra.mxu1 %v11121_v39 }
 0xbe5   : > { %10215 = vmatprep.subr.bf16.mxu1 %v11122_v11 }
 0xbe7   : > { %9274 = vmatmul.mubr.msk.bf16.gmra.mrb[204].mxu1 %vm14621_vm6, %v9273_v52 }
 0xbe8   : > { %10216 = vmatpush3.bf16.msra.mxu1 %v11123_v50 }
 0xbe9   : > { %10217 = vmatprep.subr.bf16.mxu1 %v11124_v17 }
 0xbec   : > { %10218 = vmatpush3.bf16.msra.mxu1 %v11125_v35 }
 0xc98   : > { %v10665_v1 = vpop.f32.mrb[184].mxu0 }
 0xc99   : > { %v7170_v48 = vpop.f32.mrb[185].mxu0 }
 0xc9a   : > { %v10666_v22 = vpop.f32.mrb[186].mxu0 }
 0xc9b   : > { %v7173_v23 = vpop.f32.mrb[187].mxu0 }
 0xca2   : > { %v10167_v46 = vpop.f32.mrb[192].mxu1  ;;  %v15049_v13 = vpop.f32.mrb[188].mxu0 }
 0xca3   : > { %v10168_v44 = vpop.f32.mrb[193].mxu1  ;;  %v7186_v37 = vpop.f32.mrb[189].mxu0 }
 0xca4   : > { %v10169_v8 = vadd.f32 %v10168_v44, %v10167_v46  ;;  %v10170_v5 = vpop.f32.mrb[194].mxu1  ;;  %v15056_v12 = vpop.f32.mrb[190].mxu0 }
 0xca5   : > { %v10171_v6 = vpop.f32.mrb[195].mxu1  ;;  %v7189_v24 = vpop.f32.mrb[191].mxu0 }
 0xca6   : > { %v7106_v0 = vadd.f32 %v10169_v8, %v15054_v27  ;;  %v10172_v3 = vadd.f32 %v10171_v6, %v10170_v5 }
 0xca8   : > { %v7171_v34 = vadd.f32 %v7170_v48, %v7106_v0  ;;  %v7109_v58 = vadd.f32 %v10172_v3, %v15054_v27 }
 0xcaa   : > { %v7209_v33 = vmul.f32 %v15062_v42, %v7171_v34  ;;  %v7174_v53 = vadd.f32 %v7173_v23, %v7109_v58  ;;  %v10173_v52 = vpop.f32.mrb[196].mxu1 }
 0xcab   : > { %v10174_v56 = vpop.f32.mrb[197].mxu1 }
 0xcac   : > { %v7225_v25 = vadd.f32 %v15068_v54, %v7209_v33  ;;  %v7210_v26 = vmul.f32 %v15062_v42, %v7174_v53  ;;  %v10175_v43 = vadd.f32 %v10174_v56, %v10173_v52  ;;  %v10176_v4 = vpop.f32.mrb[198].mxu1 }
 0xcad   : > { %v10177_v31 = vpop.f32.mrb[199].mxu1 }
 0xcae   : > { %v7226_v9 = vadd.f32 %v15068_v54, %v7210_v26  ;;  %v7114_v18 = vadd.f32 %v10175_v43, %v15054_v27  ;;  %v10178_v15 = vadd.f32 %v10177_v31, %v10176_v4  ;;  %v15075_v19 = vmax.f32 %v7225_v25, 0.0 }
 0xcb0   : > { %v7179_v10 = vadd.f32 %v10665_v1, %v7114_v18  ;;  %v7117_v62 = vadd.f32 %v10178_v15, %v15054_v27  ;;  %v7234_v32 = vmax.f32 %v7226_v9, 0.0  ;;  %v7243_v63 = vrot.slane %v15075_v19, 7 }
 0xcb1   : > { %v7267_v11 = vrot.slane %v15075_v19, 1 }
 0xcb2   : > { %v7211_v49 = vmul.f32 %v15062_v42, %v7179_v10  ;;  %v7182_v20 = vadd.f32 %v10666_v22, %v7117_v62  ;;  %v10179_v51 = vpop.f32.mrb[200].mxu1  ;;  %v7244_v55 = vrot.slane %v7234_v32, 7  ;;  %v7292_v30 = vpack.c.bf16 %v7234_v32, %v15075_v19  ;;  %v11126_v19 = vld [vmem:[#allocation13 + $0x380] sm:$0xff]  }
 0xcb3   : > { %v10180_v39 = vpop.f32.mrb[201].mxu1  ;;  %v7268_v50 = vrot.slane %v7234_v32, 1  ;;  %10695 = vmatprep.subr.bf16.mxu0 %v11126_v19 }
 0xcb4   : > { %v7227_v17 = vadd.f32 %v15068_v54, %v7211_v49  ;;  %v7212_v35 = vmul.f32 %v15062_v42, %v7182_v20  ;;  %v10181_v1 = vadd.f32 %v10180_v39, %v10179_v51  ;;  %v10182_v48 = vpop.f32.mrb[202].mxu1  ;;  %v15088_v23 = vsel %vm1163_vm8, %v7243_v63, %v7244_v55  ;;  %7534 = vmatprep.mubr.bf16.mxu1 %v7292_v30 }
 0xcb5   : > { %v10183_v22 = vpop.f32.mrb[203].mxu1  ;;  %v7281_v46 = vsel %vm1212_vm1, %v7267_v11, %v7268_v50 }
 0xcb6   : > { %v15094_v44 = vmax.f32 %v7227_v17, 0.0  ;;  %v7228_v8 = vadd.f32 %v15068_v54, %v7212_v35  ;;  %v7122_v5 = vadd.f32 %v10181_v1, %v15054_v27  ;;  %v10184_v6 = vadd.f32 %v10183_v22, %v10182_v48 }
 0xcb8   : > { %v15098_v0 = vmax.f32 %v7228_v8, 0.0  ;;  %v7187_v3 = vadd.f32 %v7186_v37, %v7122_v5  ;;  %v7125_v34 = vadd.f32 %v10184_v6, %v15054_v27  ;;  %v7269_v58 = vrot.slane %v15094_v44, 1 }
 0xcb9   : > { %v7245_v33 = vrot.slane %v15094_v44, 7 }
 0xcba   : > { %v7270_v53 = vrot.slane %v15098_v0, 1  ;;  %v7213_v52 = vmul.f32 %v15062_v42, %v7187_v3  ;;  %v7190_v56 = vadd.f32 %v7189_v24, %v7125_v34  ;;  %v10185_v25 = vpop.f32.mrb[204].mxu1  ;;  %v7280_v26 = vsel %vm1212_vm1, %v7268_v50, %v7269_v58 }
 0xcbb   : > { %v10186_v43 = vpop.f32.mrb[205].mxu1  ;;  %v9339_v4 = vpack.c.bf16 %v7280_v26, %v7281_v46  ;;  %v7295_v37 = vpack.c.bf16 %v15098_v0, %v15094_v44  ;;  %v7246_v31 = vrot.slane %v15098_v0, 7  ;;  %v7256_v9 = vsel %vm1163_vm8, %v7244_v55, %v7245_v33 }
 0xcbc   : > { %v7229_v18 = vadd.f32 %v15068_v54, %v7213_v52  ;;  %v7214_v15 = vmul.f32 %v15062_v42, %v7190_v56  ;;  %v10187_v10 = vadd.f32 %v10186_v43, %v10185_v25  ;;  %v10188_v24 = vpop.f32.mrb[206].mxu1  ;;  %v7279_v62 = vsel %vm1212_vm1, %v7269_v58, %v7270_v53 }
 0xcbd   : > { %v10189_v32 = vpop.f32.mrb[207].mxu1  ;;  %10687 = vmatprep.mubr.msk.bf16.mxu0 %vm14694_vm10, %v9339_v4  ;;  %v7255_v49 = vsel %vm1163_vm8, %v7245_v33, %v7246_v31 }
 0xcbe   : > { %v7237_v20 = vmax.f32 %v7229_v18, 0.0  ;;  %v7230_v51 = vadd.f32 %v15068_v54, %v7214_v15  ;;  %v7130_v55 = vadd.f32 %v10187_v10, %v15054_v27  ;;  %v10190_v30 = vadd.f32 %v10189_v32, %v10188_v24 }
 0xcbf   : > { %v9327_v39 = vpack.c.bf16 %v7255_v49, %v7256_v9  ;;  %v11131_v49 = vld [vmem:[#allocation13 + $0x398] sm:$0xff]  }
 0xcc0   : > { %v7271_v50 = vrot.slane %v7237_v20, 1  ;;  %v7238_v17 = vmax.f32 %v7230_v51, 0.0  ;;  %v7195_v35 = vadd.f32 %v15049_v13, %v7130_v55  ;;  %v7133_v1 = vadd.f32 %v10190_v30, %v15054_v27  ;;  %v11133_v51 = vld [vmem:[#allocation13 + $0x308] sm:$0xff]   ;;  %v11134_v55 = vld [vmem:[#allocation13 + $0x3a0] sm:$0xff]   ;;  %v11135_v30 = vld [vmem:[#allocation13 + $0x350] sm:$0xff]  }
 0xcc1   : > { %v7247_v48 = vrot.slane %v7237_v20, 7 }
 0xcc2   : > { %v7278_v22 = vsel %vm1212_vm1, %v7270_v53, %v7271_v50  ;;  %v7215_v46 = vmul.f32 %v15062_v42, %v7195_v35  ;;  %v7198_v44 = vadd.f32 %v15056_v12, %v7133_v1  ;;  %v7272_v8 = vrot.slane %v7238_v17, 1  ;;  %v11139_v35 = vld [vmem:[#allocation13 + $0x318] sm:$0xff]   ;;  %v11140_v1 = vld [vmem:[#allocation13 + $0x3b0] sm:$0xff]  }
 0xcc3   : > { %v9343_v5 = vpack.c.bf16 %v7278_v22, %v7279_v62  ;;  %v7298_v6 = vpack.c.bf16 %v7238_v17, %v7237_v20  ;;  %v7248_v0 = vrot.slane %v7238_v17, 7  ;;  %v7254_v3 = vsel %vm1163_vm8, %v7246_v31, %v7247_v48  ;;  %v11132_v20 = vld [vmem:[#allocation13 + $0x348] sm:$0xff]   ;;  %v11138_v17 = vld [vmem:[#allocation13 + $0x358] sm:$0xff]   ;;  %v11142_v22 = vld [vmem:[#allocation13 + $0x320] sm:$0xff]  }
 0xcc4   : > { %v7231_v34 = vadd.f32 %v15068_v54, %v7215_v46  ;;  %v7216_v13 = vmul.f32 %v15062_v42, %v7198_v44  ;;  %v7277_v27 = vsel %vm1212_vm1, %v7271_v50, %v7272_v8  ;;  %v11137_v50 = vld [vmem:[#allocation13 + $0x3a8] sm:$0xff]   ;;  %v11143_v46 = vld [vmem:[#allocation13 + $0x3b8] sm:$0xff]  }
 0xcc5   : > { %10688 = vmatmul.mubr.msk.bf16.vlgmr.msra.gmra.mrb[192].mxu0 %vm14722_vm12, %v9343_v5  ;;  %v7253_v12 = vsel %vm1163_vm8, %v7247_v48, %v7248_v0  ;;  %v11141_v48 = vld [vmem:[#allocation13 + $0x360] sm:$0xff]   ;;  %v11144_v44 = vld [vmem:[#allocation13 + $0x368] sm:$0xff]   ;;  %v11146_v5 = vld [vmem:[#allocation13 + $0x370] sm:$0xff]  }
 0xcc6   : > { %v7239_v58 = vmax.f32 %v7231_v34, 0.0  ;;  %v7232_v33 = vadd.f32 %v15068_v54, %v7216_v13  ;;  %v9331_v53 = vpack.c.bf16 %v7253_v12, %v7254_v3  ;;  %10696 = vmatpush3.bf16.msra.mxu0 %v11126_v19  ;;  %v11149_v3 = vld [vmem:[#allocation13 + $0x338] sm:$0xff]  }
 0xcc8   : > { %v7240_v52 = vmax.f32 %v7232_v33, 0.0  ;;  %v7273_v56 = vrot.slane %v7239_v58, 1  ;;  %v7249_v25 = vrot.slane %v7239_v58, 7 }
 0xcca   : > { %v7250_v26 = vrot.slane %v7240_v52, 7  ;;  %v7276_v42 = vsel %vm1212_vm1, %v7272_v8, %v7273_v56  ;;  %v7274_v43 = vrot.slane %v7240_v52, 1  ;;  %v7301_v4 = vpack.c.bf16 %v7240_v52, %v7239_v58  ;;  %v11145_v8 = vld [vmem:[#allocation13 + $0x328] sm:$0xff]  }
 0xccb   : > { %v9347_v31 = vpack.c.bf16 %v7276_v42, %v7277_v27  ;;  %v7252_v9 = vsel %vm1163_vm8, %v7248_v0, %v7249_v25  ;;  %v11148_v0 = vld [vmem:[#allocation13 + $0x378] sm:$0xff]  }
 0xccc   : > { %v7258_v18 = vsel %vm1163_vm8, %v7250_v26, %v7243_v63  ;;  %v7275_v54 = vsel %vm1212_vm1, %v7273_v56, %v7274_v43  ;;  %v7282_v15 = vsel %vm1212_vm1, %v7274_v43, %v7267_v11  ;;  %v7251_v10 = vsel %vm1163_vm8, %v7249_v25, %v7250_v26  ;;  %v11127_v63 = vld [vmem:[#allocation13 + $0x388] sm:$0xff]   ;;  %v11128_v11 = vld [vmem:[#allocation13 + $0x390] sm:$0xff]  }
 0xccd   : > { %10691 = vmatprep.mubr.msk.bf16.mxu0 %vm14740_vm15, %v9347_v31  ;;  %v9323_v24 = vpack.c.bf16 %v15088_v23, %v7258_v18  ;;  %v9351_v62 = vpack.c.bf16 %v7282_v15, %v7275_v54  ;;  %v9335_v32 = vpack.c.bf16 %v7251_v10, %v7252_v9  ;;  %10697 = vmatprep.subr.bf16.mxu0 %v11127_v63  ;;  %v11129_v23 = vld [vmem:[#allocation13 + $0x340] sm:$0xff]  }
 0xcce   : > { %10698 = vmatpush3.bf16.msra.mxu0 %v11127_v63  ;;  %10255 = vmatprep.subr.bf16.mxu1 %v11129_v23  ;;  %v15182_v15 = vld [vmem:[%s15795_s29 + $0x4] ss:$0 sm:$0xff] }
 0xccf   : > { %9324 = vmatmul.mubr.msk.bf16.vlgmr.msra.gmra.mrb[208].mxu1 %vm14491_vm0, %v9323_v24  ;;  %10692 = vmatmul.mubr.msk.bf16.gmra.mrb[196].mxu0 %vm14753_vm5, %v9351_v62  ;;  %v15195_v23 = vld [vmem:[%s15796_s12 + $0x4] ss:$0 sm:$0xff] }
 0xcd0   : > { %7542 = vmatprep.mubr.bf16.mxu1 %v7295_v37  ;;  %v11130_v37 = vld [vmem:[#allocation13 + $0x300] sm:$0xff]   ;;  %10699 = vmatprep.subr.bf16.mxu0 %v11128_v11 }
 0xcd1   : > { %10256 = vmatpush3.bf16.msra.mxu1 %v11130_v37 }
 0xcd2   : > { %10700 = vmatpush3.bf16.msra.mxu0 %v11128_v11  ;;  %10257 = vmatprep.subr.bf16.mxu1 %v11132_v20 }
 0xcd3   : > { %10701 = vmatprep.subr.bf16.mxu0 %v11131_v49 }
 0xcd5   : > { %10258 = vmatpush3.bf16.msra.mxu1 %v11133_v51 }
 0xcd6   : > { %10702 = vmatpush3.bf16.msra.mxu0 %v11131_v49  ;;  %10259 = vmatprep.subr.bf16.mxu1 %v11135_v30 }
 0xcd7   : > { %9328 = vmatmul.mubr.msk.bf16.gmra.mrb[212].mxu1 %vm14559_vm2, %v9327_v39  ;;  %v11136_v39 = vld [vmem:[#allocation13 + $0x310] sm:$0xff]   ;;  %10703 = vmatprep.subr.bf16.mxu0 %v11134_v55 }
 0xcd8   : > { %7550 = vmatprep.mubr.bf16.mxu1 %v7298_v6  ;;  %v11147_v6 = vld [vmem:[#allocation13 + $0x330] sm:$0xff]  }
 0xcd9   : > { %10260 = vmatpush3.bf16.msra.mxu1 %v11136_v39 }
 0xcda   : > { %10704 = vmatpush3.bf16.msra.mxu0 %v11134_v55  ;;  %10261 = vmatprep.subr.bf16.mxu1 %v11138_v17 }
 0xcdb   : > { %10705 = vmatprep.subr.bf16.mxu0 %v11137_v50 }
 0xcdd   : > { %10262 = vmatpush3.bf16.msra.mxu1 %v11139_v35 }
 0xcde   : > { %10706 = vmatpush3.bf16.msra.mxu0 %v11137_v50  ;;  %10263 = vmatprep.subr.bf16.mxu1 %v11141_v48 }
 0xcdf   : > { %9332 = vmatmul.mubr.msk.bf16.gmra.mrb[216].mxu1 %vm14614_vm7, %v9331_v53  ;;  %10707 = vmatprep.subr.bf16.mxu0 %v11140_v1  ;;  %v15173_v53 = vld [vmem:[%s15807_s15 + $0x3] ss:$0 sm:$0xff] }
 0xce0   : > { %7558 = vmatprep.mubr.bf16.mxu1 %v7301_v4 }
 0xce1   : > { %10264 = vmatpush3.bf16.msra.mxu1 %v11142_v22 }
 0xce2   : > { %10708 = vmatpush3.bf16.msra.mxu0 %v11140_v1  ;;  %10265 = vmatprep.subr.bf16.mxu1 %v11144_v44 }
 0xce3   : > { %10709 = vmatprep.subr.bf16.mxu0 %v11143_v46 }
 0xce5   : > { %10266 = vmatpush3.bf16.msra.mxu1 %v11145_v8 }
 0xce6   : > { %10710 = vmatpush3.bf16.msra.mxu0 %v11143_v46  ;;  %10267 = vmatprep.subr.bf16.mxu1 %v11146_v5 }
 0xce7   : > { %9336 = vmatmul.mubr.msk.bf16.gmra.mrb[220].mxu1 %vm14621_vm6, %v9335_v32 }
 0xce9   : > { %10268 = vmatpush3.bf16.msra.mxu1 %v11147_v6 }
 0xcea   : > { %10269 = vmatprep.subr.bf16.mxu1 %v11148_v0 }
 0xced   : > { %10270 = vmatpush3.bf16.msra.mxu1 %v11149_v3 }
 0xd98   : > { %v10689_v34 = vpop.f32.mrb[192].mxu0 }
 0xd99   : > { %v7601_v13 = vpop.f32.mrb[193].mxu0 }
 0xd9a   : > { %v10690_v27 = vpop.f32.mrb[194].mxu0 }
 0xd9b   : > { %v7604_v12 = vpop.f32.mrb[195].mxu0 }
 0xda2   : > { %v10219_v58 = vpop.f32.mrb[208].mxu1  ;;  %v15168_v33 = vpop.f32.mrb[196].mxu0 }
 0xda3   : > { %v10220_v52 = vpop.f32.mrb[209].mxu1  ;;  %v7617_v56 = vpop.f32.mrb[197].mxu0 }
 0xda4   : > { %v10221_v25 = vadd.f32 %v10220_v52, %v10219_v58  ;;  %v10222_v26 = vpop.f32.mrb[210].mxu1  ;;  %v15175_v42 = vpop.f32.mrb[198].mxu0 }
 0xda5   : > { %v10223_v43 = vpop.f32.mrb[211].mxu1  ;;  %v7620_v4 = vpop.f32.mrb[199].mxu0 }
 0xda6   : > { %v7537_v31 = vadd.f32 %v10221_v25, %v15173_v53  ;;  %v10224_v9 = vadd.f32 %v10223_v43, %v10222_v26 }
 0xda8   : > { %v7602_v18 = vadd.f32 %v7601_v13, %v7537_v31  ;;  %v7540_v54 = vadd.f32 %v10224_v9, %v15173_v53 }
 0xdaa   : > { %v15185_v10 = vadd.f32 %v7602_v18, %v14921_v14  ;;  %v7605_v24 = vadd.f32 %v7604_v12, %v7540_v54  ;;  %v10225_v62 = vpop.f32.mrb[212].mxu1 }
 0xdab   : > { %v10226_v32 = vpop.f32.mrb[213].mxu1 }
 0xdac   : > { %v7648_v19 = vmul.f32 %v15182_v15, %v15185_v10  ;;  %v15190_v63 = vadd.f32 %v7605_v24, %v14926_v57  ;;  %v10227_v11 = vadd.f32 %v10226_v32, %v10225_v62  ;;  %v10228_v37 = vpop.f32.mrb[214].mxu1 }
 0xdad   : > { %v10229_v49 = vpop.f32.mrb[215].mxu1 }
 0xdae   : > { %v7649_v14 = vmul.f32 %v15182_v15, %v15190_v63  ;;  %v7545_v20 = vadd.f32 %v10227_v11, %v15173_v53  ;;  %v10230_v51 = vadd.f32 %v10229_v49, %v10228_v37  ;;  %v7664_v55 = vadd.f32 %v15195_v23, %v7648_v19 }
 0xdb0   : > { %v7610_v30 = vadd.f32 %v10689_v34, %v7545_v20  ;;  %v7548_v57 = vadd.f32 %v10230_v51, %v15173_v53  ;;  %v7665_v39 = vadd.f32 %v15195_v23, %v7649_v14  ;;  %v15208_v22 = vmax.f32 %v7664_v55, 0.0 }
 0xdb2   : > { %v15204_v50 = vadd.f32 %v7610_v30, %v14940_v28  ;;  %v7613_v17 = vadd.f32 %v10690_v27, %v7548_v57  ;;  %v10231_v35 = vpop.f32.mrb[216].mxu1  ;;  %v15206_v1 = vmax.f32 %v7665_v39, 0.0  ;;  %v7706_v54 = vrot.slane %v15208_v22, 1 }
 0xdb3   : > { %v10232_v48 = vpop.f32.mrb[217].mxu1 }
 0xdb4   : > { %v7650_v46 = vmul.f32 %v15182_v15, %v15204_v50  ;;  %v15213_v44 = vadd.f32 %v7613_v17, %v14949_v21  ;;  %v10233_v8 = vadd.f32 %v10232_v48, %v10231_v35  ;;  %v10234_v5 = vpop.f32.mrb[218].mxu1  ;;  %v7731_v28 = vpack.c.bf16 %v15206_v1, %v15208_v22 }
 0xdb5   : > { %v10235_v6 = vpop.f32.mrb[219].mxu1  ;;  %v7707_v52 = vrot.slane %v15206_v1, 1 }
 0xdb6   : > { %v7666_v0 = vadd.f32 %v15195_v23, %v7650_v46  ;;  %v7651_v3 = vmul.f32 %v15182_v15, %v15213_v44  ;;  %v7553_v34 = vadd.f32 %v10233_v8, %v15173_v53  ;;  %v10236_v13 = vadd.f32 %v10235_v6, %v10234_v5  ;;  %7973 = vmatprep.mubr.bf16.mxu1 %v7731_v28 }
 0xdb8   : > { %v15221_v27 = vmax.f32 %v7666_v0, 0.0  ;;  %v7667_v21 = vadd.f32 %v15195_v23, %v7651_v3  ;;  %v7618_v12 = vadd.f32 %v7617_v56, %v7553_v34  ;;  %v7556_v58 = vadd.f32 %v10236_v13, %v15173_v53 }
 0xdb9   : > { %v7683_v3 = vrot.slane %v15206_v1, 7  ;;  %v7682_v13 = vrot.slane %v15208_v22, 7 }
 0xdba   : > { %v15227_v25 = vadd.f32 %v7618_v12, %v14963_v2  ;;  %v7621_v26 = vadd.f32 %v7620_v4, %v7556_v58  ;;  %v10237_v43 = vpop.f32.mrb[220].mxu1  ;;  %v7708_v31 = vrot.slane %v15221_v27, 1  ;;  %v15230_v9 = vmax.f32 %v7667_v21, 0.0 }
 0xdbb   : > { %v10238_v18 = vpop.f32.mrb[221].mxu1  ;;  %v7720_v4 = vsel %vm1212_vm1, %v7706_v54, %v7707_v52 }
 0xdbc   : > { %v7652_v24 = vmul.f32 %v15182_v15, %v15227_v25  ;;  %v15236_v56 = vadd.f32 %v7621_v26, %v14972_v29  ;;  %v10239_v62 = vadd.f32 %v10238_v18, %v10237_v43  ;;  %v10240_v32 = vpop.f32.mrb[222].mxu1  ;;  %v7719_v2 = vsel %vm1212_vm1, %v7707_v52, %v7708_v31 }
 0xdbd   : > { %v10241_v19 = vpop.f32.mrb[223].mxu1  ;;  %v7709_v29 = vrot.slane %v15230_v9, 1  ;;  %v9401_v20 = vpack.c.bf16 %v7719_v2, %v7720_v4  ;;  %v7696_v26 = vsel %vm1163_vm8, %v7682_v13, %v7683_v3  ;;  %v7734_v18 = vpack.c.bf16 %v15230_v9, %v15221_v27 }
 0xdbe   : > { %v7668_v11 = vadd.f32 %v15195_v23, %v7652_v24  ;;  %v7653_v37 = vmul.f32 %v15182_v15, %v15236_v56  ;;  %v7561_v49 = vadd.f32 %v10239_v62, %v15173_v53  ;;  %v10242_v14 = vadd.f32 %v10241_v19, %v10240_v32 }
 0xdbf   : > { %10711 = vmatprep.mubr.msk.bf16.mxu0 %vm14694_vm10, %v9401_v20  ;;  %v7718_v48 = vsel %vm1212_vm1, %v7708_v31, %v7709_v29  ;;  %v7685_v24 = vrot.slane %v15230_v9, 7  ;;  %v7684_v62 = vrot.slane %v15221_v27, 7 }
 0xdc0   : > { %v7676_v51 = vmax.f32 %v7668_v11, 0.0  ;;  %v7669_v55 = vadd.f32 %v15195_v23, %v7653_v37  ;;  %v7626_v30 = vadd.f32 %v15168_v33, %v7561_v49  ;;  %v7564_v57 = vadd.f32 %v10242_v14, %v15173_v53 }
 0xdc1   : > { %v7695_v32 = vsel %vm1163_vm8, %v7683_v3, %v7684_v62  ;;  %v11165_v3 = vld [vmem:[#allocation13 + $0x420] sm:$0xff]  }
 0xdc2   : > { %v7710_v39 = vrot.slane %v7676_v51, 1  ;;  %v15253_v17 = vadd.f32 %v7626_v30, %v14989_v47  ;;  %v7629_v35 = vadd.f32 %v15175_v42, %v7564_v57  ;;  %v7677_v46 = vmax.f32 %v7669_v55, 0.0  ;;  %v11150_v55 = vld [vmem:[#allocation13 + $0x440] sm:$0xff]   ;;  %v11151_v30 = vld [vmem:[#allocation13 + $0x448] sm:$0xff]   ;;  %v11152_v57 = vld [vmem:[#allocation13 + $0x450] sm:$0xff]  }
 0xdc3   : > { %v7686_v9 = vrot.slane %v7676_v51, 7  ;;  %10719 = vmatprep.subr.bf16.mxu0 %v11150_v55 }
 0xdc4   : > { %v7654_v8 = vmul.f32 %v15182_v15, %v15253_v17  ;;  %v15261_v33 = vadd.f32 %v7629_v35, %v14997_v38  ;;  %v7717_v53 = vsel %vm1212_vm1, %v7709_v29, %v7710_v39  ;;  %v7711_v0 = vrot.slane %v7677_v46, 1  ;;  %v11154_v35 = vld [vmem:[#allocation13 + $0x3c0] sm:$0xff]  }
 0xdc5   : > { %v9405_v5 = vpack.c.bf16 %v7717_v53, %v7718_v48  ;;  %v7737_v2 = vpack.c.bf16 %v7677_v46, %v7676_v51  ;;  %v7687_v4 = vrot.slane %v7677_v46, 7  ;;  %v7693_v27 = vsel %vm1163_vm8, %v7685_v24, %v7686_v9  ;;  %v11155_v48 = vld [vmem:[#allocation13 + $0x458] sm:$0xff]   ;;  %v11156_v46 = vld [vmem:[#allocation13 + $0x408] sm:$0xff]   ;;  %v11158_v53 = vld [vmem:[#allocation13 + $0x460] sm:$0xff]  }
 0xdc6   : > { %v7670_v6 = vadd.f32 %v15195_v23, %v7654_v8  ;;  %v7655_v47 = vmul.f32 %v15182_v15, %v15261_v33  ;;  %v7716_v15 = vsel %vm1212_vm1, %v7710_v39, %v7711_v0  ;;  %v11153_v39 = vld [vmem:[#allocation13 + $0x400] sm:$0xff]   ;;  %v11157_v8 = vld [vmem:[#allocation13 + $0x3c8] sm:$0xff]  }
 0xdc7   : > { %10712 = vmatmul.mubr.msk.bf16.vlgmr.msra.gmra.mrb[200].mxu0 %vm14722_vm12, %v9405_v5  ;;  %v7692_v11 = vsel %vm1163_vm8, %v7686_v9, %v7687_v4  ;;  %10307 = vmatprep.subr.bf16.mxu1 %v11153_v39  ;;  %v11159_v5 = vld [vmem:[#allocation13 + $0x410] sm:$0xff]  }
 0xdc8   : > { %v7678_v42 = vmax.f32 %v7670_v6, 0.0  ;;  %v7671_v28 = vadd.f32 %v15195_v23, %v7655_v47  ;;  %v9393_v37 = vpack.c.bf16 %v7692_v11, %v7693_v27  ;;  %10720 = vmatpush3.bf16.msra.mxu0 %v11150_v55  ;;  %v11161_v6 = vld [vmem:[#allocation13 + $0x468] sm:$0xff]   ;;  %v11160_v47 = vld [vmem:[#allocation13 + $0x3d0] sm:$0xff]   ;;  %v15326_v27 = vld [vmem:[%s15795_s29 + $0x5] ss:$0 sm:$0xff] }
 0xdc9   : > { %10721 = vmatprep.subr.bf16.mxu0 %v11151_v30 }
 0xdca   : > { %v7679_v38 = vmax.f32 %v7671_v28, 0.0  ;;  %v7712_v34 = vrot.slane %v7678_v42, 1  ;;  %v7688_v14 = vrot.slane %v7678_v42, 7  ;;  %v11163_v28 = vld [vmem:[#allocation13 + $0x3d8] sm:$0xff]  }
 0xdcc   : > { %v7689_v21 = vrot.slane %v7679_v38, 7  ;;  %v7715_v12 = vsel %vm1212_vm1, %v7711_v0, %v7712_v34  ;;  %v7713_v58 = vrot.slane %v7679_v38, 1  ;;  %v7740_v49 = vpack.c.bf16 %v7679_v38, %v7678_v42  ;;  %10722 = vmatpush3.bf16.msra.mxu0 %v11151_v30  ;;  %v11162_v42 = vld [vmem:[#allocation13 + $0x418] sm:$0xff]   ;;  %v11164_v0 = vld [vmem:[#allocation13 + $0x470] sm:$0xff]   ;;  %v11166_v38 = vld [vmem:[#allocation13 + $0x3e0] sm:$0xff]  }
 0xdcd   : > { %v9409_v52 = vpack.c.bf16 %v7715_v12, %v7716_v15  ;;  %v7691_v20 = vsel %vm1163_vm8, %v7687_v4, %v7688_v14  ;;  %10723 = vmatprep.subr.bf16.mxu0 %v11152_v57  ;;  %v11170_v12 = vld [vmem:[#allocation13 + $0x430] sm:$0xff]  }
 0xdce   : > { %v7697_v23 = vsel %vm1163_vm8, %v7689_v21, %v7682_v13  ;;  %v7714_v1 = vsel %vm1212_vm1, %v7712_v34, %v7713_v58  ;;  %v7721_v22 = vsel %vm1212_vm1, %v7713_v58, %v7706_v54  ;;  %v7694_v54 = vsel %vm1163_vm8, %v7684_v62, %v7685_v24  ;;  %v11167_v34 = vld [vmem:[#allocation13 + $0x478] sm:$0xff]   ;;  %v11168_v13 = vld [vmem:[#allocation13 + $0x428] sm:$0xff]   ;;  %v11171_v15 = vld [vmem:[#allocation13 + $0x3f0] sm:$0xff]  }
 0xdcf   : > { %10715 = vmatprep.mubr.msk.bf16.mxu0 %vm14740_vm15, %v9409_v52  ;;  %v9385_v43 = vpack.c.bf16 %v7696_v26, %v7697_v23  ;;  %v9413_v31 = vpack.c.bf16 %v7721_v22, %v7714_v1  ;;  %v9389_v19 = vpack.c.bf16 %v7694_v54, %v7695_v32  ;;  %v7690_v29 = vsel %vm1163_vm8, %v7688_v14, %v7689_v21  ;;  %v11169_v21 = vld [vmem:[#allocation13 + $0x3e8] sm:$0xff]   ;;  %v11172_v58 = vld [vmem:[#allocation13 + $0x438] sm:$0xff]   ;;  %v15332_v14 = vld [vmem:[%s15796_s12 + $0x5] ss:$0 sm:$0xff] }
 0xdd0   : > { %v9397_v51 = vpack.c.bf16 %v7690_v29, %v7691_v20  ;;  %10724 = vmatpush3.bf16.msra.mxu0 %v11152_v57  ;;  %v11173_v52 = vld [vmem:[#allocation13 + $0x3f8] sm:$0xff]  }
 0xdd1   : > { %9386 = vmatmul.mubr.msk.bf16.vlgmr.msra.gmra.mrb[224].mxu1 %vm14491_vm0, %v9385_v43  ;;  %10716 = vmatmul.mubr.msk.bf16.gmra.mrb[204].mxu0 %vm14753_vm5, %v9413_v31 }
 0xdd2   : > { %7981 = vmatprep.mubr.bf16.mxu1 %v7734_v18  ;;  %10308 = vmatpush3.bf16.msra.mxu1 %v11154_v35  ;;  %v15318_v18 = vld [vmem:[%s15807_s15 + $0x4] ss:$0 sm:$0xff] }
 0xdd3   : > { %10725 = vmatprep.subr.bf16.mxu0 %v11155_v48  ;;  %10309 = vmatprep.subr.bf16.mxu1 %v11156_v46 }
 0xdd4   : > { %10726 = vmatpush3.bf16.msra.mxu0 %v11155_v48 }
 0xdd5   : > { %10727 = vmatprep.subr.bf16.mxu0 %v11158_v53 }
 0xdd6   : > { %10310 = vmatpush3.bf16.msra.mxu1 %v11157_v8 }
 0xdd7   : > { %10311 = vmatprep.subr.bf16.mxu1 %v11159_v5 }
 0xdd8   : > { %10728 = vmatpush3.bf16.msra.mxu0 %v11158_v53 }
 0xdd9   : > { %9390 = vmatmul.mubr.msk.bf16.gmra.mrb[228].mxu1 %vm14559_vm2, %v9389_v19  ;;  %10729 = vmatprep.subr.bf16.mxu0 %v11161_v6 }
 0xdda   : > { %7989 = vmatprep.mubr.bf16.mxu1 %v7737_v2  ;;  %10312 = vmatpush3.bf16.msra.mxu1 %v11160_v47 }
 0xddb   : > { %10313 = vmatprep.subr.bf16.mxu1 %v11162_v42 }
 0xddc   : > { %10730 = vmatpush3.bf16.msra.mxu0 %v11161_v6 }
 0xddd   : > { %10731 = vmatprep.subr.bf16.mxu0 %v11164_v0 }
 0xdde   : > { %10314 = vmatpush3.bf16.msra.mxu1 %v11163_v28 }
 0xddf   : > { %10315 = vmatprep.subr.bf16.mxu1 %v11165_v3 }
 0xde0   : > { %10732 = vmatpush3.bf16.msra.mxu0 %v11164_v0 }
 0xde1   : > { %9394 = vmatmul.mubr.msk.bf16.gmra.mrb[232].mxu1 %vm14614_vm7, %v9393_v37  ;;  %10733 = vmatprep.subr.bf16.mxu0 %v11167_v34 }
 0xde2   : > { %7997 = vmatprep.mubr.bf16.mxu1 %v7740_v49  ;;  %10316 = vmatpush3.bf16.msra.mxu1 %v11166_v38 }
 0xde3   : > { %10317 = vmatprep.subr.bf16.mxu1 %v11168_v13 }
 0xde4   : > { %10734 = vmatpush3.bf16.msra.mxu0 %v11167_v34 }
 0xde6   : > { %10318 = vmatpush3.bf16.msra.mxu1 %v11169_v21 }
 0xde7   : > { %10319 = vmatprep.subr.bf16.mxu1 %v11170_v12 }
 0xde9   : > { %9398 = vmatmul.mubr.msk.bf16.gmra.mrb[236].mxu1 %vm14621_vm6, %v9397_v51 }
 0xdea   : > { %10320 = vmatpush3.bf16.msra.mxu1 %v11171_v15 }
 0xdeb   : > { %10321 = vmatprep.subr.bf16.mxu1 %v11172_v58 }
 0xdee   : > { %10322 = vmatpush3.bf16.msra.mxu1 %v11173_v52 }
 0xe9a   : > { %v10713_v26 = vpop.f32.mrb[200].mxu0 }
 0xe9b   : > { %v8040_v23 = vpop.f32.mrb[201].mxu0 }
 0xe9c   : > { %v10714_v1 = vpop.f32.mrb[202].mxu0 }
 0xe9d   : > { %v8043_v22 = vpop.f32.mrb[203].mxu0 }
 0xea4   : > { %v10271_v43 = vpop.f32.mrb[224].mxu1  ;;  %v15313_v31 = vpop.f32.mrb[204].mxu0 }
 0xea5   : > { %v10272_v24 = vpop.f32.mrb[225].mxu1  ;;  %v8056_v62 = vpop.f32.mrb[205].mxu0 }
 0xea6   : > { %v10273_v54 = vadd.f32 %v10272_v24, %v10271_v43  ;;  %v10274_v32 = vpop.f32.mrb[226].mxu1  ;;  %v15320_v19 = vpop.f32.mrb[206].mxu0 }
 0xea7   : > { %v10275_v2 = vpop.f32.mrb[227].mxu1  ;;  %v8059_v4 = vpop.f32.mrb[207].mxu0 }
 0xea8   : > { %v7976_v9 = vadd.f32 %v10273_v54, %v15318_v18  ;;  %v10276_v11 = vadd.f32 %v10275_v2, %v10274_v32 }
 0xeaa   : > { %v8041_v37 = vadd.f32 %v8040_v23, %v7976_v9  ;;  %v7979_v49 = vadd.f32 %v10276_v11, %v15318_v18 }
 0xeac   : > { %v8079_v29 = vmul.f32 %v15326_v27, %v8041_v37  ;;  %v8044_v20 = vadd.f32 %v8043_v22, %v7979_v49  ;;  %v10277_v51 = vpop.f32.mrb[228].mxu1 }
 0xead   : > { %v10278_v55 = vpop.f32.mrb[229].mxu1 }
 0xeae   : > { %v8095_v30 = vadd.f32 %v15332_v14, %v8079_v29  ;;  %v8080_v57 = vmul.f32 %v15326_v27, %v8044_v20  ;;  %v10279_v39 = vadd.f32 %v10278_v55, %v10277_v51  ;;  %v10280_v35 = vpop.f32.mrb[230].mxu1 }
 0xeaf   : > { %v10281_v48 = vpop.f32.mrb[231].mxu1 }
 0xeb0   : > { %v8096_v46 = vadd.f32 %v15332_v14, %v8080_v57  ;;  %v7984_v8 = vadd.f32 %v10279_v39, %v15318_v18  ;;  %v10282_v53 = vadd.f32 %v10281_v48, %v10280_v35  ;;  %v15339_v5 = vmax.f32 %v8095_v30, 0.0 }
 0xeb2   : > { %v8049_v6 = vadd.f32 %v10713_v26, %v7984_v8  ;;  %v7987_v47 = vadd.f32 %v10282_v53, %v15318_v18  ;;  %v8104_v42 = vmax.f32 %v8096_v46, 0.0  ;;  %v8113_v28 = vrot.slane %v15339_v5, 7 }
 0xeb3   : > { %v8137_v12 = vrot.slane %v15339_v5, 1 }
 0xeb4   : > { %v8081_v0 = vmul.f32 %v15326_v27, %v8049_v6  ;;  %v8052_v3 = vadd.f32 %v10714_v1, %v7987_v47  ;;  %v10283_v38 = vpop.f32.mrb[232].mxu1  ;;  %v8114_v34 = vrot.slane %v8104_v42, 7  ;;  %v8162_v13 = vpack.c.bf16 %v8104_v42, %v15339_v5 }
 0xeb5   : > { %v10284_v21 = vpop.f32.mrb[233].mxu1  ;;  %v8138_v15 = vrot.slane %v8104_v42, 1 }
 0xeb6   : > { %v8097_v58 = vadd.f32 %v15332_v14, %v8081_v0  ;;  %v8082_v52 = vmul.f32 %v15326_v27, %v8052_v3  ;;  %v10285_v26 = vadd.f32 %v10284_v21, %v10283_v38  ;;  %v10286_v23 = vpop.f32.mrb[234].mxu1  ;;  %v15352_v22 = vsel %vm1163_vm8, %v8113_v28, %v8114_v34  ;;  %8404 = vmatprep.mubr.bf16.mxu1 %v8162_v13 }
 0xeb7   : > { %v10287_v1 = vpop.f32.mrb[235].mxu1  ;;  %v8151_v43 = vsel %vm1212_vm1, %v8137_v12, %v8138_v15 }
 0xeb8   : > { %v15358_v24 = vmax.f32 %v8097_v58, 0.0  ;;  %v8098_v54 = vadd.f32 %v15332_v14, %v8082_v52  ;;  %v7992_v32 = vadd.f32 %v10285_v26, %v15318_v18  ;;  %v10288_v2 = vadd.f32 %v10287_v1, %v10286_v23 }
 0xeba   : > { %v15362_v9 = vmax.f32 %v8098_v54, 0.0  ;;  %v8057_v11 = vadd.f32 %v8056_v62, %v7992_v32  ;;  %v7995_v37 = vadd.f32 %v10288_v2, %v15318_v18  ;;  %v8139_v49 = vrot.slane %v15358_v24, 1 }
 0xebb   : > { %v8115_v29 = vrot.slane %v15358_v24, 7 }
 0xebc   : > { %v8140_v20 = vrot.slane %v15362_v9, 1  ;;  %v8083_v51 = vmul.f32 %v15326_v27, %v8057_v11  ;;  %v8060_v55 = vadd.f32 %v8059_v4, %v7995_v37  ;;  %v10289_v30 = vpop.f32.mrb[236].mxu1  ;;  %v8150_v57 = vsel %vm1212_vm1, %v8138_v15, %v8139_v49 }
 0xebd   : > { %v10290_v39 = vpop.f32.mrb[237].mxu1  ;;  %v9463_v35 = vpack.c.bf16 %v8150_v57, %v8151_v43  ;;  %v8165_v62 = vpack.c.bf16 %v15362_v9, %v15358_v24  ;;  %v8116_v48 = vrot.slane %v15362_v9, 7  ;;  %v8126_v46 = vsel %vm1163_vm8, %v8114_v34, %v8115_v29 }
 0xebe   : > { %v8099_v8 = vadd.f32 %v15332_v14, %v8083_v51  ;;  %v8084_v53 = vmul.f32 %v15326_v27, %v8060_v55  ;;  %v10291_v6 = vadd.f32 %v10290_v39, %v10289_v30  ;;  %v10292_v4 = vpop.f32.mrb[238].mxu1  ;;  %v8149_v47 = vsel %vm1212_vm1, %v8139_v49, %v8140_v20 }
 0xebf   : > { %v10293_v42 = vpop.f32.mrb[239].mxu1  ;;  %10735 = vmatprep.mubr.msk.bf16.mxu0 %vm14694_vm10, %v9463_v35  ;;  %v8125_v0 = vsel %vm1163_vm8, %v8115_v29, %v8116_v48 }
 0xec0   : > { %v8107_v3 = vmax.f32 %v8099_v8, 0.0  ;;  %v8100_v38 = vadd.f32 %v15332_v14, %v8084_v53  ;;  %v8000_v34 = vadd.f32 %v10291_v6, %v15318_v18  ;;  %v10294_v13 = vadd.f32 %v10293_v42, %v10292_v4 }
 0xec1   : > { %v9451_v21 = vpack.c.bf16 %v8125_v0, %v8126_v46 }
 0xec2   : > { %v8141_v15 = vrot.slane %v8107_v3, 1  ;;  %v8108_v58 = vmax.f32 %v8100_v38, 0.0  ;;  %v8065_v52 = vadd.f32 %v15313_v31, %v8000_v34  ;;  %v8003_v26 = vadd.f32 %v10294_v13, %v15318_v18 }
 0xec3   : > { %v8117_v23 = vrot.slane %v8107_v3, 7 }
 0xec4   : > { %v8148_v60 = vsel %vm1212_vm1, %v8140_v20, %v8141_v15  ;;  %v8085_v1 = vmul.f32 %v15326_v27, %v8065_v52  ;;  %v8068_v43 = vadd.f32 %v15320_v19, %v8003_v26  ;;  %v8142_v24 = vrot.slane %v8108_v58, 1 }
 0xec5   : > { %v9467_v54 = vpack.c.bf16 %v8148_v60, %v8149_v47  ;;  %v8168_v32 = vpack.c.bf16 %v8108_v58, %v8107_v3  ;;  %v8118_v2 = vrot.slane %v8108_v58, 7  ;;  %v8124_v9 = vsel %vm1163_vm8, %v8116_v48, %v8117_v23 }
 0xec6   : > { %v8101_v11 = vadd.f32 %v15332_v14, %v8085_v1  ;;  %v8086_v31 = vmul.f32 %v15326_v27, %v8068_v43  ;;  %v8147_v18 = vsel %vm1212_vm1, %v8141_v15, %v8142_v24 }
 0xec7   : > { %10736 = vmatmul.mubr.msk.bf16.vlgmr.msra.gmra.mrb[208].mxu0 %vm14722_vm12, %v9467_v54  ;;  %v8123_v19 = vsel %vm1163_vm8, %v8117_v23, %v8118_v2 }
 0xec8   : > { %v8109_v37 = vmax.f32 %v8101_v11, 0.0  ;;  %v8102_v49 = vadd.f32 %v15332_v14, %v8086_v31  ;;  %v9455_v29 = vpack.c.bf16 %v8123_v19, %v8124_v9 }
 0xeca   : > { %v8110_v20 = vmax.f32 %v8102_v49, 0.0  ;;  %v8143_v51 = vrot.slane %v8109_v37, 1  ;;  %v8119_v55 = vrot.slane %v8109_v37, 7 }
 0xecc   : > { %v8120_v30 = vrot.slane %v8110_v20, 7  ;;  %v8146_v27 = vsel %vm1212_vm1, %v8142_v24, %v8143_v51  ;;  %v8144_v57 = vrot.slane %v8110_v20, 1  ;;  %v8171_v39 = vpack.c.bf16 %v8110_v20, %v8109_v37 }
 0xecd   : > { %v9471_v35 = vpack.c.bf16 %v8146_v27, %v8147_v18  ;;  %v8122_v41 = vsel %vm1163_vm8, %v8118_v2, %v8119_v55 }
 0xece   : > { %v8128_v48 = vsel %vm1163_vm8, %v8120_v30, %v8113_v28  ;;  %v8145_v14 = vsel %vm1212_vm1, %v8143_v51, %v8144_v57  ;;  %v8152_v46 = vsel %vm1212_vm1, %v8144_v57, %v8137_v12  ;;  %v8121_v8 = vsel %vm1163_vm8, %v8119_v55, %v8120_v30 }
 0xecf   : > { %10739 = vmatprep.mubr.msk.bf16.mxu0 %vm14740_vm15, %v9471_v35  ;;  %v9447_v53 = vpack.c.bf16 %v15352_v22, %v8128_v48  ;;  %v9475_v6 = vpack.c.bf16 %v8152_v46, %v8145_v14  ;;  %v9459_v4 = vpack.c.bf16 %v8121_v8, %v8122_v41 }
 0xed1   : > { %9448 = vmatmul.mubr.msk.bf16.vlgmr.msra.gmra.mrb[240].mxu1 %vm14491_vm0, %v9447_v53  ;;  %10740 = vmatmul.mubr.msk.bf16.gmra.mrb[212].mxu0 %vm14753_vm5, %v9475_v6 }
 0xed2   : > { %8412 = vmatprep.mubr.bf16.mxu1 %v8165_v62 }
 0xed9   : > { %9452 = vmatmul.mubr.msk.bf16.gmra.mrb[244].mxu1 %vm14559_vm2, %v9451_v21 }
 0xeda   : > { %8420 = vmatprep.mubr.bf16.mxu1 %v8168_v32 }
 0xee1   : > { %9456 = vmatmul.mubr.msk.bf16.gmra.mrb[248].mxu1 %vm14614_vm7, %v9455_v29 }
 0xee2   : > { %8428 = vmatprep.mubr.bf16.mxu1 %v8171_v39 }
 0xee9   : > { %9460 = vmatmul.mubr.msk.bf16.gmra.mrb[252].mxu1 %vm14621_vm6, %v9459_v4 }
 0xf9a   : > { %v10737_v59 = vpop.f32.mrb[208].mxu0 }
 0xf9b   : > { %v8471_v40 = vpop.f32.mrb[209].mxu0 }
 0xf9c   : > { %v10738_v16 = vpop.f32.mrb[210].mxu0 }
 0xf9d   : > { %v8474_v5 = vpop.f32.mrb[211].mxu0 }
 0xfa4   : > { %v10323_v28 = vpop.f32.mrb[240].mxu1  ;;  %v10741_v36 = vpop.f32.mrb[212].mxu0 }
 0xfa5   : > { %v10324_v12 = vpop.f32.mrb[241].mxu1  ;;  %v8487_v22 = vpop.f32.mrb[213].mxu0 }
 0xfa6   : > { %v10325_v62 = vadd.f32 %v10324_v12, %v10323_v28  ;;  %v10326_v7 = vpop.f32.mrb[242].mxu1  ;;  %v10742_v47 = vpop.f32.mrb[214].mxu0 }
 0xfa7   : > { %v10327_v42 = vpop.f32.mrb[243].mxu1  ;;  %v8490_v0 = vpop.f32.mrb[215].mxu0 }
 0xfa8   : > { %v8407_v45 = vadd.f32 %v10325_v62, %v9420_v61  ;;  %v10328_v3 = vadd.f32 %v10327_v42, %v10326_v7 }
 0xfaa   : > { %v8472_v38 = vadd.f32 %v8471_v40, %v8407_v45  ;;  %v8410_v34 = vadd.f32 %v10328_v3, %v9420_v61 }
 0xfac   : > { %v8502_v13 = vadd.f32 %v8472_v38, %v15185_v10  ;;  %v8475_v21 = vadd.f32 %v8474_v5, %v8410_v34  ;;  %v10329_v15 = vpop.f32.mrb[244].mxu1 }
 0xfad   : > { %v10330_v58 = vpop.f32.mrb[245].mxu1 }
 0xfae   : > { %8510 = vst [vmem:[%s15437_s6] sm:$0xff] %v8502_v13  ;;  %v8503_v52 = vadd.f32 %v8475_v21, %v15190_v63  ;;  %v10331_v26 = vadd.f32 %v10330_v58, %v10329_v15  ;;  %v10332_v23 = vpop.f32.mrb[246].mxu1 }
 0xfaf   : > { %v10333_v60 = vpop.f32.mrb[247].mxu1 }
 0xfb0   : > { %8511 = vst [vmem:[%s15437_s6 + $0x8] sm:$0xff] %v8503_v52  ;;  %v8415_v1 = vadd.f32 %v10331_v26, %v9420_v61  ;;  %v10334_v43 = vadd.f32 %v10333_v60, %v10332_v23 }
 0xfb2   : > { %v8480_v24 = vadd.f32 %v10737_v59, %v8415_v1  ;;  %v8418_v10 = vadd.f32 %v10334_v43, %v9420_v61 }
 0xfb4   : > { %v8504_v54 = vadd.f32 %v8480_v24, %v15204_v50  ;;  %v8483_v32 = vadd.f32 %v10738_v16, %v8418_v10  ;;  %v10335_v2 = vpop.f32.mrb[248].mxu1 }
 0xfb5   : > { %v10336_v9 = vpop.f32.mrb[249].mxu1 }
 0xfb6   : > { %8512 = vst [vmem:[%s15437_s6 + $0x10] sm:$0xff] %v8504_v54  ;;  %v8505_v11 = vadd.f32 %v8483_v32, %v15213_v44  ;;  %v10337_v31 = vadd.f32 %v10336_v9, %v10335_v2  ;;  %v10338_v63 = vpop.f32.mrb[250].mxu1 }
 0xfb7   : > { %v10339_v18 = vpop.f32.mrb[251].mxu1 }
 0xfb8   : > { %8513 = vst [vmem:[%s15437_s6 + $0x18] sm:$0xff] %v8505_v11  ;;  %v8423_v19 = vadd.f32 %v10337_v31, %v9420_v61  ;;  %v10340_v37 = vadd.f32 %v10339_v18, %v10338_v63 }
 0xfba   : > { %v8488_v49 = vadd.f32 %v8487_v22, %v8423_v19  ;;  %v8426_v29 = vadd.f32 %v10340_v37, %v9420_v61 }
 0xfbc   : > { %v8506_v50 = vadd.f32 %v8488_v49, %v15227_v25  ;;  %v8491_v20 = vadd.f32 %v8490_v0, %v8426_v29  ;;  %v10341_v51 = vpop.f32.mrb[252].mxu1 }
 0xfbd   : > { %v10342_v55 = vpop.f32.mrb[253].mxu1 }
 0xfbe   : > { %8514 = vst [vmem:[%s15437_s6 + $0x20] sm:$0xff] %v8506_v50  ;;  %v8507_v44 = vadd.f32 %v8491_v20, %v15236_v56  ;;  %v10343_v30 = vadd.f32 %v10342_v55, %v10341_v51  ;;  %v10344_v27 = vpop.f32.mrb[254].mxu1 }
 0xfbf   : > { %v10345_v57 = vpop.f32.mrb[255].mxu1 }
 0xfc0   : > { %8515 = vst [vmem:[%s15437_s6 + $0x28] sm:$0xff] %v8507_v44  ;;  %v8431_v39 = vadd.f32 %v10343_v30, %v9420_v61  ;;  %v10346_v35 = vadd.f32 %v10345_v57, %v10344_v27 }
 0xfc2   : > { %v8496_v41 = vadd.f32 %v10741_v36, %v8431_v39  ;;  %v8434_v48 = vadd.f32 %v10346_v35, %v9420_v61 }
 0xfc4   : > { %v8508_v25 = vadd.f32 %v8496_v41, %v15253_v17  ;;  %v8499_v14 = vadd.f32 %v10742_v47, %v8434_v48 }
 0xfc6   : > { %8516 = vst [vmem:[%s15437_s6 + $0x30] sm:$0xff] %v8508_v25  ;;  %v8509_v56 = vadd.f32 %v8499_v14, %v15261_v33 }
 0xfc8   : > { %8517 = vst [vmem:[%s15437_s6 + $0x38] sm:$0xff] %v8509_v56 }
 0xfc9   : > { %11385 = shalt.err (!%p11382_p8)
}
 0xfca   : > { %s11386_s6 = scalar_lea.hbm %s15456_s21, 1024  ;;  %s11390_s0 = scalar_lea.hbm %s15808_s20, 2048 }
 0xfcb   : > { %p11387_p4 = scmp.ne.s32.totalorder %s15456_s21, %s11386_s6  ;;  %p11391_p0 = scmp.lt.u32.totalorder %s15456_s21, %s15808_s20 }
 0xfcc   : > { %p11392_p5 = scmp.lt.u32.totalorder %s11390_s0, %s11386_s6  ;;  %p11394_p6 = scmp.lt.u32.totalorder %s11386_s6, %s15456_s21 }
 0xfcd   : > { %p11388_p10 = pnand %p11387_p4, %p15809_p9 }
 0xfce   : > { %p11393_p7 = por %p11392_p5, %p11391_p0 }
 0xfcf   : > { %p11389_p11 = pneg %p11388_p10 }
 0xfd0   : > { %p11395_p12 = por %p11394_p6, %p11393_p7 }
 0xfd2   : > { %p11396_p13 = pnand %p11395_p12, %p11389_p11 }
 0xfd4   : > { %11399 = shalt.err (!%p11396_p13)
}
 0xfd5   : > { %s11466_s14 = smov 128   ;;  %s11467_s13 = smov 8  }
 0xfd6   : > { %s15810_s2 = scalar_lea.sflag [#allocation4], %s11806_s10 }
 0xfd7   : > { %10769 = dma.vmem_to_hbm [thread:$0]  (%p15809_p9), %s15458_s9, 1024, %s15456_s21, %s15810_s2, %s11466_s14, %s11466_s14, %s11467_s13  }
 0xfd8 PF: > { %s8548_s30 = sand.u32 1, %s11438_s25   ;;  %p15811_p1 = scmp.ne.s32.totalorder %s15596_s17, 0 }
 0xfd9   : > { %p15812_p3 = scmp.ge.s32.totalorder %s11450_s28, 2  ;;  %s8549_s6 = scalar_lea.sflag [#allocation4], %s8548_s30 }
 0xfdb   : > { %p10795_p2 = pnand %p15812_p3, %p15811_p1 }
 0xfdd   : > { %11433 = dma.done.wait (!%p10795_p2), %s8549_s6, 1024  }
 0xfde   : > { %11435 = vsyncadd (!%p10795_p2), %s8549_s6, 4294966272  ;;  %p29_p8 = scmp.ge.s32.totalorder %s11727_s16, 4   ;;  %s15813_s25 = smov %s11442_s26 }
 0xfdf   : > { %s15814_s26 = smov %s11446_s27  ;;  %s15815_s27 = smov %s11738_s19 }
 0xfe0   : > { %s15816_s28 = smov %s11727_s16  ;;  %31 = sbr.rel (!%p29_p8) target bundleno = 17 (0x11), region = 181 }
 0xfe7   :  { %8554 = vsyncpa [#allocation3], 1 }
 0xfe8   :  { %8556 = vsyncpa [#allocation3 + $0x1], 1 }
 0xfe9   :  { %8557 = vsyncpa [#allocation6], 1 }
 0xfea   :  { %8558 = vsyncpa [#allocation9], 1 }
 0xfeb   :  { %8559 = vsyncpa [#allocation12], 1 }
 0xfec   :  { %8560 = vsyncpa [#allocation4], 1 }
 0xfed   :  { %8562 = vsyncpa [#allocation4 + $0x1], 1 }

</bundles_post_ra>
